<compile_context>
chip_gen: v5e
topology: v5e:2x2
jax: 0.10.0
libtpu: 0.0.40
codegen_flags: <defaults>
</compile_context>

<pallas_src>
import collections
import functools
import math

import jax
import jax.numpy as jnp
from jax import lax
from jax.experimental import pallas as pl
from jax.experimental.pallas import tpu as pltpu


def _round_up(x, m):
    return (x + m - 1) // m * m


# ---------------------------------------------------------------------------
# Pallas kernel 1: M-tiled matmul, full-K / full-N blocks, bf16 MXU inputs,
# f32 accumulation, fused bias (+ optional ReLU), configurable output dtype.
# ---------------------------------------------------------------------------

def _mm_kernel(x_ref, w_ref, b_ref, o_ref, *, act):
    r = jnp.dot(x_ref[...], w_ref[...], preferred_element_type=jnp.float32)
    r = r + b_ref[...]                      # (tm, N) + (1, N)
    if act == "relu":
        r = jnp.maximum(r, 0.0)
    o_ref[...] = r.astype(o_ref.dtype)


def matmul_bias_act(x, w, b, *, act=None, out_dtype=jnp.float32):
    """x:(M,K) @ w:(K,N) + b:(1,N).  w / b are pre-cast bf16 / f32 params."""
    M, K = x.shape
    N = w.shape[1]
    Mp = _round_up(M, 8)
    tm = next((c for c in (512, 256, 128) if Mp % c == 0), Mp)
    xp = x if Mp == M else jnp.pad(x, ((0, Mp - M), (0, 0)))
    xp = xp.astype(jnp.bfloat16)

    out = pl.pallas_call(
        functools.partial(_mm_kernel, act=act),
        out_shape=jax.ShapeDtypeStruct((Mp, N), out_dtype),
        grid_spec=pltpu.PrefetchScalarGridSpec(
            num_scalar_prefetch=0,
            grid=(Mp // tm,),
            in_specs=[
                pl.BlockSpec((tm, K), lambda i: (i, 0)),
                pl.BlockSpec((K, N), lambda i: (0, 0)),   # resident across grid
                pl.BlockSpec((1, N), lambda i: (0, 0)),
            ],
            out_specs=pl.BlockSpec((tm, N), lambda i: (i, 0)),
        ),
        compiler_params=pltpu.CompilerParams(
            dimension_semantics=("parallel",),
            vmem_limit_bytes=64 * 1024 * 1024),
    )(xp, w, b)
    return out if Mp == M else out[:M]


# ---------------------------------------------------------------------------
# Pallas kernel 2: fused windowed-relative multi-head attention, one batch
# element per grid step, heads looped in-kernel over a lane-dense QKV block.
# ---------------------------------------------------------------------------

def _attn_kernel(qkv_ref, mask_ref, ek_ref, ev_ref, o_ref, *,
                 n_heads, d_head, d_model, window, scale):
    t = qkv_ref.shape[1]
    qkv = qkv_ref[0]                                   # (Tp, 3D) bf16
    key_valid = mask_ref[0] > 0.0                      # (1, Tp)  broadcast rows
    ek = ek_ref[0]                                     # (2w+1, Dh) bf16, * 1/sqrt(Dh)
    ev = ev_ref[0].astype(jnp.float32)                 # (2w+1, Dh)

    row = lax.broadcasted_iota(jnp.int32, (t, t), 0)
    col = lax.broadcasted_iota(jnp.int32, (t, t), 1)
    rel = col - row                                    # key_pos - query_pos

    outs = []
    for h in range(n_heads):
        q = qkv[:, h * d_head:(h + 1) * d_head]
        k = qkv[:, d_model + h * d_head: d_model + (h + 1) * d_head]
        v = qkv[:, 2 * d_model + h * d_head: 2 * d_model + (h + 1) * d_head]

        s = lax.dot_general(q, k, (((1,), (1,)), ((), ())),
                            preferred_element_type=jnp.float32) * scale
        # Banded relative-key bias: bias[i,j] = (q[i]/sqrt(Dh)) . E_k[j-i+w]
        band = lax.dot_general(q, ek, (((1,), (1,)), ((), ())),
                               preferred_element_type=jnp.float32)     # (Tp, 2w+1)
        for r in range(2 * window + 1):
            s = s + jnp.where(rel == (r - window), band[:, r:r + 1], 0.0)

        s = jnp.where(key_valid, s, -1e4)              # masked_fill(mask==0, -1e4)
        m = jnp.max(s, axis=-1, keepdims=True)
        e = jnp.exp(s - m)
        l = jnp.sum(e, axis=-1, keepdims=True)
        p = e * pl.reciprocal(l, approx=True)

        ctx = jnp.dot(p.astype(v.dtype), v, preferred_element_type=jnp.float32)
        # Banded relative-value term: ctx[i] += sum_d p[i, i+d] * E_v[d+w]
        for r in range(2 * window + 1):
            diag = jnp.sum(jnp.where(rel == (r - window), p, 0.0),
                           axis=-1, keepdims=True)                     # (Tp, 1)
            ctx = ctx + diag * ev[r:r + 1, :]
        outs.append(ctx)

    o_ref[0] = jnp.concatenate(outs, axis=-1).astype(o_ref.dtype)      # (Tp, D)


def attention_core(qkv, key_mask, ek, ev, *, n_heads, window):
    """qkv:(B,Tp,3D) bf16, key_mask:(B,1,Tp) f32, ek/ev:(1,2w+1,Dh) bf16."""
    B, Tp, three_d = qkv.shape
    d_model = three_d // 3
    d_head = d_model // n_heads
    wt = ek.shape[1]
    kernel = functools.partial(
        _attn_kernel, n_heads=n_heads, d_head=d_head, d_model=d_model,
        window=window, scale=1.0 / math.sqrt(d_head))
    return pl.pallas_call(
        kernel,
        out_shape=jax.ShapeDtypeStruct((B, Tp, d_model), jnp.bfloat16),
        grid_spec=pltpu.PrefetchScalarGridSpec(
            num_scalar_prefetch=0,
            grid=(B,),
            in_specs=[
                pl.BlockSpec((1, Tp, three_d), lambda b: (b, 0, 0)),
                pl.BlockSpec((1, 1, Tp), lambda b: (b, 0, 0)),
                pl.BlockSpec((1, wt, d_head), lambda b: (0, 0, 0)),
                pl.BlockSpec((1, wt, d_head), lambda b: (0, 0, 0)),
            ],
            out_specs=pl.BlockSpec((1, Tp, d_model), lambda b: (b, 0, 0)),
        ),
        compiler_params=pltpu.CompilerParams(
            dimension_semantics=("parallel",),
            vmem_limit_bytes=64 * 1024 * 1024),
    )(qkv, key_mask, ek, ev)


# ---------------------------------------------------------------------------
# JAX glue (elementwise / layout only; every FLOP-heavy op is a Pallas kernel)
# ---------------------------------------------------------------------------

def _conv1d_patches(x, ks):
    """'same'-padded conv patches from static shifted slices (no gather)."""
    if ks == 1:
        return x
    T = x.shape[1]
    pad_l, pad_r = (ks - 1) // 2, ks // 2
    xp = jnp.pad(x, ((0, 0), (pad_l, pad_r), (0, 0)))
    return jnp.concatenate(
        [lax.slice_in_dim(xp, j, j + T, axis=1) for j in range(ks)], axis=-1)


def layer_norm(x, gamma, beta, eps=1e-5):
    mean = jnp.mean(x, axis=-1, keepdims=True)
    var = jnp.mean(jnp.square(x - mean), axis=-1, keepdims=True)
    return (x - mean) * lax.rsqrt(var + eps) * gamma + beta


Config = collections.namedtuple("Config", ["hidden", "heads", "window",
                                           "kernel_size"])


@functools.partial(jax.jit, static_argnames=("cfg",))
def text_encoder_forward(prep, x_ids, x_lengths, *, cfg):
    D, H, W, ks = cfg.hidden, cfg.heads, cfg.window, cfg.kernel_size
    B, T = x_ids.shape
    Tp = _round_up(T, 128)

    # Embedding * sqrt(H); pad T -> Tp once, all layers run at Tp.
    h = prep["emb"][x_ids] * math.sqrt(D)                    # (B, T, D) f32
    h = jnp.pad(h, ((0, 0), (0, Tp - T), (0, 0)))
    mask = (jnp.arange(Tp)[None, :] < x_lengths[:, None]).astype(jnp.float32)
    mask3 = mask[:, :, None]                                 # (B, Tp, 1)
    key_mask = mask[:, None, :]                              # (B, 1, Tp)
    x = h * mask3          # == einsum('btd,but->bdt') modulo the final transpose

    for lp in prep["layers"]:
        # -------- windowed relative multi-head attention --------
        qkv = matmul_bias_act(x.reshape(B * Tp, D), lp["w_qkv"], lp["b_qkv"],
                              out_dtype=jnp.bfloat16).reshape(B, Tp, 3 * D)
        ctx = attention_core(qkv, key_mask, lp["ek"], lp["ev"],
                             n_heads=H, window=W)
        y = matmul_bias_act(ctx.reshape(B * Tp, D), lp["w_o"], lp["b_o"],
                            out_dtype=jnp.float32).reshape(B, Tp, D)
        x = layer_norm(x + y, lp["ln1_g"], lp["ln1_b"])

        # -------- FFN: two 'same' conv1d as patch matmuls, fused ReLU --------
        p1 = _conv1d_patches((x * mask3).astype(jnp.bfloat16), ks)
        hmid = matmul_bias_act(p1.reshape(B * Tp, -1), lp["w1"], lp["b1"],
                               act="relu", out_dtype=jnp.bfloat16)
        hmid = hmid.reshape(B, Tp, -1) * mask3.astype(jnp.bfloat16)
        p2 = _conv1d_patches(hmid, ks)
        y = matmul_bias_act(p2.reshape(B * Tp, -1), lp["w2"], lp["b2"],
                            out_dtype=jnp.float32).reshape(B, Tp, D)
        x = layer_norm(x + y * mask3, lp["ln2_g"], lp["ln2_b"])

    x = x * mask3
    x_out = jnp.transpose(x[:, :T, :], (0, 2, 1))            # (B, D, T)
    x_mask = mask[:, None, :T]                               # (B, 1, T)
    return x_out, x_mask


# ---------------------------------------------------------------------------
# Parameter construction + one-time kernel-friendly preparation
# ---------------------------------------------------------------------------

def init_params(key, *, n_vocab, hidden_channels, filter_channels, n_heads,
                n_layers, kernel_size, window_size=4):
    D = hidden_channels
    Dh = D // n_heads

    def nxt():
        nonlocal key
        key, sub = jax.random.split(key)
        return sub

    def xavier(shape):
        bound = math.sqrt(6.0 / (shape[0] + shape[1]))
        return jax.random.uniform(nxt(), shape, jnp.float32, -bound, bound)

    def conv_w(cout, cin, ks):
        bound = 1.0 / math.sqrt(cin * ks)
        return jax.random.uniform(nxt(), (cout, cin, ks), jnp.float32,
                                  -bound, bound)

    def conv_b(cout, cin, ks):
        bound = 1.0 / math.sqrt(cin * ks)
        return jax.random.uniform(nxt(), (cout,), jnp.float32, -bound, bound)

    rel_std = Dh ** (-0.5)
    layers = []
    for _ in range(n_layers):
        layers.append({
            "attn": {
                "wq": xavier((D, D)), "bq": jnp.zeros((D,), jnp.float32),
                "wk": xavier((D, D)), "bk": jnp.zeros((D,), jnp.float32),
                "wv": xavier((D, D)), "bv": jnp.zeros((D,), jnp.float32),
                "wo": xavier((D, D)), "bo": jnp.zeros((D,), jnp.float32),
                "emb_rel_k": rel_std * jax.random.normal(
                    nxt(), (1, 2 * window_size + 1, Dh), jnp.float32),
                "emb_rel_v": rel_std * jax.random.normal(
                    nxt(), (1, 2 * window_size + 1, Dh), jnp.float32),
            },
            "ffn": {
                "w1": conv_w(filter_channels, D, kernel_size),
                "b1": conv_b(filter_channels, D, kernel_size),
                "w2": conv_w(D, filter_channels, kernel_size),
                "b2": conv_b(D, filter_channels, kernel_size),
            },
            "ln1_g": jnp.ones((D,), jnp.float32),
            "ln1_b": jnp.zeros((D,), jnp.float32),
            "ln2_g": jnp.ones((D,), jnp.float32),
            "ln2_b": jnp.zeros((D,), jnp.float32),
        })

    params = {
        "emb": (D ** -0.5) * jax.random.normal(nxt(), (n_vocab, D), jnp.float32),
        # TODO(synk): emb_t / proj exist on the PyTorch module but are unused
        # in forward(); intentionally omitted.
        "layers": layers,
        "config": {"hidden_channels": D, "n_heads": n_heads,
                   "window_size": window_size, "kernel_size": kernel_size},
    }
    return params, key


def prepare_params(params):
    """One-time prep: fuse QKV, transpose conv weights to matmul layout,
    pre-cast MXU operands to bf16, fold 1/sqrt(Dh) into the rel-key table."""
    cfg = params["config"]
    D = cfg["hidden_channels"]
    Dh = D // cfg["n_heads"]
    scale = 1.0 / math.sqrt(Dh)
    layers = []
    for lp in params["layers"]:
        a, f = lp["attn"], lp["ffn"]
        ks = f["w1"].shape[2]
        fc = f["w1"].shape[0]
        layers.append({
            "w_qkv": jnp.concatenate([a["wq"], a["wk"], a["wv"]],
                                     axis=1).astype(jnp.bfloat16),
            "b_qkv": jnp.concatenate([a["bq"], a["bk"], a["bv"]]
                                     )[None, :].astype(jnp.float32),
            "w_o": a["wo"].astype(jnp.bfloat16),
            "b_o": a["bo"][None, :].astype(jnp.float32),
            "ek": (a["emb_rel_k"] * scale).astype(jnp.bfloat16),
            "ev": a["emb_rel_v"].astype(jnp.bfloat16),
            "w1": jnp.transpose(f["w1"], (2, 1, 0)).reshape(ks * D, fc
                                                            ).astype(jnp.bfloat16),
            "b1": f["b1"][None, :].astype(jnp.float32),
            "w2": jnp.transpose(f["w2"], (2, 1, 0)).reshape(ks * fc, D
                                                            ).astype(jnp.bfloat16),
            "b2": f["b2"][None, :].astype(jnp.float32),
            "ln1_g": lp["ln1_g"], "ln1_b": lp["ln1_b"],
            "ln2_g": lp["ln2_g"], "ln2_b": lp["ln2_b"],
        })
    return {"emb": params["emb"], "layers": layers}


# ---------------------------------------------------------------------------
# main
# ---------------------------------------------------------------------------

if __name__ == "__main__":
    key = jax.random.PRNGKey(0)

    n_vocab, out_channels = 40, 4        # out_channels only feeds the unused proj
    hidden_channels, filter_channels = 32, 64
    n_heads, n_layers, kernel_size, p_dropout = 2, 2, 3, 0.0
    window_size = 4

    params, key = init_params(
        key, n_vocab=n_vocab, hidden_channels=hidden_channels,
        filter_channels=filter_channels, n_heads=n_heads, n_layers=n_layers,
        kernel_size=kernel_size, window_size=window_size)
    prep = prepare_params(params)
    cfg = Config(hidden=hidden_channels, heads=n_heads, window=window_size,
                 kernel_size=kernel_size)

    B, T = 2, 16
    key, k_ids = jax.random.split(key)
    x_ids = jax.random.randint(k_ids, (B, T), 0, n_vocab, dtype=jnp.int32)
    x_lengths = jnp.array([T, 11], dtype=jnp.int32)

    x_out, x_mask = text_encoder_forward(prep, x_ids, x_lengths, cfg=cfg)
    jax.block_until_ready((x_out, x_mask))

    assert x_out.shape == (B, hidden_channels, T)
    assert x_mask.shape == (B, 1, T)
    assert bool(jnp.all(jnp.isfinite(x_out)))
    print("KERNEL_OK")
</pallas_src>

<mosaic_0001>
module attributes {stable_mosaic.version = 11 : i64} {
  func.func @_mm_kernel(%arg0: i32, %arg1: memref<256x32xbf16, #tpu.memory_space<vmem>>, %arg2: memref<32x96xbf16, #tpu.memory_space<vmem>>, %arg3: memref<1x96xf32, #tpu.memory_space<vmem>>, %arg4: memref<256x96xbf16, #tpu.memory_space<vmem>>) attributes {dimension_semantics = [#tpu.dimension_semantics<parallel>], iteration_bounds = array<i64: 1>, scalar_prefetch = 0 : i64, scratch_operands = 0 : i64, tpu.core_type = #tpu.core_type<tc>, window_params = [{transform_indices = @transform_0, window_bounds = array<i64: 256, 32>}, {pipeline_mode = #tpu.pipeline_mode<synchronous>, transform_indices = @transform_1, window_bounds = array<i64: 32, 96>}, {pipeline_mode = #tpu.pipeline_mode<synchronous>, transform_indices = @transform_2, window_bounds = array<i64: 1, 96>}, {transform_indices = @transform_3, window_bounds = array<i64: 256, 96>}]} {
    %c0 = arith.constant 0 : index
    %c0_0 = arith.constant 0 : index
    %0 = vector.load %arg1[%c0, %c0_0] : memref<256x32xbf16, #tpu.memory_space<vmem>>, vector<256x32xbf16>
    %c0_1 = arith.constant 0 : index
    %c0_2 = arith.constant 0 : index
    %1 = vector.load %arg2[%c0_1, %c0_2] : memref<32x96xbf16, #tpu.memory_space<vmem>>, vector<32x96xbf16>
    %cst = arith.constant dense<0.000000e+00> : vector<256x96xf32>
    %2 = tpu.matmul %0, %1, %cst {dimension_numbers = #tpu.dot_dimension_numbers<[1], [0], [0], [1], [0, 0, 1, 1], [], []>} : vector<256x32xbf16>, vector<32x96xbf16>, vector<256x96xf32> -> vector<256x96xf32>
    %c0_3 = arith.constant 0 : index
    %c0_4 = arith.constant 0 : index
    %3 = vector.load %arg3[%c0_3, %c0_4] : memref<1x96xf32, #tpu.memory_space<vmem>>, vector<1x96xf32>
    %4 = vector.broadcast %3 : vector<1x96xf32> to vector<256x96xf32>
    %5 = arith.addf %2, %4 : vector<256x96xf32>
    %6 = arith.truncf %5 : vector<256x96xf32> to vector<256x96xbf16>
    %c0_5 = arith.constant 0 : index
    %c0_6 = arith.constant 0 : index
    %7 = vector.load %arg4[%c0_5, %c0_6] : memref<256x96xbf16, #tpu.memory_space<vmem>>, vector<256x96xbf16>
    tpu.vector_store %arg4[%c0_5, %c0_6], %6 {strides = array<i32>} : memref<256x96xbf16, #tpu.memory_space<vmem>>, vector<256x96xbf16>,
    return
  }
  func.func @transform_0(%arg0: i32) -> (i32, i32) {
    %c0_i32 = arith.constant 0 : i32
    %c0_i32_0 = arith.constant 0 : i32
    return %arg0, %c0_i32 : i32, i32
  }
  func.func @transform_1(%arg0: i32) -> (i32, i32) {
    %c0_i32 = arith.constant 0 : i32
    %c0_i32_0 = arith.constant 0 : i32
    %c0_i32_1 = arith.constant 0 : i32
    return %c0_i32, %c0_i32_0 : i32, i32
  }
  func.func @transform_2(%arg0: i32) -> (i32, i32) {
    %c0_i32 = arith.constant 0 : i32
    %c0_i32_0 = arith.constant 0 : i32
    %c0_i32_1 = arith.constant 0 : i32
    return %c0_i32, %c0_i32_0 : i32, i32
  }
  func.func @transform_3(%arg0: i32) -> (i32, i32) {
    %c0_i32 = arith.constant 0 : i32
    %c0_i32_0 = arith.constant 0 : i32
    return %arg0, %c0_i32 : i32, i32
  }
}

module attributes {stable_mosaic.version = 11 : i64} {
  func.func @_attn_kernel(%arg0: i32, %arg1: memref<1x128x96xbf16, #tpu.memory_space<vmem>>, %arg2: memref<1x1x128xf32, #tpu.memory_space<vmem>>, %arg3: memref<1x9x16xbf16, #tpu.memory_space<vmem>>, %arg4: memref<1x9x16xbf16, #tpu.memory_space<vmem>>, %arg5: memref<1x128x32xbf16, #tpu.memory_space<vmem>>) attributes {dimension_semantics = [#tpu.dimension_semantics<parallel>], iteration_bounds = array<i64: 2>, scalar_prefetch = 0 : i64, scratch_operands = 0 : i64, tpu.core_type = #tpu.core_type<tc>, window_params = [{transform_indices = @transform_0, window_bounds = array<i64: 1, 128, 96>}, {transform_indices = @transform_1, window_bounds = array<i64: 1, 1, 128>}, {pipeline_mode = #tpu.pipeline_mode<synchronous>, transform_indices = @transform_2, window_bounds = array<i64: 1, 9, 16>}, {pipeline_mode = #tpu.pipeline_mode<synchronous>, transform_indices = @transform_3, window_bounds = array<i64: 1, 9, 16>}, {transform_indices = @transform_4, window_bounds = array<i64: 1, 128, 32>}]} {
    %c0 = arith.constant 0 : index
    %c0_0 = arith.constant 0 : index
    %c0_1 = arith.constant 0 : index
    %0 = vector.load %arg1[%c0, %c0_0, %c0_1] : memref<1x128x96xbf16, #tpu.memory_space<vmem>>, vector<1x128x96xbf16>
    %1 = vector.shape_cast %0 : vector<1x128x96xbf16> to vector<128x96xbf16>
    %c0_2 = arith.constant 0 : index
    %c0_3 = arith.constant 0 : index
    %c0_4 = arith.constant 0 : index
    %2 = vector.load %arg2[%c0_2, %c0_3, %c0_4] : memref<1x1x128xf32, #tpu.memory_space<vmem>>, vector<1x1x128xf32>
    %3 = vector.shape_cast %2 : vector<1x1x128xf32> to vector<1x128xf32>
    %cst = arith.constant 0.000000e+00 : f32
    %4 = vector.broadcast %cst : f32 to vector<1x128xf32>
    %5 = arith.cmpf ogt, %3, %4 : vector<1x128xf32>
    %c0_5 = arith.constant 0 : index
    %c0_6 = arith.constant 0 : index
    %c0_7 = arith.constant 0 : index
    %6 = vector.load %arg3[%c0_5, %c0_6, %c0_7] : memref<1x9x16xbf16, #tpu.memory_space<vmem>>, vector<1x9x16xbf16>
    %7 = vector.shape_cast %6 : vector<1x9x16xbf16> to vector<9x16xbf16>
    %c0_8 = arith.constant 0 : index
    %c0_9 = arith.constant 0 : index
    %c0_10 = arith.constant 0 : index
    %8 = vector.load %arg4[%c0_8, %c0_9, %c0_10] : memref<1x9x16xbf16, #tpu.memory_space<vmem>>, vector<1x9x16xbf16>
    %9 = vector.shape_cast %8 : vector<1x9x16xbf16> to vector<9x16xbf16>
    %10 = arith.extf %9 : vector<9x16xbf16> to vector<9x16xf32>
    %11 = tpu.iota {dimensions = array<i32: 0>} : vector<128x128xi32>
    %12 = tpu.iota {dimensions = array<i32: 1>} : vector<128x128xi32>
    %13 = arith.subi %12, %11 : vector<128x128xi32>
    %14 = vector.extract_strided_slice %1 {offsets = [0, 0], sizes = [128, 16], strides = [1, 1]} : vector<128x96xbf16> to vector<128x16xbf16>
    %15 = vector.extract_strided_slice %1 {offsets = [0, 32], sizes = [128, 16], strides = [1, 1]} : vector<128x96xbf16> to vector<128x16xbf16>
    %16 = vector.extract_strided_slice %1 {offsets = [0, 64], sizes = [128, 16], strides = [1, 1]} : vector<128x96xbf16> to vector<128x16xbf16>
    %cst_11 = arith.constant dense<0.000000e+00> : vector<128x128xf32>
    %17 = tpu.matmul %14, %15, %cst_11 {dimension_numbers = #tpu.dot_dimension_numbers<[1], [1], [0], [0], [0, 0, 1, 0], [], []>} : vector<128x16xbf16>, vector<128x16xbf16>, vector<128x128xf32> -> vector<128x128xf32>
    %cst_12 = arith.constant 2.500000e-01 : f32
    %18 = vector.broadcast %cst_12 : f32 to vector<128x128xf32>
    %19 = arith.mulf %17, %18 : vector<128x128xf32>
    %cst_13 = arith.constant dense<0.000000e+00> : vector<128x9xf32>
    %20 = tpu.matmul %14, %7, %cst_13 {dimension_numbers = #tpu.dot_dimension_numbers<[1], [1], [0], [0], [0, 0, 1, 0], [], []>} : vector<128x16xbf16>, vector<9x16xbf16>, vector<128x9xf32> -> vector<128x9xf32>
    %c-4_i32 = arith.constant -4 : i32
    %21 = vector.broadcast %c-4_i32 : i32 to vector<128x128xi32>
    %22 = arith.cmpi eq, %13, %21 : vector<128x128xi32>
    %23 = vector.extract_strided_slice %20 {offsets = [0, 0], sizes = [128, 1], strides = [1, 1]} : vector<128x9xf32> to vector<128x1xf32>
    %cst_14 = arith.constant 0.000000e+00 : f32
    %24 = vector.shape_cast %23 : vector<128x1xf32> to vector<128x1xf32>
    %25 = vector.broadcast %24 : vector<128x1xf32> to vector<128x128xf32>
    %26 = vector.broadcast %cst_14 : f32 to vector<128x128xf32>
    %27 = arith.select %22, %25, %26 : vector<128x128xi1>, vector<128x128xf32>
    %28 = arith.addf %19, %27 : vector<128x128xf32>
    %c-3_i32 = arith.constant -3 : i32
    %29 = vector.broadcast %c-3_i32 : i32 to vector<128x128xi32>
    %30 = arith.cmpi eq, %13, %29 : vector<128x128xi32>
    %31 = vector.extract_strided_slice %20 {offsets = [0, 1], sizes = [128, 1], strides = [1, 1]} : vector<128x9xf32> to vector<128x1xf32>
    %cst_15 = arith.constant 0.000000e+00 : f32
    %32 = vector.shape_cast %31 : vector<128x1xf32> to vector<128x1xf32>
    %33 = vector.broadcast %32 : vector<128x1xf32> to vector<128x128xf32>
    %34 = vector.broadcast %cst_15 : f32 to vector<128x128xf32>
    %35 = arith.select %30, %33, %34 : vector<128x128xi1>, vector<128x128xf32>
    %36 = arith.addf %28, %35 : vector<128x128xf32>
    %c-2_i32 = arith.constant -2 : i32
    %37 = vector.broadcast %c-2_i32 : i32 to vector<128x128xi32>
    %38 = arith.cmpi eq, %13, %37 : vector<128x128xi32>
    %39 = vector.extract_strided_slice %20 {offsets = [0, 2], sizes = [128, 1], strides = [1, 1]} : vector<128x9xf32> to vector<128x1xf32>
    %cst_16 = arith.constant 0.000000e+00 : f32
    %40 = vector.shape_cast %39 : vector<128x1xf32> to vector<128x1xf32>
    %41 = vector.broadcast %40 : vector<128x1xf32> to vector<128x128xf32>
    %42 = vector.broadcast %cst_16 : f32 to vector<128x128xf32>
    %43 = arith.select %38, %41, %42 : vector<128x128xi1>, vector<128x128xf32>
    %44 = arith.addf %36, %43 : vector<128x128xf32>
    %c-1_i32 = arith.constant -1 : i32
    %45 = vector.broadcast %c-1_i32 : i32 to vector<128x128xi32>
    %46 = arith.cmpi eq, %13, %45 : vector<128x128xi32>
    %47 = vector.extract_strided_slice %20 {offsets = [0, 3], sizes = [128, 1], strides = [1, 1]} : vector<128x9xf32> to vector<128x1xf32>
    %cst_17 = arith.constant 0.000000e+00 : f32
    %48 = vector.shape_cast %47 : vector<128x1xf32> to vector<128x1xf32>
    %49 = vector.broadcast %48 : vector<128x1xf32> to vector<128x128xf32>
    %50 = vector.broadcast %cst_17 : f32 to vector<128x128xf32>
    %51 = arith.select %46, %49, %50 : vector<128x128xi1>, vector<128x128xf32>
    %52 = arith.addf %44, %51 : vector<128x128xf32>
    %c0_i32 = arith.constant 0 : i32
    %53 = vector.broadcast %c0_i32 : i32 to vector<128x128xi32>
    %54 = arith.cmpi eq, %13, %53 : vector<128x128xi32>
    %55 = vector.extract_strided_slice %20 {offsets = [0, 4], sizes = [128, 1], strides = [1, 1]} : vector<128x9xf32> to vector<128x1xf32>
    %cst_18 = arith.constant 0.000000e+00 : f32
    %56 = vector.shape_cast %55 : vector<128x1xf32> to vector<128x1xf32>
    %57 = vector.broadcast %56 : vector<128x1xf32> to vector<128x128xf32>
    %58 = vector.broadcast %cst_18 : f32 to vector<128x128xf32>
    %59 = arith.select %54, %57, %58 : vector<128x128xi1>, vector<128x128xf32>
    %60 = arith.addf %52, %59 : vector<128x128xf32>
    %c1_i32 = arith.constant 1 : i32
    %61 = vector.broadcast %c1_i32 : i32 to vector<128x128xi32>
    %62 = arith.cmpi eq, %13, %61 : vector<128x128xi32>
    %63 = vector.extract_strided_slice %20 {offsets = [0, 5], sizes = [128, 1], strides = [1, 1]} : vector<128x9xf32> to vector<128x1xf32>
    %cst_19 = arith.constant 0.000000e+00 : f32
    %64 = vector.shape_cast %63 : vector<128x1xf32> to vector<128x1xf32>
    %65 = vector.broadcast %64 : vector<128x1xf32> to vector<128x128xf32>
    %66 = vector.broadcast %cst_19 : f32 to vector<128x128xf32>
    %67 = arith.select %62, %65, %66 : vector<128x128xi1>, vector<128x128xf32>
    %68 = arith.addf %60, %67 : vector<128x128xf32>
    %c2_i32 = arith.constant 2 : i32
    %69 = vector.broadcast %c2_i32 : i32 to vector<128x128xi32>
    %70 = arith.cmpi eq, %13, %69 : vector<128x128xi32>
    %71 = vector.extract_strided_slice %20 {offsets = [0, 6], sizes = [128, 1], strides = [1, 1]} : vector<128x9xf32> to vector<128x1xf32>
    %cst_20 = arith.constant 0.000000e+00 : f32
    %72 = vector.shape_cast %71 : vector<128x1xf32> to vector<128x1xf32>
    %73 = vector.broadcast %72 : vector<128x1xf32> to vector<128x128xf32>
    %74 = vector.broadcast %cst_20 : f32 to vector<128x128xf32>
    %75 = arith.select %70, %73, %74 : vector<128x128xi1>, vector<128x128xf32>
    %76 = arith.addf %68, %75 : vector<128x128xf32>
    %c3_i32 = arith.constant 3 : i32
    %77 = vector.broadcast %c3_i32 : i32 to vector<128x128xi32>
    %78 = arith.cmpi eq, %13, %77 : vector<128x128xi32>
    %79 = vector.extract_strided_slice %20 {offsets = [0, 7], sizes = [128, 1], strides = [1, 1]} : vector<128x9xf32> to vector<128x1xf32>
    %cst_21 = arith.constant 0.000000e+00 : f32
    %80 = vector.shape_cast %79 : vector<128x1xf32> to vector<128x1xf32>
    %81 = vector.broadcast %80 : vector<128x1xf32> to vector<128x128xf32>
    %82 = vector.broadcast %cst_21 : f32 to vector<128x128xf32>
    %83 = arith.select %78, %81, %82 : vector<128x128xi1>, vector<128x128xf32>
    %84 = arith.addf %76, %83 : vector<128x128xf32>
    %c4_i32 = arith.constant 4 : i32
    %85 = vector.broadcast %c4_i32 : i32 to vector<128x128xi32>
    %86 = arith.cmpi eq, %13, %85 : vector<128x128xi32>
    %87 = vector.extract_strided_slice %20 {offsets = [0, 8], sizes = [128, 1], strides = [1, 1]} : vector<128x9xf32> to vector<128x1xf32>
    %cst_22 = arith.constant 0.000000e+00 : f32
    %88 = vector.shape_cast %87 : vector<128x1xf32> to vector<128x1xf32>
    %89 = vector.broadcast %88 : vector<128x1xf32> to vector<128x128xf32>
    %90 = vector.broadcast %cst_22 : f32 to vector<128x128xf32>
    %91 = arith.select %86, %89, %90 : vector<128x128xi1>, vector<128x128xf32>
    %92 = arith.addf %84, %91 : vector<128x128xf32>
    %cst_23 = arith.constant -1.000000e+04 : f32
    %93 = vector.shape_cast %5 : vector<1x128xi1> to vector<1x128xi1>
    %94 = vector.broadcast %93 : vector<1x128xi1> to vector<128x128xi1>
    %95 = vector.broadcast %cst_23 : f32 to vector<128x128xf32>
    %96 = arith.select %94, %92, %95 : vector<128x128xi1>, vector<128x128xf32>
    %cst_24 = arith.constant dense<0xFF800000> : vector<128xf32>
    %97 = vector.multi_reduction <maximumf>, %96, %cst_24 [1] : vector<128x128xf32> to vector<128xf32>
    %98 = vector.shape_cast %97 : vector<128xf32> to vector<128x1xf32>
    %99 = vector.broadcast %98 : vector<128x1xf32> to vector<128x128xf32>
    %100 = arith.subf %96, %99 : vector<128x128xf32>
    %101 = math.exp %100 : vector<128x128xf32>
    %cst_25 = arith.constant dense<0.000000e+00> : vector<128xf32>
    %102 = vector.multi_reduction <add>, %101, %cst_25 [1] : vector<128x128xf32> to vector<128xf32>
    %103 = vector.shape_cast %102 : vector<128xf32> to vector<128x1xf32>
    %104 = tpu.reciprocal %103 {approx = true} : vector<128x1xf32> -> vector<128x1xf32>
    %105 = vector.broadcast %104 : vector<128x1xf32> to vector<128x128xf32>
    %106 = arith.mulf %101, %105 : vector<128x128xf32>
    %107 = arith.truncf %106 : vector<128x128xf32> to vector<128x128xbf16>
    %cst_26 = arith.constant dense<0.000000e+00> : vector<128x16xf32>
    %108 = tpu.matmul %107, %16, %cst_26 {dimension_numbers = #tpu.dot_dimension_numbers<[1], [0], [0], [1], [0, 0, 1, 1], [], []>} : vector<128x128xbf16>, vector<128x16xbf16>, vector<128x16xf32> -> vector<128x16xf32>
    %c-4_i32_27 = arith.constant -4 : i32
    %109 = vector.broadcast %c-4_i32_27 : i32 to vector<128x128xi32>
    %110 = arith.cmpi eq, %13, %109 : vector<128x128xi32>
    %cst_28 = arith.constant 0.000000e+00 : f32
    %111 = vector.broadcast %cst_28 : f32 to vector<128x128xf32>
    %112 = arith.select %110, %106, %111 : vector<128x128xi1>, vector<128x128xf32>
    %cst_29 = arith.constant dense<0.000000e+00> : vector<128xf32>
    %113 = vector.multi_reduction <add>, %112, %cst_29 [1] : vector<128x128xf32> to vector<128xf32>
    %114 = vector.shape_cast %113 : vector<128xf32> to vector<128x1xf32>
    %115 = vector.extract_strided_slice %10 {offsets = [0, 0], sizes = [1, 16], strides = [1, 1]} : vector<9x16xf32> to vector<1x16xf32>
    %116 = vector.broadcast %114 : vector<128x1xf32> to vector<128x16xf32>
    %117 = vector.broadcast %115 : vector<1x16xf32> to vector<128x16xf32>
    %118 = arith.mulf %116, %117 : vector<128x16xf32>
    %119 = arith.addf %108, %118 : vector<128x16xf32>
    %c-3_i32_30 = arith.constant -3 : i32
    %120 = vector.broadcast %c-3_i32_30 : i32 to vector<128x128xi32>
    %121 = arith.cmpi eq, %13, %120 : vector<128x128xi32>
    %cst_31 = arith.constant 0.000000e+00 : f32
    %122 = vector.broadcast %cst_31 : f32 to vector<128x128xf32>
    %123 = arith.select %121, %106, %122 : vector<128x128xi1>, vector<128x128xf32>
    %cst_32 = arith.constant dense<0.000000e+00> : vector<128xf32>
    %124 = vector.multi_reduction <add>, %123, %cst_32 [1] : vector<128x128xf32> to vector<128xf32>
    %125 = vector.shape_cast %124 : vector<128xf32> to vector<128x1xf32>
    %126 = vector.extract_strided_slice %10 {offsets = [1, 0], sizes = [1, 16], strides = [1, 1]} : vector<9x16xf32> to vector<1x16xf32>
    %127 = vector.broadcast %125 : vector<128x1xf32> to vector<128x16xf32>
    %128 = vector.broadcast %126 : vector<1x16xf32> to vector<128x16xf32>
    %129 = arith.mulf %127, %128 : vector<128x16xf32>
    %130 = arith.addf %119, %129 : vector<128x16xf32>
    %c-2_i32_33 = arith.constant -2 : i32
    %131 = vector.broadcast %c-2_i32_33 : i32 to vector<128x128xi32>
    %132 = arith.cmpi eq, %13, %131 : vector<128x128xi32>
    %cst_34 = arith.constant 0.000000e+00 : f32
    %133 = vector.broadcast %cst_34 : f32 to vector<128x128xf32>
    %134 = arith.select %132, %106, %133 : vector<128x128xi1>, vector<128x128xf32>
    %cst_35 = arith.constant dense<0.000000e+00> : vector<128xf32>
    %135 = vector.multi_reduction <add>, %134, %cst_35 [1] : vector<128x128xf32> to vector<128xf32>
    %136 = vector.shape_cast %135 : vector<128xf32> to vector<128x1xf32>
    %137 = vector.extract_strided_slice %10 {offsets = [2, 0], sizes = [1, 16], strides = [1, 1]} : vector<9x16xf32> to vector<1x16xf32>
    %138 = vector.broadcast %136 : vector<128x1xf32> to vector<128x16xf32>
    %139 = vector.broadcast %137 : vector<1x16xf32> to vector<128x16xf32>
    %140 = arith.mulf %138, %139 : vector<128x16xf32>
    %141 = arith.addf %130, %140 : vector<128x16xf32>
    %c-1_i32_36 = arith.constant -1 : i32
    %142 = vector.broadcast %c-1_i32_36 : i32 to vector<128x128xi32>
    %143 = arith.cmpi eq, %13, %142 : vector<128x128xi32>
    %cst_37 = arith.constant 0.000000e+00 : f32
    %144 = vector.broadcast %cst_37 : f32 to vector<128x128xf32>
    %145 = arith.select %143, %106, %144 : vector<128x128xi1>, vector<128x128xf32>
    %cst_38 = arith.constant dense<0.000000e+00> : vector<128xf32>
    %146 = vector.multi_reduction <add>, %145, %cst_38 [1] : vector<128x128xf32> to vector<128xf32>
    %147 = vector.shape_cast %146 : vector<128xf32> to vector<128x1xf32>
    %148 = vector.extract_strided_slice %10 {offsets = [3, 0], sizes = [1, 16], strides = [1, 1]} : vector<9x16xf32> to vector<1x16xf32>
    %149 = vector.broadcast %147 : vector<128x1xf32> to vector<128x16xf32>
    %150 = vector.broadcast %148 : vector<1x16xf32> to vector<128x16xf32>
    %151 = arith.mulf %149, %150 : vector<128x16xf32>
    %152 = arith.addf %141, %151 : vector<128x16xf32>
    %c0_i32_39 = arith.constant 0 : i32
    %153 = vector.broadcast %c0_i32_39 : i32 to vector<128x128xi32>
    %154 = arith.cmpi eq, %13, %153 : vector<128x128xi32>
    %cst_40 = arith.constant 0.000000e+00 : f32
    %155 = vector.broadcast %cst_40 : f32 to vector<128x128xf32>
    %156 = arith.select %154, %106, %155 : vector<128x128xi1>, vector<128x128xf32>
    %cst_41 = arith.constant dense<0.000000e+00> : vector<128xf32>
    %157 = vector.multi_reduction <add>, %156, %cst_41 [1] : vector<128x128xf32> to vector<128xf32>
    %158 = vector.shape_cast %157 : vector<128xf32> to vector<128x1xf32>
    %159 = vector.extract_strided_slice %10 {offsets = [4, 0], sizes = [1, 16], strides = [1, 1]} : vector<9x16xf32> to vector<1x16xf32>
    %160 = vector.broadcast %158 : vector<128x1xf32> to vector<128x16xf32>
    %161 = vector.broadcast %159 : vector<1x16xf32> to vector<128x16xf32>
    %162 = arith.mulf %160, %161 : vector<128x16xf32>
    %163 = arith.addf %152, %162 : vector<128x16xf32>
    %c1_i32_42 = arith.constant 1 : i32
    %164 = vector.broadcast %c1_i32_42 : i32 to vector<128x128xi32>
    %165 = arith.cmpi eq, %13, %164 : vector<128x128xi32>
    %cst_43 = arith.constant 0.000000e+00 : f32
    %166 = vector.broadcast %cst_43 : f32 to vector<128x128xf32>
    %167 = arith.select %165, %106, %166 : vector<128x128xi1>, vector<128x128xf32>
    %cst_44 = arith.constant dense<0.000000e+00> : vector<128xf32>
    %168 = vector.multi_reduction <add>, %167, %cst_44 [1] : vector<128x128xf32> to vector<128xf32>
    %169 = vector.shape_cast %168 : vector<128xf32> to vector<128x1xf32>
    %170 = vector.extract_strided_slice %10 {offsets = [5, 0], sizes = [1, 16], strides = [1, 1]} : vector<9x16xf32> to vector<1x16xf32>
    %171 = vector.broadcast %169 : vector<128x1xf32> to vector<128x16xf32>
    %172 = vector.broadcast %170 : vector<1x16xf32> to vector<128x16xf32>
    %173 = arith.mulf %171, %172 : vector<128x16xf32>
    %174 = arith.addf %163, %173 : vector<128x16xf32>
    %c2_i32_45 = arith.constant 2 : i32
    %175 = vector.broadcast %c2_i32_45 : i32 to vector<128x128xi32>
    %176 = arith.cmpi eq, %13, %175 : vector<128x128xi32>
    %cst_46 = arith.constant 0.000000e+00 : f32
    %177 = vector.broadcast %cst_46 : f32 to vector<128x128xf32>
    %178 = arith.select %176, %106, %177 : vector<128x128xi1>, vector<128x128xf32>
    %cst_47 = arith.constant dense<0.000000e+00> : vector<128xf32>
    %179 = vector.multi_reduction <add>, %178, %cst_47 [1] : vector<128x128xf32> to vector<128xf32>
    %180 = vector.shape_cast %179 : vector<128xf32> to vector<128x1xf32>
    %181 = vector.extract_strided_slice %10 {offsets = [6, 0], sizes = [1, 16], strides = [1, 1]} : vector<9x16xf32> to vector<1x16xf32>
    %182 = vector.broadcast %180 : vector<128x1xf32> to vector<128x16xf32>
    %183 = vector.broadcast %181 : vector<1x16xf32> to vector<128x16xf32>
    %184 = arith.mulf %182, %183 : vector<128x16xf32>
    %185 = arith.addf %174, %184 : vector<128x16xf32>
    %c3_i32_48 = arith.constant 3 : i32
    %186 = vector.broadcast %c3_i32_48 : i32 to vector<128x128xi32>
    %187 = arith.cmpi eq, %13, %186 : vector<128x128xi32>
    %cst_49 = arith.constant 0.000000e+00 : f32
    %188 = vector.broadcast %cst_49 : f32 to vector<128x128xf32>
    %189 = arith.select %187, %106, %188 : vector<128x128xi1>, vector<128x128xf32>
    %cst_50 = arith.constant dense<0.000000e+00> : vector<128xf32>
    %190 = vector.multi_reduction <add>, %189, %cst_50 [1] : vector<128x128xf32> to vector<128xf32>
    %191 = vector.shape_cast %190 : vector<128xf32> to vector<128x1xf32>
    %192 = vector.extract_strided_slice %10 {offsets = [7, 0], sizes = [1, 16], strides = [1, 1]} : vector<9x16xf32> to vector<1x16xf32>
    %193 = vector.broadcast %191 : vector<128x1xf32> to vector<128x16xf32>
    %194 = vector.broadcast %192 : vector<1x16xf32> to vector<128x16xf32>
    %195 = arith.mulf %193, %194 : vector<128x16xf32>
    %196 = arith.addf %185, %195 : vector<128x16xf32>
    %c4_i32_51 = arith.constant 4 : i32
    %197 = vector.broadcast %c4_i32_51 : i32 to vector<128x128xi32>
    %198 = arith.cmpi eq, %13, %197 : vector<128x128xi32>
    %cst_52 = arith.constant 0.000000e+00 : f32
    %199 = vector.broadcast %cst_52 : f32 to vector<128x128xf32>
    %200 = arith.select %198, %106, %199 : vector<128x128xi1>, vector<128x128xf32>
    %cst_53 = arith.constant dense<0.000000e+00> : vector<128xf32>
    %201 = vector.multi_reduction <add>, %200, %cst_53 [1] : vector<128x128xf32> to vector<128xf32>
    %202 = vector.shape_cast %201 : vector<128xf32> to vector<128x1xf32>
    %203 = vector.extract_strided_slice %10 {offsets = [8, 0], sizes = [1, 16], strides = [1, 1]} : vector<9x16xf32> to vector<1x16xf32>
    %204 = vector.broadcast %202 : vector<128x1xf32> to vector<128x16xf32>
    %205 = vector.broadcast %203 : vector<1x16xf32> to vector<128x16xf32>
    %206 = arith.mulf %204, %205 : vector<128x16xf32>
    %207 = arith.addf %196, %206 : vector<128x16xf32>
    %208 = vector.extract_strided_slice %1 {offsets = [0, 16], sizes = [128, 16], strides = [1, 1]} : vector<128x96xbf16> to vector<128x16xbf16>
    %209 = vector.extract_strided_slice %1 {offsets = [0, 48], sizes = [128, 16], strides = [1, 1]} : vector<128x96xbf16> to vector<128x16xbf16>
    %210 = vector.extract_strided_slice %1 {offsets = [0, 80], sizes = [128, 16], strides = [1, 1]} : vector<128x96xbf16> to vector<128x16xbf16>
    %cst_54 = arith.constant dense<0.000000e+00> : vector<128x128xf32>
    %211 = tpu.matmul %208, %209, %cst_54 {dimension_numbers = #tpu.dot_dimension_numbers<[1], [1], [0], [0], [0, 0, 1, 0], [], []>} : vector<128x16xbf16>, vector<128x16xbf16>, vector<128x128xf32> -> vector<128x128xf32>
    %cst_55 = arith.constant 2.500000e-01 : f32
    %212 = vector.broadcast %cst_55 : f32 to vector<128x128xf32>
    %213 = arith.mulf %211, %212 : vector<128x128xf32>
    %cst_56 = arith.constant dense<0.000000e+00> : vector<128x9xf32>
    %214 = tpu.matmul %208, %7, %cst_56 {dimension_numbers = #tpu.dot_dimension_numbers<[1], [1], [0], [0], [0, 0, 1, 0], [], []>} : vector<128x16xbf16>, vector<9x16xbf16>, vector<128x9xf32> -> vector<128x9xf32>
    %c-4_i32_57 = arith.constant -4 : i32
    %215 = vector.broadcast %c-4_i32_57 : i32 to vector<128x128xi32>
    %216 = arith.cmpi eq, %13, %215 : vector<128x128xi32>
    %217 = vector.extract_strided_slice %214 {offsets = [0, 0], sizes = [128, 1], strides = [1, 1]} : vector<128x9xf32> to vector<128x1xf32>
    %cst_58 = arith.constant 0.000000e+00 : f32
    %218 = vector.shape_cast %217 : vector<128x1xf32> to vector<128x1xf32>
    %219 = vector.broadcast %218 : vector<128x1xf32> to vector<128x128xf32>
    %220 = vector.broadcast %cst_58 : f32 to vector<128x128xf32>
    %221 = arith.select %216, %219, %220 : vector<128x128xi1>, vector<128x128xf32>
    %222 = arith.addf %213, %221 : vector<128x128xf32>
    %c-3_i32_59 = arith.constant -3 : i32
    %223 = vector.broadcast %c-3_i32_59 : i32 to vector<128x128xi32>
    %224 = arith.cmpi eq, %13, %223 : vector<128x128xi32>
    %225 = vector.extract_strided_slice %214 {offsets = [0, 1], sizes = [128, 1], strides = [1, 1]} : vector<128x9xf32> to vector<128x1xf32>
    %cst_60 = arith.constant 0.000000e+00 : f32
    %226 = vector.shape_cast %225 : vector<128x1xf32> to vector<128x1xf32>
    %227 = vector.broadcast %226 : vector<128x1xf32> to vector<128x128xf32>
    %228 = vector.broadcast %cst_60 : f32 to vector<128x128xf32>
    %229 = arith.select %224, %227, %228 : vector<128x128xi1>, vector<128x128xf32>
    %230 = arith.addf %222, %229 : vector<128x128xf32>
    %c-2_i32_61 = arith.constant -2 : i32
    %231 = vector.broadcast %c-2_i32_61 : i32 to vector<128x128xi32>
    %232 = arith.cmpi eq, %13, %231 : vector<128x128xi32>
    %233 = vector.extract_strided_slice %214 {offsets = [0, 2], sizes = [128, 1], strides = [1, 1]} : vector<128x9xf32> to vector<128x1xf32>
    %cst_62 = arith.constant 0.000000e+00 : f32
    %234 = vector.shape_cast %233 : vector<128x1xf32> to vector<128x1xf32>
    %235 = vector.broadcast %234 : vector<128x1xf32> to vector<128x128xf32>
    %236 = vector.broadcast %cst_62 : f32 to vector<128x128xf32>
    %237 = arith.select %232, %235, %236 : vector<128x128xi1>, vector<128x128xf32>
    %238 = arith.addf %230, %237 : vector<128x128xf32>
    %c-1_i32_63 = arith.constant -1 : i32
    %239 = vector.broadcast %c-1_i32_63 : i32 to vector<128x128xi32>
    %240 = arith.cmpi eq, %13, %239 : vector<128x128xi32>
    %241 = vector.extract_strided_slice %214 {offsets = [0, 3], sizes = [128, 1], strides = [1, 1]} : vector<128x9xf32> to vector<128x1xf32>
    %cst_64 = arith.constant 0.000000e+00 : f32
    %242 = vector.shape_cast %241 : vector<128x1xf32> to vector<128x1xf32>
    %243 = vector.broadcast %242 : vector<128x1xf32> to vector<128x128xf32>
    %244 = vector.broadcast %cst_64 : f32 to vector<128x128xf32>
    %245 = arith.select %240, %243, %244 : vector<128x128xi1>, vector<128x128xf32>
    %246 = arith.addf %238, %245 : vector<128x128xf32>
    %c0_i32_65 = arith.constant 0 : i32
    %247 = vector.broadcast %c0_i32_65 : i32 to vector<128x128xi32>
    %248 = arith.cmpi eq, %13, %247 : vector<128x128xi32>
    %249 = vector.extract_strided_slice %214 {offsets = [0, 4], sizes = [128, 1], strides = [1, 1]} : vector<128x9xf32> to vector<128x1xf32>
    %cst_66 = arith.constant 0.000000e+00 : f32
    %250 = vector.shape_cast %249 : vector<128x1xf32> to vector<128x1xf32>
    %251 = vector.broadcast %250 : vector<128x1xf32> to vector<128x128xf32>
    %252 = vector.broadcast %cst_66 : f32 to vector<128x128xf32>
    %253 = arith.select %248, %251, %252 : vector<128x128xi1>, vector<128x128xf32>
    %254 = arith.addf %246, %253 : vector<128x128xf32>
    %c1_i32_67 = arith.constant 1 : i32
    %255 = vector.broadcast %c1_i32_67 : i32 to vector<128x128xi32>
    %256 = arith.cmpi eq, %13, %255 : vector<128x128xi32>
    %257 = vector.extract_strided_slice %214 {offsets = [0, 5], sizes = [128, 1], strides = [1, 1]} : vector<128x9xf32> to vector<128x1xf32>
    %cst_68 = arith.constant 0.000000e+00 : f32
    %258 = vector.shape_cast %257 : vector<128x1xf32> to vector<128x1xf32>
    %259 = vector.broadcast %258 : vector<128x1xf32> to vector<128x128xf32>
    %260 = vector.broadcast %cst_68 : f32 to vector<128x128xf32>
    %261 = arith.select %256, %259, %260 : vector<128x128xi1>, vector<128x128xf32>
    %262 = arith.addf %254, %261 : vector<128x128xf32>
    %c2_i32_69 = arith.constant 2 : i32
    %263 = vector.broadcast %c2_i32_69 : i32 to vector<128x128xi32>
    %264 = arith.cmpi eq, %13, %263 : vector<128x128xi32>
    %265 = vector.extract_strided_slice %214 {offsets = [0, 6], sizes = [128, 1], strides = [1, 1]} : vector<128x9xf32> to vector<128x1xf32>
    %cst_70 = arith.constant 0.000000e+00 : f32
    %266 = vector.shape_cast %265 : vector<128x1xf32> to vector<128x1xf32>
    %267 = vector.broadcast %266 : vector<128x1xf32> to vector<128x128xf32>
    %268 = vector.broadcast %cst_70 : f32 to vector<128x128xf32>
    %269 = arith.select %264, %267, %268 : vector<128x128xi1>, vector<128x128xf32>
    %270 = arith.addf %262, %269 : vector<128x128xf32>
    %c3_i32_71 = arith.constant 3 : i32
    %271 = vector.broadcast %c3_i32_71 : i32 to vector<128x128xi32>
    %272 = arith.cmpi eq, %13, %271 : vector<128x128xi32>
    %273 = vector.extract_strided_slice %214 {offsets = [0, 7], sizes = [128, 1], strides = [1, 1]} : vector<128x9xf32> to vector<128x1xf32>
    %cst_72 = arith.constant 0.000000e+00 : f32
    %274 = vector.shape_cast %273 : vector<128x1xf32> to vector<128x1xf32>
    %275 = vector.broadcast %274 : vector<128x1xf32> to vector<128x128xf32>
    %276 = vector.broadcast %cst_72 : f32 to vector<128x128xf32>
    %277 = arith.select %272, %275, %276 : vector<128x128xi1>, vector<128x128xf32>
    %278 = arith.addf %270, %277 : vector<128x128xf32>
    %c4_i32_73 = arith.constant 4 : i32
    %279 = vector.broadcast %c4_i32_73 : i32 to vector<128x128xi32>
    %280 = arith.cmpi eq, %13, %279 : vector<128x128xi32>
    %281 = vector.extract_strided_slice %214 {offsets = [0, 8], sizes = [128, 1], strides = [1, 1]} : vector<128x9xf32> to vector<128x1xf32>
    %cst_74 = arith.constant 0.000000e+00 : f32
    %282 = vector.shape_cast %281 : vector<128x1xf32> to vector<128x1xf32>
    %283 = vector.broadcast %282 : vector<128x1xf32> to vector<128x128xf32>
    %284 = vector.broadcast %cst_74 : f32 to vector<128x128xf32>
    %285 = arith.select %280, %283, %284 : vector<128x128xi1>, vector<128x128xf32>
    %286 = arith.addf %278, %285 : vector<128x128xf32>
    %cst_75 = arith.constant -1.000000e+04 : f32
    %287 = vector.shape_cast %5 : vector<1x128xi1> to vector<1x128xi1>
    %288 = vector.broadcast %287 : vector<1x128xi1> to vector<128x128xi1>
    %289 = vector.broadcast %cst_75 : f32 to vector<128x128xf32>
    %290 = arith.select %288, %286, %289 : vector<128x128xi1>, vector<128x128xf32>
    %cst_76 = arith.constant dense<0xFF800000> : vector<128xf32>
    %291 = vector.multi_reduction <maximumf>, %290, %cst_76 [1] : vector<128x128xf32> to vector<128xf32>
    %292 = vector.shape_cast %291 : vector<128xf32> to vector<128x1xf32>
    %293 = vector.broadcast %292 : vector<128x1xf32> to vector<128x128xf32>
    %294 = arith.subf %290, %293 : vector<128x128xf32>
    %295 = math.exp %294 : vector<128x128xf32>
    %cst_77 = arith.constant dense<0.000000e+00> : vector<128xf32>
    %296 = vector.multi_reduction <add>, %295, %cst_77 [1] : vector<128x128xf32> to vector<128xf32>
    %297 = vector.shape_cast %296 : vector<128xf32> to vector<128x1xf32>
    %298 = tpu.reciprocal %297 {approx = true} : vector<128x1xf32> -> vector<128x1xf32>
    %299 = vector.broadcast %298 : vector<128x1xf32> to vector<128x128xf32>
    %300 = arith.mulf %295, %299 : vector<128x128xf32>
    %301 = arith.truncf %300 : vector<128x128xf32> to vector<128x128xbf16>
    %cst_78 = arith.constant dense<0.000000e+00> : vector<128x16xf32>
    %302 = tpu.matmul %301, %210, %cst_78 {dimension_numbers = #tpu.dot_dimension_numbers<[1], [0], [0], [1], [0, 0, 1, 1], [], []>} : vector<128x128xbf16>, vector<128x16xbf16>, vector<128x16xf32> -> vector<128x16xf32>
    %c-4_i32_79 = arith.constant -4 : i32
    %303 = vector.broadcast %c-4_i32_79 : i32 to vector<128x128xi32>
    %304 = arith.cmpi eq, %13, %303 : vector<128x128xi32>
    %cst_80 = arith.constant 0.000000e+00 : f32
    %305 = vector.broadcast %cst_80 : f32 to vector<128x128xf32>
    %306 = arith.select %304, %300, %305 : vector<128x128xi1>, vector<128x128xf32>
    %cst_81 = arith.constant dense<0.000000e+00> : vector<128xf32>
    %307 = vector.multi_reduction <add>, %306, %cst_81 [1] : vector<128x128xf32> to vector<128xf32>
    %308 = vector.shape_cast %307 : vector<128xf32> to vector<128x1xf32>
    %309 = vector.extract_strided_slice %10 {offsets = [0, 0], sizes = [1, 16], strides = [1, 1]} : vector<9x16xf32> to vector<1x16xf32>
    %310 = vector.broadcast %308 : vector<128x1xf32> to vector<128x16xf32>
    %311 = vector.broadcast %309 : vector<1x16xf32> to vector<128x16xf32>
    %312 = arith.mulf %310, %311 : vector<128x16xf32>
    %313 = arith.addf %302, %312 : vector<128x16xf32>
    %c-3_i32_82 = arith.constant -3 : i32
    %314 = vector.broadcast %c-3_i32_82 : i32 to vector<128x128xi32>
    %315 = arith.cmpi eq, %13, %314 : vector<128x128xi32>
    %cst_83 = arith.constant 0.000000e+00 : f32
    %316 = vector.broadcast %cst_83 : f32 to vector<128x128xf32>
    %317 = arith.select %315, %300, %316 : vector<128x128xi1>, vector<128x128xf32>
    %cst_84 = arith.constant dense<0.000000e+00> : vector<128xf32>
    %318 = vector.multi_reduction <add>, %317, %cst_84 [1] : vector<128x128xf32> to vector<128xf32>
    %319 = vector.shape_cast %318 : vector<128xf32> to vector<128x1xf32>
    %320 = vector.extract_strided_slice %10 {offsets = [1, 0], sizes = [1, 16], strides = [1, 1]} : vector<9x16xf32> to vector<1x16xf32>
    %321 = vector.broadcast %319 : vector<128x1xf32> to vector<128x16xf32>
    %322 = vector.broadcast %320 : vector<1x16xf32> to vector<128x16xf32>
    %323 = arith.mulf %321, %322 : vector<128x16xf32>
    %324 = arith.addf %313, %323 : vector<128x16xf32>
    %c-2_i32_85 = arith.constant -2 : i32
    %325 = vector.broadcast %c-2_i32_85 : i32 to vector<128x128xi32>
    %326 = arith.cmpi eq, %13, %325 : vector<128x128xi32>
    %cst_86 = arith.constant 0.000000e+00 : f32
    %327 = vector.broadcast %cst_86 : f32 to vector<128x128xf32>
    %328 = arith.select %326, %300, %327 : vector<128x128xi1>, vector<128x128xf32>
    %cst_87 = arith.constant dense<0.000000e+00> : vector<128xf32>
    %329 = vector.multi_reduction <add>, %328, %cst_87 [1] : vector<128x128xf32> to vector<128xf32>
    %330 = vector.shape_cast %329 : vector<128xf32> to vector<128x1xf32>
    %331 = vector.extract_strided_slice %10 {offsets = [2, 0], sizes = [1, 16], strides = [1, 1]} : vector<9x16xf32> to vector<1x16xf32>
    %332 = vector.broadcast %330 : vector<128x1xf32> to vector<128x16xf32>
    %333 = vector.broadcast %331 : vector<1x16xf32> to vector<128x16xf32>
    %334 = arith.mulf %332, %333 : vector<128x16xf32>
    %335 = arith.addf %324, %334 : vector<128x16xf32>
    %c-1_i32_88 = arith.constant -1 : i32
    %336 = vector.broadcast %c-1_i32_88 : i32 to vector<128x128xi32>
    %337 = arith.cmpi eq, %13, %336 : vector<128x128xi32>
    %cst_89 = arith.constant 0.000000e+00 : f32
    %338 = vector.broadcast %cst_89 : f32 to vector<128x128xf32>
    %339 = arith.select %337, %300, %338 : vector<128x128xi1>, vector<128x128xf32>
    %cst_90 = arith.constant dense<0.000000e+00> : vector<128xf32>
    %340 = vector.multi_reduction <add>, %339, %cst_90 [1] : vector<128x128xf32> to vector<128xf32>
    %341 = vector.shape_cast %340 : vector<128xf32> to vector<128x1xf32>
    %342 = vector.extract_strided_slice %10 {offsets = [3, 0], sizes = [1, 16], strides = [1, 1]} : vector<9x16xf32> to vector<1x16xf32>
    %343 = vector.broadcast %341 : vector<128x1xf32> to vector<128x16xf32>
    %344 = vector.broadcast %342 : vector<1x16xf32> to vector<128x16xf32>
    %345 = arith.mulf %343, %344 : vector<128x16xf32>
    %346 = arith.addf %335, %345 : vector<128x16xf32>
    %c0_i32_91 = arith.constant 0 : i32
    %347 = vector.broadcast %c0_i32_91 : i32 to vector<128x128xi32>
    %348 = arith.cmpi eq, %13, %347 : vector<128x128xi32>
    %cst_92 = arith.constant 0.000000e+00 : f32
    %349 = vector.broadcast %cst_92 : f32 to vector<128x128xf32>
    %350 = arith.select %348, %300, %349 : vector<128x128xi1>, vector<128x128xf32>
    %cst_93 = arith.constant dense<0.000000e+00> : vector<128xf32>
    %351 = vector.multi_reduction <add>, %350, %cst_93 [1] : vector<128x128xf32> to vector<128xf32>
    %352 = vector.shape_cast %351 : vector<128xf32> to vector<128x1xf32>
    %353 = vector.extract_strided_slice %10 {offsets = [4, 0], sizes = [1, 16], strides = [1, 1]} : vector<9x16xf32> to vector<1x16xf32>
    %354 = vector.broadcast %352 : vector<128x1xf32> to vector<128x16xf32>
    %355 = vector.broadcast %353 : vector<1x16xf32> to vector<128x16xf32>
    %356 = arith.mulf %354, %355 : vector<128x16xf32>
    %357 = arith.addf %346, %356 : vector<128x16xf32>
    %c1_i32_94 = arith.constant 1 : i32
    %358 = vector.broadcast %c1_i32_94 : i32 to vector<128x128xi32>
    %359 = arith.cmpi eq, %13, %358 : vector<128x128xi32>
    %cst_95 = arith.constant 0.000000e+00 : f32
    %360 = vector.broadcast %cst_95 : f32 to vector<128x128xf32>
    %361 = arith.select %359, %300, %360 : vector<128x128xi1>, vector<128x128xf32>
    %cst_96 = arith.constant dense<0.000000e+00> : vector<128xf32>
    %362 = vector.multi_reduction <add>, %361, %cst_96 [1] : vector<128x128xf32> to vector<128xf32>
    %363 = vector.shape_cast %362 : vector<128xf32> to vector<128x1xf32>
    %364 = vector.extract_strided_slice %10 {offsets = [5, 0], sizes = [1, 16], strides = [1, 1]} : vector<9x16xf32> to vector<1x16xf32>
    %365 = vector.broadcast %363 : vector<128x1xf32> to vector<128x16xf32>
    %366 = vector.broadcast %364 : vector<1x16xf32> to vector<128x16xf32>
    %367 = arith.mulf %365, %366 : vector<128x16xf32>
    %368 = arith.addf %357, %367 : vector<128x16xf32>
    %c2_i32_97 = arith.constant 2 : i32
    %369 = vector.broadcast %c2_i32_97 : i32 to vector<128x128xi32>
    %370 = arith.cmpi eq, %13, %369 : vector<128x128xi32>
    %cst_98 = arith.constant 0.000000e+00 : f32
    %371 = vector.broadcast %cst_98 : f32 to vector<128x128xf32>
    %372 = arith.select %370, %300, %371 : vector<128x128xi1>, vector<128x128xf32>
    %cst_99 = arith.constant dense<0.000000e+00> : vector<128xf32>
    %373 = vector.multi_reduction <add>, %372, %cst_99 [1] : vector<128x128xf32> to vector<128xf32>
    %374 = vector.shape_cast %373 : vector<128xf32> to vector<128x1xf32>
    %375 = vector.extract_strided_slice %10 {offsets = [6, 0], sizes = [1, 16], strides = [1, 1]} : vector<9x16xf32> to vector<1x16xf32>
    %376 = vector.broadcast %374 : vector<128x1xf32> to vector<128x16xf32>
    %377 = vector.broadcast %375 : vector<1x16xf32> to vector<128x16xf32>
    %378 = arith.mulf %376, %377 : vector<128x16xf32>
    %379 = arith.addf %368, %378 : vector<128x16xf32>
    %c3_i32_100 = arith.constant 3 : i32
    %380 = vector.broadcast %c3_i32_100 : i32 to vector<128x128xi32>
    %381 = arith.cmpi eq, %13, %380 : vector<128x128xi32>
    %cst_101 = arith.constant 0.000000e+00 : f32
    %382 = vector.broadcast %cst_101 : f32 to vector<128x128xf32>
    %383 = arith.select %381, %300, %382 : vector<128x128xi1>, vector<128x128xf32>
    %cst_102 = arith.constant dense<0.000000e+00> : vector<128xf32>
    %384 = vector.multi_reduction <add>, %383, %cst_102 [1] : vector<128x128xf32> to vector<128xf32>
    %385 = vector.shape_cast %384 : vector<128xf32> to vector<128x1xf32>
    %386 = vector.extract_strided_slice %10 {offsets = [7, 0], sizes = [1, 16], strides = [1, 1]} : vector<9x16xf32> to vector<1x16xf32>
    %387 = vector.broadcast %385 : vector<128x1xf32> to vector<128x16xf32>
    %388 = vector.broadcast %386 : vector<1x16xf32> to vector<128x16xf32>
    %389 = arith.mulf %387, %388 : vector<128x16xf32>
    %390 = arith.addf %379, %389 : vector<128x16xf32>
    %c4_i32_103 = arith.constant 4 : i32
    %391 = vector.broadcast %c4_i32_103 : i32 to vector<128x128xi32>
    %392 = arith.cmpi eq, %13, %391 : vector<128x128xi32>
    %cst_104 = arith.constant 0.000000e+00 : f32
    %393 = vector.broadcast %cst_104 : f32 to vector<128x128xf32>
    %394 = arith.select %392, %300, %393 : vector<128x128xi1>, vector<128x128xf32>
    %cst_105 = arith.constant dense<0.000000e+00> : vector<128xf32>
    %395 = vector.multi_reduction <add>, %394, %cst_105 [1] : vector<128x128xf32> to vector<128xf32>
    %396 = vector.shape_cast %395 : vector<128xf32> to vector<128x1xf32>
    %397 = vector.extract_strided_slice %10 {offsets = [8, 0], sizes = [1, 16], strides = [1, 1]} : vector<9x16xf32> to vector<1x16xf32>
    %398 = vector.broadcast %396 : vector<128x1xf32> to vector<128x16xf32>
    %399 = vector.broadcast %397 : vector<1x16xf32> to vector<128x16xf32>
    %400 = arith.mulf %398, %399 : vector<128x16xf32>
    %401 = arith.addf %390, %400 : vector<128x16xf32>
    %402 = tpu.concatenate %207, %401 in 1 : vector<128x16xf32>, vector<128x16xf32> -> vector<128x32xf32>
    %403 = arith.truncf %402 : vector<128x32xf32> to vector<128x32xbf16>
    %c0_106 = arith.constant 0 : index
    %c0_107 = arith.constant 0 : index
    %c0_108 = arith.constant 0 : index
    %404 = vector.load %arg5[%c0_106, %c0_107, %c0_108] : memref<1x128x32xbf16, #tpu.memory_space<vmem>>, vector<1x128x32xbf16>
    %405 = vector.shape_cast %404 : vector<1x128x32xbf16> to vector<128x32xbf16>
    %406 = vector.shape_cast %403 : vector<128x32xbf16> to vector<1x128x32xbf16>
    tpu.vector_store %arg5[%c0_106, %c0_107, %c0_108], %406 {strides = array<i32>} : memref<1x128x32xbf16, #tpu.memory_space<vmem>>, vector<1x128x32xbf16>,
    return
  }
  func.func @transform_0(%arg0: i32) -> (i32, i32, i32) {
    %c0_i32 = arith.constant 0 : i32
    %c0_i32_0 = arith.constant 0 : i32
    %c0_i32_1 = arith.constant 0 : i32
    return %arg0, %c0_i32, %c0_i32_0 : i32, i32, i32
  }
  func.func @transform_1(%arg0: i32) -> (i32, i32, i32) {
    %c0_i32 = arith.constant 0 : i32
    %c0_i32_0 = arith.constant 0 : i32
    %c0_i32_1 = arith.constant 0 : i32
    return %arg0, %c0_i32, %c0_i32_0 : i32, i32, i32
  }
  func.func @transform_2(%arg0: i32) -> (i32, i32, i32) {
    %c0_i32 = arith.constant 0 : i32
    %c0_i32_0 = arith.constant 0 : i32
    %c0_i32_1 = arith.constant 0 : i32
    %c0_i32_2 = arith.constant 0 : i32
    return %c0_i32, %c0_i32_0, %c0_i32_1 : i32, i32, i32
  }
  func.func @transform_3(%arg0: i32) -> (i32, i32, i32) {
    %c0_i32 = arith.constant 0 : i32
    %c0_i32_0 = arith.constant 0 : i32
    %c0_i32_1 = arith.constant 0 : i32
    %c0_i32_2 = arith.constant 0 : i32
    return %c0_i32, %c0_i32_0, %c0_i32_1 : i32, i32, i32
  }
  func.func @transform_4(%arg0: i32) -> (i32, i32, i32) {
    %c0_i32 = arith.constant 0 : i32
    %c0_i32_0 = arith.constant 0 : i32
    %c0_i32_1 = arith.constant 0 : i32
    return %arg0, %c0_i32, %c0_i32_0 : i32, i32, i32
  }
}

module attributes {stable_mosaic.version = 11 : i64} {
  func.func @_mm_kernel(%arg0: i32, %arg1: memref<256x32xbf16, #tpu.memory_space<vmem>>, %arg2: memref<32x32xbf16, #tpu.memory_space<vmem>>, %arg3: memref<1x32xf32, #tpu.memory_space<vmem>>, %arg4: memref<256x32xf32, #tpu.memory_space<vmem>>) attributes {dimension_semantics = [#tpu.dimension_semantics<parallel>], iteration_bounds = array<i64: 1>, scalar_prefetch = 0 : i64, scratch_operands = 0 : i64, tpu.core_type = #tpu.core_type<tc>, window_params = [{transform_indices = @transform_0, window_bounds = array<i64: 256, 32>}, {pipeline_mode = #tpu.pipeline_mode<synchronous>, transform_indices = @transform_1, window_bounds = array<i64: 32, 32>}, {pipeline_mode = #tpu.pipeline_mode<synchronous>, transform_indices = @transform_2, window_bounds = array<i64: 1, 32>}, {transform_indices = @transform_3, window_bounds = array<i64: 256, 32>}]} {
    %c0 = arith.constant 0 : index
    %c0_0 = arith.constant 0 : index
    %0 = vector.load %arg1[%c0, %c0_0] : memref<256x32xbf16, #tpu.memory_space<vmem>>, vector<256x32xbf16>
    %c0_1 = arith.constant 0 : index
    %c0_2 = arith.constant 0 : index
    %1 = vector.load %arg2[%c0_1, %c0_2] : memref<32x32xbf16, #tpu.memory_space<vmem>>, vector<32x32xbf16>
    %cst = arith.constant dense<0.000000e+00> : vector<256x32xf32>
    %2 = tpu.matmul %0, %1, %cst {dimension_numbers = #tpu.dot_dimension_numbers<[1], [0], [0], [1], [0, 0, 1, 1], [], []>} : vector<256x32xbf16>, vector<32x32xbf16>, vector<256x32xf32> -> vector<256x32xf32>
    %c0_3 = arith.constant 0 : index
    %c0_4 = arith.constant 0 : index
    %3 = vector.load %arg3[%c0_3, %c0_4] : memref<1x32xf32, #tpu.memory_space<vmem>>, vector<1x32xf32>
    %4 = vector.broadcast %3 : vector<1x32xf32> to vector<256x32xf32>
    %5 = arith.addf %2, %4 : vector<256x32xf32>
    %c0_5 = arith.constant 0 : index
    %c0_6 = arith.constant 0 : index
    %6 = vector.load %arg4[%c0_5, %c0_6] : memref<256x32xf32, #tpu.memory_space<vmem>>, vector<256x32xf32>
    tpu.vector_store %arg4[%c0_5, %c0_6], %5 {strides = array<i32>} : memref<256x32xf32, #tpu.memory_space<vmem>>, vector<256x32xf32>,
    return
  }
  func.func @transform_0(%arg0: i32) -> (i32, i32) {
    %c0_i32 = arith.constant 0 : i32
    %c0_i32_0 = arith.constant 0 : i32
    return %arg0, %c0_i32 : i32, i32
  }
  func.func @transform_1(%arg0: i32) -> (i32, i32) {
    %c0_i32 = arith.constant 0 : i32
    %c0_i32_0 = arith.constant 0 : i32
    %c0_i32_1 = arith.constant 0 : i32
    return %c0_i32, %c0_i32_0 : i32, i32
  }
  func.func @transform_2(%arg0: i32) -> (i32, i32) {
    %c0_i32 = arith.constant 0 : i32
    %c0_i32_0 = arith.constant 0 : i32
    %c0_i32_1 = arith.constant 0 : i32
    return %c0_i32, %c0_i32_0 : i32, i32
  }
  func.func @transform_3(%arg0: i32) -> (i32, i32) {
    %c0_i32 = arith.constant 0 : i32
    %c0_i32_0 = arith.constant 0 : i32
    return %arg0, %c0_i32 : i32, i32
  }
}

module attributes {stable_mosaic.version = 11 : i64} {
  func.func @_mm_kernel(%arg0: i32, %arg1: memref<256x96xbf16, #tpu.memory_space<vmem>>, %arg2: memref<96x64xbf16, #tpu.memory_space<vmem>>, %arg3: memref<1x64xf32, #tpu.memory_space<vmem>>, %arg4: memref<256x64xbf16, #tpu.memory_space<vmem>>) attributes {dimension_semantics = [#tpu.dimension_semantics<parallel>], iteration_bounds = array<i64: 1>, scalar_prefetch = 0 : i64, scratch_operands = 0 : i64, tpu.core_type = #tpu.core_type<tc>, window_params = [{transform_indices = @transform_0, window_bounds = array<i64: 256, 96>}, {pipeline_mode = #tpu.pipeline_mode<synchronous>, transform_indices = @transform_1, window_bounds = array<i64: 96, 64>}, {pipeline_mode = #tpu.pipeline_mode<synchronous>, transform_indices = @transform_2, window_bounds = array<i64: 1, 64>}, {transform_indices = @transform_3, window_bounds = array<i64: 256, 64>}]} {
    %c0 = arith.constant 0 : index
    %c0_0 = arith.constant 0 : index
    %0 = vector.load %arg1[%c0, %c0_0] : memref<256x96xbf16, #tpu.memory_space<vmem>>, vector<256x96xbf16>
    %c0_1 = arith.constant 0 : index
    %c0_2 = arith.constant 0 : index
    %1 = vector.load %arg2[%c0_1, %c0_2] : memref<96x64xbf16, #tpu.memory_space<vmem>>, vector<96x64xbf16>
    %cst = arith.constant dense<0.000000e+00> : vector<256x64xf32>
    %2 = tpu.matmul %0, %1, %cst {dimension_numbers = #tpu.dot_dimension_numbers<[1], [0], [0], [1], [0, 0, 1, 1], [], []>} : vector<256x96xbf16>, vector<96x64xbf16>, vector<256x64xf32> -> vector<256x64xf32>
    %c0_3 = arith.constant 0 : index
    %c0_4 = arith.constant 0 : index
    %3 = vector.load %arg3[%c0_3, %c0_4] : memref<1x64xf32, #tpu.memory_space<vmem>>, vector<1x64xf32>
    %4 = vector.broadcast %3 : vector<1x64xf32> to vector<256x64xf32>
    %5 = arith.addf %2, %4 : vector<256x64xf32>
    %cst_5 = arith.constant 0.000000e+00 : f32
    %6 = vector.broadcast %cst_5 : f32 to vector<256x64xf32>
    %7 = arith.maximumf %5, %6 : vector<256x64xf32>
    %8 = arith.truncf %7 : vector<256x64xf32> to vector<256x64xbf16>
    %c0_6 = arith.constant 0 : index
    %c0_7 = arith.constant 0 : index
    %9 = vector.load %arg4[%c0_6, %c0_7] : memref<256x64xbf16, #tpu.memory_space<vmem>>, vector<256x64xbf16>
    tpu.vector_store %arg4[%c0_6, %c0_7], %8 {strides = array<i32>} : memref<256x64xbf16, #tpu.memory_space<vmem>>, vector<256x64xbf16>,
    return
  }
  func.func @transform_0(%arg0: i32) -> (i32, i32) {
    %c0_i32 = arith.constant 0 : i32
    %c0_i32_0 = arith.constant 0 : i32
    return %arg0, %c0_i32 : i32, i32
  }
  func.func @transform_1(%arg0: i32) -> (i32, i32) {
    %c0_i32 = arith.constant 0 : i32
    %c0_i32_0 = arith.constant 0 : i32
    %c0_i32_1 = arith.constant 0 : i32
    return %c0_i32, %c0_i32_0 : i32, i32
  }
  func.func @transform_2(%arg0: i32) -> (i32, i32) {
    %c0_i32 = arith.constant 0 : i32
    %c0_i32_0 = arith.constant 0 : i32
    %c0_i32_1 = arith.constant 0 : i32
    return %c0_i32, %c0_i32_0 : i32, i32
  }
  func.func @transform_3(%arg0: i32) -> (i32, i32) {
    %c0_i32 = arith.constant 0 : i32
    %c0_i32_0 = arith.constant 0 : i32
    return %arg0, %c0_i32 : i32, i32
  }
}

module attributes {stable_mosaic.version = 11 : i64} {
  func.func @_mm_kernel(%arg0: i32, %arg1: memref<256x192xbf16, #tpu.memory_space<vmem>>, %arg2: memref<192x32xbf16, #tpu.memory_space<vmem>>, %arg3: memref<1x32xf32, #tpu.memory_space<vmem>>, %arg4: memref<256x32xf32, #tpu.memory_space<vmem>>) attributes {dimension_semantics = [#tpu.dimension_semantics<parallel>], iteration_bounds = array<i64: 1>, scalar_prefetch = 0 : i64, scratch_operands = 0 : i64, tpu.core_type = #tpu.core_type<tc>, window_params = [{transform_indices = @transform_0, window_bounds = array<i64: 256, 192>}, {pipeline_mode = #tpu.pipeline_mode<synchronous>, transform_indices = @transform_1, window_bounds = array<i64: 192, 32>}, {pipeline_mode = #tpu.pipeline_mode<synchronous>, transform_indices = @transform_2, window_bounds = array<i64: 1, 32>}, {transform_indices = @transform_3, window_bounds = array<i64: 256, 32>}]} {
    %c0 = arith.constant 0 : index
    %c0_0 = arith.constant 0 : index
    %0 = vector.load %arg1[%c0, %c0_0] : memref<256x192xbf16, #tpu.memory_space<vmem>>, vector<256x192xbf16>
    %c0_1 = arith.constant 0 : index
    %c0_2 = arith.constant 0 : index
    %1 = vector.load %arg2[%c0_1, %c0_2] : memref<192x32xbf16, #tpu.memory_space<vmem>>, vector<192x32xbf16>
    %cst = arith.constant dense<0.000000e+00> : vector<256x32xf32>
    %2 = tpu.matmul %0, %1, %cst {dimension_numbers = #tpu.dot_dimension_numbers<[1], [0], [0], [1], [0, 0, 1, 1], [], []>} : vector<256x192xbf16>, vector<192x32xbf16>, vector<256x32xf32> -> vector<256x32xf32>
    %c0_3 = arith.constant 0 : index
    %c0_4 = arith.constant 0 : index
    %3 = vector.load %arg3[%c0_3, %c0_4] : memref<1x32xf32, #tpu.memory_space<vmem>>, vector<1x32xf32>
    %4 = vector.broadcast %3 : vector<1x32xf32> to vector<256x32xf32>
    %5 = arith.addf %2, %4 : vector<256x32xf32>
    %c0_5 = arith.constant 0 : index
    %c0_6 = arith.constant 0 : index
    %6 = vector.load %arg4[%c0_5, %c0_6] : memref<256x32xf32, #tpu.memory_space<vmem>>, vector<256x32xf32>
    tpu.vector_store %arg4[%c0_5, %c0_6], %5 {strides = array<i32>} : memref<256x32xf32, #tpu.memory_space<vmem>>, vector<256x32xf32>,
    return
  }
  func.func @transform_0(%arg0: i32) -> (i32, i32) {
    %c0_i32 = arith.constant 0 : i32
    %c0_i32_0 = arith.constant 0 : i32
    return %arg0, %c0_i32 : i32, i32
  }
  func.func @transform_1(%arg0: i32) -> (i32, i32) {
    %c0_i32 = arith.constant 0 : i32
    %c0_i32_0 = arith.constant 0 : i32
    %c0_i32_1 = arith.constant 0 : i32
    return %c0_i32, %c0_i32_0 : i32, i32
  }
  func.func @transform_2(%arg0: i32) -> (i32, i32) {
    %c0_i32 = arith.constant 0 : i32
    %c0_i32_0 = arith.constant 0 : i32
    %c0_i32_1 = arith.constant 0 : i32
    return %c0_i32, %c0_i32_0 : i32, i32
  }
  func.func @transform_3(%arg0: i32) -> (i32, i32) {
    %c0_i32 = arith.constant 0 : i32
    %c0_i32_0 = arith.constant 0 : i32
    return %arg0, %c0_i32 : i32, i32
  }
}

</mosaic_0001>

<bundles_post_ra>
// kernel: text_encoder_forward.12
= control target key start
LH: loop header
LB: loop body
LE: loop exit
PB: predicated region body
PF: predicated region fallthrough
CT: control target
= control target key end

     0   :  { %vm147_vm0 = vcmask 261120   ;;  %s689_s1 = inlined_call_operand.vmem [shape: bf16[32,32], index: 1, kind: input, shape index: {}]   ;;  %s690_s0 = inlined_call_operand.vmem [shape: bf16[256,32], index: 0, kind: input, shape index: {}]   ;;  %s691_s2 = inlined_call_operand.vmem [shape: f32[1,32], index: 2, kind: input, shape index: {}]   ;;  %s692_s3 = inlined_call_operand.vmem [shape: f32[256,32], index: 3, kind: output, shape index: {}]  }
   0x1   :  { %v426_v0 = vld [vmem:[%s689_s1 + $0x8] sm:$0xff]  ;;  %v425_v1 = vld [vmem:[%s689_s1] sm:$0xff]  ;;  %v411_v10 = vld [vmem:[%s690_s0 + $0x10] sm:$0xff] }
   0x2   :  { %202 = vmatpush.bf16.msra.mxu0 %v426_v0  ;;  %427 = vmatpush.bf16.msra.mxu1 %v426_v0  ;;  %v409_v2 = vld [vmem:[%s690_s0] sm:$0xff]  ;;  %v410_v6 = vld [vmem:[%s690_s0 + $0x8] sm:$0xff]  ;;  %v415_v11 = vld [vmem:[%s690_s0 + $0x30] sm:$0xff] }
   0x3   :  { %428 = vmatpush.bf16.msra.mxu2 %v426_v0  ;;  %429 = vmatpush.bf16.msra.mxu3 %v426_v0  ;;  %v413_v3 = vld [vmem:[%s690_s0 + $0x20] sm:$0xff]  ;;  %v414_v7 = vld [vmem:[%s690_s0 + $0x28] sm:$0xff]  ;;  %v419_v12 = vld [vmem:[%s690_s0 + $0x50] sm:$0xff] }
   0x4   :  { %v417_v4 = vld [vmem:[%s690_s0 + $0x40] sm:$0xff]  ;;  %v418_v8 = vld [vmem:[%s690_s0 + $0x48] sm:$0xff]  ;;  %v423_v13 = vld [vmem:[%s690_s0 + $0x70] sm:$0xff] }
   0x5   :  { %v421_v5 = vld [vmem:[%s690_s0 + $0x60] sm:$0xff]  ;;  %v422_v9 = vld [vmem:[%s690_s0 + $0x68] sm:$0xff]  ;;  %v412_v14 = vld [vmem:[%s690_s0 + $0x18] sm:$0xff] }
   0x6   :  { %203 = vmatpush.bf16.msra.mxu0 %v425_v1  ;;  %430 = vmatpush.bf16.msra.mxu1 %v425_v1  ;;  %v416_v15 = vld [vmem:[%s690_s0 + $0x38] sm:$0xff]  ;;  %v527_v18 = vld [vmem:[%s691_s2] ss:$0 sm:$0xff] }
   0x7   :  { %431 = vmatpush.bf16.msra.mxu2 %v425_v1  ;;  %432 = vmatpush.bf16.msra.mxu3 %v425_v1  ;;  %v420_v16 = vld [vmem:[%s690_s0 + $0x58] sm:$0xff] }
   0x8   :  { %v424_v17 = vld [vmem:[%s690_s0 + $0x78] sm:$0xff] }
   0x9   :  { %393 = vmatmul.msk.bf16.vlgmr.msra.gmra.mxu0 %vm147_vm0, %v409_v2  ;;  %397 = vmatmul.msk.bf16.vlgmr.msra.gmra.mxu1 %vm147_vm0, %v413_v3 }
   0xa   :  { %401 = vmatmul.msk.bf16.vlgmr.msra.gmra.mxu2 %vm147_vm0, %v417_v4  ;;  %405 = vmatmul.msk.bf16.vlgmr.msra.gmra.mxu3 %vm147_vm0, %v421_v5 }
  0x19   :  { %394 = vmatmul.msk.bf16.gmra.mxu0 %vm147_vm0, %v410_v6  ;;  %398 = vmatmul.msk.bf16.gmra.mxu1 %vm147_vm0, %v414_v7 }
  0x1a   :  { %402 = vmatmul.msk.bf16.gmra.mxu2 %vm147_vm0, %v418_v8  ;;  %406 = vmatmul.msk.bf16.gmra.mxu3 %vm147_vm0, %v422_v9 }
  0x29   :  { %395 = vmatmul.msk.bf16.gmra.mxu0 %vm147_vm0, %v411_v10  ;;  %399 = vmatmul.msk.bf16.gmra.mxu1 %vm147_vm0, %v415_v11 }
  0x2a   :  { %403 = vmatmul.msk.bf16.gmra.mxu2 %vm147_vm0, %v419_v12  ;;  %407 = vmatmul.msk.bf16.gmra.mxu3 %vm147_vm0, %v423_v13 }
  0x39   :  { %396 = vmatmul.msk.bf16.gmra.mxu0 %vm147_vm0, %v412_v14  ;;  %400 = vmatmul.msk.bf16.gmra.mxu1 %vm147_vm0, %v416_v15 }
  0x3a   :  { %404 = vmatmul.msk.bf16.gmra.mxu2 %vm147_vm0, %v420_v16  ;;  %408 = vmatmul.msk.bf16.gmra.mxu3 %vm147_vm0, %v424_v17 }
  0x86   :  { %v205_v19 = vpop.f32.mrf.mxu0  ;;  %v225_v20 = vpop.f32.mrf.mxu1 }
  0x87   :  { %v206_v21 = vadd.f32 %v527_v18, %v205_v19  ;;  %v226_v22 = vadd.f32 %v527_v18, %v225_v20 }
  0x89   :  { %285 = vst.msk [vmem:[%s692_s3] sm:$0xff] %vm147_vm0, %v206_v21 }
  0x8a   :  { %293 = vst.msk [vmem:[%s692_s3 + $0x40] sm:$0xff] %vm147_vm0, %v226_v22 }
  0x8d   :  { %v245_v23 = vpop.f32.mrf.mxu2  ;;  %v265_v24 = vpop.f32.mrf.mxu3 }
  0x8e   :  { %v246_v25 = vadd.f32 %v527_v18, %v245_v23  ;;  %v266_v26 = vadd.f32 %v527_v18, %v265_v24  ;;  %v207_v27 = vpop.f32.mrf.mxu0  ;;  %v227_v28 = vpop.f32.mrf.mxu1 }
  0x8f   :  { %v208_v29 = vadd.f32 %v527_v18, %v207_v27  ;;  %v228_v30 = vadd.f32 %v527_v18, %v227_v28 }
  0x90   :  { %301 = vst.msk [vmem:[%s692_s3 + $0x80] sm:$0xff] %vm147_vm0, %v246_v25 }
  0x91   :  { %309 = vst.msk [vmem:[%s692_s3 + $0xc0] sm:$0xff] %vm147_vm0, %v266_v26 }
  0x92   :  { %286 = vst.msk [vmem:[%s692_s3 + $0x8] sm:$0xff] %vm147_vm0, %v208_v29 }
  0x93   :  { %294 = vst.msk [vmem:[%s692_s3 + $0x48] sm:$0xff] %vm147_vm0, %v228_v30 }
  0x95   :  { %v247_v31 = vpop.f32.mrf.mxu2  ;;  %v267_v32 = vpop.f32.mrf.mxu3 }
  0x96   :  { %v248_v33 = vadd.f32 %v527_v18, %v247_v31  ;;  %v268_v34 = vadd.f32 %v527_v18, %v267_v32  ;;  %v210_v35 = vpop.f32.mrf.mxu0  ;;  %v230_v36 = vpop.f32.mrf.mxu1 }
  0x97   :  { %v211_v37 = vadd.f32 %v527_v18, %v210_v35  ;;  %v231_v38 = vadd.f32 %v527_v18, %v230_v36 }
  0x98   :  { %302 = vst.msk [vmem:[%s692_s3 + $0x88] sm:$0xff] %vm147_vm0, %v248_v33 }
  0x99   :  { %310 = vst.msk [vmem:[%s692_s3 + $0xc8] sm:$0xff] %vm147_vm0, %v268_v34 }
  0x9a   :  { %287 = vst.msk [vmem:[%s692_s3 + $0x10] sm:$0xff] %vm147_vm0, %v211_v37 }
  0x9b   :  { %295 = vst.msk [vmem:[%s692_s3 + $0x50] sm:$0xff] %vm147_vm0, %v231_v38 }
  0x9d   :  { %v250_v39 = vpop.f32.mrf.mxu2  ;;  %v270_v40 = vpop.f32.mrf.mxu3 }
  0x9e   :  { %v251_v41 = vadd.f32 %v527_v18, %v250_v39  ;;  %v271_v42 = vadd.f32 %v527_v18, %v270_v40  ;;  %v212_v43 = vpop.f32.mrf.mxu0  ;;  %v232_v44 = vpop.f32.mrf.mxu1 }
  0x9f   :  { %v213_v45 = vadd.f32 %v527_v18, %v212_v43  ;;  %v233_v46 = vadd.f32 %v527_v18, %v232_v44 }
  0xa0   :  { %303 = vst.msk [vmem:[%s692_s3 + $0x90] sm:$0xff] %vm147_vm0, %v251_v41 }
  0xa1   :  { %311 = vst.msk [vmem:[%s692_s3 + $0xd0] sm:$0xff] %vm147_vm0, %v271_v42 }
  0xa2   :  { %288 = vst.msk [vmem:[%s692_s3 + $0x18] sm:$0xff] %vm147_vm0, %v213_v45 }
  0xa3   :  { %296 = vst.msk [vmem:[%s692_s3 + $0x58] sm:$0xff] %vm147_vm0, %v233_v46 }
  0xa5   :  { %v252_v47 = vpop.f32.mrf.mxu2  ;;  %v272_v48 = vpop.f32.mrf.mxu3 }
  0xa6   :  { %v253_v49 = vadd.f32 %v527_v18, %v252_v47  ;;  %v273_v50 = vadd.f32 %v527_v18, %v272_v48  ;;  %v215_v51 = vpop.f32.mrf.mxu0  ;;  %v235_v52 = vpop.f32.mrf.mxu1 }
  0xa7   :  { %v216_v53 = vadd.f32 %v527_v18, %v215_v51  ;;  %v236_v54 = vadd.f32 %v527_v18, %v235_v52 }
  0xa8   :  { %304 = vst.msk [vmem:[%s692_s3 + $0x98] sm:$0xff] %vm147_vm0, %v253_v49 }
  0xa9   :  { %312 = vst.msk [vmem:[%s692_s3 + $0xd8] sm:$0xff] %vm147_vm0, %v273_v50 }
  0xaa   :  { %289 = vst.msk [vmem:[%s692_s3 + $0x20] sm:$0xff] %vm147_vm0, %v216_v53 }
  0xab   :  { %297 = vst.msk [vmem:[%s692_s3 + $0x60] sm:$0xff] %vm147_vm0, %v236_v54 }
  0xad   :  { %v255_v55 = vpop.f32.mrf.mxu2  ;;  %v275_v56 = vpop.f32.mrf.mxu3 }
  0xae   :  { %v256_v57 = vadd.f32 %v527_v18, %v255_v55  ;;  %v276_v58 = vadd.f32 %v527_v18, %v275_v56  ;;  %v217_v59 = vpop.f32.mrf.mxu0  ;;  %v237_v60 = vpop.f32.mrf.mxu1 }
  0xaf   :  { %v218_v61 = vadd.f32 %v527_v18, %v217_v59  ;;  %v238_v62 = vadd.f32 %v527_v18, %v237_v60 }
  0xb0   :  { %305 = vst.msk [vmem:[%s692_s3 + $0xa0] sm:$0xff] %vm147_vm0, %v256_v57 }
  0xb1   :  { %313 = vst.msk [vmem:[%s692_s3 + $0xe0] sm:$0xff] %vm147_vm0, %v276_v58 }
  0xb2   :  { %290 = vst.msk [vmem:[%s692_s3 + $0x28] sm:$0xff] %vm147_vm0, %v218_v61 }
  0xb3   :  { %298 = vst.msk [vmem:[%s692_s3 + $0x68] sm:$0xff] %vm147_vm0, %v238_v62 }
  0xb5   :  { %v257_v63 = vpop.f32.mrf.mxu2  ;;  %v277_v0 = vpop.f32.mrf.mxu3 }
  0xb6   :  { %v258_v1 = vadd.f32 %v527_v18, %v257_v63  ;;  %v278_v2 = vadd.f32 %v527_v18, %v277_v0  ;;  %v220_v3 = vpop.f32.mrf.mxu0  ;;  %v240_v4 = vpop.f32.mrf.mxu1 }
  0xb7   :  { %v221_v5 = vadd.f32 %v527_v18, %v220_v3  ;;  %v241_v6 = vadd.f32 %v527_v18, %v240_v4 }
  0xb8   :  { %306 = vst.msk [vmem:[%s692_s3 + $0xa8] sm:$0xff] %vm147_vm0, %v258_v1 }
  0xb9   :  { %314 = vst.msk [vmem:[%s692_s3 + $0xe8] sm:$0xff] %vm147_vm0, %v278_v2 }
  0xba   :  { %291 = vst.msk [vmem:[%s692_s3 + $0x30] sm:$0xff] %vm147_vm0, %v221_v5 }
  0xbb   :  { %299 = vst.msk [vmem:[%s692_s3 + $0x70] sm:$0xff] %vm147_vm0, %v241_v6 }
  0xbd   :  { %v260_v7 = vpop.f32.mrf.mxu2  ;;  %v280_v8 = vpop.f32.mrf.mxu3 }
  0xbe   :  { %v261_v9 = vadd.f32 %v527_v18, %v260_v7  ;;  %v281_v10 = vadd.f32 %v527_v18, %v280_v8  ;;  %v222_v11 = vpop.f32.mrf.mxu0  ;;  %v242_v12 = vpop.f32.mrf.mxu1 }
  0xbf   :  { %v223_v13 = vadd.f32 %v527_v18, %v222_v11  ;;  %v243_v14 = vadd.f32 %v527_v18, %v242_v12 }
  0xc0   :  { %307 = vst.msk [vmem:[%s692_s3 + $0xb0] sm:$0xff] %vm147_vm0, %v261_v9 }
  0xc1   :  { %315 = vst.msk [vmem:[%s692_s3 + $0xf0] sm:$0xff] %vm147_vm0, %v281_v10 }
  0xc2   :  { %292 = vst.msk [vmem:[%s692_s3 + $0x38] sm:$0xff] %vm147_vm0, %v223_v13 }
  0xc3   :  { %300 = vst.msk [vmem:[%s692_s3 + $0x78] sm:$0xff] %vm147_vm0, %v243_v14 }
  0xc5   :  { %v262_v15 = vpop.f32.mrf.mxu2  ;;  %v282_v16 = vpop.f32.mrf.mxu3 }
  0xc6   :  { %v263_v17 = vadd.f32 %v527_v18, %v262_v15  ;;  %v283_v19 = vadd.f32 %v527_v18, %v282_v16 }
  0xc8   :  { %308 = vst.msk [vmem:[%s692_s3 + $0xb8] sm:$0xff] %vm147_vm0, %v263_v17 }
  0xc9   :  { %316 = vst.msk [vmem:[%s692_s3 + $0xf8] sm:$0xff] %vm147_vm0, %v283_v19 }

// kernel: text_encoder_forward.10
= control target key start
LH: loop header
LB: loop body
LE: loop exit
PB: predicated region body
PF: predicated region fallthrough
CT: control target
= control target key end

     0   :  { %vm147_vm0 = vcmask 261120   ;;  %vm317_vm1 = vcmask 781312   ;;  %s722_s1 = inlined_call_operand.vmem [shape: bf16[32,96], index: 1, kind: input, shape index: {}]   ;;  %s723_s0 = inlined_call_operand.vmem [shape: bf16[256,32], index: 0, kind: input, shape index: {}]   ;;  %s724_s2 = inlined_call_operand.vmem [shape: f32[1,96], index: 2, kind: input, shape index: {}]   ;;  %s725_s3 = inlined_call_operand.vmem [shape: bf16[256,96], index: 3, kind: output, shape index: {}]  }
   0x1   :  { %v459_v0 = vld [vmem:[%s722_s1 + $0x8] sm:$0xff]  ;;  %v458_v1 = vld [vmem:[%s722_s1] sm:$0xff]  ;;  %v444_v10 = vld [vmem:[%s723_s0 + $0x10] sm:$0xff] }
   0x2   :  { %202 = vmatpush.bf16.msra.mxu0 %v459_v0  ;;  %460 = vmatpush.bf16.msra.mxu1 %v459_v0  ;;  %v442_v2 = vld [vmem:[%s723_s0] sm:$0xff]  ;;  %v443_v6 = vld [vmem:[%s723_s0 + $0x8] sm:$0xff]  ;;  %v448_v11 = vld [vmem:[%s723_s0 + $0x30] sm:$0xff] }
   0x3   :  { %461 = vmatpush.bf16.msra.mxu2 %v459_v0  ;;  %462 = vmatpush.bf16.msra.mxu3 %v459_v0  ;;  %v446_v3 = vld [vmem:[%s723_s0 + $0x20] sm:$0xff]  ;;  %v447_v7 = vld [vmem:[%s723_s0 + $0x28] sm:$0xff]  ;;  %v452_v12 = vld [vmem:[%s723_s0 + $0x50] sm:$0xff] }
   0x4   :  { %v450_v4 = vld [vmem:[%s723_s0 + $0x40] sm:$0xff]  ;;  %v451_v8 = vld [vmem:[%s723_s0 + $0x48] sm:$0xff]  ;;  %v456_v13 = vld [vmem:[%s723_s0 + $0x70] sm:$0xff] }
   0x5   :  { %v454_v5 = vld [vmem:[%s723_s0 + $0x60] sm:$0xff]  ;;  %v455_v9 = vld [vmem:[%s723_s0 + $0x68] sm:$0xff]  ;;  %v445_v14 = vld [vmem:[%s723_s0 + $0x18] sm:$0xff] }
   0x6   :  { %203 = vmatpush.bf16.msra.mxu0 %v458_v1  ;;  %463 = vmatpush.bf16.msra.mxu1 %v458_v1  ;;  %v449_v15 = vld [vmem:[%s723_s0 + $0x38] sm:$0xff]  ;;  %v560_v18 = vld [vmem:[%s724_s2] ss:$0 sm:$0xff] }
   0x7   :  { %464 = vmatpush.bf16.msra.mxu2 %v458_v1  ;;  %465 = vmatpush.bf16.msra.mxu3 %v458_v1  ;;  %v453_v16 = vld [vmem:[%s723_s0 + $0x58] sm:$0xff] }
   0x8   :  { %v457_v17 = vld [vmem:[%s723_s0 + $0x78] sm:$0xff] }
   0x9   :  { %426 = vmatmul.msk.bf16.vlgmr.msra.gmra.mxu0 %vm147_vm0, %v442_v2  ;;  %430 = vmatmul.msk.bf16.vlgmr.msra.gmra.mxu1 %vm147_vm0, %v446_v3 }
   0xa   :  { %434 = vmatmul.msk.bf16.vlgmr.msra.gmra.mxu2 %vm147_vm0, %v450_v4  ;;  %438 = vmatmul.msk.bf16.vlgmr.msra.gmra.mxu3 %vm147_vm0, %v454_v5 }
  0x19   :  { %427 = vmatmul.msk.bf16.gmra.mxu0 %vm147_vm0, %v443_v6  ;;  %431 = vmatmul.msk.bf16.gmra.mxu1 %vm147_vm0, %v447_v7 }
  0x1a   :  { %435 = vmatmul.msk.bf16.gmra.mxu2 %vm147_vm0, %v451_v8  ;;  %439 = vmatmul.msk.bf16.gmra.mxu3 %vm147_vm0, %v455_v9 }
  0x29   :  { %428 = vmatmul.msk.bf16.gmra.mxu0 %vm147_vm0, %v444_v10  ;;  %432 = vmatmul.msk.bf16.gmra.mxu1 %vm147_vm0, %v448_v11 }
  0x2a   :  { %436 = vmatmul.msk.bf16.gmra.mxu2 %vm147_vm0, %v452_v12  ;;  %440 = vmatmul.msk.bf16.gmra.mxu3 %vm147_vm0, %v456_v13 }
  0x39   :  { %429 = vmatmul.msk.bf16.gmra.mxu0 %vm147_vm0, %v445_v14  ;;  %433 = vmatmul.msk.bf16.gmra.mxu1 %vm147_vm0, %v449_v15 }
  0x3a   :  { %437 = vmatmul.msk.bf16.gmra.mxu2 %vm147_vm0, %v453_v16  ;;  %441 = vmatmul.msk.bf16.gmra.mxu3 %vm147_vm0, %v457_v17 }
  0x86   :  { %v205_v19 = vpop.f32.mrf.mxu0  ;;  %v225_v20 = vpop.f32.mrf.mxu1 }
  0x87   :  { %v206_v21 = vadd.f32 %v560_v18, %v205_v19  ;;  %v226_v22 = vadd.f32 %v560_v18, %v225_v20 }
  0x89   :  { %v285_v23 = vpack.c.bf16 %v206_v21, %v206_v21  ;;  %v293_v24 = vpack.c.bf16 %v226_v22, %v226_v22 }
  0x8b   :  { %318 = vst.msk [vmem:[%s725_s3] sm:$0xf] %vm317_vm1, %v285_v23 }
  0x8c   :  { %326 = vst.msk [vmem:[%s725_s3 + $0x20] sm:$0xf] %vm317_vm1, %v293_v24 }
  0x8d   :  { %v245_v25 = vpop.f32.mrf.mxu2  ;;  %v265_v26 = vpop.f32.mrf.mxu3 }
  0x8e   :  { %v246_v27 = vadd.f32 %v560_v18, %v245_v25  ;;  %v266_v28 = vadd.f32 %v560_v18, %v265_v26  ;;  %v207_v29 = vpop.f32.mrf.mxu0  ;;  %v227_v30 = vpop.f32.mrf.mxu1 }
  0x8f   :  { %v208_v31 = vadd.f32 %v560_v18, %v207_v29  ;;  %v228_v32 = vadd.f32 %v560_v18, %v227_v30 }
  0x90   :  { %v301_v33 = vpack.c.bf16 %v246_v27, %v246_v27  ;;  %v309_v34 = vpack.c.bf16 %v266_v28, %v266_v28 }
  0x91   :  { %v286_v35 = vpack.c.bf16 %v208_v31, %v208_v31  ;;  %v294_v36 = vpack.c.bf16 %v228_v32, %v228_v32 }
  0x92   :  { %334 = vst.msk [vmem:[%s725_s3 + $0x40] sm:$0xf] %vm317_vm1, %v301_v33 }
  0x93   :  { %342 = vst.msk [vmem:[%s725_s3 + $0x60] sm:$0xf] %vm317_vm1, %v309_v34 }
  0x94   :  { %319 = vst.msk [vmem:[%s725_s3 + $0x4] sm:$0xf] %vm317_vm1, %v286_v35 }
  0x95   :  { %327 = vst.msk [vmem:[%s725_s3 + $0x24] sm:$0xf] %vm317_vm1, %v294_v36  ;;  %v247_v37 = vpop.f32.mrf.mxu2  ;;  %v267_v38 = vpop.f32.mrf.mxu3 }
  0x96   :  { %v248_v39 = vadd.f32 %v560_v18, %v247_v37  ;;  %v268_v40 = vadd.f32 %v560_v18, %v267_v38  ;;  %v210_v41 = vpop.f32.mrf.mxu0  ;;  %v230_v42 = vpop.f32.mrf.mxu1 }
  0x97   :  { %v211_v43 = vadd.f32 %v560_v18, %v210_v41  ;;  %v231_v44 = vadd.f32 %v560_v18, %v230_v42 }
  0x98   :  { %v302_v45 = vpack.c.bf16 %v248_v39, %v248_v39  ;;  %v310_v46 = vpack.c.bf16 %v268_v40, %v268_v40 }
  0x99   :  { %v287_v47 = vpack.c.bf16 %v211_v43, %v211_v43  ;;  %v295_v48 = vpack.c.bf16 %v231_v44, %v231_v44 }
  0x9a   :  { %335 = vst.msk [vmem:[%s725_s3 + $0x44] sm:$0xf] %vm317_vm1, %v302_v45 }
  0x9b   :  { %343 = vst.msk [vmem:[%s725_s3 + $0x64] sm:$0xf] %vm317_vm1, %v310_v46 }
  0x9c   :  { %320 = vst.msk [vmem:[%s725_s3 + $0x8] sm:$0xf] %vm317_vm1, %v287_v47 }
  0x9d   :  { %328 = vst.msk [vmem:[%s725_s3 + $0x28] sm:$0xf] %vm317_vm1, %v295_v48  ;;  %v250_v49 = vpop.f32.mrf.mxu2  ;;  %v270_v50 = vpop.f32.mrf.mxu3 }
  0x9e   :  { %v251_v51 = vadd.f32 %v560_v18, %v250_v49  ;;  %v271_v52 = vadd.f32 %v560_v18, %v270_v50  ;;  %v212_v53 = vpop.f32.mrf.mxu0  ;;  %v232_v54 = vpop.f32.mrf.mxu1 }
  0x9f   :  { %v213_v55 = vadd.f32 %v560_v18, %v212_v53  ;;  %v233_v56 = vadd.f32 %v560_v18, %v232_v54 }
  0xa0   :  { %v303_v57 = vpack.c.bf16 %v251_v51, %v251_v51  ;;  %v311_v58 = vpack.c.bf16 %v271_v52, %v271_v52 }
  0xa1   :  { %v288_v59 = vpack.c.bf16 %v213_v55, %v213_v55  ;;  %v296_v60 = vpack.c.bf16 %v233_v56, %v233_v56 }
  0xa2   :  { %336 = vst.msk [vmem:[%s725_s3 + $0x48] sm:$0xf] %vm317_vm1, %v303_v57 }
  0xa3   :  { %344 = vst.msk [vmem:[%s725_s3 + $0x68] sm:$0xf] %vm317_vm1, %v311_v58 }
  0xa4   :  { %321 = vst.msk [vmem:[%s725_s3 + $0xc] sm:$0xf] %vm317_vm1, %v288_v59 }
  0xa5   :  { %329 = vst.msk [vmem:[%s725_s3 + $0x2c] sm:$0xf] %vm317_vm1, %v296_v60  ;;  %v252_v61 = vpop.f32.mrf.mxu2  ;;  %v272_v62 = vpop.f32.mrf.mxu3 }
  0xa6   :  { %v253_v63 = vadd.f32 %v560_v18, %v252_v61  ;;  %v273_v0 = vadd.f32 %v560_v18, %v272_v62  ;;  %v215_v1 = vpop.f32.mrf.mxu0  ;;  %v235_v2 = vpop.f32.mrf.mxu1 }
  0xa7   :  { %v216_v3 = vadd.f32 %v560_v18, %v215_v1  ;;  %v236_v4 = vadd.f32 %v560_v18, %v235_v2 }
  0xa8   :  { %v304_v5 = vpack.c.bf16 %v253_v63, %v253_v63  ;;  %v312_v6 = vpack.c.bf16 %v273_v0, %v273_v0 }
  0xa9   :  { %v289_v7 = vpack.c.bf16 %v216_v3, %v216_v3  ;;  %v297_v8 = vpack.c.bf16 %v236_v4, %v236_v4 }
  0xaa   :  { %337 = vst.msk [vmem:[%s725_s3 + $0x4c] sm:$0xf] %vm317_vm1, %v304_v5 }
  0xab   :  { %345 = vst.msk [vmem:[%s725_s3 + $0x6c] sm:$0xf] %vm317_vm1, %v312_v6 }
  0xac   :  { %322 = vst.msk [vmem:[%s725_s3 + $0x10] sm:$0xf] %vm317_vm1, %v289_v7 }
  0xad   :  { %330 = vst.msk [vmem:[%s725_s3 + $0x30] sm:$0xf] %vm317_vm1, %v297_v8  ;;  %v255_v9 = vpop.f32.mrf.mxu2  ;;  %v275_v10 = vpop.f32.mrf.mxu3 }
  0xae   :  { %v256_v11 = vadd.f32 %v560_v18, %v255_v9  ;;  %v276_v12 = vadd.f32 %v560_v18, %v275_v10  ;;  %v217_v13 = vpop.f32.mrf.mxu0  ;;  %v237_v14 = vpop.f32.mrf.mxu1 }
  0xaf   :  { %v218_v15 = vadd.f32 %v560_v18, %v217_v13  ;;  %v238_v16 = vadd.f32 %v560_v18, %v237_v14 }
  0xb0   :  { %v305_v17 = vpack.c.bf16 %v256_v11, %v256_v11  ;;  %v313_v19 = vpack.c.bf16 %v276_v12, %v276_v12 }
  0xb1   :  { %v290_v20 = vpack.c.bf16 %v218_v15, %v218_v15  ;;  %v298_v21 = vpack.c.bf16 %v238_v16, %v238_v16 }
  0xb2   :  { %338 = vst.msk [vmem:[%s725_s3 + $0x50] sm:$0xf] %vm317_vm1, %v305_v17 }
  0xb3   :  { %346 = vst.msk [vmem:[%s725_s3 + $0x70] sm:$0xf] %vm317_vm1, %v313_v19 }
  0xb4   :  { %323 = vst.msk [vmem:[%s725_s3 + $0x14] sm:$0xf] %vm317_vm1, %v290_v20 }
  0xb5   :  { %331 = vst.msk [vmem:[%s725_s3 + $0x34] sm:$0xf] %vm317_vm1, %v298_v21  ;;  %v257_v22 = vpop.f32.mrf.mxu2  ;;  %v277_v23 = vpop.f32.mrf.mxu3 }
  0xb6   :  { %v258_v24 = vadd.f32 %v560_v18, %v257_v22  ;;  %v278_v25 = vadd.f32 %v560_v18, %v277_v23  ;;  %v220_v26 = vpop.f32.mrf.mxu0  ;;  %v240_v27 = vpop.f32.mrf.mxu1 }
  0xb7   :  { %v221_v28 = vadd.f32 %v560_v18, %v220_v26  ;;  %v241_v29 = vadd.f32 %v560_v18, %v240_v27 }
  0xb8   :  { %v306_v30 = vpack.c.bf16 %v258_v24, %v258_v24  ;;  %v314_v31 = vpack.c.bf16 %v278_v25, %v278_v25 }
  0xb9   :  { %v291_v32 = vpack.c.bf16 %v221_v28, %v221_v28  ;;  %v299_v33 = vpack.c.bf16 %v241_v29, %v241_v29 }
  0xba   :  { %339 = vst.msk [vmem:[%s725_s3 + $0x54] sm:$0xf] %vm317_vm1, %v306_v30 }
  0xbb   :  { %347 = vst.msk [vmem:[%s725_s3 + $0x74] sm:$0xf] %vm317_vm1, %v314_v31 }
  0xbc   :  { %324 = vst.msk [vmem:[%s725_s3 + $0x18] sm:$0xf] %vm317_vm1, %v291_v32 }
  0xbd   :  { %332 = vst.msk [vmem:[%s725_s3 + $0x38] sm:$0xf] %vm317_vm1, %v299_v33  ;;  %v260_v34 = vpop.f32.mrf.mxu2  ;;  %v280_v35 = vpop.f32.mrf.mxu3 }
  0xbe   :  { %v261_v36 = vadd.f32 %v560_v18, %v260_v34  ;;  %v281_v37 = vadd.f32 %v560_v18, %v280_v35  ;;  %v222_v38 = vpop.f32.mrf.mxu0  ;;  %v242_v39 = vpop.f32.mrf.mxu1 }
  0xbf   :  { %v223_v40 = vadd.f32 %v560_v18, %v222_v38  ;;  %v243_v41 = vadd.f32 %v560_v18, %v242_v39 }
  0xc0   :  { %v307_v42 = vpack.c.bf16 %v261_v36, %v261_v36  ;;  %v315_v43 = vpack.c.bf16 %v281_v37, %v281_v37 }
  0xc1   :  { %v292_v44 = vpack.c.bf16 %v223_v40, %v223_v40  ;;  %v300_v45 = vpack.c.bf16 %v243_v41, %v243_v41 }
  0xc2   :  { %340 = vst.msk [vmem:[%s725_s3 + $0x58] sm:$0xf] %vm317_vm1, %v307_v42 }
  0xc3   :  { %348 = vst.msk [vmem:[%s725_s3 + $0x78] sm:$0xf] %vm317_vm1, %v315_v43 }
  0xc4   :  { %325 = vst.msk [vmem:[%s725_s3 + $0x1c] sm:$0xf] %vm317_vm1, %v292_v44 }
  0xc5   :  { %333 = vst.msk [vmem:[%s725_s3 + $0x3c] sm:$0xf] %vm317_vm1, %v300_v45  ;;  %v262_v46 = vpop.f32.mrf.mxu2  ;;  %v282_v47 = vpop.f32.mrf.mxu3 }
  0xc6   :  { %v263_v48 = vadd.f32 %v560_v18, %v262_v46  ;;  %v283_v49 = vadd.f32 %v560_v18, %v282_v47 }
  0xc8   :  { %v308_v50 = vpack.c.bf16 %v263_v48, %v263_v48  ;;  %v316_v51 = vpack.c.bf16 %v283_v49, %v283_v49 }
  0xca   :  { %341 = vst.msk [vmem:[%s725_s3 + $0x5c] sm:$0xf] %vm317_vm1, %v308_v50 }
  0xcb   :  { %349 = vst.msk [vmem:[%s725_s3 + $0x7c] sm:$0xf] %vm317_vm1, %v316_v51 }

// kernel: text_encoder_forward.13
= control target key start
LH: loop header
LB: loop body
LE: loop exit
PB: predicated region body
PF: predicated region fallthrough
CT: control target
= control target key end

     0   :  { %vm179_vm0 = vcmask 785408   ;;  %vm381_vm1 = vcmask 519168   ;;  %s830_s1 = inlined_call_operand.vmem [shape: bf16[96,64], index: 1, kind: input, shape index: {}]   ;;  %s831_s2 = inlined_call_operand.vmem [shape: f32[1,64], index: 2, kind: input, shape index: {}]   ;;  %s832_s0 = inlined_call_operand.vmem [shape: bf16[256,96], index: 0, kind: input, shape index: {}]   ;;  %s833_s3 = inlined_call_operand.vmem [shape: bf16[256,64], index: 3, kind: output, shape index: {}]  }
   0x1   :  { %v543_v0 = vld [vmem:[%s830_s1 + $0x28] sm:$0xff]  ;;  %v542_v1 = vld [vmem:[%s830_s1 + $0x20] sm:$0xff]  ;;  %v541_v2 = vld [vmem:[%s830_s1 + $0x18] sm:$0xff] }
   0x2   :  { %230 = vmatpush.bf16.msra.mxu0 %v543_v0  ;;  %544 = vmatpush.bf16.msra.mxu1 %v543_v0  ;;  %v540_v3 = vld [vmem:[%s830_s1 + $0x10] sm:$0xff]  ;;  %v539_v4 = vld [vmem:[%s830_s1 + $0x8] sm:$0xff]  ;;  %v538_v5 = vld [vmem:[%s830_s1] sm:$0xff] }
   0x3   :  { %545 = vmatpush.bf16.msra.mxu2 %v543_v0  ;;  %546 = vmatpush.bf16.msra.mxu3 %v543_v0  ;;  %v522_v6 = vld [vmem:[%s832_s0] sm:$0xff]  ;;  %v523_v10 = vld [vmem:[%s832_s0 + $0x8] sm:$0xff]  ;;  %v524_v14 = vld [vmem:[%s832_s0 + $0x10] sm:$0xff] }
   0x4   :  { %v526_v7 = vld [vmem:[%s832_s0 + $0x20] sm:$0xff]  ;;  %v527_v11 = vld [vmem:[%s832_s0 + $0x28] sm:$0xff]  ;;  %v528_v15 = vld [vmem:[%s832_s0 + $0x30] sm:$0xff] }
   0x5   :  { %v530_v8 = vld [vmem:[%s832_s0 + $0x40] sm:$0xff]  ;;  %v531_v12 = vld [vmem:[%s832_s0 + $0x48] sm:$0xff]  ;;  %v532_v16 = vld [vmem:[%s832_s0 + $0x50] sm:$0xff] }
   0x6   :  { %231 = vmatpush.bf16.msra.mxu0 %v542_v1  ;;  %547 = vmatpush.bf16.msra.mxu1 %v542_v1  ;;  %v534_v9 = vld [vmem:[%s832_s0 + $0x60] sm:$0xff]  ;;  %v535_v13 = vld [vmem:[%s832_s0 + $0x68] sm:$0xff]  ;;  %v536_v17 = vld [vmem:[%s832_s0 + $0x70] sm:$0xff] }
   0x7   :  { %548 = vmatpush.bf16.msra.mxu2 %v542_v1  ;;  %549 = vmatpush.bf16.msra.mxu3 %v542_v1  ;;  %v525_v18 = vld [vmem:[%s832_s0 + $0x18] sm:$0xff]  ;;  %v668_v22 = vld [vmem:[%s831_s2] ss:$0 sm:$0xff] }
   0x8   :  { %v529_v19 = vld [vmem:[%s832_s0 + $0x38] sm:$0xff] }
   0x9   :  { %v533_v20 = vld [vmem:[%s832_s0 + $0x58] sm:$0xff] }
   0xa   :  { %232 = vmatpush.bf16.msra.mxu0 %v541_v2  ;;  %550 = vmatpush.bf16.msra.mxu1 %v541_v2  ;;  %v537_v21 = vld [vmem:[%s832_s0 + $0x78] sm:$0xff] }
   0xb   :  { %551 = vmatpush.bf16.msra.mxu2 %v541_v2  ;;  %552 = vmatpush.bf16.msra.mxu3 %v541_v2 }
   0xe   :  { %233 = vmatpush.bf16.msra.mxu0 %v540_v3  ;;  %553 = vmatpush.bf16.msra.mxu1 %v540_v3 }
   0xf   :  { %554 = vmatpush.bf16.msra.mxu2 %v540_v3  ;;  %555 = vmatpush.bf16.msra.mxu3 %v540_v3 }
  0x12   :  { %234 = vmatpush.bf16.msra.mxu0 %v539_v4  ;;  %556 = vmatpush.bf16.msra.mxu1 %v539_v4 }
  0x13   :  { %557 = vmatpush.bf16.msra.mxu2 %v539_v4  ;;  %558 = vmatpush.bf16.msra.mxu3 %v539_v4 }
  0x16   :  { %235 = vmatpush.bf16.msra.mxu0 %v538_v5  ;;  %559 = vmatpush.bf16.msra.mxu1 %v538_v5 }
  0x17   :  { %560 = vmatpush.bf16.msra.mxu2 %v538_v5  ;;  %561 = vmatpush.bf16.msra.mxu3 %v538_v5 }
  0x19   :  { %506 = vmatmul.msk.bf16.vlgmr.msra.gmra.mxu0 %vm179_vm0, %v522_v6  ;;  %510 = vmatmul.msk.bf16.vlgmr.msra.gmra.mxu1 %vm179_vm0, %v526_v7 }
  0x1a   :  { %514 = vmatmul.msk.bf16.vlgmr.msra.gmra.mxu2 %vm179_vm0, %v530_v8  ;;  %518 = vmatmul.msk.bf16.vlgmr.msra.gmra.mxu3 %vm179_vm0, %v534_v9 }
  0x29   :  { %507 = vmatmul.msk.bf16.gmra.mxu0 %vm179_vm0, %v523_v10  ;;  %511 = vmatmul.msk.bf16.gmra.mxu1 %vm179_vm0, %v527_v11 }
  0x2a   :  { %515 = vmatmul.msk.bf16.gmra.mxu2 %vm179_vm0, %v531_v12  ;;  %519 = vmatmul.msk.bf16.gmra.mxu3 %vm179_vm0, %v535_v13 }
  0x39   :  { %508 = vmatmul.msk.bf16.gmra.mxu0 %vm179_vm0, %v524_v14  ;;  %512 = vmatmul.msk.bf16.gmra.mxu1 %vm179_vm0, %v528_v15 }
  0x3a   :  { %516 = vmatmul.msk.bf16.gmra.mxu2 %vm179_vm0, %v532_v16  ;;  %520 = vmatmul.msk.bf16.gmra.mxu3 %vm179_vm0, %v536_v17 }
  0x49   :  { %509 = vmatmul.msk.bf16.gmra.mxu0 %vm179_vm0, %v525_v18  ;;  %513 = vmatmul.msk.bf16.gmra.mxu1 %vm179_vm0, %v529_v19 }
  0x4a   :  { %517 = vmatmul.msk.bf16.gmra.mxu2 %vm179_vm0, %v533_v20  ;;  %521 = vmatmul.msk.bf16.gmra.mxu3 %vm179_vm0, %v537_v21 }
  0x96   :  { %v237_v23 = vpop.f32.mrf.mxu0  ;;  %v257_v24 = vpop.f32.mrf.mxu1 }
  0x97   :  { %v238_v25 = vadd.f32 %v668_v22, %v237_v23  ;;  %v258_v26 = vadd.f32 %v668_v22, %v257_v24 }
  0x99   :  { %v317_v27 = vmax.f32 %v238_v25, 0.0  ;;  %v325_v28 = vmax.f32 %v258_v26, 0.0 }
  0x9b   :  { %v349_v29 = vpack.c.bf16 %v317_v27, %v317_v27  ;;  %v357_v30 = vpack.c.bf16 %v325_v28, %v325_v28 }
  0x9d   :  { %382 = vst.msk [vmem:[%s833_s3] sm:$0xf] %vm381_vm1, %v349_v29  ;;  %v277_v31 = vpop.f32.mrf.mxu2  ;;  %v297_v32 = vpop.f32.mrf.mxu3 }
  0x9e   :  { %390 = vst.msk [vmem:[%s833_s3 + $0x20] sm:$0xf] %vm381_vm1, %v357_v30  ;;  %v278_v33 = vadd.f32 %v668_v22, %v277_v31  ;;  %v298_v34 = vadd.f32 %v668_v22, %v297_v32  ;;  %v239_v35 = vpop.f32.mrf.mxu0  ;;  %v259_v36 = vpop.f32.mrf.mxu1 }
  0x9f   :  { %v240_v37 = vadd.f32 %v668_v22, %v239_v35  ;;  %v260_v38 = vadd.f32 %v668_v22, %v259_v36 }
  0xa0   :  { %v333_v39 = vmax.f32 %v278_v33, 0.0  ;;  %v341_v40 = vmax.f32 %v298_v34, 0.0 }
  0xa1   :  { %v318_v41 = vmax.f32 %v240_v37, 0.0  ;;  %v326_v42 = vmax.f32 %v260_v38, 0.0 }
  0xa2   :  { %v365_v43 = vpack.c.bf16 %v333_v39, %v333_v39  ;;  %v373_v44 = vpack.c.bf16 %v341_v40, %v341_v40 }
  0xa3   :  { %v350_v45 = vpack.c.bf16 %v318_v41, %v318_v41  ;;  %v358_v46 = vpack.c.bf16 %v326_v42, %v326_v42 }
  0xa4   :  { %398 = vst.msk [vmem:[%s833_s3 + $0x40] sm:$0xf] %vm381_vm1, %v365_v43 }
  0xa5   :  { %406 = vst.msk [vmem:[%s833_s3 + $0x60] sm:$0xf] %vm381_vm1, %v373_v44  ;;  %v279_v47 = vpop.f32.mrf.mxu2  ;;  %v299_v48 = vpop.f32.mrf.mxu3 }
  0xa6   :  { %383 = vst.msk [vmem:[%s833_s3 + $0x4] sm:$0xf] %vm381_vm1, %v350_v45  ;;  %v280_v49 = vadd.f32 %v668_v22, %v279_v47  ;;  %v300_v50 = vadd.f32 %v668_v22, %v299_v48  ;;  %v242_v51 = vpop.f32.mrf.mxu0  ;;  %v262_v52 = vpop.f32.mrf.mxu1 }
  0xa7   :  { %391 = vst.msk [vmem:[%s833_s3 + $0x24] sm:$0xf] %vm381_vm1, %v358_v46  ;;  %v243_v53 = vadd.f32 %v668_v22, %v242_v51  ;;  %v263_v54 = vadd.f32 %v668_v22, %v262_v52 }
  0xa8   :  { %v334_v55 = vmax.f32 %v280_v49, 0.0  ;;  %v342_v56 = vmax.f32 %v300_v50, 0.0 }
  0xa9   :  { %v319_v57 = vmax.f32 %v243_v53, 0.0  ;;  %v327_v58 = vmax.f32 %v263_v54, 0.0 }
  0xaa   :  { %v366_v59 = vpack.c.bf16 %v334_v55, %v334_v55  ;;  %v374_v60 = vpack.c.bf16 %v342_v56, %v342_v56 }
  0xab   :  { %v351_v61 = vpack.c.bf16 %v319_v57, %v319_v57  ;;  %v359_v62 = vpack.c.bf16 %v327_v58, %v327_v58 }
  0xac   :  { %399 = vst.msk [vmem:[%s833_s3 + $0x44] sm:$0xf] %vm381_vm1, %v366_v59 }
  0xad   :  { %407 = vst.msk [vmem:[%s833_s3 + $0x64] sm:$0xf] %vm381_vm1, %v374_v60  ;;  %v282_v63 = vpop.f32.mrf.mxu2  ;;  %v302_v0 = vpop.f32.mrf.mxu3 }
  0xae   :  { %384 = vst.msk [vmem:[%s833_s3 + $0x8] sm:$0xf] %vm381_vm1, %v351_v61  ;;  %v283_v1 = vadd.f32 %v668_v22, %v282_v63  ;;  %v303_v2 = vadd.f32 %v668_v22, %v302_v0  ;;  %v244_v3 = vpop.f32.mrf.mxu0  ;;  %v264_v4 = vpop.f32.mrf.mxu1 }
  0xaf   :  { %392 = vst.msk [vmem:[%s833_s3 + $0x28] sm:$0xf] %vm381_vm1, %v359_v62  ;;  %v245_v5 = vadd.f32 %v668_v22, %v244_v3  ;;  %v265_v6 = vadd.f32 %v668_v22, %v264_v4 }
  0xb0   :  { %v335_v7 = vmax.f32 %v283_v1, 0.0  ;;  %v343_v8 = vmax.f32 %v303_v2, 0.0 }
  0xb1   :  { %v320_v9 = vmax.f32 %v245_v5, 0.0  ;;  %v328_v10 = vmax.f32 %v265_v6, 0.0 }
  0xb2   :  { %v367_v11 = vpack.c.bf16 %v335_v7, %v335_v7  ;;  %v375_v12 = vpack.c.bf16 %v343_v8, %v343_v8 }
  0xb3   :  { %v352_v13 = vpack.c.bf16 %v320_v9, %v320_v9  ;;  %v360_v14 = vpack.c.bf16 %v328_v10, %v328_v10 }
  0xb4   :  { %400 = vst.msk [vmem:[%s833_s3 + $0x48] sm:$0xf] %vm381_vm1, %v367_v11 }
  0xb5   :  { %408 = vst.msk [vmem:[%s833_s3 + $0x68] sm:$0xf] %vm381_vm1, %v375_v12  ;;  %v284_v15 = vpop.f32.mrf.mxu2  ;;  %v304_v16 = vpop.f32.mrf.mxu3 }
  0xb6   :  { %385 = vst.msk [vmem:[%s833_s3 + $0xc] sm:$0xf] %vm381_vm1, %v352_v13  ;;  %v285_v17 = vadd.f32 %v668_v22, %v284_v15  ;;  %v305_v18 = vadd.f32 %v668_v22, %v304_v16  ;;  %v247_v19 = vpop.f32.mrf.mxu0  ;;  %v267_v20 = vpop.f32.mrf.mxu1 }
  0xb7   :  { %393 = vst.msk [vmem:[%s833_s3 + $0x2c] sm:$0xf] %vm381_vm1, %v360_v14  ;;  %v248_v21 = vadd.f32 %v668_v22, %v247_v19  ;;  %v268_v23 = vadd.f32 %v668_v22, %v267_v20 }
  0xb8   :  { %v336_v24 = vmax.f32 %v285_v17, 0.0  ;;  %v344_v25 = vmax.f32 %v305_v18, 0.0 }
  0xb9   :  { %v321_v26 = vmax.f32 %v248_v21, 0.0  ;;  %v329_v27 = vmax.f32 %v268_v23, 0.0 }
  0xba   :  { %v368_v28 = vpack.c.bf16 %v336_v24, %v336_v24  ;;  %v376_v29 = vpack.c.bf16 %v344_v25, %v344_v25 }
  0xbb   :  { %v353_v30 = vpack.c.bf16 %v321_v26, %v321_v26  ;;  %v361_v31 = vpack.c.bf16 %v329_v27, %v329_v27 }
  0xbc   :  { %401 = vst.msk [vmem:[%s833_s3 + $0x4c] sm:$0xf] %vm381_vm1, %v368_v28 }
  0xbd   :  { %409 = vst.msk [vmem:[%s833_s3 + $0x6c] sm:$0xf] %vm381_vm1, %v376_v29  ;;  %v287_v32 = vpop.f32.mrf.mxu2  ;;  %v307_v33 = vpop.f32.mrf.mxu3 }
  0xbe   :  { %386 = vst.msk [vmem:[%s833_s3 + $0x10] sm:$0xf] %vm381_vm1, %v353_v30  ;;  %v288_v34 = vadd.f32 %v668_v22, %v287_v32  ;;  %v308_v35 = vadd.f32 %v668_v22, %v307_v33  ;;  %v249_v36 = vpop.f32.mrf.mxu0  ;;  %v269_v37 = vpop.f32.mrf.mxu1 }
  0xbf   :  { %394 = vst.msk [vmem:[%s833_s3 + $0x30] sm:$0xf] %vm381_vm1, %v361_v31  ;;  %v250_v38 = vadd.f32 %v668_v22, %v249_v36  ;;  %v270_v39 = vadd.f32 %v668_v22, %v269_v37 }
  0xc0   :  { %v337_v40 = vmax.f32 %v288_v34, 0.0  ;;  %v345_v41 = vmax.f32 %v308_v35, 0.0 }
  0xc1   :  { %v322_v42 = vmax.f32 %v250_v38, 0.0  ;;  %v330_v43 = vmax.f32 %v270_v39, 0.0 }
  0xc2   :  { %v369_v44 = vpack.c.bf16 %v337_v40, %v337_v40  ;;  %v377_v45 = vpack.c.bf16 %v345_v41, %v345_v41 }
  0xc3   :  { %v354_v46 = vpack.c.bf16 %v322_v42, %v322_v42  ;;  %v362_v47 = vpack.c.bf16 %v330_v43, %v330_v43 }
  0xc4   :  { %402 = vst.msk [vmem:[%s833_s3 + $0x50] sm:$0xf] %vm381_vm1, %v369_v44 }
  0xc5   :  { %410 = vst.msk [vmem:[%s833_s3 + $0x70] sm:$0xf] %vm381_vm1, %v377_v45  ;;  %v289_v48 = vpop.f32.mrf.mxu2  ;;  %v309_v49 = vpop.f32.mrf.mxu3 }
  0xc6   :  { %387 = vst.msk [vmem:[%s833_s3 + $0x14] sm:$0xf] %vm381_vm1, %v354_v46  ;;  %v290_v50 = vadd.f32 %v668_v22, %v289_v48  ;;  %v310_v51 = vadd.f32 %v668_v22, %v309_v49  ;;  %v252_v52 = vpop.f32.mrf.mxu0  ;;  %v272_v53 = vpop.f32.mrf.mxu1 }
  0xc7   :  { %395 = vst.msk [vmem:[%s833_s3 + $0x34] sm:$0xf] %vm381_vm1, %v362_v47  ;;  %v253_v54 = vadd.f32 %v668_v22, %v252_v52  ;;  %v273_v55 = vadd.f32 %v668_v22, %v272_v53 }
  0xc8   :  { %v338_v56 = vmax.f32 %v290_v50, 0.0  ;;  %v346_v57 = vmax.f32 %v310_v51, 0.0 }
  0xc9   :  { %v323_v58 = vmax.f32 %v253_v54, 0.0  ;;  %v331_v59 = vmax.f32 %v273_v55, 0.0 }
  0xca   :  { %v370_v60 = vpack.c.bf16 %v338_v56, %v338_v56  ;;  %v378_v61 = vpack.c.bf16 %v346_v57, %v346_v57 }
  0xcb   :  { %v355_v62 = vpack.c.bf16 %v323_v58, %v323_v58  ;;  %v363_v63 = vpack.c.bf16 %v331_v59, %v331_v59 }
  0xcc   :  { %403 = vst.msk [vmem:[%s833_s3 + $0x54] sm:$0xf] %vm381_vm1, %v370_v60 }
  0xcd   :  { %411 = vst.msk [vmem:[%s833_s3 + $0x74] sm:$0xf] %vm381_vm1, %v378_v61  ;;  %v292_v0 = vpop.f32.mrf.mxu2  ;;  %v312_v1 = vpop.f32.mrf.mxu3 }
  0xce   :  { %388 = vst.msk [vmem:[%s833_s3 + $0x18] sm:$0xf] %vm381_vm1, %v355_v62  ;;  %v293_v2 = vadd.f32 %v668_v22, %v292_v0  ;;  %v313_v3 = vadd.f32 %v668_v22, %v312_v1  ;;  %v254_v4 = vpop.f32.mrf.mxu0  ;;  %v274_v5 = vpop.f32.mrf.mxu1 }
  0xcf   :  { %396 = vst.msk [vmem:[%s833_s3 + $0x38] sm:$0xf] %vm381_vm1, %v363_v63  ;;  %v255_v6 = vadd.f32 %v668_v22, %v254_v4  ;;  %v275_v7 = vadd.f32 %v668_v22, %v274_v5 }
  0xd0   :  { %v339_v8 = vmax.f32 %v293_v2, 0.0  ;;  %v347_v9 = vmax.f32 %v313_v3, 0.0 }
  0xd1   :  { %v324_v10 = vmax.f32 %v255_v6, 0.0  ;;  %v332_v11 = vmax.f32 %v275_v7, 0.0 }
  0xd2   :  { %v371_v12 = vpack.c.bf16 %v339_v8, %v339_v8  ;;  %v379_v13 = vpack.c.bf16 %v347_v9, %v347_v9 }
  0xd3   :  { %v356_v14 = vpack.c.bf16 %v324_v10, %v324_v10  ;;  %v364_v15 = vpack.c.bf16 %v332_v11, %v332_v11 }
  0xd4   :  { %404 = vst.msk [vmem:[%s833_s3 + $0x58] sm:$0xf] %vm381_vm1, %v371_v12 }
  0xd5   :  { %412 = vst.msk [vmem:[%s833_s3 + $0x78] sm:$0xf] %vm381_vm1, %v379_v13  ;;  %v294_v16 = vpop.f32.mrf.mxu2  ;;  %v314_v17 = vpop.f32.mrf.mxu3 }
  0xd6   :  { %389 = vst.msk [vmem:[%s833_s3 + $0x1c] sm:$0xf] %vm381_vm1, %v356_v14  ;;  %v295_v18 = vadd.f32 %v668_v22, %v294_v16  ;;  %v315_v19 = vadd.f32 %v668_v22, %v314_v17 }
  0xd7   :  { %397 = vst.msk [vmem:[%s833_s3 + $0x3c] sm:$0xf] %vm381_vm1, %v364_v15 }
  0xd8   :  { %v340_v20 = vmax.f32 %v295_v18, 0.0  ;;  %v348_v21 = vmax.f32 %v315_v19, 0.0 }
  0xda   :  { %v372_v23 = vpack.c.bf16 %v340_v20, %v340_v20  ;;  %v380_v24 = vpack.c.bf16 %v348_v21, %v348_v21 }
  0xdc   :  { %405 = vst.msk [vmem:[%s833_s3 + $0x5c] sm:$0xf] %vm381_vm1, %v372_v23 }
  0xdd   :  { %413 = vst.msk [vmem:[%s833_s3 + $0x7c] sm:$0xf] %vm381_vm1, %v380_v24 }

// kernel: text_encoder_forward.11
= control target key start
LH: loop header
LB: loop body
LE: loop exit
PB: predicated region body
PF: predicated region fallthrough
CT: control target
= control target key end

     0   :  { %s5144_s15 = smov 0   ;;  %s10286_s0 = inlined_call_operand.vmem [shape: bf16[2,128,96], index: 0, kind: input, shape index: {}]   ;;  %s10287_s1 = inlined_call_operand.vmem [shape: f32[2,1,128], index: 1, kind: input, shape index: {}]   ;;  %s10288_s2 = inlined_call_operand.vmem [shape: bf16[1,9,16], index: 2, kind: input, shape index: {}]   ;;  %s10289_s3 = inlined_call_operand.vmem [shape: bf16[1,9,16], index: 3, kind: input, shape index: {}]   ;;  %s10290_s4 = inlined_call_operand.vmem [shape: bf16[2,128,32], index: 4, kind: output, shape index: {}]  }
   0x1 LB: > { %s4676_s16 = sadd.s32 4294967295, %s5102_s15   ;;  %p4680_p0 = scmp.ge.s32.totalorder %s5102_s15, 1  ;;  %s5102_s15 = sphi %s5144_s15, %s14_s15  }
   0x2   : > { %p170_p1 = scmp.lt.s32.totalorder %s5102_s15, 3 }
   0x4   : > { %p171_p2 = pnand %p4680_p0, %p170_p1 }
   0x6   : > { %174 = sbr.rel (%p171_p2) target bundleno = 3104 (0xc20), region = 36 }
   0xb   : > { %v4727_v0 = vld [vmem:[%s10288_s2] sm:$0xf]  ;;  %v4765_v1 = vld [vmem:[%s10288_s2] sm:$0x10]  ;;  %vm10315_vm0 = vcmask 130048   ;;  %p199_p3 = scmp.lt.s32.totalorder %s4676_s16, 1 }
   0xc   : > { %v4728_v2 = vor.u32 %v4765_v1, %v4727_v0  ;;  %s5104_s25 = smov 96   ;;  %v10295_v12 = vmov 2   ;;  %v10297_v13 = vmov 1   ;;  %v10299_v14 = vmov 0   ;;  %s5114_s29 = smov 64  }
   0xd   : > { %s11751_s16 = smov (!%p199_p3, %s4676_s16), 1  ;;  %4816 = vset.pattern.permute.xlu0 %v10295_v12  ;;  %4815 = vset.pattern.permute.xlu1 %v10297_v13  ;;  %v10293_v27 = vmov 3   ;;  %v10291_v47 = vmov 4   ;;  %s5115_s30 = smov 112  }
   0xe   : > { %v5161_v3 = vsel %vm10315_vm0, %v4728_v2, 0  ;;  %s4755_s21 = sshll.u32 %s11751_s16, 6  ;;  %4814 = vset.pattern.permute.xlu2 %v10299_v14  ;;  %s206_s28 = scalar_lea.vmem %s10287_s1, %s11751_s16 }
   0xf   : > { %10484 = vst [vmem:[#allocation2_spill] sm:$0xff] %v5161_v3  ;;  %457 = vmatpush.bf16.xpose.msra.mxu1 %v5161_v3  ;;  %4766 = vmatpush.bf16.xpose.msra.mxu3 %v5161_v3  ;;  %s5171_s24 = scalar_lea.vmem %s10286_s0, %s4755_s21  ;;  %s5116_s5 = smov 80  }
  0x10   : > { %v5174_v4 = vld [vmem:[%s5171_s24 + $0x10] sm:$0xff]  ;;  %v5177_v5 = vld [vmem:[%s5171_s24] sm:$0xff]  ;;  %v5190_v7 = vld [vmem:[%s5171_s24 + $0x18] sm:$0xff]  ;;  %s5117_s6 = smov 48   ;;  %s5118_s11 = smov 16  }
  0x11   : > { %v5180_v6 = vld [vmem:[%s5171_s24 + $0x20] sm:$0xff]  ;;  %316 = vrot.lane.b32.xlu1 %v5174_v4, %s5104_s25  ;;  %312 = vrot.lane.b32.xlu0 %v5177_v5, %s5104_s25  ;;  %v5193_v8 = vld [vmem:[%s5171_s24 + $0x8] sm:$0xff]  ;;  %s9998_s14 = scalar_lea.vmem %s10290_s4, %s4755_s21 }
  0x12   : > { %320 = vrot.lane.b32.xlu2 %v5180_v6, %s5104_s25  ;;  %v5196_v9 = vld [vmem:[%s5171_s24 + $0x28] sm:$0xff]  ;;  %v5202_v10 = vld [vmem:[%s5171_s24 + $0x38] sm:$0xff]  ;;  %v5205_v11 = vld [vmem:[%s5171_s24 + $0x30] sm:$0xff] }
  0x16   : > { %4729 = vmatmul.msk.bf16.vlgmr.msra.gmra.mxu1 %vm10315_vm0, %v5177_v5  ;;  %4733 = vmatmul.msk.bf16.vlgmr.msra.gmra.mxu3 %vm10315_vm0, %v5180_v6 }
  0x19   : > { %318 = vrot.lane.b32.xlu1 %v5190_v7, %s5104_s25  ;;  %314 = vrot.lane.b32.xlu0 %v5193_v8, %s5104_s25 }
  0x1a   : > { %322 = vrot.lane.b32.xlu2 %v5196_v9, %s5104_s25 }
  0x21   : > { %326 = vrot.lane.b32.xlu1 %v5202_v10, %s5104_s25  ;;  %324 = vrot.lane.b32.xlu0 %v5205_v11, %s5104_s25 }
  0x26   : > { %4730 = vmatmul.msk.bf16.gmra.mxu1 %vm10315_vm0, %v5193_v8  ;;  %4734 = vmatmul.msk.bf16.gmra.mxu3 %vm10315_vm0, %v5196_v9 }
  0x36   : > { %4731 = vmatmul.msk.bf16.gmra.mxu1 %vm10315_vm0, %v5174_v4  ;;  %4735 = vmatmul.msk.bf16.gmra.mxu3 %vm10315_vm0, %v5205_v11 }
  0x46   : > { %4736 = vmatmul.msk.bf16.gmra.mxu3 %vm10315_vm0, %v5202_v10  ;;  %4732 = vmatmul.msk.bf16.gmra.mxu1 %vm10315_vm0, %v5190_v7 }
  0x6c   : > { %v321_v22 = vpop.permute.xlu2 %320 }
  0x6d   : > { %v366_v34 = vsel %vm10315_vm0, %v321_v22, 0  ;;  %v10301_v22 = vmov 6  }
  0x74   : > { %v323_v29 = vpop.permute.xlu2 %322 }
  0x75   : > { %v369_v31 = vsel %vm10315_vm0, %v323_v29, 0 }
  0x83   : > { %v317_v15 = vpop.permute.xlu1 %316  ;;  %v5224_v16 = vpop.permute.xlu0 %312 }
  0x84   : > { %v360_v40 = vsel %vm10315_vm0, %v317_v15, 0  ;;  %v354_v43 = vsel %vm10315_vm0, %v5224_v16, 0 }
  0x8b   : > { %v319_v17 = vpop.permute.xlu1 %318  ;;  %v315_v18 = vpop.permute.xlu0 %314 }
  0x8c   : > { %v363_v37 = vsel %vm10315_vm0, %v319_v17, 0  ;;  %v357_v42 = vsel %vm10315_vm0, %v315_v18, 0 }
  0x93   : > { %v5226_v19 = vpop.f32.mrf.mxu1  ;;  %v327_v20 = vpop.permute.xlu1 %326 }
  0x94   : > { %756 = vperm.xlu0 %4816, %v5226_v19   ;;  %644 = vperm.xlu1 %4815, %v5226_v19   ;;  %v375_v21 = vsel %vm10315_vm0, %v327_v20, 0  ;;  %v325_v24 = vpop.permute.xlu0 %324 }
  0x95   : > { %517 = vperm.xlu2 %4814, %v5226_v19   ;;  %377 = vmatpush.bf16.xpose.msra.mxu0 %v375_v21  ;;  %v372_v26 = vsel %vm10315_vm0, %v325_v24, 0 }
  0x99   : > { %v5232_v23 = vpop.f32.mrf.mxu3 }
  0x9b   : > { %v5234_v25 = vpop.f32.mrf.mxu1 }
  0x9c   : > { %788 = vperm.xlu0 %4816, %v5232_v23   ;;  %676 = vperm.xlu1 %4815, %v5232_v23  }
  0x9d   : > { %4817 = vset.pattern.permute.xlu2 %v10293_v27  ;;  %378 = vmatpush.bf16.xpose.msra.mxu0 %v372_v26 }
  0x9e   : > { %868 = vperm.xlu2 %4817, %v5226_v19  }
  0xa1   : > { %v5241_v28 = vpop.f32.mrf.mxu3 }
  0xa3   : > { %v5243_v30 = vpop.f32.mrf.mxu1 }
  0xa4   : > { %4823 = vset.pattern.permute.xlu0 %v10297_v13  ;;  %4821 = vset.pattern.permute.xlu1 %v10295_v12 }
  0xa5   : > { %760 = vperm.xlu1 %4821, %v5234_v25   ;;  %652 = vperm.xlu0 %4823, %v5243_v30  }
  0xa6   : > { %4818 = vset.pattern.permute.xlu2 %v10299_v14  ;;  %379 = vmatpush.bf16.xpose.msra.mxu0 %v369_v31 }
  0xa7   : > { %557 = vperm.xlu2 %4818, %v5232_v23  }
  0xa9   : > { %v5252_v32 = vpop.f32.mrf.mxu3 }
  0xab   : > { %v5254_v33 = vpop.f32.mrf.mxu1 }
  0xad   : > { %792 = vperm.xlu1 %4821, %v5241_v28   ;;  %684 = vperm.xlu0 %4823, %v5252_v32  }
  0xae   : > { %380 = vmatpush.bf16.xpose.msra.mxu0 %v366_v34 }
  0xaf   : > { %4819 = vset.pattern.permute.xlu2 %v10293_v27 }
  0xb0   : > { %900 = vperm.xlu2 %4819, %v5232_v23  }
  0xb1   : > { %v5261_v35 = vpop.f32.mrf.mxu3 }
  0xb3   : > { %v5263_v36 = vpop.f32.mrf.mxu1 }
  0xb5   : > { %4822 = vset.pattern.permute.xlu1 %v10299_v14  ;;  %4834 = vset.pattern.permute.xlu0 %v10295_v12 }
  0xb6   : > { %800 = vperm.xlu0 %4834, %v5261_v35   ;;  %527 = vperm.xlu1 %4822, %v5243_v30  }
  0xb7   : > { %381 = vmatpush.bf16.xpose.msra.mxu0 %v363_v37 }
  0xb8   : > { %4820 = vset.pattern.permute.xlu2 %v10297_v13 }
  0xb9   : > { %648 = vperm.xlu2 %4820, %v5234_v25   ;;  %v5272_v38 = vpop.f32.mrf.mxu3 }
  0xbb   : > { %v5274_v39 = vpop.f32.mrf.mxu1 }
  0xbe   : > { %4825 = vset.pattern.permute.xlu1 %v10293_v27  ;;  %776 = vperm.xlu0 %4834, %v5274_v39  }
  0xbf   : > { %876 = vperm.xlu1 %4825, %v5243_v30   ;;  %382 = vmatpush.bf16.xpose.msra.mxu0 %v360_v40 }
  0xc1   : > { %680 = vperm.xlu2 %4820, %v5241_v28   ;;  %v5281_v41 = vpop.f32.mrf.mxu3 }
  0xc3   : > { %v5292_v44 = vpop.f32.mrf.mxu1 }
  0xc6   : > { %4846 = vset.pattern.permute.xlu0 %v10297_v13 }
  0xc7   : > { %4826 = vset.pattern.permute.xlu1 %v10299_v14  ;;  %696 = vperm.xlu0 %4846, %v5281_v41  }
  0xc8   : > { %383 = vmatpush.bf16.xpose.msra.mxu0 %v357_v42  ;;  %567 = vperm.xlu1 %4826, %v5252_v32  }
  0xc9   : > { %4824 = vset.pattern.permute.xlu2 %v10295_v12  ;;  %v5294_v45 = vpop.f32.mrf.mxu3 }
  0xca   : > { %764 = vperm.xlu2 %4824, %v5243_v30  }
  0xcb   : > { %v5303_v46 = vpop.f32.mrf.mxu1 }
  0xcf   : > { %4853 = vset.pattern.permute.xlu0 %v10295_v12 }
  0xd0   : > { %384 = vmatpush.bf16.xpose.msra.mxu0 %v354_v43  ;;  %4827 = vset.pattern.permute.xlu1 %v10293_v27 }
  0xd1   : > { %812 = vperm.xlu0 %4853, %v5294_v45   ;;  %908 = vperm.xlu1 %4827, %v5252_v32   ;;  %v5388_v62 = vpop.f32.mrf.mxu3 }
  0xd2   : > { %796 = vperm.xlu2 %4824, %v5252_v32  }
  0xd7   : > { %4717 = vmatmul.msk.bf16.vlgmr.msra.gmra.mxu0 %vm10315_vm0, %v5177_v5 }
  0xd9   : > { %4856 = vset.pattern.permute.xlu0 %v10297_v13  ;;  %4829 = vset.pattern.permute.xlu1 %v10297_v13 }
  0xda   : > { %4828 = vset.pattern.permute.xlu2 %v10299_v14  ;;  %672 = vperm.xlu0 %4856, %v5303_v46  }
  0xdb   : > { %656 = vperm.xlu1 %4829, %v5254_v33   ;;  %532 = vperm.xlu2 %4828, %v5254_v33  }
  0xe2   : > { %4863 = vset.pattern.permute.xlu0 %v10291_v47 }
  0xe3   : > { %4830 = vset.pattern.permute.xlu1 %v10295_v12  ;;  %4831 = vset.pattern.permute.xlu2 %v10293_v27 }
  0xe4   : > { %988 = vperm.xlu0 %4863, %v5243_v30   ;;  %768 = vperm.xlu1 %4830, %v5254_v33  }
  0xe5   : > { %880 = vperm.xlu2 %4831, %v5254_v33  }
  0xe7   : > { %4718 = vmatmul.msk.bf16.gmra.mxu0 %vm10315_vm0, %v5193_v8 }
  0xec   : > { %1008 = vperm.xlu0 %4863, %v5303_v46   ;;  %4833 = vset.pattern.permute.xlu1 %v10297_v13 }
  0xed   : > { %4832 = vset.pattern.permute.xlu2 %v10299_v14  ;;  %688 = vperm.xlu1 %4833, %v5261_v35  }
  0xee   : > { %572 = vperm.xlu2 %4832, %v5261_v35  }
  0xef   : > { %v5324_v48 = vpop.permute.xlu2 %517 }
  0xf4   : > { %1020 = vperm.xlu0 %4863, %v5252_v32  }
  0xf5   : > { %4836 = vset.pattern.permute.xlu1 %v10299_v14 }
  0xf6   : > { %4835 = vset.pattern.permute.xlu2 %v10293_v27  ;;  %537 = vperm.xlu1 %4836, %v5263_v36  }
  0xf7   : > { %912 = vperm.xlu2 %4835, %v5261_v35   ;;  %4719 = vmatmul.msk.bf16.gmra.mxu0 %vm10315_vm0, %v5174_v4  ;;  %v10303_v4 = vmov 5  }
  0xf8   : > { %v5333_v49 = vpop.permute.xlu2 %868 }
  0xfc   : > { %1032 = vperm.xlu0 %4863, %v5281_v41  }
  0xfe   : > { %4839 = vset.pattern.permute.xlu1 %v10293_v27 }
  0xff   : > { %4837 = vset.pattern.permute.xlu2 %v10297_v13  ;;  %884 = vperm.xlu1 %4839, %v5263_v36  }
 0x100   : > { %660 = vperm.xlu2 %4837, %v5263_v36  }
 0x101   : > { %v5340_v50 = vpop.permute.xlu2 %557 }
 0x104   : > { %4864 = vset.pattern.permute.xlu0 %v10293_v27 }
 0x105   : > { %872 = vperm.xlu0 %4864, %v5234_v25  }
 0x106   : > { %v5344_v51 = vpop.permute.xlu0 %756  ;;  %v5346_v52 = vpop.permute.xlu1 %644 }
 0x107   : > { %4841 = vset.pattern.permute.xlu1 %v10295_v12  ;;  %4720 = vmatmul.msk.bf16.gmra.mxu0 %vm10315_vm0, %v5190_v7 }
 0x108   : > { %4838 = vset.pattern.permute.xlu2 %v10295_v12  ;;  %804 = vperm.xlu1 %4841, %v5272_v38  }
 0x109   : > { %772 = vperm.xlu2 %4838, %v5263_v36  }
 0x10a   : > { %v5354_v53 = vpop.permute.xlu2 %900 }
 0x10d   : > { %892 = vperm.xlu0 %4864, %v5292_v44  }
 0x10e   : > { %v5357_v54 = vpop.permute.xlu1 %676  ;;  %v5359_v55 = vpop.permute.xlu0 %788 }
 0x110   : > { %4843 = vset.pattern.permute.xlu1 %v10297_v13 }
 0x111   : > { %4840 = vset.pattern.permute.xlu2 %v10297_v13  ;;  %664 = vperm.xlu1 %4843, %v5274_v39  }
 0x112   : > { %692 = vperm.xlu2 %4840, %v5272_v38  }
 0x113   : > { %v5365_v56 = vpop.permute.xlu2 %648 }
 0x115   : > { %904 = vperm.xlu0 %4864, %v5241_v28  }
 0x117   : > { %4721 = vmatmul.msk.bf16.gmra.mxu0 %vm10315_vm0, %v5180_v6  ;;  %v5370_v57 = vpop.permute.xlu1 %760  ;;  %v5372_v58 = vpop.permute.xlu0 %652 }
 0x119   : > { %4845 = vset.pattern.permute.xlu1 %v10299_v14 }
 0x11a   : > { %4842 = vset.pattern.permute.xlu2 %v10299_v14  ;;  %582 = vperm.xlu1 %4845, %v5281_v41  }
 0x11b   : > { %542 = vperm.xlu2 %4842, %v5274_v39   ;;  %v5378_v59 = vpop.permute.xlu2 %680 }
 0x11d   : > { %916 = vperm.xlu0 %4864, %v5272_v38  }
 0x11f   : > { %v5381_v60 = vpop.permute.xlu1 %792  ;;  %v5383_v61 = vpop.permute.xlu0 %684 }
 0x122   : > { %4848 = vset.pattern.permute.xlu1 %v10293_v27 }
 0x123   : > { %4844 = vset.pattern.permute.xlu2 %v10293_v27  ;;  %920 = vperm.xlu1 %4848, %v5281_v41  }
 0x124   : > { %888 = vperm.xlu2 %4844, %v5274_v39   ;;  %v5391_v63 = vpop.permute.xlu2 %764 }
 0x125   : > { %928 = vperm.xlu0 %4864, %v5388_v62  }
 0x127   : > { %4722 = vmatmul.msk.bf16.gmra.mxu0 %vm10315_vm0, %v5196_v9 }
 0x128   : > { %v5396_v0 = vpop.permute.xlu1 %527  ;;  %v5398_v1 = vpop.permute.xlu0 %800 }
 0x12b   : > { %4850 = vset.pattern.permute.xlu1 %v10295_v12 }
 0x12c   : > { %4847 = vset.pattern.permute.xlu2 %v10295_v12  ;;  %v5402_v2 = vpop.permute.xlu2 %796  ;;  %780 = vperm.xlu1 %4850, %v5292_v44  }
 0x12d   : > { %808 = vperm.xlu2 %4847, %v5281_v41   ;;  %4865 = vset.pattern.permute.xlu0 %v10303_v4 }
 0x12e   : > { %1092 = vperm.xlu0 %4865, %v5226_v19  }
 0x130   : > { %v5408_v5 = vpop.permute.xlu0 %776 }
 0x131   : > { %v5410_v6 = vpop.permute.xlu1 %876 }
 0x134   : > { %4852 = vset.pattern.permute.xlu1 %v10297_v13 }
 0x135   : > { %4849 = vset.pattern.permute.xlu2 %v10297_v13  ;;  %v5414_v7 = vpop.permute.xlu2 %532  ;;  %700 = vperm.xlu1 %4852, %v5294_v45  }
 0x136   : > { %668 = vperm.xlu2 %4849, %v5292_v44   ;;  %1112 = vperm.xlu0 %4865, %v5274_v39  }
 0x137   : > { %4723 = vmatmul.msk.bf16.gmra.mxu0 %vm10315_vm0, %v5205_v11 }
 0x139   : > { %v5421_v8 = vpop.permute.xlu0 %696 }
 0x13a   : > { %v5423_v9 = vpop.permute.xlu1 %567 }
 0x13d   : > { %4855 = vset.pattern.permute.xlu1 %v10299_v14 }
 0x13e   : > { %4851 = vset.pattern.permute.xlu2 %v10299_v14  ;;  %1124 = vperm.xlu0 %4865, %v5232_v23  }
 0x13f   : > { %v5428_v15 = vpop.permute.xlu2 %880  ;;  %587 = vperm.xlu2 %4851, %v5294_v45   ;;  %552 = vperm.xlu1 %4855, %v5303_v46  }
 0x143   : > { %v5432_v16 = vpop.permute.xlu1 %908  ;;  %v5434_v17 = vpop.permute.xlu0 %812 }
 0x146   : > { %1136 = vperm.xlu0 %4865, %v5261_v35  }
 0x147   : > { %4854 = vset.pattern.permute.xlu2 %v10293_v27  ;;  %4858 = vset.pattern.permute.xlu1 %v10293_v27 }
 0x148   : > { %v5439_v11 = vpop.permute.xlu2 %572  ;;  %924 = vperm.xlu2 %4854, %v5294_v45   ;;  %896 = vperm.xlu1 %4858, %v5303_v46  }
 0x149   : > { %4724 = vmatmul.msk.bf16.gmra.mxu0 %vm10315_vm0, %v5202_v10 }
 0x14c   : > { %v5445_v18 = vpop.permute.xlu0 %672 }
 0x14d   : > { %v5447_v20 = vpop.permute.xlu1 %656 }
 0x14e   : > { %1148 = vperm.xlu0 %4865, %v5294_v45  }
 0x150   : > { %4857 = vset.pattern.permute.xlu2 %v10295_v12  ;;  %4860 = vset.pattern.permute.xlu1 %v10295_v12 }
 0x151   : > { %v5452_v21 = vpop.permute.xlu2 %912  ;;  %784 = vperm.xlu2 %4857, %v5303_v46   ;;  %816 = vperm.xlu1 %4860, %v5388_v62  }
 0x156   : > { %4869 = vset.pattern.permute.xlu0 %v10301_v22  ;;  %v5457_v10 = vpop.permute.xlu0 %988  ;;  %v5459_v24 = vpop.permute.xlu1 %768  ;;  %v10306_v22 = vmov 7  }
 0x157   : > { %1208 = vperm.xlu0 %4869, %v5234_v25  }
 0x159   : > { %4859 = vset.pattern.permute.xlu2 %v10297_v13  ;;  %4861 = vset.pattern.permute.xlu1 %v10291_v47 }
 0x15a   : > { %v5464_v26 = vpop.permute.xlu2 %660  ;;  %704 = vperm.xlu2 %4859, %v5388_v62   ;;  %980 = vperm.xlu1 %4861, %v5226_v19  }
 0x15e   : > { %v5468_v29 = vpop.permute.xlu0 %1008 }
 0x15f   : > { %1228 = vperm.xlu0 %4869, %v5292_v44   ;;  %v5471_v31 = vpop.permute.xlu1 %688 }
 0x162   : > { %4862 = vset.pattern.permute.xlu2 %v10291_v47  ;;  %992 = vperm.xlu1 %4861, %v5254_v33  }
 0x163   : > { %v5475_v34 = vpop.permute.xlu2 %772  ;;  %984 = vperm.xlu2 %4862, %v5234_v25  }
 0x166   : > { %v5478_v37 = vpop.permute.xlu0 %1020 }
 0x167   : > { %10485 = vst [vmem:[#allocation3_spill] sm:$0xff] %v5478_v37  ;;  %1240 = vperm.xlu0 %4869, %v5241_v28  }
 0x168   : > { %v5481_v40 = vpop.permute.xlu1 %537 }
 0x16a   : > { %1000 = vperm.xlu1 %4861, %v5274_v39  }
 0x16b   : > { %996 = vperm.xlu2 %4862, %v5263_v36  }
 0x16c   : > { %v5485_v42 = vpop.permute.xlu2 %692 }
 0x16d   : > { %10486 = vst [vmem:[#allocation4_spill] sm:$0xff] %v5485_v42 }
 0x16e   : > { %v5487_v43 = vpop.permute.xlu0 %1032 }
 0x16f   : > { %10487 = vst [vmem:[#allocation5_spill] sm:$0xff] %v5487_v43  ;;  %1252 = vperm.xlu0 %4869, %v5272_v38  }
 0x171   : > { %v5490_v47 = vpop.permute.xlu1 %884 }
 0x172   : > { %10488 = vst [vmem:[#allocation6_spill] sm:$0xff] %v5490_v47  ;;  %1012 = vperm.xlu1 %4861, %v5232_v23  }
 0x173   : > { %1004 = vperm.xlu2 %4862, %v5292_v44  }
 0x175   : > { %v5494_v27 = vpop.permute.xlu2 %542 }
 0x176   : > { %10489 = vst [vmem:[#allocation7_spill] sm:$0xff] %v5494_v27  ;;  %v10528_v27 = vmov 7  }
 0x177   : > { %1264 = vperm.xlu0 %4869, %v5388_v62   ;;  %v5497_v12 = vpop.permute.xlu0 %872 }
 0x178   : > { %10490 = vst [vmem:[#allocation8_spill] sm:$0xff] %v5497_v12 }
 0x17a   : > { %1024 = vperm.xlu1 %4861, %v5261_v35   ;;  %v5500_v13 = vpop.permute.xlu1 %804 }
 0x17b   : > { %10491 = vst [vmem:[#allocation9_spill] sm:$0xff] %v5500_v13  ;;  %1016 = vperm.xlu2 %4862, %v5241_v28  }
 0x17e   : > { %v5503_v14 = vpop.permute.xlu2 %888 }
 0x17f   : > { %10492 = vst [vmem:[#allocation10_spill] sm:$0xff] %v5503_v14  ;;  %4873 = vset.pattern.permute.xlu0 %v10306_v22  ;;  %v5506_v4 = vpop.permute.xlu0 %892  ;;  %v10497_v14 = vmov 5  }
 0x180   : > { %10493 = vst [vmem:[#allocation11_spill] sm:$0xff] %v5506_v4  ;;  %1324 = vperm.xlu0 %4873, %v5243_v30  }
 0x182   : > { %1036 = vperm.xlu1 %4861, %v5294_v45  }
 0x183   : > { %1028 = vperm.xlu2 %4862, %v5272_v38   ;;  %v5511_v3 = vpop.permute.xlu1 %664 }
 0x184   : > { %10494 = vst [vmem:[#allocation12_spill] sm:$0xff] %v5511_v3  ;;  %v5606_v3 = vpop.f32.mrf.mxu0 }
 0x187   : > { %v5513_v12 = vpop.permute.xlu2 %808  ;;  %v5516_v13 = vpop.permute.xlu0 %904 }
 0x188   : > { %10495 = vst [vmem:[#allocation13_spill] sm:$0xff] %v5513_v12  ;;  %1344 = vperm.xlu0 %4873, %v5303_v46  }
 0x189   : > { %10496 = vst [vmem:[#allocation14_spill] sm:$0xff] %v5516_v13 }
 0x18a   : > { %4866 = vset.pattern.permute.xlu1 %v10497_v14 }
 0x18b   : > { %1040 = vperm.xlu2 %4862, %v5388_v62   ;;  %1096 = vperm.xlu1 %4866, %v5234_v25  }
 0x18c   : > { %v5521_v22 = vpop.permute.xlu1 %582 }
 0x18d   : > { %10498 = vst [vmem:[#allocation15_spill] sm:$0xff] %v5521_v22 }
 0x18f   : > { %v5528_v12 = vpop.permute.xlu0 %916 }
 0x190   : > { %v5523_v4 = vpop.permute.xlu2 %668  ;;  %1356 = vperm.xlu0 %4873, %v5252_v32   ;;  %10500 = vst [vmem:[#allocation17_spill] sm:$0xff] %v5528_v12 }
 0x191   : > { %10499 = vst [vmem:[#allocation16_spill] sm:$0xff] %v5523_v4 }
 0x193   : > { %4867 = vset.pattern.permute.xlu2 %v10497_v14  ;;  %1104 = vperm.xlu1 %4866, %v5254_v33   ;;  %v10309_v14 = vmov 8  }
 0x194   : > { %1100 = vperm.xlu2 %4867, %v5243_v30  }
 0x195   : > { %v5531_v13 = vpop.permute.xlu1 %920 }
 0x196   : > { %10501 = vst [vmem:[#allocation18_spill] sm:$0xff] %v5531_v13 }
 0x197   : > { %v5538_v4 = vpop.permute.xlu0 %928 }
 0x198   : > { %1368 = vperm.xlu0 %4873, %v5281_v41   ;;  %10503 = vst [vmem:[#allocation20_spill] sm:$0xff] %v5538_v4 }
 0x199   : > { %v5534_v47 = vpop.permute.xlu2 %587 }
 0x19a   : > { %10502 = vst [vmem:[#allocation19_spill] sm:$0xff] %v5534_v47 }
 0x19b   : > { %1116 = vperm.xlu1 %4866, %v5292_v44  }
 0x19c   : > { %1108 = vperm.xlu2 %4867, %v5263_v36  }
 0x19e   : > { %v5540_v22 = vpop.permute.xlu1 %780 }
 0x19f   : > { %10504 = vst [vmem:[#allocation21_spill] sm:$0xff] %v5540_v22 }
 0x1a0   : > { %4874 = vset.pattern.permute.xlu0 %v10309_v14  ;;  %v5550_v13 = vpop.permute.xlu0 %1092 }
 0x1a1   : > { %1428 = vperm.xlu0 %4874, %v5226_v19   ;;  %10507 = vst [vmem:[#allocation24_spill] sm:$0xff] %v5550_v13 }
 0x1a2   : > { %v5544_v12 = vpop.permute.xlu2 %924 }
 0x1a3   : > { %10505 = vst [vmem:[#allocation22_spill] sm:$0xff] %v5544_v12  ;;  %1128 = vperm.xlu1 %4866, %v5241_v28  }
 0x1a4   : > { %1120 = vperm.xlu2 %4867, %v5303_v46  }
 0x1a7   : > { %v5548_v47 = vpop.permute.xlu1 %700 }
 0x1a8   : > { %10506 = vst [vmem:[#allocation23_spill] sm:$0xff] %v5548_v47  ;;  %v5560_v12 = vpop.permute.xlu0 %1112 }
 0x1a9   : > { %1448 = vperm.xlu0 %4874, %v5274_v39   ;;  %10510 = vst [vmem:[#allocation27_spill] sm:$0xff] %v5560_v12 }
 0x1ab   : > { %v5553_v4 = vpop.permute.xlu2 %784  ;;  %1140 = vperm.xlu1 %4866, %v5272_v38  }
 0x1ac   : > { %10508 = vst [vmem:[#allocation25_spill] sm:$0xff] %v5553_v4  ;;  %1132 = vperm.xlu2 %4867, %v5252_v32   ;;  %v10513_v4 = vmov 6  }
 0x1b0   : > { %v5570_v43 = vpop.permute.xlu0 %1124 }
 0x1b1   : > { %1460 = vperm.xlu0 %4874, %v5232_v23   ;;  %v5558_v14 = vpop.permute.xlu1 %552  ;;  %10514 = vst [vmem:[#allocation30_spill] sm:$0xff] %v5570_v43  ;;  %v10519_v43 = vmov 0  }
 0x1b2   : > { %10509 = vst [vmem:[#allocation26_spill] sm:$0xff] %v5558_v14 }
 0x1b3   : > { %1152 = vperm.xlu1 %4866, %v5388_v62  }
 0x1b4   : > { %1144 = vperm.xlu2 %4867, %v5281_v41   ;;  %v5564_v47 = vpop.permute.xlu2 %704 }
 0x1b5   : > { %10511 = vst [vmem:[#allocation28_spill] sm:$0xff] %v5564_v47 }
 0x1b9   : > { %1472 = vperm.xlu0 %4874, %v5261_v35  }
 0x1ba   : > { %v5567_v22 = vpop.permute.xlu1 %896 }
 0x1bb   : > { %10512 = vst [vmem:[#allocation29_spill] sm:$0xff] %v5567_v22  ;;  %4870 = vset.pattern.permute.xlu1 %v10513_v4  ;;  %v5584_v22 = vpop.permute.xlu0 %1136 }
 0x1bc   : > { %4868 = vset.pattern.permute.xlu2 %v10513_v4  ;;  %1212 = vperm.xlu1 %4870, %v5243_v30   ;;  %10518 = vst [vmem:[#allocation34_spill] sm:$0xff] %v5584_v22 }
 0x1bd   : > { %1204 = vperm.xlu2 %4868, %v5226_v19   ;;  %v5575_v12 = vpop.permute.xlu2 %984 }
 0x1be   : > { %10515 = vst [vmem:[#allocation31_spill] sm:$0xff] %v5575_v12 }
 0x1c1   : > { %1484 = vperm.xlu0 %4874, %v5294_v45  }
 0x1c3   : > { %v5578_v14 = vpop.permute.xlu1 %816 }
 0x1c4   : > { %10516 = vst [vmem:[#allocation32_spill] sm:$0xff] %v5578_v14  ;;  %1220 = vperm.xlu1 %4870, %v5263_v36   ;;  %v5594_v14 = vpop.permute.xlu0 %1148 }
 0x1c5   : > { %1216 = vperm.xlu2 %4868, %v5254_v33   ;;  %v5582_v47 = vpop.permute.xlu2 %996  ;;  %10521 = vst [vmem:[#allocation36_spill] sm:$0xff] %v5594_v14 }
 0x1c6   : > { %10517 = vst [vmem:[#allocation33_spill] sm:$0xff] %v5582_v47 }
 0x1c9   : > { %4877 = vset.pattern.permute.xlu0 %v10519_v43 }
 0x1ca   : > { %522 = vperm.xlu0 %4877, %v5234_v25  }
 0x1cc   : > { %1232 = vperm.xlu1 %4870, %v5303_v46   ;;  %v5589_v4 = vpop.permute.xlu1 %980  ;;  %v5603_v13 = vpop.permute.xlu0 %1208 }
 0x1cd   : > { %1224 = vperm.xlu2 %4868, %v5274_v39   ;;  %v5592_v12 = vpop.permute.xlu2 %1004  ;;  %10524 = vst [vmem:[#allocation39_spill] sm:$0xff] %v5603_v13  ;;  %v5620_v13 = vpop.f32.mrf.mxu0 }
 0x1ce   : > { %10520 = vst [vmem:[#allocation35_spill] sm:$0xff] %v5592_v12 }
 0x1d2   : > { %547 = vperm.xlu0 %4877, %v5292_v44  }
 0x1d4   : > { %1244 = vperm.xlu1 %4870, %v5252_v32   ;;  %v5598_v47 = vpop.permute.xlu1 %992 }
 0x1d5   : > { %10522 = vst [vmem:[#allocation37_spill] sm:$0xff] %v5598_v47  ;;  %1236 = vperm.xlu2 %4868, %v5232_v23   ;;  %v5601_v22 = vpop.permute.xlu2 %1016  ;;  %v5615_v47 = vpop.permute.xlu0 %1228 }
 0x1d6   : > { %10523 = vst [vmem:[#allocation38_spill] sm:$0xff] %v5601_v22 }
 0x1d7   : > { %10527 = vst [vmem:[#allocation42_spill] sm:$0xff] %v5615_v47  ;;  %v5636_v47 = vpop.f32.mrf.mxu0 }
 0x1da   : > { %562 = vperm.xlu0 %4877, %v5241_v28  }
 0x1dc   : > { %1256 = vperm.xlu1 %4870, %v5281_v41   ;;  %v5609_v12 = vpop.permute.xlu1 %1000 }
 0x1dd   : > { %10525 = vst [vmem:[#allocation40_spill] sm:$0xff] %v5609_v12  ;;  %1248 = vperm.xlu2 %4868, %v5261_v35   ;;  %v5612_v14 = vpop.permute.xlu2 %1028 }
 0x1de   : > { %10526 = vst [vmem:[#allocation41_spill] sm:$0xff] %v5612_v14  ;;  %v5631_v14 = vpop.permute.xlu0 %1240 }
 0x1df   : > { %10532 = vst [vmem:[#allocation46_spill] sm:$0xff] %v5631_v14 }
 0x1e2   : > { %577 = vperm.xlu0 %4877, %v5272_v38  }
 0x1e4   : > { %4871 = vset.pattern.permute.xlu1 %v10528_v27  ;;  %v5618_v22 = vpop.permute.xlu1 %1012 }
 0x1e5   : > { %10529 = vst [vmem:[#allocation43_spill] sm:$0xff] %v5618_v22  ;;  %1260 = vperm.xlu2 %4868, %v5294_v45   ;;  %v5623_v42 = vpop.permute.xlu2 %1040  ;;  %1316 = vperm.xlu1 %4871, %v5226_v19  }
 0x1e6   : > { %10530 = vst [vmem:[#allocation44_spill] sm:$0xff] %v5623_v42  ;;  %v5644_v42 = vpop.permute.xlu0 %1252 }
 0x1e7   : > { %10536 = vst [vmem:[#allocation50_spill] sm:$0xff] %v5644_v42 }
 0x1ea   : > { %592 = vperm.xlu0 %4877, %v5388_v62  }
 0x1ec   : > { %v5627_v12 = vpop.permute.xlu1 %1024 }
 0x1ed   : > { %10531 = vst [vmem:[#allocation45_spill] sm:$0xff] %v5627_v12  ;;  %4872 = vset.pattern.permute.xlu2 %v10528_v27  ;;  %1328 = vperm.xlu1 %4871, %v5254_v33   ;;  %v5646_v27 = vpop.f32.mrf.mxu0 }
 0x1ee   : > { %1320 = vperm.xlu2 %4872, %v5234_v25   ;;  %v5634_v22 = vpop.permute.xlu2 %1100 }
 0x1ef   : > { %10533 = vst [vmem:[#allocation47_spill] sm:$0xff] %v5634_v22  ;;  %v5654_v22 = vpop.permute.xlu0 %1264 }
 0x1f0   : > { %10539 = vst [vmem:[#allocation53_spill] sm:$0xff] %v5654_v22 }
 0x1f4   : > { %v5638_v37 = vpop.permute.xlu1 %1036 }
 0x1f5   : > { %10534 = vst [vmem:[#allocation48_spill] sm:$0xff] %v5638_v37  ;;  %1336 = vperm.xlu1 %4871, %v5274_v39   ;;  %v5656_v37 = vpop.f32.mrf.mxu0 }
 0x1f6   : > { %1332 = vperm.xlu2 %4872, %v5263_v36   ;;  %v5642_v19 = vpop.permute.xlu2 %1108 }
 0x1f7   : > { %10535 = vst [vmem:[#allocation49_spill] sm:$0xff] %v5642_v19  ;;  %v5664_v42 = vpop.permute.xlu0 %1324 }
 0x1f8   : > { %10542 = vst [vmem:[#allocation56_spill] sm:$0xff] %v5664_v42 }
 0x1fd   : > { %1348 = vperm.xlu1 %4871, %v5232_v23   ;;  %v5649_v14 = vpop.permute.xlu1 %1096  ;;  %v5666_v23 = vpop.f32.mrf.mxu0 }
 0x1fe   : > { %10537 = vst [vmem:[#allocation51_spill] sm:$0xff] %v5649_v14  ;;  %1340 = vperm.xlu2 %4872, %v5292_v44   ;;  %v5652_v12 = vpop.permute.xlu2 %1120 }
 0x1ff   : > { %10538 = vst [vmem:[#allocation52_spill] sm:$0xff] %v5652_v12  ;;  %v10545_v12 = vmov 8  }
 0x205   : > { %1360 = vperm.xlu1 %4871, %v5261_v35   ;;  %v5659_v39 = vpop.permute.xlu1 %1104 }
 0x206   : > { %10540 = vst [vmem:[#allocation54_spill] sm:$0xff] %v5659_v39  ;;  %1352 = vperm.xlu2 %4872, %v5241_v28   ;;  %v5662_v19 = vpop.permute.xlu2 %1132  ;;  %v5677_v39 = vpop.permute.xlu0 %1344 }
 0x207   : > { %10541 = vst [vmem:[#allocation55_spill] sm:$0xff] %v5662_v19  ;;  %v5681_v19 = vpop.f32.mrf.mxu0 }
 0x208   : > { %10547 = vst [vmem:[#allocation60_spill] sm:$0xff] %v5677_v39 }
 0x209   : > { %10548 = vst [vmem:[#allocation61_spill] sm:$0xff] %v5681_v19 }
 0x20d   : > { %1372 = vperm.xlu1 %4871, %v5294_v45   ;;  %v5669_v14 = vpop.permute.xlu1 %1116 }
 0x20e   : > { %10543 = vst [vmem:[#allocation57_spill] sm:$0xff] %v5669_v14  ;;  %1364 = vperm.xlu2 %4872, %v5272_v38   ;;  %v5672_v22 = vpop.permute.xlu2 %1144 }
 0x20f   : > { %10544 = vst [vmem:[#allocation58_spill] sm:$0xff] %v5672_v22  ;;  %v5694_v39 = vpop.f32.mrf.mxu0 }
 0x210   : > { %10553 = vst [vmem:[#allocation66_spill] sm:$0xff] %v5694_v39 }
 0x215   : > { %4875 = vset.pattern.permute.xlu1 %v10545_v12  ;;  %v5675_v35 = vpop.permute.xlu1 %1128 }
 0x216   : > { %10546 = vst [vmem:[#allocation59_spill] sm:$0xff] %v5675_v35  ;;  %1376 = vperm.xlu2 %4872, %v5388_v62   ;;  %1432 = vperm.xlu1 %4875, %v5234_v25   ;;  %v5692_v35 = vpop.permute.xlu0 %1356 }
 0x217   : > { %v5683_v45 = vpop.permute.xlu2 %1204  ;;  %10552 = vst [vmem:[#allocation65_spill] sm:$0xff] %v5692_v35 }
 0x218   : > { %10549 = vst [vmem:[#allocation62_spill] sm:$0xff] %v5683_v45 }
 0x21d   : > { %v5685_v14 = vpop.permute.xlu1 %1140 }
 0x21e   : > { %10550 = vst [vmem:[#allocation63_spill] sm:$0xff] %v5685_v14  ;;  %4876 = vset.pattern.permute.xlu2 %v10545_v12  ;;  %1440 = vperm.xlu1 %4875, %v5254_v33   ;;  %v5702_v14 = vpop.permute.xlu0 %1368  ;;  %v5708_v33 = vpop.f32.mrf.mxu0  ;;  %v229_v12 = vld [vmem:[%s206_s28] sm:$0x1] }
 0x21f   : > { %1436 = vperm.xlu2 %4876, %v5243_v30   ;;  %v5690_v22 = vpop.permute.xlu2 %1216  ;;  %10556 = vst [vmem:[#allocation69_spill] sm:$0xff] %v5702_v14  ;;  %v237_v30 = vlaneseq  ;;  %vm230_vm1 = vcmp.gt.f32.partialorder %v229_v12, 0.0 }
 0x220   : > { %10551 = vst [vmem:[#allocation64_spill] sm:$0xff] %v5690_v22 }
 0x221   : > { %10557 = vst [vmem:[#allocation70_spill] sm:$0xff] %v5708_v33 }
 0x225   : > { %v5696_v42 = vpop.permute.xlu1 %1152 }
 0x226   : > { %10554 = vst [vmem:[#allocation67_spill] sm:$0xff] %v5696_v42  ;;  %1452 = vperm.xlu1 %4875, %v5292_v44   ;;  %v5713_v42 = vshrl.u32 %v237_v30, 7  ;;  %v5718_v44 = vand.u32 127, %v237_v30  ;;  %v5730_v39 = vpop.permute.xlu0 %1428  ;;  %v5735_v30 = vpop.f32.mrf.mxu0 }
 0x227   : > { %1444 = vperm.xlu2 %4876, %v5263_v36   ;;  %v5700_v25 = vpop.permute.xlu2 %1224  ;;  %10562 = vst [vmem:[#allocation75_spill] sm:$0xff] %v5730_v39 }
 0x228   : > { %10555 = vst [vmem:[#allocation68_spill] sm:$0xff] %v5700_v25  ;;  %v246_v14 = vadd.s32 64, %v5713_v42  ;;  %v239_v22 = vadd.s32 8, %v5713_v42  ;;  %v5723_v25 = vsel %vm230_vm1, 1, %v10519_v43  ;;  %v240_v12 = vadd.s32 16, %v5713_v42 }
 0x229   : > { %10560 = vst [vmem:[#allocation73_spill] sm:$0xff] %v5723_v25  ;;  %v252_v39 = vadd.s32 112, %v5713_v42 }
 0x22a   : > { %10564 = vst [vmem:[#allocation77_spill] sm:$0xff] %v5735_v30  ;;  %v5743_v45 = vsub.s32 %v5718_v44, %v239_v22  ;;  %v249_v22 = vadd.s32 88, %v5713_v42  ;;  %v251_v30 = vadd.s32 104, %v5713_v42 }
 0x22c   : > { %vm10321_vm10 = vcmp.eq.s32.totalorder %v5743_v45, 4294967293  ;;  %vm10323_vm11 = vcmp.eq.s32.totalorder %v5743_v45, 4294967294 }
 0x22e   : > { %1464 = vperm.xlu1 %4875, %v5241_v28   ;;  %v5711_v35 = vpop.permute.xlu1 %1212  ;;  %v5727_v28 = vsub.s32 %v5718_v44, %v5713_v42  ;;  %v5796_v25 = vpop.permute.xlu0 %1448 }
 0x22f   : > { %10558 = vst [vmem:[#allocation71_spill] sm:$0xff] %v5711_v35  ;;  %1456 = vperm.xlu2 %4876, %v5303_v46   ;;  %v5716_v36 = vpop.permute.xlu2 %1236  ;;  %v247_v35 = vadd.s32 72, %v5713_v42  ;;  %v5733_v46 = vsub.s32 %v5718_v44, %v246_v14 }
 0x230   : > { %10559 = vst [vmem:[#allocation72_spill] sm:$0xff] %v5716_v36  ;;  %vm10322_vm2 = vcmp.eq.s32.totalorder %v5727_v28, 4294967292  ;;  %vm10316_vm3 = vcmp.eq.s32.totalorder %v5727_v28, 4294967295  ;;  %vm10317_vm5 = vcmp.eq.s32.totalorder %v5727_v28, 4294967294  ;;  %vm10354_vm6 = vcmp.eq.s32.totalorder %v5727_v28, 4294967293 }
 0x231   : > { %10561 = vst [vmem:[#allocation74_spill] sm:$0xff] %v5727_v28  ;;  %v5751_v14 = vsub.s32 %v5718_v44, %v247_v35  ;;  %vm10337_vm4 = vcmp.eq.s32.totalorder %v5733_v46, 4294967292  ;;  %vm10318_vm7 = vcmp.eq.s32.totalorder %v5733_v46, 4294967295  ;;  %vm10319_vm8 = vcmp.eq.s32.totalorder %v5733_v46, 4294967294 }
 0x232   : > { %10563 = vst [vmem:[#allocation76_spill] sm:$0xff] %v5733_v46  ;;  %v241_v35 = vadd.s32 24, %v5713_v42  ;;  %v595_v19 = vsel %vm10322_vm2, %v5324_v48, 0.0  ;;  %vm10320_vm9 = vcmp.eq.s32.totalorder %v5733_v46, 4294967293  ;;  %v5783_v48 = vsel %vm10337_vm4, %v5340_v50, 0.0 }
 0x233   : > { %10567 = vst [vmem:[#allocation80_spill] sm:$0xff] %v5751_v14  ;;  %vm10325_vm12 = vcmp.eq.s32.totalorder %v5751_v14, 4294967293  ;;  %vm10326_vm14 = vcmp.eq.s32.totalorder %v5751_v14, 4294967294 }
 0x234   : > { %10569 = vst [vmem:[#allocation82_spill] sm:$0xff] %v5783_v48  ;;  %v5804_v48 = vsel %vm10317_vm5, %v5344_v51, 0.0 }
 0x235   : > { %10572 = vst [vmem:[#allocation85_spill] sm:$0xff] %v5796_v25  ;;  %v5863_v25 = vsel %vm10325_vm12, %v5378_v59, 0.0 }
 0x236   : > { %1476 = vperm.xlu1 %4875, %v5272_v38   ;;  %v5739_v36 = vpop.permute.xlu1 %1220  ;;  %v248_v38 = vadd.s32 80, %v5713_v42  ;;  %10576 = vst [vmem:[#allocation89_spill] sm:$0xff] %v5863_v25  ;;  %v250_v25 = vadd.s32 96, %v5713_v42 }
 0x237   : > { %10565 = vst [vmem:[#allocation78_spill] sm:$0xff] %v5739_v36  ;;  %1468 = vperm.xlu2 %4876, %v5252_v32   ;;  %v5746_v33 = vpop.permute.xlu2 %1248  ;;  %v5760_v32 = vsub.s32 %v5718_v44, %v240_v12  ;;  %v243_v36 = vadd.s32 40, %v5713_v42 }
 0x238   : > { %10566 = vst [vmem:[#allocation79_spill] sm:$0xff] %v5746_v33  ;;  %v5773_v33 = vsel %vm10316_vm3, %v5333_v49, 0.0  ;;  %v5777_v12 = vsub.s32 %v5718_v44, %v248_v38  ;;  %v5790_v49 = vsub.s32 %v5718_v44, %v249_v22  ;;  %v5793_v38 = vsub.s32 %v5718_v44, %v241_v35  ;;  %v5811_v35 = vpop.f32.mrf.mxu0 }
 0x239   : > { %10568 = vst [vmem:[#allocation81_spill] sm:$0xff] %v5760_v32  ;;  %vm10324_vm13 = vcmp.eq.s32.totalorder %v5760_v32, 4294967293  ;;  %vm10332_vm15 = vcmp.eq.s32.totalorder %v5760_v32, 4294967294  ;;  %v707_v22 = vsel %vm10354_vm6, %v5346_v52, 0.0  ;;  %vm10394_vm0 = vcmp.eq.s32.totalorder %v5760_v32, 4294967292 }
 0x23a   : > { %10570 = vst [vmem:[#allocation83_spill] sm:$0xff] %v5790_v49  ;;  %vm10327_vm1 = vcmp.eq.s32.totalorder %v5777_v12, 4294967293  ;;  %vm10328_vm3 = vcmp.eq.s32.totalorder %v5777_v12, 4294967294  ;;  %vm10330_vm5 = vcmp.eq.s32.totalorder %v5760_v32, 4294967295  ;;  %v5824_v51 = vsub.s32 %v5718_v44, %v243_v36 }
 0x23b   : > { %10571 = vst [vmem:[#allocation84_spill] sm:$0xff] %v5793_v38  ;;  %v5829_v52 = vsel %vm10319_vm8, %v5359_v55, 0.0  ;;  %v5843_v36 = vsel %vm10321_vm10, %v5365_v56, 0.0  ;;  %vm10333_vm8 = vcmp.eq.s32.totalorder %v5793_v38, 4294967292  ;;  %v5848_v55 = vsub.s32 %v5718_v44, %v252_v39 }
 0x23c   : > { %v426_v56 = vmul.f32 0.25, %v5606_v3  ;;  %vm10331_vm10 = vcmp.eq.s32.totalorder %v5824_v51, 4294967294  ;;  %vm10336_vm2 = vcmp.eq.s32.totalorder %v5793_v38, 4294967295  ;;  %v5871_v39 = vsel %vm10326_vm14, %v5381_v60, 0.0 }
 0x23d   : > { %10575 = vst [vmem:[#allocation88_spill] sm:$0xff] %v5848_v55  ;;  %v5876_v3 = vsel %vm10327_vm1, %v5383_v61, 0.0  ;;  %v821_v59 = vsel %vm10332_vm15, %v5391_v63, 0.0  ;;  %vm10339_vm12 = vcmp.eq.s32.totalorder %v5848_v55, 4294967294  ;;  %vm10341_vm14 = vcmp.eq.s32.totalorder %v5790_v49, 4294967292 }
 0x23e   : > { %1488 = vperm.xlu1 %4875, %v5388_v62   ;;  %v5799_v50 = vpop.permute.xlu1 %1232  ;;  %10577 = vst [vmem:[#allocation90_spill] sm:$0xff] %v5871_v39  ;;  %v597_v61 = vsel %vm10394_vm0, %v5396_v0, 0.0  ;;  %v428_v39 = vmul.f32 0.25, %v5636_v47  ;;  %v5900_v63 = vsel %vm10328_vm3, %v5402_v2, 0.0  ;;  %vm10350_vm1 = vcmp.eq.s32.totalorder %v5793_v38, 4294967293  ;;  %v5911_v47 = vpop.permute.xlu0 %1460 }
 0x23f   : > { %10573 = vst [vmem:[#allocation86_spill] sm:$0xff] %v5799_v50  ;;  %1480 = vperm.xlu2 %4876, %v5281_v41   ;;  %v5814_v62 = vpop.permute.xlu2 %1260  ;;  %v5819_v50 = vsel %vm10318_vm7, %v5354_v53, 0.0  ;;  %v5834_v41 = vsel %vm10320_vm9, %v5357_v54, 0.0  ;;  %v5837_v53 = vsub.s32 %v5718_v44, %v251_v30  ;;  %vm10329_vm7 = vcmp.eq.s32.totalorder %v5790_v49, 4294967294 }
 0x240   : > { %10574 = vst [vmem:[#allocation87_spill] sm:$0xff] %v5814_v62  ;;  %v245_v62 = vadd.s32 56, %v5713_v42  ;;  %v5853_v54 = vsel %vm10323_vm11, %v5370_v57, 0.0  ;;  %v709_v30 = vsel %vm10324_vm13, %v5372_v58, 0.0  ;;  %vm10335_vm9 = vcmp.eq.s32.totalorder %v5777_v12, 4294967292 }
 0x241   : > { %v242_v57 = vadd.s32 32, %v5713_v42  ;;  %vm10334_vm11 = vcmp.eq.s32.totalorder %v5837_v53, 4294967293  ;;  %vm10338_vm13 = vcmp.eq.s32.totalorder %v5777_v12, 4294967295  ;;  %10579 = vst [vmem:[#allocation92_spill] sm:$0xff] %v5911_v47  ;;  %v5923_v2 = vsel %vm10331_vm10, %v5408_v5, 0.0 }
 0x242   : > { %v5880_v58 = vsub.s32 %v5718_v44, %v245_v62  ;;  %v611_v62 = vadd.f32 %v595_v19, %v426_v56  ;;  %v598_v56 = vsel %vm10333_vm8, %v5414_v7, 0.0  ;;  %vm10344_vm10 = vcmp.eq.s32.totalorder %v5793_v38, 4294967294 }
 0x243   : > { %v5909_v0 = vsub.s32 %v5718_v44, %v242_v57  ;;  %v5942_v5 = vsel %vm10335_vm9, %v5423_v9, 0.0  ;;  %v613_v47 = vadd.f32 %v597_v61, %v428_v39  ;;  %v429_v7 = vmul.f32 0.25, %v5646_v27 }
 0x244   : > { %vm10340_vm3 = vcmp.eq.s32.totalorder %v5880_v58, 4294967293  ;;  %v723_v57 = vadd.f32 %v707_v22, %v611_v62  ;;  %vm10347_vm8 = vcmp.eq.s32.totalorder %v5880_v58, 0  ;;  %v5959_v9 = vsel %vm10338_vm13, %v5432_v16, 0.0 }
 0x245   : > { %vm10345_vm15 = vcmp.eq.s32.totalorder %v5909_v0, 4294967293  ;;  %vm10352_vm9 = vcmp.eq.s32.totalorder %v5909_v0, 4294967294  ;;  %v5966_v22 = vsel %vm10339_vm12, %v5434_v17, 0.0  ;;  %v5971_v27 = vsel %vm10341_vm14, %v5439_v11, 0.0 }
 0x246   : > { %v5888_v60 = vpop.permute.xlu1 %1244  ;;  %4879 = vset.pattern.permute.xlu1 %v10519_v43  ;;  %10581 = vst [vmem:[#allocation94_spill] sm:$0xff] %v5966_v22  ;;  %vm10346_vm4 = vcmp.eq.s32.totalorder %v5909_v0, 4294967292  ;;  %v5980_v16 = vsel %vm10340_vm3, %v5445_v18, 0.0  ;;  %v835_v39 = vadd.f32 %v5804_v48, %v723_v57  ;;  %v725_v17 = vadd.f32 %v709_v30, %v613_v47  ;;  %v6011_v48 = vpop.permute.xlu0 %1472 }
 0x247   : > { %10578 = vst [vmem:[#allocation91_spill] sm:$0xff] %v5888_v60  ;;  %4878 = vset.pattern.permute.xlu2 %v10519_v43  ;;  %v5905_v60 = vsel %vm10329_vm7, %v5398_v1, 0.0  ;;  %v5918_v43 = vsel %vm10330_vm5, %v5410_v6, 0.0  ;;  %vm10342_vm7 = vcmp.eq.s32.totalorder %v5790_v49, 4294967295  ;;  %v5927_v1 = vpop.f32.mrf.mxu0  ;;  %v5935_v6 = vsel %vm10334_vm11, %v5421_v8, 0.0 }
 0x248   : > { %v5913_v19 = vpop.permute.xlu2 %1320  ;;  %vm10343_vm5 = vcmp.eq.s32.totalorder %v5760_v32, 0  ;;  %vm10349_vm11 = vcmp.eq.s32.totalorder %v5790_v49, 4294967293  ;;  %v5954_v8 = vsel %vm10336_vm2, %v5428_v15, 0.0  ;;  %vm10351_vm2 = vcmp.eq.s32.totalorder %v5777_v12, 0  ;;  %10584 = vst [vmem:[#allocation97_spill] sm:$0xff] %v6011_v48 }
 0x249   : > { %10580 = vst [vmem:[#allocation93_spill] sm:$0xff] %v5913_v19  ;;  %v5945_v19 = vsub.s32 %v5718_v44, %v250_v25  ;;  %v244_v25 = vadd.s32 48, %v5713_v42  ;;  %v710_v11 = vsel %vm10350_vm1, %v5447_v20, 0.0  ;;  %v5990_v61 = vsel %vm10342_vm7, %v5452_v21, 0.0 }
 0x24a   : > { %v614_v62 = vadd.f32 %v598_v56, %v429_v7  ;;  %vm10360_vm12 = vcmp.eq.s32.totalorder %v5837_v53, 0  ;;  %vm10361_vm3 = vcmp.eq.s32.totalorder %v5909_v0, 4294967295  ;;  %vm10348_vm14 = vcmp.eq.s32.totalorder %v5727_v28, 0 }
 0x24b   : > { %vm10353_vm13 = vcmp.eq.s32.totalorder %v5945_v19, 4294967293  ;;  %v5998_v18 = vsub.s32 %v5718_v44, %v244_v25  ;;  %v1045_v20 = vsel %vm10343_vm5, %v5457_v10, 0.0  ;;  %v822_v21 = vsel %vm10344_vm10, %v5459_v24, 0.0 }
 0x24c   : > { %vm10356_vm7 = vcmp.eq.s32.totalorder %v5824_v51, 4294967292  ;;  %v6014_v30 = vmul.f32 0.25, %v5620_v13  ;;  %v837_v47 = vadd.f32 %v821_v59, %v725_v17  ;;  %v599_v10 = vsel %vm10346_vm4, %v5481_v40, 0.0  ;;  %v10585_v59 = vld [vmem:[#allocation3_spill] sm:$0xff] }
 0x24d   : > { %10583 = vst [vmem:[#allocation96_spill] sm:$0xff] %v5998_v18  ;;  %vm10368_vm5 = vcmp.eq.s32.totalorder %v5743_v45, 4294967295  ;;  %v947_v24 = vadd.f32 %v5773_v33, %v835_v39  ;;  %v726_v57 = vadd.f32 %v710_v11, %v614_v62  ;;  %vm10362_vm10 = vcmp.eq.s32.totalorder %v5945_v19, 4294967294  ;;  %v10589_v62 = vld [vmem:[#allocation7_spill] sm:$0xff] }
 0x24e   : > { %v5975_v15 = vpop.permute.xlu1 %1256  ;;  %v1043_v13 = vsel %vm10348_vm14, %v5589_v4, 0.0  ;;  %v6035_v40 = vsel %vm10349_vm11, %v5471_v31, 0.0  ;;  %vm10364_vm4 = vcmp.eq.s32.totalorder %v5998_v18, 4294967295  ;;  %v823_v33 = vsel %vm10352_vm9, %v5475_v34, 0.0  ;;  %v10586_v34 = vld [vmem:[#allocation4_spill] sm:$0xff] }
 0x24f   : > { %10582 = vst [vmem:[#allocation95_spill] sm:$0xff] %v5975_v15  ;;  %v430_v15 = vmul.f32 0.25, %v5656_v37  ;;  %v711_v37 = vsel %vm10345_vm15, %v5464_v26, 0.0  ;;  %v6020_v56 = vpop.f32.mrf.mxu0  ;;  %v6026_v26 = vsel %vm10347_vm8, %v5468_v29, 0.0  ;;  %vm10363_vm15 = vcmp.eq.s32.totalorder %v5824_v51, 4294967295 }
 0x250   : > { %v5993_v22 = vpop.permute.xlu2 %1332  ;;  %v253_v29 = vadd.s32 120, %v5713_v42  ;;  %v6046_v25 = vsel %vm10351_vm2, %v10585_v59, 0.0  ;;  %v431_v4 = vmul.f32 0.25, %v5666_v23  ;;  %vm10355_vm8 = vcmp.eq.s32.totalorder %v5824_v51, 4294967293  ;;  %v10594_v59 = vld [vmem:[#allocation62_spill] sm:$0xff] }
 0x251   : > { %v615_v7 = vadd.f32 %v599_v10, %v430_v15  ;;  %vm10365_vm14 = vcmp.eq.s32.totalorder %v5837_v53, 4294967294  ;;  %vm10358_vm11 = vcmp.eq.s32.totalorder %v5727_v28, 1  ;;  %v1059_v31 = vadd.f32 %v1043_v13, %v947_v24  ;;  %v10590_v24 = vld [vmem:[#allocation12_spill] sm:$0xff] }
 0x252   : > { %v949_v42 = vadd.f32 %v5918_v43, %v837_v47  ;;  %vm10357_vm1 = vcmp.eq.s32.totalorder %v5727_v28, 2  ;;  %v6057_v39 = vsel %vm10353_vm13, %v10586_v34, 0.0  ;;  %v838_v17 = vadd.f32 %v822_v21, %v726_v57  ;;  %v10592_v21 = vld [vmem:[#allocation70_spill] sm:$0xff]  ;;  %v10593_v57 = vld [vmem:[#allocation24_spill] sm:$0xff] }
 0x253   : > { %10587 = vst [vmem:[#allocation3_spill] sm:$0xff] %v6057_v39  ;;  %v727_v11 = vadd.f32 %v711_v37, %v615_v7  ;;  %vm10367_vm2 = vcmp.eq.s32.totalorder %v5751_v14, 4294967295  ;;  %v600_v10 = vsel %vm10356_vm7, %v10589_v62, 0.0  ;;  %v712_v43 = vsel %vm10355_vm8, %v10590_v24, 0.0  ;;  %v10595_v62 = vld [vmem:[#allocation5_spill] sm:$0xff]  ;;  %v6098_v39 = vpop.permute.xlu0 %1484 }
 0x254   : > { %v6069_v47 = vsub.s32 %v5718_v44, %v253_v29  ;;  %vm10359_vm9 = vcmp.eq.s32.totalorder %v5727_v28, 3  ;;  %v616_v13 = vadd.f32 %v600_v10, %v431_v4  ;;  %vm10370_vm13 = vcmp.eq.s32.totalorder %v5837_v53, 4294967292  ;;  %v10596_v10 = vld [vmem:[#allocation73_spill] sm:$0xff]  ;;  %10601 = vst [vmem:[#allocation12_spill] sm:$0xff] %v6098_v39 }
 0x255   : > { %vm10369_vm6 = vcmp.eq.s32.totalorder %v5945_v19, 4294967295  ;;  %v434_v37 = vmul.f32 0.25, %v10592_v21  ;;  %v1155_v7 = vsel %vm10358_vm11, %v10593_v57, 0.0  ;;  %v1267_v34 = vsel %vm10357_vm1, %v10594_v59, 0.0  ;;  %v10600_v57 = vld [vmem:[#allocation6_spill] sm:$0xff] }
 0x256   : > { %10591 = vst [vmem:[#allocation7_spill] sm:$0xff] %v6069_v47  ;;  %v6084_v44 = vsel %vm10360_vm12, %v10595_v62, 0.0  ;;  %vm10382_vm8 = vcmp.eq.s32.totalorder %v5998_v18, 4294967293  ;;  %v6087_v29 = vadd.f32 %v1045_v20, %v949_v42  ;;  %v1171_v4 = vadd.f32 %v1155_v7, %v1059_v31 }
 0x257   : > { %v1317_v15 = vpop.permute.xlu1 %1316  ;;  %v10597_v24 = vperm.slane %v10596_v10, 0  ;;  %v935_v59 = vsel %vm10361_vm3, %v10600_v57, 0.0  ;;  %v839_v48 = vadd.f32 %v823_v33, %v727_v11  ;;  %vm10376_vm1 = vcmp.eq.s32.totalorder %v5837_v53, 4294967295  ;;  %v418_v31 = vpop.f32.mrf.mxu0  ;;  %v10602_v10 = vld [vmem:[#allocation8_spill] sm:$0xff]  ;;  %v10603_v33 = vld [vmem:[#allocation82_spill] sm:$0xff] }
 0x258   : > { %v6060_v23 = vpop.permute.xlu2 %1340  ;;  %v1379_v62 = vsel %vm10359_vm9, %v1317_v15, 0.0  ;;  %v436_v20 = vmul.f32 0.25, %v5811_v35  ;;  %v6105_v42 = vadd.f32 %v5954_v8, %v838_v17  ;;  %v1283_v7 = vadd.f32 %v1267_v34, %v1171_v4  ;;  %v10604_v15 = vld [vmem:[#allocation9_spill] sm:$0xff] }
 0x259   : > { %10588 = vst [vmem:[#allocation4_spill] sm:$0xff] %v6060_v23  ;;  %vm6091_vm7 = vcmp.eq.s32.totalorder %v10597_v24, 1  ;;  %v728_v23 = vadd.f32 %v712_v43, %v616_v13  ;;  %v6110_v24 = vsel %vm10368_vm5, %v10602_v10, 0.0  ;;  %v619_v11 = vadd.f32 %v10603_v33, %v434_v37  ;;  %v10606_v43 = vld [vmem:[#allocation10_spill] sm:$0xff]  ;;  %v10607_v37 = vld [vmem:[#allocation11_spill] sm:$0xff]  ;;  %v10609_v33 = vld [vmem:[#allocation61_spill] sm:$0xff] }
 0x25a   : > { %vm10374_vm11 = vcmp.eq.s32.totalorder %v6069_v47, 4294967295  ;;  %vm10378_vm9 = vcmp.eq.s32.totalorder %v5848_v55, 4294967292  ;;  %v6118_v35 = vsel %vm10362_vm10, %v10604_v15, 0.0  ;;  %vm10377_vm12 = vcmp.eq.s32.totalorder %v5998_v18, 4294967294 }
 0x25b   : > { %10605 = vst [vmem:[#allocation70_spill] sm:$0xff] %v6118_v35  ;;  %vm10366_vm3 = vcmp.eq.s32.totalorder %v5727_v28, 4  ;;  %v1395_v8 = vadd.f32 %v1379_v62, %v1283_v7  ;;  %v936_v13 = vsel %vm10363_vm15, %v10606_v43, 0.0  ;;  %v6130_v34 = vsel %vm10364_vm4, %v10607_v37, 0.0  ;;  %v10610_v7 = vld [vmem:[#allocation13_spill] sm:$0xff]  ;;  %v10611_v37 = vld [vmem:[#allocation14_spill] sm:$0xff] }
 0x25c   : > { %v840_v4 = vadd.f32 %v5923_v2, %v728_v23  ;;  %v6133_v57 = vadd.f32 %v935_v59, %v839_v48  ;;  %v6138_v15 = vmul.f32 0.25, %v10609_v33  ;;  %vm10379_vm10 = vcmp.eq.s32.totalorder %v5848_v55, 4294967295  ;;  %v10612_v23 = vld [vmem:[#allocation75_spill] sm:$0xff]  ;;  %v10613_v33 = vld [vmem:[#allocation66_spill] sm:$0xff] }
 0x25d   : > { %v621_v62 = vadd.f32 %v5942_v5, %v436_v20  ;;  %vm10371_vm15 = vcmp.eq.s32.totalorder %v5880_v58, 4294967292  ;;  %v6146_v43 = vsel %vm10365_vm14, %v10610_v7, 0.0  ;;  %v6151_v2 = vsel %vm10367_vm2, %v10611_v37, 0.0  ;;  %v10614_v7 = vld [vmem:[#allocation26_spill] sm:$0xff] }
 0x25e   : > { %v731_v48 = vadd.f32 %v5834_v41, %v619_v11  ;;  %v1491_v59 = vsel %vm10366_vm3, %v10612_v23, 0.0  ;;  %v433_v5 = vmul.f32 0.25, %v10613_v33  ;;  %vm10380_vm4 = vcmp.eq.s32.totalorder %v5848_v55, 4294967293  ;;  %v10615_v41 = vld [vmem:[#allocation15_spill] sm:$0xff]  ;;  %v10616_v23 = vld [vmem:[#allocation17_spill] sm:$0xff] }
 0x25f   : > { %v6122_v17 = vpop.permute.xlu1 %1328  ;;  %v437_v20 = vmul.f32 0.25, %v5927_v1  ;;  %v1507_v39 = vadd.f32 %v1491_v59, %v1395_v8  ;;  %vm10381_vm14 = vcmp.eq.s32.totalorder %v5824_v51, 1  ;;  %v602_v37 = vsel %vm10371_vm15, %v10614_v7, 0.0  ;;  %v10617_v8 = vld [vmem:[#allocation16_spill] sm:$0xff] }
 0x260   : > { %v6135_v10 = vpop.permute.xlu2 %1352  ;;  %v6164_v35 = vadd.f32 %v936_v13, %v840_v4  ;;  %v608_v11 = vsel %vm10370_vm13, %v10615_v41, 0.0  ;;  %v6172_v33 = vsel %vm10369_vm6, %v10616_v23, 0.0  ;;  %v733_v1 = vadd.f32 %v5876_v3, %v621_v62  ;;  %v523_v13 = vpop.permute.xlu0 %522  ;;  %v10619_v23 = vld [vmem:[#allocation18_spill] sm:$0xff] }
 0x261   : > { %10608 = vst [vmem:[#allocation24_spill] sm:$0xff] %v6135_v10  ;;  %v439_v10 = vmul.f32 0.25, %v418_v31  ;;  %vm10383_vm3 = vcmp.eq.s32.totalorder %v5880_v58, 4294967294  ;;  %v6179_v59 = vsel %vm10382_vm8, %v10617_v8, 0.0  ;;  %v843_v31 = vadd.f32 %v5829_v52, %v731_v48  ;;  %v421_v3 = vpop.f32.mrf.mxu0  ;;  %v10620_v48 = vld [vmem:[#allocation20_spill] sm:$0xff] }
 0x262   : > { %vm10385_vm2 = vcmp.eq.s32.totalorder %v5733_v46, 1  ;;  %vm10392_vm5 = vcmp.eq.s32.totalorder %v5743_v45, 4294967292  ;;  %v622_v4 = vadd.f32 %v5971_v27, %v437_v20  ;;  %v618_v7 = vadd.f32 %v602_v37, %v433_v5  ;;  %v10623_v37 = vld [vmem:[#allocation77_spill] sm:$0xff] }
 0x263   : > { %vm10391_vm6 = vcmp.eq.s32.totalorder %v6069_v47, 4294967293  ;;  %v6190_v41 = vsel %vm6091_vm7, %v1507_v39, -10000.0  ;;  %v944_v52 = vsel %vm10376_vm1, %v10619_v23, 0.0  ;;  %v6198_v8 = vsel %vm10374_vm11, %v10620_v48, 0.0  ;;  %v10622_v39 = vld [vmem:[#allocation19_spill] sm:$0xff] }
 0x264   : > { %10618 = vst [vmem:[#allocation62_spill] sm:$0xff] %v6190_v41  ;;  %vm10388_vm13 = vcmp.eq.s32.totalorder %v5790_v49, 1  ;;  %vm10384_vm15 = vcmp.eq.s32.totalorder %v5880_v58, 4294967295  ;;  %v624_v27 = vadd.f32 %v608_v11, %v439_v10  ;;  %v609_v20 = vsel %vm10378_vm9, %v10622_v39, 0.0  ;;  %v10625_v39 = vld [vmem:[#allocation22_spill] sm:$0xff] }
 0x265   : > { %10621 = vst [vmem:[#allocation5_spill] sm:$0xff] %v6198_v8  ;;  %v6209_v23 = vmul.f32 0.25, %v10623_v37  ;;  %v845_v28 = vadd.f32 %v5900_v63, %v733_v1  ;;  %v596_v48 = vsel %vm10392_vm5, %v523_v13, 0.0  ;;  %v10624_v8 = vld [vmem:[#allocation21_spill] sm:$0xff]  ;;  %vm10390_vm11 = vcmp.eq.s32.totalorder %v5743_v45, 0 }
 0x266   : > { %v6217_v10 = vsel %vm10377_vm12, %v10624_v8, 0.0  ;;  %v440_v11 = vmul.f32 0.25, %v421_v3  ;;  %v6226_v37 = vsel %vm10379_vm10, %v10625_v39, 0.0  ;;  %v734_v63 = vadd.f32 %v6035_v40, %v622_v4  ;;  %v10627_v8 = vld [vmem:[#allocation27_spill] sm:$0xff] }
 0x267   : > { %v6186_v62 = vpop.permute.xlu1 %1336  ;;  %v730_v1 = vadd.f32 %v5980_v16, %v618_v7  ;;  %vm10393_vm1 = vcmp.eq.s32.totalorder %v5848_v55, 1  ;;  %v736_v13 = vadd.f32 %v5935_v6, %v624_v27  ;;  %vm10395_vm12 = vcmp.eq.s32.totalorder %v6069_v47, 4294967294  ;;  %v10628_v6 = vld [vmem:[#allocation25_spill] sm:$0xff] }
 0x268   : > { %v6202_v5 = vpop.permute.xlu2 %1364  ;;  %1542 = vmax.xlane.f32.xlu2 %v6190_v41  ;;  %v6221_v41 = vadd.f32 %v5819_v50, %v843_v31  ;;  %vm10389_vm9 = vcmp.eq.s32.totalorder %v5909_v0, 0  ;;  %v612_v50 = vadd.f32 %v596_v48, %v6014_v30  ;;  %v10626_v31 = vld [vmem:[#allocation23_spill] sm:$0xff]  ;;  %v6241_v40 = vsel %vm10381_vm14, %v10627_v8, 0.0  ;;  %v10629_v7 = vld [vmem:[#allocation29_spill] sm:$0xff] }
 0x269   : > { %v721_v3 = vsel %vm10380_vm4, %v10626_v31, 0.0  ;;  %vm10386_vm10 = vcmp.eq.s32.totalorder %v5760_v32, 1  ;;  %v957_v16 = vadd.f32 %v5959_v9, %v845_v28  ;;  %v826_v4 = vsel %vm10383_vm3, %v10628_v6, 0.0  ;;  %v10630_v9 = vld [vmem:[#allocation47_spill] sm:$0xff] }
 0x26a   : > { %v938_v30 = vsel %vm10384_vm15, %v10629_v7, 0.0  ;;  %v625_v27 = vadd.f32 %v609_v20, %v440_v11  ;;  %vm10397_vm4 = vcmp.eq.s32.totalorder %v5743_v45, 2  ;;  %v846_v48 = vadd.f32 %v5905_v60, %v734_v63  ;;  %v10632_v60 = vld [vmem:[#allocation30_spill] sm:$0xff] }
 0x26b   : > { %v842_v39 = vadd.f32 %v826_v4, %v730_v1  ;;  %vm10426_vm14 = vcmp.eq.s32.totalorder %v5998_v18, 0  ;;  %vm10387_vm8 = vcmp.eq.s32.totalorder %v5760_v32, 2  ;;  %v848_v28 = vadd.f32 %v6146_v43, %v736_v13  ;;  %v10633_v13 = vld [vmem:[#allocation28_spill] sm:$0xff]  ;;  %v10634_v4 = vld [vmem:[#allocation71_spill] sm:$0xff] }
 0x26c   : > { %vm10401_vm3 = vcmp.eq.s32.totalorder %v5998_v18, 2  ;;  %v1157_v8 = vsel %vm10386_vm10, %v10630_v9, 0.0  ;;  %v724_v20 = vadd.f32 %v5843_v36, %v612_v50  ;;  %v6268_v63 = vsel %vm10385_vm2, %v10632_v60, 0.0  ;;  %v548_v9 = vpop.permute.xlu0 %547  ;;  %v10636_v60 = vld [vmem:[#allocation33_spill] sm:$0xff] }
 0x26d   : > { %v954_v1 = vadd.f32 %v938_v30, %v842_v39  ;;  %vm966_vm15 = vcmp.eq.s32.totalorder %v5793_v38, 0  ;;  %v6272_v43 = vadd.f32 %v6046_v25, %v957_v16  ;;  %v6277_v6 = vsel %vm10391_vm6, %v10633_v13, 0.0  ;;  %v10635_v30 = vld [vmem:[#allocation34_spill] sm:$0xff]  ;;  %v10637_v13 = vld [vmem:[#allocation31_spill] sm:$0xff] }
 0x26e   : > { %v6280_v36 = vmul.f32 0.25, %v6020_v56  ;;  %v737_v50 = vadd.f32 %v721_v3, %v625_v27  ;;  %v1269_v7 = vsel %vm10387_vm8, %v10634_v4, 0.0  ;;  %v6288_v39 = vsel %vm10388_vm13, %v10635_v30, 0.0  ;;  %v10639_v30 = vld [vmem:[#allocation32_spill] sm:$0xff] }
 0x26f   : > { %v6255_v31 = vpop.permute.xlu1 %1348  ;;  %vm10415_vm2 = vcmp.eq.s32.totalorder %v5751_v14, 0  ;;  %v958_v25 = vadd.f32 %v5990_v61, %v846_v48  ;;  %v1173_v16 = vadd.f32 %v1157_v8, %v6087_v29  ;;  %v1047_v56 = vsel %vm10389_vm9, %v10636_v60, 0.0  ;;  %v10638_v48 = vld [vmem:[#allocation36_spill] sm:$0xff] }
 0x270   : > { %v6263_v11 = vpop.permute.xlu2 %1376  ;;  %vm10406_vm10 = vcmp.eq.s32.totalorder %v5751_v14, 2  ;;  %vm10413_vm8 = vcmp.eq.s32.totalorder %v5824_v51, 0  ;;  %v960_v3 = vadd.f32 %v944_v52, %v848_v28  ;;  %v836_v27 = vadd.f32 %v5853_v54, %v724_v20  ;;  %v10640_v54 = vld [vmem:[#allocation94_spill] sm:$0xff] }
 0x271   : > { %10631 = vst [vmem:[#allocation73_spill] sm:$0xff] %v6263_v11  ;;  %v1044_v4 = vsel %vm10390_vm11, %v10637_v13, 0.0  ;;  %vm10396_vm13 = vcmp.eq.s32.totalorder %v5760_v32, 3  ;;  %v6304_v61 = vadd.f32 %v6026_v26, %v954_v1  ;;  %v1285_v29 = vadd.f32 %v1269_v7, %v1173_v16  ;;  %v10641_v1 = vld [vmem:[#allocation39_spill] sm:$0xff]  ;;  %v10642_v7 = vld [vmem:[#allocation56_spill] sm:$0xff] }
 0x272   : > { %v6309_v8 = vsel %vm10393_vm1, %v10638_v48, 0.0  ;;  %v6314_v52 = vsel %vm10395_vm12, %v10639_v30, 0.0  ;;  %v849_v28 = vadd.f32 %v10640_v54, %v737_v50  ;;  %vm10414_vm9 = vcmp.eq.s32.totalorder %v5945_v19, 0 }
 0x273   : > { %vm10405_vm11 = vcmp.eq.s32.totalorder %v5945_v19, 2  ;;  %vm505_vm6 = vcmp.eq.s32.totalorder %v5998_v18, 4294967292  ;;  %v1063_v26 = vadd.f32 %v1047_v56, %v6133_v57  ;;  %vm10404_vm5 = vcmp.eq.s32.totalorder %v5733_v46, 0  ;;  %v10644_v56 = vld [vmem:[#allocation35_spill] sm:$0xff] }
 0x274   : > { %vm10411_vm1 = vcmp.eq.s32.totalorder %v6069_v47, 0  ;;  %vm10400_vm0 = vcmp.eq.s32.totalorder %v5760_v32, 4  ;;  %v1268_v50 = vsel %vm10397_vm4, %v10641_v1, 0.0  ;;  %v1381_v16 = vsel %vm10396_vm13, %v10642_v7, 0.0  ;;  %v10645_v1 = vld [vmem:[#allocation37_spill] sm:$0xff]  ;;  %v10650_v32 = vld [vmem:[#allocation38_spill] sm:$0xff] }
 0x275   : > { %v6333_v60 = vadd.f32 %v6084_v44, %v960_v3  ;;  %v948_v57 = vadd.f32 %v6110_v24, %v836_v27  ;;  %v6339_v13 = vsel %vm10426_vm14, %v10644_v56, 0.0  ;;  %vm10402_vm12 = vcmp.eq.s32.totalorder %v5790_v49, 0  ;;  %v10646_v44 = vld [vmem:[#allocation40_spill] sm:$0xff]  ;;  %v10647_v56 = vld [vmem:[#allocation42_spill] sm:$0xff] }
 0x276   : > { %v601_v48 = vsel %vm505_vm6, %v548_v9, 0.0  ;;  %v1397_v54 = vadd.f32 %v1381_v16, %v1285_v29  ;;  %v1046_v7 = vsel %vm966_vm15, %v10645_v1, 0.0  ;;  %v1048_v24 = vsel %vm10413_vm8, %v10646_v44, 0.0  ;;  %v10648_v9 = vld [vmem:[#allocation43_spill] sm:$0xff]  ;;  %v10649_v1 = vld [vmem:[#allocation45_spill] sm:$0xff] }
 0x277   : > { %v6323_v20 = vpop.permute.xlu1 %1360  ;;  %10643 = vst [vmem:[#allocation6_spill] sm:$0xff] %v6333_v60  ;;  %v961_v3 = vadd.f32 %v6226_v37, %v849_v28  ;;  %v6356_v11 = vsel %vm10401_vm3, %v10647_v56, 0.0  ;;  %v1051_v29 = vsel %vm10404_vm5, %v10648_v9, 0.0  ;;  %vm10403_vm13 = vcmp.eq.s32.totalorder %v5848_v55, 0 }
 0x278   : > { %v1054_v44 = vsel %vm10402_vm12, %v10649_v1, 0.0  ;;  %vm10408_vm4 = vcmp.eq.s32.totalorder %v5743_v45, 1  ;;  %v617_v37 = vadd.f32 %v601_v48, %v6138_v15  ;;  %v1060_v28 = vadd.f32 %v1044_v4, %v948_v57  ;;  %v10651_v1 = vld [vmem:[#allocation48_spill] sm:$0xff]  ;;  %v10653_v4 = vld [vmem:[#allocation51_spill] sm:$0xff] }
 0x279   : > { %v1437_v30 = vpop.permute.xlu2 %1436  ;;  %v1062_v56 = vadd.f32 %v1046_v7, %v6105_v42  ;;  %v6371_v60 = vsel %vm10415_vm2, %v10650_v32, 0.0  ;;  %v1064_v9 = vadd.f32 %v1048_v24, %v6164_v35  ;;  %v1057_v15 = vsel %vm10403_vm13, %v10651_v1, 0.0  ;;  %v10652_v32 = vld [vmem:[#allocation46_spill] sm:$0xff]  ;;  %v10654_v24 = vld [vmem:[#allocation41_spill] sm:$0xff] }
 0x27a   : > { %v1493_v27 = vsel %vm10400_vm0, %v1437_v30, 0.0  ;;  %v563_v30 = vpop.permute.xlu0 %562  ;;  %vm10407_vm0 = vcmp.eq.s32.totalorder %v5909_v0, 1  ;;  %vm10412_vm3 = vcmp.eq.s32.totalorder %v5880_v58, 3  ;;  %v6388_v42 = vsel %vm10406_vm10, %v10652_v32, 0.0  ;;  %v10656_v32 = vld [vmem:[#allocation44_spill] sm:$0xff] }
 0x27b   : > { %v1509_v16 = vadd.f32 %v1493_v27, %v1397_v54  ;;  %v1067_v27 = vadd.f32 %v1051_v29, %v6221_v41  ;;  %v1070_v35 = vadd.f32 %v1054_v44, %v958_v25  ;;  %v1156_v41 = vsel %vm10408_vm4, %v10653_v4, 0.0  ;;  %v10655_v25 = vld [vmem:[#allocation50_spill] sm:$0xff] }
 0x27c   : > { %vm508_vm12 = vcmp.eq.s32.totalorder %v5751_v14, 4294967292  ;;  %vm10409_vm13 = vcmp.eq.s32.totalorder %v5880_v58, 1  ;;  %vm10410_vm5 = vcmp.eq.s32.totalorder %v5793_v38, 1  ;;  %v729_v48 = vadd.f32 %v6179_v59, %v617_v37  ;;  %v10657_v59 = vld [vmem:[#allocation49_spill] sm:$0xff] }
 0x27d   : > { %v6376_v54 = vsel %vm6091_vm7, %v1509_v16, -10000.0  ;;  %v1172_v7 = vadd.f32 %v1156_v41, %v1060_v28  ;;  %v6402_v29 = vsel %vm10414_vm9, %v10654_v24, 0.0  ;;  %v6407_v16 = vsel %vm10405_vm11, %v10655_v25, 0.0  ;;  %v10658_v24 = vld [vmem:[#allocation52_spill] sm:$0xff] }
 0x27e   : > { %1546 = vmax.xlane.f32.xlu1 %v6376_v54  ;;  %v1073_v44 = vadd.f32 %v1057_v15, %v961_v3  ;;  %v1176_v1 = vadd.f32 %v6241_v40, %v1064_v9  ;;  %v6413_v4 = vsel %vm10411_vm1, %v10656_v32, 0.0  ;;  %v1159_v37 = vsel %vm10407_vm0, %v10657_v59, 0.0  ;;  %v10659_v15 = vld [vmem:[#allocation54_spill] sm:$0xff]  ;;  %v10660_v59 = vld [vmem:[#allocation60_spill] sm:$0xff] }
 0x27f   : > { %v6394_v57 = vpop.permute.xlu1 %1372  ;;  %v1179_v28 = vadd.f32 %v6268_v63, %v1067_v27  ;;  %v604_v41 = vsel %vm508_vm12, %v563_v30, 0.0  ;;  %v1162_v3 = vsel %vm10409_vm13, %v10658_v24, 0.0  ;;  %v1158_v40 = vsel %vm10410_vm5, %v10659_v15, 0.0 }
 0x280   : > { %vm10424_vm11 = vcmp.eq.s32.totalorder %v5998_v18, 1  ;;  %v6429_v9 = vadd.f32 %v6288_v39, %v1070_v35  ;;  %vm10420_vm10 = vcmp.eq.s32.totalorder %v5824_v51, 2  ;;  %v841_v63 = vadd.f32 %v6217_v10, %v729_v48 }
 0x281   : > { %vm10416_vm0 = vcmp.eq.s32.totalorder %v5743_v45, 3  ;;  %v1284_v30 = vadd.f32 %v1268_v50, %v1172_v7  ;;  %v1175_v27 = vadd.f32 %v1159_v37, %v1063_v26  ;;  %vm10422_vm4 = vcmp.eq.s32.totalorder %v5824_v51, 4  ;;  %v10662_v50 = vld [vmem:[#allocation93_spill] sm:$0xff] }
 0x282   : > { %v6436_v25 = vadd.f32 %v6309_v8, %v1073_v44  ;;  %v620_v32 = vadd.f32 %v604_v41, %v6209_v23  ;;  %v6442_v39 = vsel %vm10412_vm3, %v10660_v59, 0.0  ;;  %vm10421_vm13 = vcmp.eq.s32.totalorder %v5793_v38, 2  ;;  %v578_v35 = vpop.permute.xlu0 %577  ;;  %v10661_v8 = vld [vmem:[#allocation68_spill] sm:$0xff] }
 0x283   : > { %vm10417_vm5 = vcmp.eq.s32.totalorder %v5824_v51, 3  ;;  %vm10418_vm1 = vcmp.eq.s32.totalorder %v5743_v45, 4  ;;  %v6448_v10 = vadd.f32 %v1162_v3, %v6304_v61  ;;  %v1174_v26 = vadd.f32 %v1158_v40, %v1062_v56  ;;  %v10663_v56 = vld [vmem:[#allocation89_spill] sm:$0xff]  ;;  %v10664_v3 = vld [vmem:[#allocation64_spill] sm:$0xff] }
 0x284   : > { %v1272_v23 = vsel %vm10420_vm10, %v10661_v8, 0.0  ;;  %v1380_v48 = vsel %vm10416_vm0, %v10662_v50, 0.0  ;;  %vm10435_vm3 = vcmp.eq.s32.totalorder %v5751_v14, 1  ;;  %vm10419_vm8 = vcmp.eq.s32.totalorder %v5733_v46, 2  ;;  %v10667_v8 = vld [vmem:[#allocation78_spill] sm:$0xff] }
 0x285   : > { %v953_v7 = vadd.f32 %v6130_v34, %v841_v63  ;;  %v1396_v44 = vadd.f32 %v1380_v48, %v1284_v30  ;;  %vm511_vm9 = vcmp.eq.s32.totalorder %v5945_v19, 4294967292  ;;  %vm10423_vm2 = vcmp.eq.s32.totalorder %v5909_v0, 2  ;;  %v10665_v63 = vld [vmem:[#allocation57_spill] sm:$0xff]  ;;  %v1445_v48 = vpop.permute.xlu2 %1444 }
 0x286   : > { %v732_v37 = vadd.f32 %v10663_v56, %v620_v32  ;;  %v1384_v41 = vsel %vm10417_vm5, %v6186_v62, 0.0  ;;  %v1270_v15 = vsel %vm10421_vm13, %v10664_v3, 0.0  ;;  %v1288_v34 = vadd.f32 %v1272_v23, %v1176_v1  ;;  %v10666_v32 = vld [vmem:[#allocation72_spill] sm:$0xff] }
 0x287   : > { %vm10425_vm0 = vcmp.eq.s32.totalorder %v5793_v38, 3  ;;  %v1161_v30 = vsel %vm10424_vm11, %v10665_v63, 0.0  ;;  %v1275_v59 = vsel %vm10419_vm8, %v10666_v32, 0.0  ;;  %vm10432_vm5 = vcmp.eq.s32.totalorder %v5790_v49, 2 }
 0x288   : > { %v1433_v61 = vpop.permute.xlu1 %1432  ;;  %v607_v62 = vsel %vm511_vm9, %v578_v35, 0.0  ;;  %v1271_v1 = vsel %vm10423_vm2, %v10667_v8, 0.0  ;;  %v1065_v23 = vadd.f32 %v6339_v13, %v953_v7  ;;  %v1400_v50 = vadd.f32 %v1384_v41, %v1288_v34  ;;  %v10669_v35 = vld [vmem:[#allocation90_spill] sm:$0xff] }
 0x289   : > { %v1492_v24 = vsel %vm10418_vm1, %v1433_v61, 0.0  ;;  %vm10434_vm1 = vcmp.eq.s32.totalorder %v5733_v46, 4  ;;  %v10668_v61 = vld [vmem:[#allocation85_spill] sm:$0xff]  ;;  %v844_v3 = vadd.f32 %v10669_v35, %v732_v37  ;;  %v1382_v63 = vsel %vm10425_vm0, %v6122_v17, 0.0 }
 0x28a   : > { %v1508_v40 = vadd.f32 %v1492_v24, %v1396_v44  ;;  %v1496_v56 = vsel %vm10422_vm4, %v10668_v61, 0.0  ;;  %v1286_v24 = vadd.f32 %v1270_v15, %v1174_v26  ;;  %vm10429_vm8 = vcmp.eq.s32.totalorder %v5909_v0, 3  ;;  %v423_v26 = vpop.f32.mrf.mxu0  ;;  %v593_v37 = vpop.permute.xlu0 %592 }
 0x28b   : > { %v623_v13 = vadd.f32 %v607_v62, %v6280_v36  ;;  %vm10428_vm10 = vcmp.eq.s32.totalorder %v5733_v46, 3  ;;  %vm10427_vm13 = vcmp.eq.s32.totalorder %v5793_v38, 4  ;;  %v1291_v7 = vadd.f32 %v1275_v59, %v1179_v28 }
 0x28c   : > { %v6487_v44 = vsel %vm6091_vm7, %v1508_v40, -10000.0  ;;  %v1287_v41 = vadd.f32 %v1271_v1, %v1175_v27  ;;  %vm10433_vm4 = vcmp.eq.s32.totalorder %v5880_v58, 2  ;;  %vm10431_vm2 = vcmp.eq.s32.totalorder %v5998_v18, 3  ;;  %v10671_v1 = vld [vmem:[#allocation59_spill] sm:$0xff] }
 0x28d   : > { %1544 = vmax.xlane.f32.xlu0 %v6487_v44  ;;  %vm1085_vm11 = vcmp.eq.s32.totalorder %v5777_v12, 1  ;;  %v1177_v17 = vadd.f32 %v1161_v30, %v1065_v23  ;;  %vm10457_vm0 = vcmp.eq.s32.totalorder %v6069_v47, 4294967292  ;;  %v1398_v15 = vadd.f32 %v1382_v63, %v1286_v24  ;;  %v10670_v30 = vld [vmem:[#allocation3_spill] sm:$0xff] }
 0x28e   : > { %v1512_v36 = vadd.f32 %v1496_v56, %v1400_v50  ;;  %v956_v40 = vadd.f32 %v6151_v2, %v844_v3  ;;  %v1383_v28 = vsel %vm10429_vm8, %v5993_v22, 0.0  ;;  %v1387_v27 = vsel %vm10428_vm10, %v6255_v31, 0.0  ;;  %v10672_v23 = vld [vmem:[#allocation79_spill] sm:$0xff]  ;;  %v10673_v50 = vld [vmem:[#allocation86_spill] sm:$0xff] }
 0x28f   : > { %v735_v59 = vadd.f32 %v10670_v30, %v623_v13  ;;  %v441_v62 = vmul.f32 0.25, %v423_v26  ;;  %vm10430_vm14 = vcmp.eq.s32.totalorder %v5909_v0, 4  ;;  %v1164_v2 = vsel %vm10435_vm3, %v10671_v1, 0.0  ;;  %v10674_v13 = vld [vmem:[#allocation4_spill] sm:$0xff]  ;;  %v10677_v1 = vld [vmem:[#allocation55_spill] sm:$0xff] }
 0x290   : > { %v1441_v34 = vpop.permute.xlu1 %1440  ;;  %v1278_v22 = vsel %vm10432_vm5, %v10672_v23, 0.0  ;;  %v1274_v31 = vsel %vm10433_vm4, %v10673_v50, 0.0  ;;  %v610_v61 = vsel %vm10457_vm0, %v593_v37, 0.0  ;;  %v1399_v56 = vadd.f32 %v1383_v28, %v1287_v41 }
 0x291   : > { %v1494_v32 = vsel %vm10427_vm13, %v1441_v34, 0.0  ;;  %vm10456_vm13 = vcmp.eq.s32.totalorder %v5945_v19, 1  ;;  %v1403_v24 = vadd.f32 %v1387_v27, %v1291_v7  ;;  %v6530_v35 = vsel %vm6091_vm7, %v1512_v36, -10000.0  ;;  %v10675_v7 = vld [vmem:[#allocation70_spill] sm:$0xff]  ;;  %v1457_v36 = vpop.permute.xlu2 %1456 }
 0x292   : > { %v1510_v8 = vadd.f32 %v1494_v32, %v1398_v15  ;;  %v1289_v63 = vadd.f32 %v6356_v11, %v1177_v17  ;;  %v1385_v26 = vsel %vm10431_vm2, %v10674_v13, 0.0  ;;  %v1068_v37 = vadd.f32 %v6371_v60, %v956_v40  ;;  %v10676_v11 = vld [vmem:[#allocation92_spill] sm:$0xff] }
 0x293   : > { %v1495_v41 = vsel %vm10430_vm14, %v1445_v48, 0.0  ;;  %v847_v15 = vadd.f32 %v10675_v7, %v735_v59  ;;  %v626_v34 = vadd.f32 %v610_v61, %v441_v62  ;;  %vm10437_vm10 = vcmp.eq.s32.totalorder %v5790_v49, 3  ;;  %v10679_v61 = vld [vmem:[#allocation91_spill] sm:$0xff] }
 0x294   : > { %v6534_v3 = vsel %vm6091_vm7, %v1510_v8, -10000.0  ;;  %vm10436_vm8 = vcmp.eq.s32.totalorder %v5998_v18, 4  ;;  %v1499_v17 = vsel %vm10434_vm1, %v10676_v11, 0.0  ;;  %v1290_v60 = vadd.f32 %v1274_v31, %v6448_v10 }
 0x295   : > { %1552 = vmax.xlane.f32.xlu0 %v6530_v35  ;;  %1548 = vmax.xlane.f32.xlu2 %v6534_v3  ;;  %vm10441_vm14 = vcmp.eq.s32.totalorder %v5848_v55, 2  ;;  %vm1197_vm2 = vcmp.eq.s32.totalorder %v5777_v12, 2  ;;  %vm10444_vm5 = vcmp.eq.s32.totalorder %v5777_v12, 3  ;;  %v1294_v48 = vadd.f32 %v1278_v22, %v6429_v9 }
 0x296   : > { %v1401_v40 = vadd.f32 %v1385_v26, %v1289_v63  ;;  %v1511_v28 = vadd.f32 %v1495_v41, %v1399_v56  ;;  %v1515_v32 = vadd.f32 %v1499_v17, %v1403_v24  ;;  %vm10438_vm4 = vcmp.eq.s32.totalorder %v5751_v14, 3  ;;  %v10681_v41 = vld [vmem:[#allocation63_spill] sm:$0xff] }
 0x297   : > { %v1180_v30 = vadd.f32 %v1164_v2, %v1068_v37  ;;  %v1390_v59 = vsel %vm10437_vm10, %v6323_v20, 0.0  ;;  %v959_v62 = vadd.f32 %v6172_v33, %v847_v15  ;;  %v738_v8 = vadd.f32 %v6277_v6, %v626_v34  ;;  %v10678_v2 = vld [vmem:[#allocation87_spill] sm:$0xff]  ;;  %v10682_v15 = vld [vmem:[#allocation97_spill] sm:$0xff] }
 0x298   : > { %v1453_v27 = vpop.permute.xlu1 %1452  ;;  %vm10439_vm1 = vcmp.eq.s32.totalorder %v5880_v58, 4  ;;  %v1165_v23 = vsel %vm1085_vm11, %v10677_v1, 0.0  ;;  %vm10440_vm3 = vcmp.eq.s32.totalorder %v5790_v49, 4  ;;  %v1281_v20 = vsel %vm10441_vm14, %v10678_v2, 0.0 }
 0x299   : > { %v1497_v10 = vsel %vm10436_vm8, %v1453_v27, 0.0  ;;  %v1402_v22 = vadd.f32 %v6442_v39, %v1290_v60  ;;  %v1406_v50 = vadd.f32 %v1390_v59, %v1294_v48  ;;  %v6575_v33 = vsel %vm6091_vm7, %v1515_v32, -10000.0  ;;  %v10680_v39 = vld [vmem:[#allocation24_spill] sm:$0xff]  ;;  %v1469_v11 = vpop.permute.xlu2 %1468 }
 0x29a   : > { %v1513_v9 = vadd.f32 %v1497_v10, %v1401_v40  ;;  %v6579_v6 = vsel %vm6091_vm7, %v1511_v28, -10000.0  ;;  %v1277_v56 = vsel %vm1197_vm2, %v10679_v61, 0.0  ;;  %v1292_v24 = vadd.f32 %v6388_v42, %v1180_v30  ;;  %v10683_v28 = vld [vmem:[#allocation5_spill] sm:$0xff]  ;;  %v10685_v10 = vld [vmem:[#allocation58_spill] sm:$0xff] }
 0x29b   : > { %v1388_v63 = vsel %vm10438_vm4, %v10680_v39, 0.0  ;;  %v1498_v13 = vsel %vm10439_vm1, %v1457_v36, 0.0  ;;  %v850_v26 = vadd.f32 %v6314_v52, %v738_v8  ;;  %v1071_v37 = vadd.f32 %v6402_v29, %v959_v62  ;;  %v10684_v30 = vld [vmem:[#allocation65_spill] sm:$0xff]  ;;  %v10688_v39 = vld [vmem:[#allocation12_spill] sm:$0xff] }
 0x29c   : > { %v6583_v31 = vsel %vm6091_vm7, %v1513_v9, -10000.0  ;;  %vm10442_vm8 = vcmp.eq.s32.totalorder %v5848_v55, 3  ;;  %vm10443_vm10 = vcmp.eq.s32.totalorder %v5751_v14, 4  ;;  %v1181_v42 = vadd.f32 %v1165_v23, %v6272_v43 }
 0x29d   : > { %1558 = vmax.xlane.f32.xlu0 %v6575_v33  ;;  %1550 = vmax.xlane.f32.xlu2 %v6579_v6  ;;  %vm1088_vm4 = vcmp.eq.s32.totalorder %v5837_v53, 1  ;;  %v1167_v7 = vsel %vm10456_vm13, %v10681_v41, 0.0  ;;  %v1502_v52 = vsel %vm10440_vm3, %v10682_v15, 0.0  ;;  %v1297_v29 = vadd.f32 %v1281_v20, %v6436_v25 }
 0x29e   : > { %1554 = vmax.xlane.f32.xlu1 %v6583_v31  ;;  %v1404_v34 = vadd.f32 %v1388_v63, %v1292_v24  ;;  %v1514_v36 = vadd.f32 %v1498_v13, %v1402_v22  ;;  %v1518_v60 = vadd.f32 %v1502_v52, %v1406_v50  ;;  %v1293_v48 = vadd.f32 %v1277_v56, %v1181_v42  ;;  %v10686_v22 = vld [vmem:[#allocation95_spill] sm:$0xff] }
 0x29f   : > { %vm10446_vm1 = vcmp.eq.s32.totalorder %v5945_v19, 3  ;;  %v1393_v43 = vsel %vm10442_vm8, %v6394_v57, 0.0  ;;  %v962_v27 = vadd.f32 %v10683_v28, %v850_v26  ;;  %v1183_v32 = vadd.f32 %v1167_v7, %v1071_v37 }
 0x2a0   : > { %v1465_v17 = vpop.permute.xlu1 %1464  ;;  %vm10445_vm3 = vcmp.eq.s32.totalorder %v5777_v12, 4  ;;  %v1389_v59 = vsel %vm10444_vm5, %v10684_v30, 0.0  ;;  %v1168_v62 = vsel %vm1088_vm4, %v10685_v10, 0.0  ;;  %vm10448_vm14 = vcmp.eq.s32.totalorder %v5848_v55, 4 }
 0x2a1   : > { %v1500_v40 = vsel %vm10443_vm10, %v1465_v17, 0.0  ;;  %vm10447_vm8 = vcmp.eq.s32.totalorder %v5837_v53, 2  ;;  %v1409_v57 = vadd.f32 %v1393_v43, %v1297_v29  ;;  %v6628_v8 = vsel %vm6091_vm7, %v1518_v60, -10000.0  ;;  %v1481_v52 = vpop.permute.xlu2 %1480  ;;  %v10690_v17 = vld [vmem:[#allocation53_spill] sm:$0xff] }
 0x2a2   : > { %v1516_v25 = vadd.f32 %v1500_v40, %v1404_v34  ;;  %v6632_v9 = vsel %vm6091_vm7, %v1514_v36, -10000.0  ;;  %vm10455_vm10 = vcmp.eq.s32.totalorder %v6069_v47, 1  ;;  %v1391_v23 = vsel %vm10446_vm1, %v6202_v5, 0.0  ;;  %v10687_v5 = vld [vmem:[#allocation6_spill] sm:$0xff]  ;;  %v10692_v40 = vld [vmem:[#allocation73_spill] sm:$0xff] }
 0x2a3   : > { %v1405_v2 = vadd.f32 %v1389_v59, %v1293_v48  ;;  %v1501_v20 = vsel %vm10445_vm3, %v1469_v11, 0.0  ;;  %v1280_v50 = vsel %vm10447_vm8, %v10686_v22, 0.0  ;;  %v1295_v61 = vadd.f32 %v6407_v16, %v1183_v32  ;;  %v10689_v16 = vld [vmem:[#allocation67_spill] sm:$0xff]  ;;  %v10691_v48 = vld [vmem:[#allocation69_spill] sm:$0xff]  ;;  %v10693_v22 = vld [vmem:[#allocation62_spill] sm:$0xff] }
 0x2a4   : > { %v6636_v1 = vsel %vm6091_vm7, %v1516_v25, -10000.0  ;;  %v1074_v56 = vadd.f32 %v6413_v4, %v962_v27  ;;  %vm10449_vm5 = vcmp.eq.s32.totalorder %v5945_v19, 4  ;;  %v1184_v24 = vadd.f32 %v1168_v62, %v10687_v5 }
 0x2a5   : > { %1564 = vmax.xlane.f32.xlu0 %v6628_v8  ;;  %1556 = vmax.xlane.f32.xlu2 %v6632_v9  ;;  %v1505_v63 = vsel %vm10448_vm14, %v10688_v39, 0.0  ;;  %vm10454_vm3 = vcmp.eq.s32.totalorder %v6069_v47, 2  ;;  %v1407_v13 = vadd.f32 %v1391_v23, %v1295_v61  ;;  %v1517_v26 = vadd.f32 %v1501_v20, %v1405_v2 }
 0x2a6   : > { %1560 = vmax.xlane.f32.xlu1 %v6636_v1  ;;  %v1521_v42 = vadd.f32 %v1505_v63, %v1409_v57  ;;  %vm10452_vm1 = vcmp.eq.s32.totalorder %v5837_v53, 3  ;;  %v1170_v4 = vsel %vm10455_vm10, %v10689_v16, 0.0  ;;  %v1296_v41 = vadd.f32 %v1280_v50, %v1184_v24 }
 0x2a7   : > { %vm10453_vm8 = vcmp.eq.s32.totalorder %v6069_v47, 3  ;;  %v1186_v15 = vadd.f32 %v1170_v4, %v1074_v56  ;;  %vm10451_vm14 = vcmp.eq.s32.totalorder %v5837_v53, 4  ;;  %v6672_v36 = vsel %vm6091_vm7, %v1517_v26, -10000.0 }
 0x2a8   : > { %v1477_v37 = vpop.permute.xlu1 %1476  ;;  %v6668_v34 = vsel %vm6091_vm7, %v1521_v42, -10000.0  ;;  %v1282_v60 = vsel %vm10454_vm3, %v10690_v17, 0.0  ;;  %v1392_v43 = vsel %vm10452_vm1, %v10691_v48, 0.0  ;;  %v1394_v28 = vsel %vm10453_vm8, %v10692_v40, 0.0 }
 0x2a9   : > { %v1503_v7 = vsel %vm10449_vm5, %v1477_v37, 0.0  ;;  %v1504_v27 = vsel %vm10451_vm14, %v1481_v52, 0.0  ;;  %v1298_v32 = vadd.f32 %v1282_v60, %v1186_v15  ;;  %v1408_v25 = vadd.f32 %v1392_v43, %v1296_v41 }
 0x2aa   : > { %v1519_v29 = vadd.f32 %v1503_v7, %v1407_v13  ;;  %vm10450_vm5 = vcmp.eq.s32.totalorder %v6069_v47, 4  ;;  %vm10702_vm1 = vcmp.eq.s32.totalorder %v5743_v45, 4294967292  ;;  %vm10703_vm8 = vcmp.eq.s32.totalorder %v5998_v18, 4294967293 }
 0x2ab   : > { %v1410_v30 = vadd.f32 %v1394_v28, %v1298_v32  ;;  %v1520_v59 = vadd.f32 %v1504_v27, %v1408_v25  ;;  %vm10706_vm3 = vcmp.eq.s32.totalorder %v5751_v14, 4294967293 }
 0x2ac   : > { %v6676_v11 = vsel %vm6091_vm7, %v1519_v29, -10000.0 }
 0x2ad   : > { %1570 = vmax.xlane.f32.xlu0 %v6668_v34  ;;  %1562 = vmax.xlane.f32.xlu2 %v6672_v36  ;;  %v6697_v23 = vsel %vm6091_vm7, %v1520_v59, -10000.0 }
 0x2ae   : > { %1566 = vmax.xlane.f32.xlu1 %v6676_v11 }
 0x2b0   : > { %v1489_v10 = vpop.permute.xlu1 %1488 }
 0x2b1   : > { %v1506_v62 = vsel %vm10450_vm5, %v1489_v10, 0.0 }
 0x2b2   : > { %v1522_v57 = vadd.f32 %v1506_v62, %v1410_v30 }
 0x2b4   : > { %v6701_v2 = vsel %vm6091_vm7, %v1522_v57, -10000.0 }
 0x2b5   : > { %1568 = vmax.xlane.f32.xlu2 %v6697_v23 }
 0x2b6   : > { %1572 = vmax.xlane.f32.xlu1 %v6701_v2 }
 0x2db   : > { %v1543_v20 = vpop.xlane.xlu2 %1542 }
 0x2dc   : > { %v1574_v50 = vsub.f32 %v10693_v22, %v1543_v20 }
 0x2de   : > { %v1590_v61 = vmul.f32 1.442695, %v1574_v50 }
 0x2e0   : > { %4944 = vpow2.f32 %v1590_v61 }
 0x2e6   : > { %v6706_v56 = vpop.eup %4944 }
 0x2e7   : > { %1622 = vadd.xlane.f32.xlu2 %v6706_v56 }
 0x2f1   : > { %v1547_v5 = vpop.xlane.xlu1 %1546 }
 0x2f2   : > { %v1576_v24 = vsub.f32 %v6376_v54, %v1547_v5 }
 0x2f4   : > { %v1594_v39 = vmul.f32 1.442695, %v1576_v24 }
 0x2f6   : > { %4946 = vpow2.f32 %v1594_v39 }
 0x2fc   : > { %v6710_v63 = vpop.eup %4946 }
 0x2fd   : > { %1626 = vadd.xlane.f32.xlu1 %v6710_v63 }
 0x300   : > { %v1545_v13 = vpop.xlane.xlu0 %1544 }
 0x301   : > { %v1575_v26 = vsub.f32 %v6487_v44, %v1545_v13  ;;  %v5072_v13 = vld [vmem:[%s5171_s24] sm:$0xff] }
 0x303   : > { %v1592_v37 = vmul.f32 1.442695, %v1575_v26  ;;  %v5073_v26 = vld [vmem:[%s5171_s24 + $0x10] sm:$0xff] }
 0x305   : > { %4948 = vpow2.f32 %v1592_v37  ;;  %v5074_v37 = vld [vmem:[%s5171_s24 + $0x18] sm:$0xff] }
 0x308   : > { %v1553_v42 = vpop.xlane.xlu0 %1552  ;;  %v1549_v16 = vpop.xlane.xlu2 %1548 }
 0x309   : > { %v1579_v4 = vsub.f32 %v6530_v35, %v1553_v42  ;;  %v1577_v41 = vsub.f32 %v6534_v3, %v1549_v16  ;;  %v5075_v42 = vld [vmem:[%s5171_s24 + $0x8] sm:$0xff]  ;;  %v5076_v16 = vld [vmem:[%s5171_s24 + $0x20] sm:$0xff] }
 0x30b   : > { %v6716_v7 = vpop.eup %4948  ;;  %v1600_v54 = vmul.f32 1.442695, %v1579_v4  ;;  %v1596_v15 = vmul.f32 1.442695, %v1577_v41  ;;  %v5077_v4 = vld [vmem:[%s5171_s24 + $0x28] sm:$0xff] }
 0x30c   : > { %1624 = vadd.xlane.f32.xlu0 %v6716_v7 }
 0x30d   : > { %4950 = vpow2.f32 %v1600_v54 }
 0x30e   : > { %4952 = vpow2.f32 %v1596_v15 }
 0x310   : > { %v1559_v52 = vpop.xlane.xlu0 %1558  ;;  %v1551_v29 = vpop.xlane.xlu2 %1550 }
 0x311   : > { %v1582_v44 = vsub.f32 %v6575_v33, %v1559_v52  ;;  %v1578_v17 = vsub.f32 %v6579_v6, %v1551_v29  ;;  %v1555_v60 = vpop.xlane.xlu1 %1554 }
 0x312   : > { %v1580_v48 = vsub.f32 %v6583_v31, %v1555_v60 }
 0x313   : > { %v6722_v35 = vpop.eup %4950  ;;  %v1606_v3 = vmul.f32 1.442695, %v1582_v44  ;;  %v1598_v43 = vmul.f32 1.442695, %v1578_v17 }
 0x314   : > { %v6724_v40 = vpop.eup %4952  ;;  %v1602_v28 = vmul.f32 1.442695, %v1580_v48  ;;  %1632 = vadd.xlane.f32.xlu1 %v6722_v35 }
 0x315   : > { %4954 = vpow2.f32 %v1606_v3  ;;  %1628 = vadd.xlane.f32.xlu2 %v6724_v40 }
 0x316   : > { %4956 = vpow2.f32 %v1598_v43 }
 0x317   : > { %4958 = vpow2.f32 %v1602_v28 }
 0x318   : > { %v1565_v33 = vpop.xlane.xlu0 %1564  ;;  %v1557_v27 = vpop.xlane.xlu2 %1556 }
 0x319   : > { %v1585_v6 = vsub.f32 %v6628_v8, %v1565_v33  ;;  %v1581_v31 = vsub.f32 %v6632_v9, %v1557_v27  ;;  %v1561_v32 = vpop.xlane.xlu1 %1560  ;;  %v10694_v27 = vld [vmem:[#allocation81_spill] sm:$0xff] }
 0x31a   : > { %v1583_v25 = vsub.f32 %v6636_v1, %v1561_v32  ;;  %vm10695_vm5 = vcmp.eq.s32.totalorder %v10694_v27, 4294967292 }
 0x31b   : > { %v6731_v30 = vpop.eup %4954  ;;  %v1612_v59 = vmul.f32 1.442695, %v1585_v6  ;;  %v1604_v10 = vmul.f32 1.442695, %v1581_v31 }
 0x31c   : > { %v6733_v62 = vpop.eup %4956  ;;  %v1608_v57 = vmul.f32 1.442695, %v1583_v25  ;;  %1638 = vadd.xlane.f32.xlu1 %v6731_v30 }
 0x31d   : > { %v6736_v20 = vpop.eup %4958  ;;  %4960 = vpow2.f32 %v1612_v59  ;;  %1630 = vadd.xlane.f32.xlu0 %v6733_v62 }
 0x31e   : > { %4962 = vpow2.f32 %v1604_v10  ;;  %1634 = vadd.xlane.f32.xlu2 %v6736_v20  ;;  %v6791_v10 = vld [vmem:[%s5171_s24 + $0x38] sm:$0xff] }
 0x31f   : > { %4964 = vpow2.f32 %v1608_v57 }
 0x320   : > { %v1563_v8 = vpop.xlane.xlu2 %1562  ;;  %v1571_v41 = vpop.xlane.xlu0 %1570 }
 0x321   : > { %v1584_v9 = vsub.f32 %v6672_v36, %v1563_v8  ;;  %v1567_v1 = vpop.xlane.xlu1 %1566  ;;  %v1588_v54 = vsub.f32 %v6668_v34, %v1571_v41  ;;  %v10697_v41 = vld [vmem:[#allocation74_spill] sm:$0xff] }
 0x322   : > { %v1586_v22 = vsub.f32 %v6676_v11, %v1567_v1  ;;  %vm10698_vm14 = vcmp.eq.s32.totalorder %v10697_v41, 4294967293 }
 0x323   : > { %v6742_v50 = vpop.eup %4960  ;;  %v1610_v61 = vmul.f32 1.442695, %v1584_v9  ;;  %v1618_v52 = vmul.f32 1.442695, %v1588_v54  ;;  %v6799_v9 = vld [vmem:[%s5171_s24 + $0x30] sm:$0xff] }
 0x324   : > { %v6744_v5 = vpop.eup %4962  ;;  %v1614_v24 = vmul.f32 1.442695, %v1586_v22  ;;  %1644 = vadd.xlane.f32.xlu1 %v6742_v50 }
 0x325   : > { %v6747_v39 = vpop.eup %4964  ;;  %1636 = vadd.xlane.f32.xlu0 %v6744_v5  ;;  %4966 = vpow2.f32 %v1610_v61 }
 0x326   : > { %1640 = vadd.xlane.f32.xlu2 %v6747_v39  ;;  %4968 = vpow2.f32 %v1614_v24 }
 0x327   : > { %4970 = vpow2.f32 %v1618_v52 }
 0x328   : > { %v1569_v15 = vpop.xlane.xlu2 %1568 }
 0x329   : > { %v1587_v29 = vsub.f32 %v6697_v23, %v1569_v15  ;;  %v1573_v44 = vpop.xlane.xlu1 %1572 }
 0x32a   : > { %v1589_v60 = vsub.f32 %v6701_v2, %v1573_v44 }
 0x32b   : > { %v6751_v36 = vpop.eup %4966  ;;  %v1616_v17 = vmul.f32 1.442695, %v1587_v29 }
 0x32c   : > { %v6753_v11 = vpop.eup %4968  ;;  %v1620_v48 = vmul.f32 1.442695, %v1589_v60 }
 0x32d   : > { %1642 = vadd.xlane.f32.xlu0 %v6751_v36  ;;  %4972 = vpow2.f32 %v1616_v17  ;;  %v6772_v3 = vpop.eup %4970 }
 0x32e   : > { %1646 = vadd.xlane.f32.xlu2 %v6753_v11  ;;  %4974 = vpow2.f32 %v1620_v48 }
 0x333   : > { %v6775_v34 = vpop.eup %4972 }
 0x334   : > { %v6778_v23 = vpop.eup %4974 }
 0x33d   : > { %1759 = vrot.lane.b32.xlu1 %v5072_v13, %s5114_s29 }
 0x341   : > { %1763 = vrot.lane.b32.xlu0 %v5073_v26, %s5114_s29 }
 0x345   : > { %1765 = vrot.lane.b32.xlu1 %v5074_v37, %s5114_s29 }
 0x346   : > { %1761 = vrot.lane.b32.xlu2 %v5075_v42, %s5114_s29 }
 0x349   : > { %1767 = vrot.lane.b32.xlu0 %v5076_v16, %s5114_s29 }
 0x34e   : > { %1769 = vrot.lane.b32.xlu2 %v5077_v4, %s5114_s29 }
 0x35a   : > { %v1623_v33 = vpop.xlane.xlu2 %1622 }
 0x36f   : > { %1650 = vadd.xlane.f32.xlu1 %v6772_v3 }
 0x370   : > { %v1627_v43 = vpop.xlane.xlu1 %1626 }
 0x371   : > { %4976 = vrcp.f32 %v1627_v43 }
 0x372   : > { %4978 = vrcp.f32 %v1623_v33 }
 0x373   : > { %1648 = vadd.xlane.f32.xlu0 %v6775_v34 }
 0x377   : > { %v4977_v28 = vpop.eup %4976  ;;  %1652 = vadd.xlane.f32.xlu2 %v6778_v23 }
 0x378   : > { %v6782_v2 = vmul.f32 %v4977_v28, %v6710_v63  ;;  %v4979_v32 = vpop.eup %4978 }
 0x379   : > { %v6796_v57 = vmul.f32 %v4979_v32, %v6706_v56 }
 0x37a   : > { %v1696_v6 = vsel %vm10695_vm5, %v6782_v2, 0.0  ;;  %vm10696_vm5 = vcmp.eq.s32.totalorder %v5824_v51, 4294967292 }
 0x37b   : > { %v1832_v54 = vsel %vm10698_vm14, %v6796_v57, 0.0  ;;  %vm10699_vm14 = vcmp.eq.s32.totalorder %v5793_v38, 4294967293 }
 0x37f   : > { %1714 = vadd.xlane.f32.xlu2 %v1696_v6  ;;  %v1625_v31 = vpop.xlane.xlu0 %1624 }
 0x380   : > { %4980 = vrcp.f32 %v1625_v31 }
 0x386   : > { %v4981_v25 = vpop.eup %4980 }
 0x387   : > { %v6788_v59 = vmul.f32 %v4981_v25, %v6716_v7  ;;  %1773 = vrot.lane.b32.xlu0 %v6791_v10, %s5114_s29  ;;  %v1633_v63 = vpop.xlane.xlu1 %1632 }
 0x388   : > { %v1629_v8 = vpop.xlane.xlu2 %1628  ;;  %4982 = vrcp.f32 %v1633_v63  ;;  %1771 = vrot.lane.b32.xlu1 %v6799_v9, %s5114_s29 }
 0x389   : > { %4984 = vrcp.f32 %v1629_v8  ;;  %v1686_v7 = vpack.c.bf16 %v6788_v59, %v6796_v57 }
 0x38e   : > { %v4983_v1 = vpop.eup %4982 }
 0x38f   : > { %v4985_v22 = vpop.eup %4984  ;;  %v6806_v61 = vmul.f32 %v4983_v1, %v6722_v35  ;;  %v1639_v37 = vpop.xlane.xlu1 %1638 }
 0x390   : > { %v6809_v24 = vmul.f32 %v4985_v22, %v6724_v40  ;;  %v1631_v56 = vpop.xlane.xlu0 %1630 }
 0x391   : > { %4986 = vrcp.f32 %v1631_v56  ;;  %v1635_v13 = vpop.xlane.xlu2 %1634  ;;  %v1699_v26 = vsel %vm10696_vm5, %v6806_v61, 0.0  ;;  %vm10700_vm5 = vcmp.eq.s32.totalorder %v5733_v46, 4294967292 }
 0x392   : > { %1720 = vadd.xlane.f32.xlu2 %v1699_v26  ;;  %v1687_v42 = vpack.c.bf16 %v6809_v24, %v6782_v2  ;;  %4988 = vrcp.f32 %v1639_v37  ;;  %v1835_v33 = vsel %vm10699_vm14, %v6809_v24, 0.0  ;;  %vm10701_vm14 = vcmp.eq.s32.totalorder %v10697_v41, 4294967292 }
 0x393   : > { %4990 = vrcp.f32 %v1635_v13  ;;  %v1694_v8 = vsel %vm10701_vm14, %v6796_v57, 0.0  ;;  %vm10705_vm14 = vcmp.eq.s32.totalorder %v5909_v0, 4294967292 }
 0x397   : > { %v4987_v16 = vpop.eup %4986  ;;  %v1645_v29 = vpop.xlane.xlu1 %1644 }
 0x398   : > { %v6817_v35 = vmul.f32 %v4987_v16, %v6733_v62  ;;  %v1637_v40 = vpop.xlane.xlu0 %1636  ;;  %v4989_v52 = vpop.eup %4988 }
 0x399   : > { %4992 = vrcp.f32 %v1637_v40  ;;  %v1641_v4 = vpop.xlane.xlu2 %1640  ;;  %v4991_v44 = vpop.eup %4990  ;;  %v6837_v6 = vmul.f32 %v4989_v52, %v6731_v30 }
 0x39a   : > { %4994 = vrcp.f32 %v1641_v4  ;;  %1848 = vadd.xlane.f32.xlu2 %v1832_v54  ;;  %v1688_v15 = vpack.c.bf16 %v6806_v61, %v6817_v35  ;;  %v6828_v43 = vmul.f32 %v4991_v44, %v6736_v20  ;;  %v1698_v56 = vsel %vm10705_vm14, %v6817_v35, 0.0 }
 0x39b   : > { %4996 = vrcp.f32 %v1645_v29  ;;  %v1702_v30 = vsel %vm10700_vm5, %v6837_v6, 0.0  ;;  %vm10704_vm5 = vcmp.eq.s32.totalorder %v5793_v38, 4294967292  ;;  %vm10711_vm14 = vcmp.eq.s32.totalorder %v5945_v19, 4294967293 }
 0x39c   : > { %v1697_v1 = vsel %vm10704_vm5, %v6809_v24, 0.0  ;;  %v1700_v26 = vsel %vm505_vm6, %v6828_v43, 0.0  ;;  %vm10710_vm5 = vcmp.eq.s32.totalorder %v5743_v45, 4294967293 }
 0x39d   : > { %v1833_v52 = vsel %vm10710_vm5, %v6788_v59, 0.0  ;;  %vm10715_vm5 = vcmp.eq.s32.totalorder %v5777_v12, 4294967292 }
 0x39f   : > { %v4993_v17 = vpop.eup %4992 }
 0x3a0   : > { %v4995_v60 = vpop.eup %4994  ;;  %v6825_v62 = vmul.f32 %v4993_v17, %v6744_v5  ;;  %v1643_v48 = vpop.xlane.xlu0 %1642 }
 0x3a1   : > { %v6831_v28 = vmul.f32 %v4995_v60, %v6747_v39  ;;  %4998 = vrcp.f32 %v1643_v48  ;;  %v4997_v20 = vpop.eup %4996  ;;  %v1647_v22 = vpop.xlane.xlu2 %1646 }
 0x3a2   : > { %1854 = vadd.xlane.f32.xlu2 %v1835_v33  ;;  %v1689_v5 = vpack.c.bf16 %v6825_v62, %v6828_v43  ;;  %v6847_v25 = vmul.f32 %v4997_v20, %v6742_v50  ;;  %v1838_v50 = vsel %vm10703_vm8, %v6828_v43, 0.0  ;;  %5000 = vrcp.f32 %v1647_v22 }
 0x3a3   : > { %v1690_v31 = vpack.c.bf16 %v6831_v28, %v6837_v6  ;;  %v1841_v13 = vsel %vm10706_vm3, %v6831_v28, 0.0  ;;  %vm10707_vm8 = vcmp.eq.s32.totalorder %v5880_v58, 4294967292  ;;  %vm10709_vm3 = vcmp.eq.s32.totalorder %v10694_v27, 4294967293 }
 0x3a4   : > { %v1701_v37 = vsel %vm10707_vm8, %v6825_v62, 0.0  ;;  %v1834_v54 = vsel %vm10709_vm3, %v6782_v2, 0.0  ;;  %vm10712_vm8 = vcmp.eq.s32.totalorder %v5824_v51, 4294967293  ;;  %vm10714_vm3 = vcmp.eq.s32.totalorder %v10694_v27, 4294967294 }
 0x3a5   : > { %v1915_v60 = vsel %vm10714_vm3, %v6782_v2, 0.0  ;;  %v1703_v20 = vsel %vm508_vm12, %v6831_v28, 0.0  ;;  %vm10719_vm3 = vcmp.eq.s32.totalorder %v5777_v12, 4294967293 }
 0x3a7   : > { %v4999_v32 = vpop.eup %4998 }
 0x3a8   : > { %v6844_v39 = vmul.f32 %v4999_v32, %v6751_v36  ;;  %v1695_v36 = vsel %vm10702_vm1, %v6788_v59, 0.0  ;;  %vm10708_vm1 = vcmp.eq.s32.totalorder %v5790_v49, 4294967292  ;;  %v5001_v40 = vpop.eup %5000 }
 0x3a9   : > { %v1705_v16 = vsel %vm10708_vm1, %v6847_v25, 0.0  ;;  %v6882_v4 = vmul.f32 %v5001_v40, %v6753_v11  ;;  %v1837_v11 = vsel %vm10712_vm8, %v6806_v61, 0.0  ;;  %vm10713_vm1 = vcmp.eq.s32.totalorder %v5909_v0, 4294967293  ;;  %v6906_v33 = vpop.permute.xlu2 %1761 }
 0x3aa   : > { %1726 = vadd.xlane.f32.xlu2 %v1702_v30  ;;  %v1691_v63 = vpack.c.bf16 %v6847_v25, %v6844_v39  ;;  %v1836_v17 = vsel %vm10713_vm1, %v6817_v35, 0.0  ;;  %v1704_v32 = vsel %vm10715_vm5, %v6844_v39, 0.0  ;;  %vm10717_vm8 = vcmp.eq.s32.totalorder %v5880_v58, 4294967293 }
 0x3ab   : > { %v1844_v29 = vsel %vm10711_vm14, %v6882_v4, 0.0  ;;  %vm10716_vm14 = vcmp.eq.s32.totalorder %v5733_v46, 4294967293  ;;  %vm10718_vm1 = vcmp.eq.s32.totalorder %v5790_v49, 4294967293  ;;  %vm10720_vm5 = vcmp.eq.s32.totalorder %v5848_v55, 4294967292 }
 0x3af   : > { %v6893_v44 = vpop.permute.xlu1 %1759 }
 0x3b1   : > { %1710 = vadd.xlane.f32.xlu0 %v1694_v8 }
 0x3b2   : > { %1712 = vadd.xlane.f32.xlu1 %v1695_v36  ;;  %1860 = vadd.xlane.f32.xlu2 %v1838_v50  ;;  %v1840_v36 = vsel %vm10716_vm14, %v6837_v6, 0.0  ;;  %v1839_v50 = vsel %vm10717_vm8, %v6825_v62, 0.0  ;;  %vm10721_vm14 = vcmp.eq.s32.totalorder %v5837_v53, 4294967292  ;;  %vm10722_vm8 = vcmp.eq.s32.totalorder %v6069_v47, 4294967293 }
 0x3b3   : > { %v6904_v48 = vpop.permute.xlu0 %1763 }
 0x3b7   : > { %v6914_v30 = vpop.permute.xlu1 %1765 }
 0x3b9   : > { %1716 = vadd.xlane.f32.xlu0 %v1697_v1  ;;  %v1770_v1 = vpop.permute.xlu2 %1769 }
 0x3ba   : > { %1718 = vadd.xlane.f32.xlu1 %v1698_v56  ;;  %1866 = vadd.xlane.f32.xlu2 %v1841_v13  ;;  %v1843_v13 = vsel %vm10718_vm1, %v6847_v25, 0.0  ;;  %vm10723_vm1 = vcmp.eq.s32.totalorder %v5743_v45, 4294967294 }
 0x3bb   : > { %v1768_v8 = vpop.permute.xlu0 %1767 }
 0x3c1   : > { %1722 = vadd.xlane.f32.xlu0 %v1700_v26 }
 0x3c2   : > { %1724 = vadd.xlane.f32.xlu1 %v1701_v37  ;;  %1732 = vadd.xlane.f32.xlu2 %v1705_v16  ;;  %v1842_v37 = vsel %vm10719_vm3, %v6844_v39, 0.0  ;;  %vm10724_vm3 = vcmp.eq.s32.totalorder %v5837_v53, 4294967293 }
 0x3c9   : > { %1852 = vadd.xlane.f32.xlu0 %v1834_v54 }
 0x3ca   : > { %1850 = vadd.xlane.f32.xlu1 %v1833_v52  ;;  %1872 = vadd.xlane.f32.xlu2 %v1844_v29 }
 0x3d1   : > { %1858 = vadd.xlane.f32.xlu0 %v1837_v11  ;;  %v1706_v11 = vsel %vm511_vm9, %v6882_v4, 0.0 }
 0x3d2   : > { %1856 = vadd.xlane.f32.xlu1 %v1836_v17  ;;  %1933 = vadd.xlane.f32.xlu2 %v1915_v60 }
 0x3d9   : > { %1728 = vadd.xlane.f32.xlu0 %v1703_v20 }
 0x3da   : > { %1730 = vadd.xlane.f32.xlu1 %v1704_v32  ;;  %v1914_v32 = vsel %vm10723_vm1, %v6788_v59, 0.0  ;;  %vm10729_vm1 = vcmp.eq.s32.totalorder %v5733_v46, 4294967294 }
 0x3e1   : > { %1864 = vadd.xlane.f32.xlu0 %v1840_v36 }
 0x3e2   : > { %1862 = vadd.xlane.f32.xlu1 %v1839_v50  ;;  %v1651_v22 = vpop.xlane.xlu1 %1650 }
 0x3e3   : > { %5002 = vrcp.f32 %v1651_v22 }
 0x3e6   : > { %v1649_v56 = vpop.xlane.xlu0 %1648 }
 0x3e7   : > { %5004 = vrcp.f32 %v1649_v56 }
 0x3e9   : > { %v5003_v26 = vpop.eup %5002  ;;  %1870 = vadd.xlane.f32.xlu0 %v1843_v13 }
 0x3ea   : > { %v6929_v16 = vmul.f32 %v5003_v26, %v6772_v3  ;;  %v1653_v40 = vpop.xlane.xlu2 %1652  ;;  %1868 = vadd.xlane.f32.xlu1 %v1842_v37  ;;  %v1921_v37 = vsel %vm10729_vm1, %v6837_v6, 0.0  ;;  %vm10736_vm1 = vcmp.eq.s32.totalorder %v5848_v55, 4294967294 }
 0x3eb   : > { %5006 = vrcp.f32 %v1653_v40 }
 0x3ec   : > { %v1708_v54 = vsel %vm10720_vm5, %v6929_v16, 0.0  ;;  %vm10725_vm5 = vcmp.eq.s32.totalorder %v5824_v51, 4294967294 }
 0x3ed   : > { %v5005_v52 = vpop.eup %5004  ;;  %1738 = vadd.xlane.f32.xlu2 %v1708_v54  ;;  %v1918_v22 = vsel %vm10725_vm5, %v6806_v61, 0.0  ;;  %vm10732_vm5 = vcmp.eq.s32.totalorder %v5790_v49, 4294967294 }
 0x3ee   : > { %v6935_v29 = vmul.f32 %v5005_v52, %v6775_v34 }
 0x3f0   : > { %v1707_v3 = vsel %vm10721_vm14, %v6935_v29, 0.0  ;;  %vm10727_vm14 = vcmp.eq.s32.totalorder %v5848_v55, 4294967293 }
 0x3f1   : > { %v5007_v17 = vpop.eup %5006  ;;  %1734 = vadd.xlane.f32.xlu0 %v1706_v11  ;;  %v1846_v13 = vsel %vm10727_vm14, %v6929_v16, 0.0  ;;  %vm10733_vm14 = vcmp.eq.s32.totalorder %v5909_v0, 4294967294 }
 0x3f2   : > { %v6944_v60 = vmul.f32 %v5007_v17, %v6778_v23  ;;  %1736 = vadd.xlane.f32.xlu1 %v1707_v3  ;;  %v1845_v23 = vsel %vm10724_vm3, %v6935_v29, 0.0  ;;  %v6960_v56 = vpop.xlane.xlu2 %1714  ;;  %vm10731_vm3 = vcmp.eq.s32.totalorder %v5793_v38, 4294967294  ;;  %v1917_v52 = vsel %vm10733_vm14, %v6817_v35, 0.0  ;;  %v10737_v17 = vld [vmem:[#allocation2_spill] sm:$0xff] }
 0x3f3   : > { %10726 = vst [vmem:[#allocation8_spill] sm:$0xff] %v6960_v56  ;;  %vm10741_vm14 = vcmp.eq.s32.totalorder %v5743_v45, 4294967295 }
 0x3f4   : > { %v1847_v20 = vsel %vm10722_vm8, %v6944_v60, 0.0  ;;  %v1693_v34 = vpack.c.bf16 %v6944_v60, %v6929_v16  ;;  %vm10728_vm8 = vcmp.eq.s32.totalorder %v10697_v41, 4294967294  ;;  %v1709_v54 = vsel %vm10457_vm0, %v6944_v60, 0.0 }
 0x3f5   : > { %1878 = vadd.xlane.f32.xlu2 %v1847_v20  ;;  %v1913_v26 = vsel %vm10728_vm8, %v6796_v57, 0.0  ;;  %vm10735_vm8 = vcmp.eq.s32.totalorder %v5998_v18, 4294967294  ;;  %v1995_v20 = vsel %vm10741_vm14, %v6788_v59, 0.0  ;;  %vm10749_vm14 = vcmp.eq.s32.totalorder %v6069_v47, 4294967294 }
 0x3f9   : > { %v1774_v36 = vpop.permute.xlu0 %1773  ;;  %1931 = vadd.xlane.f32.xlu0 %v1914_v32 }
 0x3fa   : > { %1783 = vmatpush.bf16.msrb.mxu0 %v1774_v36  ;;  %4767 = vmatpush.bf16.msrb.mxu1 %v1774_v36  ;;  %v1772_v50 = vpop.permute.xlu1 %1771 }
 0x3fb   : > { %4768 = vmatpush.bf16.msra.mxu2 %v1774_v36  ;;  %1874 = vadd.xlane.f32.xlu1 %v1845_v23 }
 0x3fd   : > { %1939 = vadd.xlane.f32.xlu2 %v1918_v22  ;;  %v1928_v22 = vsel %vm10749_vm14, %v6944_v60, 0.0  ;;  %vm10759_vm14 = vcmp.eq.s32.totalorder %v5793_v38, 4294967295 }
 0x3fe   : > { %1784 = vmatpush.bf16.msrb.mxu0 %v1772_v50  ;;  %4769 = vmatpush.bf16.msrb.mxu1 %v1772_v50 }
 0x3ff   : > { %4770 = vmatpush.bf16.msra.mxu2 %v1772_v50 }
 0x401   : > { %1876 = vadd.xlane.f32.xlu0 %v1846_v13 }
 0x402   : > { %1785 = vmatpush.bf16.msrb.mxu0 %v1770_v1  ;;  %4771 = vmatpush.bf16.msrb.mxu1 %v1770_v1 }
 0x403   : > { %4772 = vmatpush.bf16.msra.mxu2 %v1770_v1  ;;  %1929 = vadd.xlane.f32.xlu1 %v1913_v26  ;;  %v1916_v1 = vsel %vm10731_vm3, %v6809_v24, 0.0  ;;  %vm10738_vm3 = vcmp.eq.s32.totalorder %v5880_v58, 4294967294 }
 0x404   : > { %v1920_v3 = vsel %vm10738_vm3, %v6825_v62, 0.0  ;;  %vm10745_vm3 = vcmp.eq.s32.totalorder %v5909_v0, 4294967295 }
 0x405   : > { %1945 = vadd.xlane.f32.xlu2 %v1921_v37  ;;  %v6971_v40 = vpop.xlane.xlu2 %1720  ;;  %v1998_v32 = vsel %vm10745_vm3, %v6817_v35, 0.0  ;;  %vm10755_vm3 = vcmp.eq.s32.totalorder %v10694_v27, 4294967295 }
 0x406   : > { %1786 = vmatpush.bf16.msrb.mxu0 %v1768_v8  ;;  %4773 = vmatpush.bf16.msrb.mxu1 %v1768_v8  ;;  %10730 = vst [vmem:[#allocation82_spill] sm:$0xff] %v6971_v40 }
 0x407   : > { %4774 = vmatpush.bf16.msra.mxu2 %v1768_v8  ;;  %v1924_v8 = vsel %vm10732_vm5, %v6847_v25, 0.0  ;;  %vm10739_vm5 = vcmp.eq.s32.totalorder %v5751_v14, 4294967294 }
 0x409   : > { %1740 = vadd.xlane.f32.xlu0 %v1709_v54 }
 0x40a   : > { %1787 = vmatpush.bf16.msrb.mxu0 %v6914_v30  ;;  %4775 = vmatpush.bf16.msrb.mxu1 %v6914_v30 }
 0x40b   : > { %4776 = vmatpush.bf16.msra.mxu2 %v6914_v30  ;;  %1935 = vadd.xlane.f32.xlu1 %v1916_v1  ;;  %v1919_v30 = vsel %vm10735_vm8, %v6828_v43, 0.0  ;;  %vm10742_vm8 = vcmp.eq.s32.totalorder %v5777_v12, 4294967294 }
 0x40d   : > { %1951 = vadd.xlane.f32.xlu2 %v1924_v8  ;;  %v6991_v11 = vpop.xlane.xlu2 %1848 }
 0x40e   : > { %1788 = vmatpush.bf16.msrb.mxu0 %v6904_v48  ;;  %4777 = vmatpush.bf16.msrb.mxu1 %v6904_v48  ;;  %10734 = vst [vmem:[#allocation9_spill] sm:$0xff] %v6991_v11 }
 0x40f   : > { %4778 = vmatpush.bf16.msra.mxu2 %v6904_v48  ;;  %v1927_v48 = vsel %vm10736_vm1, %v6929_v16, 0.0  ;;  %vm10743_vm1 = vcmp.eq.s32.totalorder %v5945_v19, 4294967294 }
 0x411   : > { %1937 = vadd.xlane.f32.xlu0 %v1917_v52 }
 0x412   : > { %1789 = vmatpush.bf16.msrb.mxu0 %v6906_v33  ;;  %4779 = vmatpush.bf16.msrb.mxu1 %v6906_v33 }
 0x413   : > { %4780 = vmatpush.bf16.msra.mxu2 %v6906_v33  ;;  %1941 = vadd.xlane.f32.xlu1 %v1919_v30  ;;  %v1997_v30 = vsel %vm10759_vm14, %v6809_v24, 0.0  ;;  %vm10769_vm14 = vcmp.eq.s32.totalorder %v10697_v41, 0 }
 0x415   : > { %1957 = vadd.xlane.f32.xlu2 %v1927_v48  ;;  %v7021_v33 = vpop.xlane.xlu2 %1854 }
 0x416   : > { %1790 = vmatpush.bf16.msrb.mxu0 %v6893_v44  ;;  %4781 = vmatpush.bf16.msrb.mxu1 %v6893_v44  ;;  %10740 = vst [vmem:[#allocation10_spill] sm:$0xff] %v7021_v33  ;;  %v11007_v33 = vmov 4  }
 0x417   : > { %4782 = vmatpush.bf16.msra.mxu2 %v6893_v44  ;;  %v1922_v44 = vsel %vm10739_vm5, %v6831_v28, 0.0  ;;  %vm10748_vm5 = vcmp.eq.s32.totalorder %v5837_v53, 4294967294 }
 0x418   : > { %v1926_v50 = vsel %vm10748_vm5, %v6935_v29, 0.0  ;;  %vm10757_vm5 = vcmp.eq.s32.totalorder %v5777_v12, 4294967295 }
 0x419   : > { %1943 = vadd.xlane.f32.xlu0 %v1920_v3  ;;  %1791 = vmatmul.bf16.vlgmr.msrb.gmra.mxu0 %v1686_v7  ;;  %v1923_v7 = vsel %vm10742_vm8, %v6844_v39, 0.0  ;;  %vm10751_vm8 = vcmp.eq.s32.totalorder %v5880_v58, 4294967295  ;;  %v2004_v8 = vsel %vm10757_vm5, %v6844_v39, 0.0  ;;  %vm10766_vm5 = vcmp.eq.s32.totalorder %v5733_v46, 4294967295 }
 0x41a   : > { %2632 = vmatpush.bf16.xpose.msra.mxu1 %v10737_v17  ;;  %1806 = vmatmul.bf16.vlgmr.msra.gmra.mxu2 %v1689_v5  ;;  %v2001_v26 = vsel %vm10751_vm8, %v6825_v62, 0.0  ;;  %vm10761_vm8 = vcmp.eq.s32.totalorder %v5824_v51, 4294967295 }
 0x41b   : > { %1801 = vmatmul.bf16.vlgmr.msrb.gmra.mxu1 %v1688_v15  ;;  %1947 = vadd.xlane.f32.xlu1 %v1922_v44  ;;  %v1925_v15 = vsel %vm10743_vm1, %v6882_v4, 0.0  ;;  %vm10754_vm1 = vcmp.eq.s32.totalorder %v10697_v41, 4294967295  ;;  %v1999_v17 = vsel %vm10761_vm8, %v6806_v61, 0.0  ;;  %vm10771_vm8 = vcmp.eq.s32.totalorder %v5751_v14, 4294967295 }
 0x41d   : > { %2012 = vadd.xlane.f32.xlu2 %v1995_v20  ;;  %v7039_v23 = vpop.xlane.xlu2 %1726 }
 0x41e   : > { %10747 = vst [vmem:[#allocation13_spill] sm:$0xff] %v7039_v23 }
 0x421   : > { %1949 = vadd.xlane.f32.xlu0 %v1923_v7 }
 0x423   : > { %1953 = vadd.xlane.f32.xlu1 %v1925_v15 }
 0x424   : > { %v7032_v5 = vpop.xlane.xlu0 %1710 }
 0x425   : > { %10744 = vst [vmem:[#allocation11_spill] sm:$0xff] %v7032_v5  ;;  %2018 = vadd.xlane.f32.xlu2 %v1998_v32  ;;  %v7037_v36 = vpop.xlane.xlu1 %1712  ;;  %v7060_v54 = vpop.xlane.xlu2 %1860 }
 0x426   : > { %10746 = vst [vmem:[#allocation61_spill] sm:$0xff] %v7037_v36 }
 0x427   : > { %10753 = vst [vmem:[#allocation66_spill] sm:$0xff] %v7060_v54 }
 0x429   : > { %1955 = vadd.xlane.f32.xlu0 %v1926_v50  ;;  %1796 = vmatmul.bf16.gmra.mxu0 %v1687_v42  ;;  %v1994_v42 = vsel %vm10754_vm1, %v6796_v57, 0.0  ;;  %vm10763_vm1 = vcmp.eq.s32.totalorder %v5837_v53, 4294967295  ;;  %v2075_v50 = vsel %vm10769_vm14, %v6796_v57, 0.0  ;;  %vm10779_vm14 = vcmp.eq.s32.totalorder %v5998_v18, 0 }
 0x42a   : > { %1811 = vmatmul.bf16.gmra.mxu2 %v1690_v31  ;;  %v1996_v31 = vsel %vm10755_vm3, %v6782_v2, 0.0  ;;  %v2007_v44 = vsel %vm10763_vm1, %v6935_v29, 0.0  ;;  %vm10765_vm3 = vcmp.eq.s32.totalorder %v5998_v18, 4294967295  ;;  %vm10772_vm1 = vcmp.eq.s32.totalorder %v5790_v49, 4294967295 }
 0x42b   : > { %1959 = vadd.xlane.f32.xlu1 %v1928_v22  ;;  %v2000_v7 = vsel %vm10765_vm3, %v6828_v43, 0.0  ;;  %vm10776_vm3 = vcmp.eq.s32.totalorder %v5945_v19, 4294967295 }
 0x42c   : > { %v7053_v13 = vpop.xlane.xlu0 %1716 }
 0x42d   : > { %10750 = vst [vmem:[#allocation14_spill] sm:$0xff] %v7053_v13  ;;  %2024 = vadd.xlane.f32.xlu2 %v2001_v26  ;;  %v7058_v37 = vpop.xlane.xlu1 %1718  ;;  %v7078_v48 = vpop.xlane.xlu2 %1866  ;;  %v2003_v26 = vsel %vm10771_vm8, %v6831_v28, 0.0  ;;  %vm10782_vm8 = vcmp.eq.s32.totalorder %v6069_v47, 4294967295 }
 0x42e   : > { %10752 = vst [vmem:[#allocation75_spill] sm:$0xff] %v7058_v37 }
 0x42f   : > { %10760 = vst [vmem:[#allocation17_spill] sm:$0xff] %v7078_v48 }
 0x431   : > { %2010 = vadd.xlane.f32.xlu0 %v1994_v42  ;;  %v1692_v42 = vpack.c.bf16 %v6935_v29, %v6882_v4 }
 0x433   : > { %2014 = vadd.xlane.f32.xlu1 %v1996_v31  ;;  %v2005_v31 = vsel %vm10772_vm1, %v6847_v25, 0.0  ;;  %vm10783_vm1 = vcmp.eq.s32.totalorder %v5743_v45, 0 }
 0x434   : > { %v7068_v1 = vpop.xlane.xlu0 %1722 }
 0x435   : > { %10756 = vst [vmem:[#allocation26_spill] sm:$0xff] %v7068_v1  ;;  %2030 = vadd.xlane.f32.xlu2 %v2004_v8  ;;  %v7073_v52 = vpop.xlane.xlu1 %1724  ;;  %v7099_v15 = vpop.xlane.xlu2 %1732 }
 0x436   : > { %10758 = vst [vmem:[#allocation15_spill] sm:$0xff] %v7073_v52 }
 0x437   : > { %10767 = vst [vmem:[#allocation20_spill] sm:$0xff] %v7099_v15 }
 0x439   : > { %2016 = vadd.xlane.f32.xlu0 %v1997_v30  ;;  %v2078_v30 = vsel %vm966_vm15, %v6809_v24, 0.0 }
 0x43a   : > { %1816 = vmatmul.bf16.gmra.mxu2 %v1691_v63  ;;  %v2002_v63 = vsel %vm10766_vm5, %v6837_v6, 0.0  ;;  %vm10777_vm5 = vcmp.eq.s32.totalorder %v5848_v55, 4294967295 }
 0x43b   : > { %2020 = vadd.xlane.f32.xlu1 %v1999_v17 }
 0x43c   : > { %v7086_v3 = vpop.xlane.xlu0 %1852 }
 0x43d   : > { %10762 = vst [vmem:[#allocation16_spill] sm:$0xff] %v7086_v3  ;;  %2036 = vadd.xlane.f32.xlu2 %v2007_v44  ;;  %v7091_v20 = vpop.xlane.xlu1 %1850  ;;  %v7123_v44 = vpop.xlane.xlu2 %1872 }
 0x43e   : > { %10764 = vst [vmem:[#allocation18_spill] sm:$0xff] %v7091_v20 }
 0x43f   : > { %10775 = vst [vmem:[#allocation23_spill] sm:$0xff] %v7123_v44 }
 0x441   : > { %2022 = vadd.xlane.f32.xlu0 %v2000_v7  ;;  %v2006_v7 = vsel %vm10776_vm3, %v6882_v4, 0.0  ;;  %vm10785_vm3 = vcmp.eq.s32.totalorder %v5751_v14, 0 }
 0x443   : > { %2026 = vadd.xlane.f32.xlu1 %v2002_v63  ;;  %v2008_v63 = vsel %vm10777_vm5, %v6929_v16, 0.0  ;;  %vm10787_vm5 = vcmp.eq.s32.totalorder %v10694_v27, 0 }
 0x444   : > { %v7101_v32 = vpop.xlane.xlu0 %1858 }
 0x445   : > { %10768 = vst [vmem:[#allocation19_spill] sm:$0xff] %v7101_v32  ;;  %2091 = vadd.xlane.f32.xlu2 %v2075_v50  ;;  %v7106_v22 = vpop.xlane.xlu1 %1856 }
 0x446   : > { %10770 = vst [vmem:[#allocation77_spill] sm:$0xff] %v7106_v22  ;;  %v11002_v22 = vmov 3  }
 0x449   : > { %2028 = vadd.xlane.f32.xlu0 %v2003_v26  ;;  %v2081_v26 = vsel %vm10779_vm14, %v6828_v43, 0.0  ;;  %vm10789_vm14 = vcmp.eq.s32.totalorder %v5909_v0, 0 }
 0x44a   : > { %1821 = vmatmul.bf16.gmra.mxu2 %v1692_v42 }
 0x44b   : > { %2032 = vadd.xlane.f32.xlu1 %v2005_v31  ;;  %v7138_v31 = vpop.xlane.xlu2 %1933 }
 0x44c   : > { %v7116_v8 = vpop.xlane.xlu0 %1728  ;;  %10781 = vst [vmem:[#allocation29_spill] sm:$0xff] %v7138_v31 }
 0x44d   : > { %10773 = vst [vmem:[#allocation21_spill] sm:$0xff] %v7116_v8  ;;  %2097 = vadd.xlane.f32.xlu2 %v2078_v30  ;;  %v7121_v17 = vpop.xlane.xlu1 %1730  ;;  %v2009_v30 = vsel %vm10782_vm8, %v6944_v60, 0.0  ;;  %vm10791_vm8 = vcmp.eq.s32.totalorder %v5945_v19, 0 }
 0x44e   : > { %10774 = vst [vmem:[#allocation22_spill] sm:$0xff] %v7121_v17 }
 0x451   : > { %2034 = vadd.xlane.f32.xlu0 %v2006_v7  ;;  %v2076_v7 = vsel %vm10783_vm1, %v6788_v59, 0.0  ;;  %vm10793_vm1 = vcmp.eq.s32.totalorder %v5824_v51, 0 }
 0x453   : > { %2038 = vadd.xlane.f32.xlu1 %v2008_v63 }
 0x454   : > { %v7131_v50 = vpop.xlane.xlu0 %1864 }
 0x455   : > { %10778 = vst [vmem:[#allocation27_spill] sm:$0xff] %v7131_v50  ;;  %2103 = vadd.xlane.f32.xlu2 %v2081_v26  ;;  %v7136_v42 = vpop.xlane.xlu1 %1862  ;;  %v2084_v26 = vsel %vm10785_vm3, %v6831_v28, 0.0  ;;  %vm10795_vm3 = vcmp.eq.s32.totalorder %v5880_v58, 0 }
 0x456   : > { %10780 = vst [vmem:[#allocation25_spill] sm:$0xff] %v7136_v42 }
 0x459   : > { %2040 = vadd.xlane.f32.xlu0 %v2009_v30  ;;  %v2077_v30 = vsel %vm10787_vm5, %v6782_v2, 0.0  ;;  %vm10797_vm5 = vcmp.eq.s32.totalorder %v6069_v47, 0 }
 0x45a   : > { %1826 = vmatmul.bf16.gmra.mxu2 %v1693_v34  ;;  %v2079_v34 = vsel %vm10789_vm14, %v6817_v35, 0.0  ;;  %vm10799_vm14 = vcmp.eq.s32.totalorder %v5733_v46, 0 }
 0x45b   : > { %2093 = vadd.xlane.f32.xlu1 %v2076_v7 }
 0x45c   : > { %v7149_v63 = vpop.xlane.xlu0 %1870 }
 0x45d   : > { %10784 = vst [vmem:[#allocation47_spill] sm:$0xff] %v7149_v63  ;;  %2109 = vadd.xlane.f32.xlu2 %v2084_v26  ;;  %v7154_v42 = vpop.xlane.xlu1 %1868  ;;  %v2087_v26 = vsel %vm10791_vm8, %v6882_v4, 0.0  ;;  %v2080_v63 = vsel %vm10793_vm1, %v6806_v61, 0.0  ;;  %vm10801_vm8 = vcmp.eq.s32.totalorder %v5777_v12, 0  ;;  %vm10803_vm1 = vcmp.eq.s32.totalorder %v10694_v27, 1 }
 0x45e   : > { %10786 = vst [vmem:[#allocation30_spill] sm:$0xff] %v7154_v42 }
 0x460   : > { %v7159_v50 = vpop.xlane.xlu2 %1738 }
 0x461   : > { %10788 = vst [vmem:[#allocation28_spill] sm:$0xff] %v7159_v50  ;;  %2095 = vadd.xlane.f32.xlu0 %v2077_v30  ;;  %v2082_v30 = vsel %vm10795_vm3, %v6825_v62, 0.0  ;;  %vm10805_vm3 = vcmp.eq.s32.totalorder %v5790_v49, 0 }
 0x462   : > { %v2086_v17 = vsel %vm10805_vm3, %v6847_v25, 0.0  ;;  %vm10815_vm3 = vcmp.eq.s32.totalorder %v5733_v46, 1 }
 0x463   : > { %2099 = vadd.xlane.f32.xlu1 %v2079_v34 }
 0x464   : > { %v7164_v7 = vpop.xlane.xlu0 %1734 }
 0x465   : > { %10790 = vst [vmem:[#allocation71_spill] sm:$0xff] %v7164_v7  ;;  %2115 = vadd.xlane.f32.xlu2 %v2087_v26  ;;  %v7169_v42 = vpop.xlane.xlu1 %1736  ;;  %v2090_v26 = vsel %vm10797_vm5, %v6944_v60, 0.0  ;;  %v2083_v7 = vsel %vm10799_vm14, %v6837_v6, 0.0  ;;  %vm10807_vm5 = vcmp.eq.s32.totalorder %v5837_v53, 0  ;;  %vm10809_vm14 = vcmp.eq.s32.totalorder %v5824_v51, 1 }
 0x466   : > { %10792 = vst [vmem:[#allocation34_spill] sm:$0xff] %v7169_v42 }
 0x468   : > { %v7174_v50 = vpop.xlane.xlu2 %1878 }
 0x469   : > { %10794 = vst [vmem:[#allocation33_spill] sm:$0xff] %v7174_v50  ;;  %2101 = vadd.xlane.f32.xlu0 %v2080_v63  ;;  %v2085_v63 = vsel %vm10801_vm8, %v6844_v39, 0.0  ;;  %vm10811_vm8 = vcmp.eq.s32.totalorder %v5848_v55, 0 }
 0x46b   : > { %2105 = vadd.xlane.f32.xlu1 %v2082_v30 }
 0x46c   : > { %v7179_v34 = vpop.xlane.xlu0 %1931 }
 0x46d   : > { %10796 = vst [vmem:[#allocation31_spill] sm:$0xff] %v7179_v34  ;;  %2121 = vadd.xlane.f32.xlu2 %v2090_v26  ;;  %v2158_v26 = vsel %vm10803_vm1, %v6782_v2, 0.0  ;;  %vm10813_vm1 = vcmp.eq.s32.totalorder %v10697_v41, 1 }
 0x46e   : > { %v7184_v42 = vpop.xlane.xlu1 %1874 }
 0x46f   : > { %10798 = vst [vmem:[#allocation36_spill] sm:$0xff] %v7184_v42 }
 0x470   : > { %v7189_v50 = vpop.xlane.xlu2 %1939 }
 0x471   : > { %10800 = vst [vmem:[#allocation32_spill] sm:$0xff] %v7189_v50  ;;  %2107 = vadd.xlane.f32.xlu0 %v2083_v7  ;;  %v2088_v7 = vsel %vm10807_vm5, %v6935_v29, 0.0  ;;  %vm10817_vm5 = vcmp.eq.s32.totalorder %v5743_v45, 1 }
 0x473   : > { %2111 = vadd.xlane.f32.xlu1 %v2085_v63 }
 0x474   : > { %v7194_v30 = vpop.xlane.xlu0 %1876 }
 0x475   : > { %10802 = vst [vmem:[#allocation94_spill] sm:$0xff] %v7194_v30  ;;  %2176 = vadd.xlane.f32.xlu2 %v2158_v26  ;;  %v2161_v26 = vsel %vm10809_vm14, %v6806_v61, 0.0  ;;  %vm10819_vm14 = vcmp.eq.s32.totalorder %v5793_v38, 1 }
 0x476   : > { %v7199_v42 = vpop.xlane.xlu1 %1929 }
 0x477   : > { %10804 = vst [vmem:[#allocation39_spill] sm:$0xff] %v7199_v42  ;;  %v2089_v42 = vsel %vm10811_vm8, %v6929_v16, 0.0  ;;  %vm10821_vm8 = vcmp.eq.s32.totalorder %v5790_v49, 1 }
 0x478   : > { %v7204_v50 = vpop.xlane.xlu2 %1945 }
 0x479   : > { %10806 = vst [vmem:[#allocation56_spill] sm:$0xff] %v7204_v50  ;;  %2113 = vadd.xlane.f32.xlu0 %v2086_v17  ;;  %v2156_v17 = vsel %vm10813_vm1, %v6796_v57, 0.0  ;;  %vm10823_vm1 = vcmp.eq.s32.totalorder %v5909_v0, 1 }
 0x47b   : > { %2117 = vadd.xlane.f32.xlu1 %v2088_v7 }
 0x47c   : > { %v7209_v63 = vpop.xlane.xlu0 %1740 }
 0x47d   : > { %10808 = vst [vmem:[#allocation35_spill] sm:$0xff] %v7209_v63  ;;  %2182 = vadd.xlane.f32.xlu2 %v2161_v26  ;;  %v2164_v26 = vsel %vm10815_vm3, %v6837_v6, 0.0  ;;  %v2157_v63 = vsel %vm10817_vm5, %v6788_v59, 0.0  ;;  %vm10825_vm3 = vcmp.eq.s32.totalorder %v5998_v18, 1  ;;  %vm10827_vm5 = vcmp.eq.s32.totalorder %v5848_v55, 1 }
 0x47e   : > { %v7214_v30 = vpop.xlane.xlu1 %1935 }
 0x47f   : > { %10810 = vst [vmem:[#allocation37_spill] sm:$0xff] %v7214_v30 }
 0x480   : > { %v7219_v50 = vpop.xlane.xlu2 %1951 }
 0x481   : > { %10812 = vst [vmem:[#allocation40_spill] sm:$0xff] %v7219_v50  ;;  %2119 = vadd.xlane.f32.xlu0 %v2089_v42  ;;  %v2159_v42 = vsel %vm10819_vm14, %v6809_v24, 0.0  ;;  %vm10829_vm14 = vcmp.eq.s32.totalorder %v5880_v58, 1 }
 0x483   : > { %2172 = vadd.xlane.f32.xlu1 %v2156_v17 }
 0x484   : > { %v7224_v7 = vpop.xlane.xlu0 %1937 }
 0x485   : > { %10814 = vst [vmem:[#allocation42_spill] sm:$0xff] %v7224_v7  ;;  %2188 = vadd.xlane.f32.xlu2 %v2164_v26  ;;  %v2167_v26 = vsel %vm10821_vm8, %v6847_v25, 0.0  ;;  %v2160_v7 = vsel %vm10823_vm1, %v6817_v35, 0.0  ;;  %vm10831_vm8 = vcmp.eq.s32.totalorder %v5751_v14, 1  ;;  %vm10833_vm1 = vcmp.eq.s32.totalorder %v5743_v45, 2 }
 0x486   : > { %v7229_v30 = vpop.xlane.xlu1 %1941 }
 0x487   : > { %10816 = vst [vmem:[#allocation43_spill] sm:$0xff] %v7229_v30 }
 0x488   : > { %v7234_v50 = vpop.xlane.xlu2 %1957 }
 0x489   : > { %10818 = vst [vmem:[#allocation45_spill] sm:$0xff] %v7234_v50  ;;  %2174 = vadd.xlane.f32.xlu0 %v2157_v63  ;;  %v2162_v63 = vsel %vm10825_vm3, %v6828_v43, 0.0  ;;  %vm10837_vm3 = vcmp.eq.s32.totalorder %v5909_v0, 2 }
 0x48b   : > { %2178 = vadd.xlane.f32.xlu1 %v2159_v42 }
 0x48c   : > { %v7239_v17 = vpop.xlane.xlu0 %1943 }
 0x48d   : > { %10820 = vst [vmem:[#allocation38_spill] sm:$0xff] %v7239_v17  ;;  %2194 = vadd.xlane.f32.xlu2 %v2167_v26  ;;  %v2170_v26 = vsel %vm10827_vm5, %v6929_v16, 0.0  ;;  %v2163_v17 = vsel %vm10829_vm14, %v6825_v62, 0.0  ;;  %vm10841_vm5 = vcmp.eq.s32.totalorder %v5880_v58, 2  ;;  %vm10843_vm14 = vcmp.eq.s32.totalorder %v10697_v41, 2 }
 0x48e   : > { %v7244_v30 = vpop.xlane.xlu1 %1947 }
 0x48f   : > { %10822 = vst [vmem:[#allocation48_spill] sm:$0xff] %v7244_v30 }
 0x490   : > { %v7249_v50 = vpop.xlane.xlu2 %2012 }
 0x491   : > { %10824 = vst [vmem:[#allocation46_spill] sm:$0xff] %v7249_v50  ;;  %2180 = vadd.xlane.f32.xlu0 %v2160_v7  ;;  %v2165_v7 = vsel %vm10831_vm8, %v6831_v28, 0.0  ;;  %vm10845_vm8 = vcmp.eq.s32.totalorder %v10694_v27, 2 }
 0x493   : > { %2184 = vadd.xlane.f32.xlu1 %v2162_v63 }
 0x494   : > { %v7254_v42 = vpop.xlane.xlu0 %1949 }
 0x495   : > { %10826 = vst [vmem:[#allocation51_spill] sm:$0xff] %v7254_v42  ;;  %2200 = vadd.xlane.f32.xlu2 %v2170_v26  ;;  %v2238_v26 = vsel %vm10833_vm1, %v6788_v59, 0.0  ;;  %v2166_v42 = vsel %vm1085_vm11, %v6844_v39, 0.0  ;;  %vm10848_vm1 = vcmp.eq.s32.totalorder %v5793_v38, 2 }
 0x496   : > { %v7259_v30 = vpop.xlane.xlu1 %1953 }
 0x497   : > { %10828 = vst [vmem:[#allocation41_spill] sm:$0xff] %v7259_v30 }
 0x498   : > { %v7264_v50 = vpop.xlane.xlu2 %2018 }
 0x499   : > { %10830 = vst [vmem:[#allocation50_spill] sm:$0xff] %v7264_v50  ;;  %2186 = vadd.xlane.f32.xlu0 %v2163_v17  ;;  %v2168_v17 = vsel %vm10456_vm13, %v6882_v4, 0.0 }
 0x49b   : > { %2190 = vadd.xlane.f32.xlu1 %v2165_v7 }
 0x49c   : > { %v7269_v63 = vpop.xlane.xlu0 %1955 }
 0x49d   : > { %10832 = vst [vmem:[#allocation44_spill] sm:$0xff] %v7269_v63  ;;  %2255 = vadd.xlane.f32.xlu2 %v2238_v26  ;;  %v2241_v26 = vsel %vm10837_vm3, %v6817_v35, 0.0  ;;  %v2169_v63 = vsel %vm1088_vm4, %v6935_v29, 0.0  ;;  %vm10850_vm3 = vcmp.eq.s32.totalorder %v5824_v51, 2 }
 0x49e   : > { %v7274_v30 = vpop.xlane.xlu1 %1959 }
 0x49f   : > { %10834 = vst [vmem:[#allocation49_spill] sm:$0xff] %v7274_v30 }
 0x4a0   : > { %v7279_v50 = vpop.xlane.xlu2 %2024 }
 0x4a1   : > { %10835 = vst [vmem:[#allocation52_spill] sm:$0xff] %v7279_v50  ;;  %2192 = vadd.xlane.f32.xlu0 %v2166_v42  ;;  %v2171_v42 = vsel %vm10455_vm10, %v6944_v60, 0.0 }
 0x4a3   : > { %2196 = vadd.xlane.f32.xlu1 %v2168_v17 }
 0x4a4   : > { %v7284_v7 = vpop.xlane.xlu0 %2010 }
 0x4a5   : > { %10836 = vst [vmem:[#allocation54_spill] sm:$0xff] %v7284_v7  ;;  %2261 = vadd.xlane.f32.xlu2 %v2241_v26  ;;  %v2244_v26 = vsel %vm10841_vm5, %v6825_v62, 0.0  ;;  %v2237_v7 = vsel %vm10843_vm14, %v6796_v57, 0.0  ;;  %vm10852_vm5 = vcmp.eq.s32.totalorder %v5837_v53, 2  ;;  %vm10854_vm14 = vcmp.eq.s32.totalorder %v5998_v18, 2 }
 0x4a6   : > { %v7289_v30 = vpop.xlane.xlu1 %2014 }
 0x4a7   : > { %10838 = vst [vmem:[#allocation60_spill] sm:$0xff] %v7289_v30 }
 0x4a8   : > { %v7294_v50 = vpop.xlane.xlu2 %2030 }
 0x4a9   : > { %10839 = vst [vmem:[#allocation68_spill] sm:$0xff] %v7294_v50  ;;  %2198 = vadd.xlane.f32.xlu0 %v2169_v63  ;;  %v2239_v63 = vsel %vm10845_vm8, %v6782_v2, 0.0  ;;  %vm10856_vm8 = vcmp.eq.s32.totalorder %v5733_v46, 2 }
 0x4ab   : > { %2202 = vadd.xlane.f32.xlu1 %v2171_v42 }
 0x4ac   : > { %v7299_v17 = vpop.xlane.xlu0 %2016 }
 0x4ad   : > { %10840 = vst [vmem:[#allocation93_spill] sm:$0xff] %v7299_v17  ;;  %2267 = vadd.xlane.f32.xlu2 %v2244_v26  ;;  %v2247_v26 = vsel %vm1197_vm2, %v6844_v39, 0.0 }
 0x4ae   : > { %v7304_v30 = vpop.xlane.xlu1 %2020 }
 0x4af   : > { %10842 = vst [vmem:[#allocation89_spill] sm:$0xff] %v7304_v30  ;;  %v2240_v30 = vsel %vm10848_vm1, %v6809_v24, 0.0  ;;  %vm10858_vm1 = vcmp.eq.s32.totalorder %v10697_v41, 3 }
 0x4b0   : > { %v7309_v50 = vpop.xlane.xlu2 %2036 }
 0x4b1   : > { %10844 = vst [vmem:[#allocation64_spill] sm:$0xff] %v7309_v50  ;;  %2253 = vadd.xlane.f32.xlu0 %v2237_v7  ;;  %v2242_v7 = vsel %vm10850_vm3, %v6806_v61, 0.0  ;;  %vm10860_vm3 = vcmp.eq.s32.totalorder %v5751_v14, 2 }
 0x4b3   : > { %2257 = vadd.xlane.f32.xlu1 %v2239_v63 }
 0x4b4   : > { %v7314_v42 = vpop.xlane.xlu0 %2022 }
 0x4b5   : > { %10846 = vst [vmem:[#allocation57_spill] sm:$0xff] %v7314_v42  ;;  %2273 = vadd.xlane.f32.xlu2 %v2247_v26  ;;  %v2250_v26 = vsel %vm10852_vm5, %v6935_v29, 0.0  ;;  %v2243_v42 = vsel %vm10854_vm14, %v6828_v43, 0.0  ;;  %vm10862_vm5 = vcmp.eq.s32.totalorder %v5790_v49, 2  ;;  %vm10864_vm14 = vcmp.eq.s32.totalorder %v5793_v38, 3 }
 0x4b6   : > { %v7319_v17 = vpop.xlane.xlu1 %2026 }
 0x4b7   : > { %10847 = vst [vmem:[#allocation72_spill] sm:$0xff] %v7319_v17 }
 0x4b8   : > { %v7324_v50 = vpop.xlane.xlu2 %2091 }
 0x4b9   : > { %10849 = vst [vmem:[#allocation78_spill] sm:$0xff] %v7324_v50  ;;  %2259 = vadd.xlane.f32.xlu0 %v2240_v30  ;;  %v2245_v30 = vsel %vm10856_vm8, %v6837_v6, 0.0  ;;  %vm10866_vm8 = vcmp.eq.s32.totalorder %v5945_v19, 2 }
 0x4bb   : > { %2263 = vadd.xlane.f32.xlu1 %v2242_v7 }
 0x4bc   : > { %v7329_v63 = vpop.xlane.xlu0 %2028 }
 0x4bd   : > { %10851 = vst [vmem:[#allocation85_spill] sm:$0xff] %v7329_v63  ;;  %2279 = vadd.xlane.f32.xlu2 %v2250_v26  ;;  %v2318_v26 = vsel %vm10858_vm1, %v6796_v57, 0.0  ;;  %v2246_v63 = vsel %vm10860_vm3, %v6831_v28, 0.0  ;;  %vm10868_vm1 = vcmp.eq.s32.totalorder %v5848_v55, 2  ;;  %vm10870_vm3 = vcmp.eq.s32.totalorder %v5998_v18, 3 }
 0x4be   : > { %v7334_v17 = vpop.xlane.xlu1 %2032 }
 0x4bf   : > { %10853 = vst [vmem:[#allocation90_spill] sm:$0xff] %v7334_v17 }
 0x4c0   : > { %v7339_v50 = vpop.xlane.xlu2 %2097 }
 0x4c1   : > { %10855 = vst [vmem:[#allocation3_spill] sm:$0xff] %v7339_v50  ;;  %2265 = vadd.xlane.f32.xlu0 %v2243_v42  ;;  %v2248_v42 = vsel %vm10862_vm5, %v6847_v25, 0.0  ;;  %vm10872_vm5 = vcmp.eq.s32.totalorder %v6069_v47, 2 }
 0x4c3   : > { %2269 = vadd.xlane.f32.xlu1 %v2245_v30 }
 0x4c4   : > { %v7344_v7 = vpop.xlane.xlu0 %2034 }
 0x4c5   : > { %10857 = vst [vmem:[#allocation59_spill] sm:$0xff] %v7344_v7  ;;  %2334 = vadd.xlane.f32.xlu2 %v2318_v26  ;;  %v2321_v26 = vsel %vm10864_vm14, %v6809_v24, 0.0  ;;  %v2249_v7 = vsel %vm10866_vm8, %v6882_v4, 0.0  ;;  %vm10874_vm14 = vcmp.eq.s32.totalorder %v5743_v45, 3  ;;  %vm10876_vm8 = vcmp.eq.s32.totalorder %v5751_v14, 3 }
 0x4c6   : > { %v7349_v17 = vpop.xlane.xlu1 %2038 }
 0x4c7   : > { %10859 = vst [vmem:[#allocation79_spill] sm:$0xff] %v7349_v17 }
 0x4c8   : > { %v7354_v50 = vpop.xlane.xlu2 %2103 }
 0x4c9   : > { %10861 = vst [vmem:[#allocation86_spill] sm:$0xff] %v7354_v50  ;;  %2271 = vadd.xlane.f32.xlu0 %v2246_v63  ;;  %v2251_v63 = vsel %vm10868_vm1, %v6929_v16, 0.0  ;;  %vm10878_vm1 = vcmp.eq.s32.totalorder %v10694_v27, 3 }
 0x4cb   : > { %2275 = vadd.xlane.f32.xlu1 %v2248_v42 }
 0x4cc   : > { %v7359_v30 = vpop.xlane.xlu0 %2040 }
 0x4cd   : > { %10863 = vst [vmem:[#allocation4_spill] sm:$0xff] %v7359_v30  ;;  %2340 = vadd.xlane.f32.xlu2 %v2321_v26  ;;  %v2324_v26 = vsel %vm10870_vm3, %v6828_v43, 0.0  ;;  %vm10880_vm3 = vcmp.eq.s32.totalorder %v5909_v0, 3 }
 0x4ce   : > { %v7364_v17 = vpop.xlane.xlu1 %2093 }
 0x4cf   : > { %10865 = vst [vmem:[#allocation70_spill] sm:$0xff] %v7364_v17  ;;  %v2252_v17 = vsel %vm10872_vm5, %v6944_v60, 0.0  ;;  %vm10882_vm5 = vcmp.eq.s32.totalorder %v5945_v19, 3 }
 0x4d0   : > { %v7369_v50 = vpop.xlane.xlu2 %2109 }
 0x4d1   : > { %10867 = vst [vmem:[#allocation92_spill] sm:$0xff] %v7369_v50  ;;  %2277 = vadd.xlane.f32.xlu0 %v2249_v7  ;;  %v2319_v7 = vsel %vm10874_vm14, %v6788_v59, 0.0  ;;  %vm10884_vm14 = vcmp.eq.s32.totalorder %v5824_v51, 3 }
 0x4d3   : > { %2281 = vadd.xlane.f32.xlu1 %v2251_v63 }
 0x4d4   : > { %v7374_v42 = vpop.xlane.xlu0 %2095 }
 0x4d5   : > { %10869 = vst [vmem:[#allocation55_spill] sm:$0xff] %v7374_v42  ;;  %2346 = vadd.xlane.f32.xlu2 %v2324_v26  ;;  %v2327_v26 = vsel %vm10876_vm8, %v6831_v28, 0.0  ;;  %v2320_v42 = vsel %vm10878_vm1, %v6782_v2, 0.0  ;;  %vm10885_vm8 = vcmp.eq.s32.totalorder %v5880_v58, 3  ;;  %vm10888_vm1 = vcmp.eq.s32.totalorder %v6069_v47, 3 }
 0x4d6   : > { %v7379_v30 = vpop.xlane.xlu1 %2099 }
 0x4d7   : > { %10871 = vst [vmem:[#allocation87_spill] sm:$0xff] %v7379_v30 }
 0x4d8   : > { %v7384_v50 = vpop.xlane.xlu2 %2115 }
 0x4d9   : > { %10873 = vst [vmem:[#allocation91_spill] sm:$0xff] %v7384_v50  ;;  %2283 = vadd.xlane.f32.xlu0 %v2252_v17 }
 0x4db   : > { %2336 = vadd.xlane.f32.xlu1 %v2319_v7  ;;  %v2322_v7 = vsel %vm10880_vm3, %v6817_v35, 0.0  ;;  %vm10890_vm3 = vcmp.eq.s32.totalorder %v5733_v46, 3 }
 0x4dc   : > { %v7389_v63 = vpop.xlane.xlu0 %2101 }
 0x4dd   : > { %10875 = vst [vmem:[#allocation24_spill] sm:$0xff] %v7389_v63  ;;  %2352 = vadd.xlane.f32.xlu2 %v2327_v26  ;;  %v2330_v26 = vsel %vm10882_vm5, %v6882_v4, 0.0  ;;  %vm10891_vm5 = vcmp.eq.s32.totalorder %v5777_v12, 3 }
 0x4de   : > { %v7394_v30 = vpop.xlane.xlu1 %2105 }
 0x4df   : > { %10877 = vst [vmem:[#allocation63_spill] sm:$0xff] %v7394_v30 }
 0x4e0   : > { %v7399_v17 = vpop.xlane.xlu2 %2121 }
 0x4e1   : > { %2338 = vadd.xlane.f32.xlu0 %v2320_v42  ;;  %10879 = vst [vmem:[#allocation97_spill] sm:$0xff] %v7399_v17  ;;  %v2323_v42 = vsel %vm10884_vm14, %v6806_v61, 0.0  ;;  %v2325_v17 = vsel %vm10885_vm8, %v6825_v62, 0.0  ;;  %vm10893_vm14 = vcmp.eq.s32.totalorder %v10694_v27, 4  ;;  %vm10896_vm8 = vcmp.eq.s32.totalorder %v5790_v49, 3 }
 0x4e3   : > { %2342 = vadd.xlane.f32.xlu1 %v2322_v7 }
 0x4e4   : > { %v7404_v63 = vpop.xlane.xlu0 %2107 }
 0x4e5   : > { %10881 = vst [vmem:[#allocation5_spill] sm:$0xff] %v7404_v63  ;;  %2358 = vadd.xlane.f32.xlu2 %v2330_v26  ;;  %v2333_v26 = vsel %vm10888_vm1, %v6944_v60, 0.0  ;;  %vm10897_vm1 = vcmp.eq.s32.totalorder %v5837_v53, 3 }
 0x4e6   : > { %v7409_v50 = vpop.xlane.xlu1 %2111 }
 0x4e7   : > { %10883 = vst [vmem:[#allocation65_spill] sm:$0xff] %v7409_v50 }
 0x4e8   : > { %v7417_v7 = vpop.xlane.xlu2 %2176 }
 0x4e9   : > { %2344 = vadd.xlane.f32.xlu0 %v2323_v42  ;;  %10886 = vst [vmem:[#allocation58_spill] sm:$0xff] %v7417_v7  ;;  %v2326_v42 = vsel %vm10890_vm3, %v6837_v6, 0.0  ;;  %vm10899_vm3 = vcmp.eq.s32.totalorder %v5824_v51, 4 }
 0x4eb   : > { %2348 = vadd.xlane.f32.xlu1 %v2325_v17  ;;  %v2328_v17 = vsel %vm10891_vm5, %v6844_v39, 0.0  ;;  %vm10902_vm5 = vcmp.eq.s32.totalorder %v5848_v55, 3 }
 0x4ec   : > { %v7419_v63 = vpop.xlane.xlu0 %2113 }
 0x4ed   : > { %10887 = vst [vmem:[#allocation95_spill] sm:$0xff] %v7419_v63  ;;  %2364 = vadd.xlane.f32.xlu2 %v2333_v26  ;;  %v2401_v63 = vsel %vm10893_vm14, %v6782_v2, 0.0  ;;  %v2404_v2 = vsel %vm10899_vm3, %v6806_v61, 0.0  ;;  %vm10903_vm14 = vcmp.eq.s32.totalorder %v10697_v41, 4  ;;  %vm10909_vm3 = vcmp.eq.s32.totalorder %v5793_v38, 4 }
 0x4ee   : > { %v7424_v50 = vpop.xlane.xlu1 %2117 }
 0x4ef   : > { %10889 = vst [vmem:[#allocation6_spill] sm:$0xff] %v7424_v50 }
 0x4f0   : > { %v7437_v26 = vpop.xlane.xlu2 %2182 }
 0x4f1   : > { %2350 = vadd.xlane.f32.xlu0 %v2326_v42  ;;  %10894 = vst [vmem:[#allocation67_spill] sm:$0xff] %v7437_v26  ;;  %v2329_v42 = vsel %vm10896_vm8, %v6847_v25, 0.0  ;;  %vm10905_vm8 = vcmp.eq.s32.totalorder %v5733_v46, 4 }
 0x4f2   : > { %v2407_v61 = vsel %vm10905_vm8, %v6837_v6, 0.0  ;;  %vm10914_vm8 = vcmp.eq.s32.totalorder %v5998_v18, 4 }
 0x4f3   : > { %2354 = vadd.xlane.f32.xlu1 %v2328_v17  ;;  %v2331_v17 = vsel %vm10897_vm1, %v6935_v29, 0.0  ;;  %vm10907_vm1 = vcmp.eq.s32.totalorder %v5743_v45, 4 }
 0x4f4   : > { %v7432_v7 = vpop.xlane.xlu0 %2119 }
 0x4f5   : > { %10892 = vst [vmem:[#allocation12_spill] sm:$0xff] %v7432_v7  ;;  %2419 = vadd.xlane.f32.xlu2 %v2401_v63 }
 0x4f6   : > { %v7439_v50 = vpop.xlane.xlu1 %2172 }
 0x4f7   : > { %10895 = vst [vmem:[#allocation53_spill] sm:$0xff] %v7439_v50 }
 0x4f8   : > { %v7454_v26 = vpop.xlane.xlu2 %2188 }
 0x4f9   : > { %2356 = vadd.xlane.f32.xlu0 %v2329_v42  ;;  %10901 = vst [vmem:[#allocation62_spill] sm:$0xff] %v7454_v26  ;;  %v2332_v42 = vsel %vm10902_vm5, %v6929_v16, 0.0  ;;  %v2400_v26 = vsel %vm10907_vm1, %v6788_v59, 0.0  ;;  %vm10911_vm5 = vcmp.eq.s32.totalorder %v5790_v49, 4  ;;  %vm10917_vm1 = vcmp.eq.s32.totalorder %v5848_v55, 4 }
 0x4fa   : > { %v2410_v6 = vsel %vm10911_vm5, %v6847_v25, 0.0  ;;  %v2413_v25 = vsel %vm10917_vm1, %v6929_v16, 0.0  ;;  %vm10920_vm5 = vcmp.eq.s32.totalorder %v5751_v14, 4  ;;  %vm10929_vm1 = vcmp.eq.s32.totalorder %v5837_v53, 4 }
 0x4fb   : > { %2360 = vadd.xlane.f32.xlu1 %v2331_v17  ;;  %v2399_v17 = vsel %vm10903_vm14, %v6796_v57, 0.0  ;;  %v2402_v57 = vsel %vm10909_vm3, %v6809_v24, 0.0  ;;  %vm10913_vm14 = vcmp.eq.s32.totalorder %v5909_v0, 4  ;;  %vm10919_vm3 = vcmp.eq.s32.totalorder %v5880_v58, 4 }
 0x4fc   : > { %v7447_v7 = vpop.xlane.xlu0 %2174  ;;  %v2403_v59 = vsel %vm10913_vm14, %v6817_v35, 0.0  ;;  %v2406_v35 = vsel %vm10919_vm3, %v6825_v62, 0.0  ;;  %vm10924_vm14 = vcmp.eq.s32.totalorder %v5777_v12, 4  ;;  %vm10930_vm3 = vcmp.eq.s32.totalorder %v6069_v47, 4 }
 0x4fd   : > { %10898 = vst [vmem:[#allocation69_spill] sm:$0xff] %v7447_v7  ;;  %2425 = vadd.xlane.f32.xlu2 %v2404_v2  ;;  %v2409_v16 = vsel %vm10924_vm14, %v6844_v39, 0.0  ;;  %v2414_v39 = vsel %vm10930_vm3, %v6944_v60, 0.0  ;;  %v11062_v55 = vmov 8  }
 0x4fe   : > { %v7452_v63 = vpop.xlane.xlu1 %2178 }
 0x4ff   : > { %10900 = vst [vmem:[#allocation73_spill] sm:$0xff] %v7452_v63  ;;  %v5087_v63 = vld [vmem:[%s5171_s24 + $0x30] sm:$0xff] }
 0x501   : > { %2362 = vadd.xlane.f32.xlu0 %v2332_v42  ;;  %v7472_v42 = vpop.xlane.xlu2 %2194 }
 0x502   : > { %10908 = vst [vmem:[#allocation98_spill] sm:$0xff] %v7472_v42 }
 0x503   : > { %2415 = vadd.xlane.f32.xlu1 %v2399_v17 }
 0x504   : > { %v7462_v30 = vpop.xlane.xlu0 %2180 }
 0x505   : > { %10904 = vst [vmem:[#allocation81_spill] sm:$0xff] %v7462_v30  ;;  %2431 = vadd.xlane.f32.xlu2 %v2407_v61  ;;  %v5084_v30 = vld [vmem:[%s5171_s24 + $0x18] sm:$0xff] }
 0x506   : > { %v7467_v2 = vpop.xlane.xlu1 %2184 }
 0x507   : > { %10906 = vst [vmem:[#allocation2_spill] sm:$0xff] %v7467_v2 }
 0x509   : > { %2417 = vadd.xlane.f32.xlu0 %v2400_v26  ;;  %v2405_v26 = vsel %vm10914_vm8, %v6828_v43, 0.0  ;;  %v7490_v24 = vpop.xlane.xlu2 %2200  ;;  %v2408_v43 = vsel %vm10920_vm5, %v6831_v28, 0.0  ;;  %vm10925_vm8 = vcmp.eq.s32.totalorder %v5945_v19, 4  ;;  %vm10974_vm5 = vcmask 130048  }
 0x50a   : > { %10915 = vst [vmem:[#allocation101_spill] sm:$0xff] %v7490_v24  ;;  %v2411_v62 = vsel %vm10925_vm8, %v6882_v4, 0.0  ;;  %vm10976_vm14 = vmmov %vm10974_vm5 }
 0x50b   : > { %2421 = vadd.xlane.f32.xlu1 %v2402_v57  ;;  %vm10977_vm8 = vmmov %vm10974_vm5 }
 0x50c   : > { %v7477_v17 = vpop.xlane.xlu0 %2186 }
 0x50d   : > { %10910 = vst [vmem:[#allocation99_spill] sm:$0xff] %v7477_v17  ;;  %2437 = vadd.xlane.f32.xlu2 %v2410_v6 }
 0x50e   : > { %v7482_v61 = vpop.xlane.xlu1 %2190 }
 0x50f   : > { %10912 = vst [vmem:[#allocation100_spill] sm:$0xff] %v7482_v61 }
 0x511   : > { %2423 = vadd.xlane.f32.xlu0 %v2403_v59 }
 0x513   : > { %2427 = vadd.xlane.f32.xlu1 %v2405_v26  ;;  %v7507_v26 = vpop.xlane.xlu2 %2255 }
 0x514   : > { %v7492_v57 = vpop.xlane.xlu0 %2192  ;;  %10922 = vst [vmem:[#allocation105_spill] sm:$0xff] %v7507_v26 }
 0x515   : > { %10916 = vst [vmem:[#allocation102_spill] sm:$0xff] %v7492_v57  ;;  %2443 = vadd.xlane.f32.xlu2 %v2413_v25 }
 0x516   : > { %v7497_v6 = vpop.xlane.xlu1 %2196 }
 0x517   : > { %10918 = vst [vmem:[#allocation103_spill] sm:$0xff] %v7497_v6 }
 0x519   : > { %2429 = vadd.xlane.f32.xlu0 %v2406_v35 }
 0x51b   : > { %2433 = vadd.xlane.f32.xlu1 %v2408_v43  ;;  %v7521_v35 = vpop.xlane.xlu2 %2261  ;;  %v2412_v43 = vsel %vm10929_vm1, %v6935_v29, 0.0  ;;  %v5081_v29 = vld [vmem:[%s5171_s24 + $0x20] sm:$0xff]  ;;  %vm10978_vm1 = vmmov %vm10974_vm5 }
 0x51c   : > { %v7505_v59 = vpop.xlane.xlu0 %2198  ;;  %10928 = vst [vmem:[#allocation109_spill] sm:$0xff] %v7521_v35  ;;  %v5083_v35 = vld [vmem:[%s5171_s24 + $0x10] sm:$0xff]  ;;  %vm10979_vm3 = vmmov %vm10978_vm1 }
 0x51d   : > { %10921 = vst [vmem:[#allocation104_spill] sm:$0xff] %v7505_v59  ;;  %vm10982_vm10 = vmmov %vm10978_vm1 }
 0x51e   : > { %v7509_v24 = vpop.xlane.xlu1 %2202  ;;  %vm10984_vm13 = vmmov %vm10978_vm1 }
 0x51f   : > { %10923 = vst [vmem:[#allocation106_spill] sm:$0xff] %v7509_v24  ;;  %vm10985_vm0 = vmmov %vm10978_vm1 }
 0x521   : > { %2435 = vadd.xlane.f32.xlu0 %v2409_v16  ;;  %v5080_v16 = vld [vmem:[%s5171_s24 + $0x8] sm:$0xff] }
 0x523   : > { %2439 = vadd.xlane.f32.xlu1 %v2411_v62  ;;  %v7534_v24 = vpop.xlane.xlu2 %2267 }
 0x524   : > { %v7517_v28 = vpop.xlane.xlu0 %2253  ;;  %10933 = vst [vmem:[#allocation112_spill] sm:$0xff] %v7534_v24 }
 0x525   : > { %10926 = vst [vmem:[#allocation107_spill] sm:$0xff] %v7517_v28 }
 0x526   : > { %v7519_v25 = vpop.xlane.xlu1 %2257 }
 0x527   : > { %10927 = vst [vmem:[#allocation108_spill] sm:$0xff] %v7519_v25 }
 0x529   : > { %2441 = vadd.xlane.f32.xlu0 %v2412_v43 }
 0x52b   : > { %2445 = vadd.xlane.f32.xlu1 %v2414_v39  ;;  %v7541_v42 = vpop.xlane.xlu2 %2273  ;;  %v5082_v39 = vld [vmem:[%s5171_s24] sm:$0xff] }
 0x52c   : > { %v7529_v4 = vpop.xlane.xlu0 %2259  ;;  %10936 = vst [vmem:[#allocation115_spill] sm:$0xff] %v7541_v42 }
 0x52d   : > { %10931 = vst [vmem:[#allocation110_spill] sm:$0xff] %v7529_v4  ;;  %2482 = vrot.lane.b32.xlu2 %v5080_v16, %s5115_s30  ;;  %v5085_v4 = vld [vmem:[%s5171_s24 + $0x28] sm:$0xff] }
 0x52e   : > { %v7532_v62 = vpop.xlane.xlu1 %2263 }
 0x52f   : > { %10932 = vst [vmem:[#allocation111_spill] sm:$0xff] %v7532_v62 }
 0x534   : > { %v7536_v57 = vpop.xlane.xlu0 %2265 }
 0x535   : > { %10934 = vst [vmem:[#allocation113_spill] sm:$0xff] %v7536_v57  ;;  %2488 = vrot.lane.b32.xlu2 %v5081_v29, %s5115_s30 }
 0x536   : > { %v7539_v43 = vpop.xlane.xlu1 %2269 }
 0x537   : > { %10935 = vst [vmem:[#allocation114_spill] sm:$0xff] %v7539_v43  ;;  %v7553_v43 = vpop.xlane.xlu2 %2279 }
 0x538   : > { %10940 = vst [vmem:[#allocation119_spill] sm:$0xff] %v7553_v43  ;;  %v5086_v43 = vld [vmem:[%s5171_s24 + $0x38] sm:$0xff] }
 0x53c   : > { %v7543_v60 = vpop.xlane.xlu0 %2271 }
 0x53d   : > { %10937 = vst [vmem:[#allocation116_spill] sm:$0xff] %v7543_v60  ;;  %2480 = vrot.lane.b32.xlu0 %v5082_v39, %s5115_s30  ;;  %2494 = vrot.lane.b32.xlu2 %v6791_v10, %s5115_s30 }
 0x53e   : > { %v7547_v61 = vpop.xlane.xlu1 %2275 }
 0x53f   : > { %10938 = vst [vmem:[#allocation117_spill] sm:$0xff] %v7547_v61  ;;  %v7563_v61 = vpop.xlane.xlu2 %2334 }
 0x540   : > { %10944 = vst [vmem:[#allocation123_spill] sm:$0xff] %v7563_v61 }
 0x544   : > { %v7549_v62 = vpop.xlane.xlu0 %2277  ;;  %2484 = vrot.lane.b32.xlu1 %v5083_v35, %s5115_s30 }
 0x545   : > { %10939 = vst [vmem:[#allocation118_spill] sm:$0xff] %v7549_v62  ;;  %2486 = vrot.lane.b32.xlu0 %v5084_v30, %s5115_s30  ;;  %2500 = vrot.lane.b32.xlu2 %v5083_v35, %s5116_s5 }
 0x546   : > { %v7555_v42 = vpop.xlane.xlu1 %2281 }
 0x547   : > { %10941 = vst [vmem:[#allocation120_spill] sm:$0xff] %v7555_v42  ;;  %v7569_v42 = vpop.xlane.xlu2 %2340 }
 0x548   : > { %10947 = vst [vmem:[#allocation126_spill] sm:$0xff] %v7569_v42 }
 0x54c   : > { %v7557_v60 = vpop.xlane.xlu0 %2283  ;;  %2492 = vrot.lane.b32.xlu1 %v6799_v9, %s5115_s30 }
 0x54d   : > { %10942 = vst [vmem:[#allocation121_spill] sm:$0xff] %v7557_v60  ;;  %2490 = vrot.lane.b32.xlu0 %v5085_v4, %s5115_s30  ;;  %2506 = vrot.lane.b32.xlu2 %v5085_v4, %s5116_s5 }
 0x54e   : > { %v7561_v10 = vpop.xlane.xlu1 %2336 }
 0x54f   : > { %10943 = vst [vmem:[#allocation122_spill] sm:$0xff] %v7561_v10  ;;  %v7575_v4 = vpop.xlane.xlu2 %2346 }
 0x550   : > { %10950 = vst [vmem:[#allocation129_spill] sm:$0xff] %v7575_v4 }
 0x554   : > { %v7565_v25 = vpop.xlane.xlu0 %2338  ;;  %2498 = vrot.lane.b32.xlu1 %v5080_v16, %s5116_s5 }
 0x555   : > { %10945 = vst [vmem:[#allocation124_spill] sm:$0xff] %v7565_v25  ;;  %2496 = vrot.lane.b32.xlu0 %v5082_v39, %s5116_s5 }
 0x556   : > { %v7567_v35 = vpop.xlane.xlu1 %2342 }
 0x557   : > { %10946 = vst [vmem:[#allocation125_spill] sm:$0xff] %v7567_v35  ;;  %v7585_v35 = vpop.xlane.xlu2 %2352 }
 0x558   : > { %10954 = vst [vmem:[#allocation133_spill] sm:$0xff] %v7585_v35 }
 0x55c   : > { %v7571_v60 = vpop.xlane.xlu0 %2344  ;;  %2504 = vrot.lane.b32.xlu1 %v5081_v29, %s5116_s5 }
 0x55d   : > { %10948 = vst [vmem:[#allocation127_spill] sm:$0xff] %v7571_v60  ;;  %2502 = vrot.lane.b32.xlu0 %v5084_v30, %s5116_s5 }
 0x55e   : > { %v7573_v9 = vpop.xlane.xlu1 %2348 }
 0x55f   : > { %10949 = vst [vmem:[#allocation128_spill] sm:$0xff] %v7573_v9  ;;  %v7591_v30 = vpop.xlane.xlu2 %2358 }
 0x560   : > { %10957 = vst [vmem:[#allocation136_spill] sm:$0xff] %v7591_v30 }
 0x564   : > { %v7577_v62 = vpop.xlane.xlu0 %2350  ;;  %2510 = vrot.lane.b32.xlu1 %v5086_v43, %s5116_s5 }
 0x565   : > { %10951 = vst [vmem:[#allocation130_spill] sm:$0xff] %v7577_v62  ;;  %2508 = vrot.lane.b32.xlu0 %v5087_v63, %s5116_s5 }
 0x566   : > { %v7581_v16 = vpop.xlane.xlu1 %2354 }
 0x567   : > { %10952 = vst [vmem:[#allocation131_spill] sm:$0xff] %v7581_v16  ;;  %v7597_v62 = vpop.xlane.xlu2 %2364 }
 0x568   : > { %10960 = vst [vmem:[#allocation139_spill] sm:$0xff] %v7597_v62 }
 0x56c   : > { %v7583_v39 = vpop.xlane.xlu0 %2356 }
 0x56d   : > { %10953 = vst [vmem:[#allocation132_spill] sm:$0xff] %v7583_v39 }
 0x56e   : > { %v7587_v25 = vpop.xlane.xlu1 %2360 }
 0x56f   : > { %10955 = vst [vmem:[#allocation134_spill] sm:$0xff] %v7587_v25  ;;  %v7603_v16 = vpop.xlane.xlu2 %2419 }
 0x570   : > { %10963 = vst [vmem:[#allocation142_spill] sm:$0xff] %v7603_v16 }
 0x574   : > { %v7589_v29 = vpop.xlane.xlu0 %2362 }
 0x575   : > { %10956 = vst [vmem:[#allocation135_spill] sm:$0xff] %v7589_v29 }
 0x576   : > { %v7593_v60 = vpop.xlane.xlu1 %2415 }
 0x577   : > { %10958 = vst [vmem:[#allocation137_spill] sm:$0xff] %v7593_v60  ;;  %v7609_v25 = vpop.xlane.xlu2 %2425 }
 0x578   : > { %10966 = vst [vmem:[#allocation145_spill] sm:$0xff] %v7609_v25 }
 0x57c   : > { %v7595_v42 = vpop.xlane.xlu0 %2417 }
 0x57d   : > { %10959 = vst [vmem:[#allocation138_spill] sm:$0xff] %v7595_v42 }
 0x57e   : > { %v7599_v43 = vpop.xlane.xlu1 %2421 }
 0x57f   : > { %10961 = vst [vmem:[#allocation140_spill] sm:$0xff] %v7599_v43  ;;  %v7615_v59 = vpop.xlane.xlu2 %2431 }
 0x580   : > { %10969 = vst [vmem:[#allocation148_spill] sm:$0xff] %v7615_v59 }
 0x584   : > { %v7601_v63 = vpop.xlane.xlu0 %2423 }
 0x585   : > { %10962 = vst [vmem:[#allocation141_spill] sm:$0xff] %v7601_v63 }
 0x586   : > { %v7605_v39 = vpop.xlane.xlu1 %2427 }
 0x587   : > { %10964 = vst [vmem:[#allocation143_spill] sm:$0xff] %v7605_v39  ;;  %v7621_v43 = vpop.xlane.xlu2 %2437 }
 0x588   : > { %10972 = vst [vmem:[#allocation151_spill] sm:$0xff] %v7621_v43 }
 0x58c   : > { %v7607_v35 = vpop.xlane.xlu0 %2429 }
 0x58d   : > { %10965 = vst [vmem:[#allocation144_spill] sm:$0xff] %v7607_v35 }
 0x58e   : > { %v7611_v29 = vpop.xlane.xlu1 %2433 }
 0x58f   : > { %10967 = vst [vmem:[#allocation146_spill] sm:$0xff] %v7611_v29  ;;  %v7626_v35 = vpop.xlane.xlu2 %2443 }
 0x590   : > { %10975 = vst [vmem:[#allocation153_spill] sm:$0xff] %v7626_v35 }
 0x594   : > { %v7613_v30 = vpop.xlane.xlu0 %2435 }
 0x595   : > { %10968 = vst [vmem:[#allocation147_spill] sm:$0xff] %v7613_v30 }
 0x596   : > { %v7617_v6 = vpop.xlane.xlu1 %2439 }
 0x597   : > { %10970 = vst [vmem:[#allocation149_spill] sm:$0xff] %v7617_v6  ;;  %v2483_v29 = vpop.permute.xlu2 %2482 }
 0x59c   : > { %v7619_v62 = vpop.xlane.xlu0 %2441 }
 0x59d   : > { %10971 = vst [vmem:[#allocation150_spill] sm:$0xff] %v7619_v62 }
 0x59e   : > { %v7623_v63 = vpop.xlane.xlu1 %2445 }
 0x59f   : > { %10973 = vst [vmem:[#allocation152_spill] sm:$0xff] %v7623_v63  ;;  %v2489_v59 = vpop.permute.xlu2 %2488 }
 0x5a7   : > { %v2495_v43 = vpop.permute.xlu2 %2494 }
 0x5af   : > { %v2481_v16 = vpop.permute.xlu0 %2480  ;;  %v2501_v35 = vpop.permute.xlu2 %2500 }
 0x5b0   : > { %4745 = vmatmul.msk.bf16.vlgmr.msra.gmra.mxu1 %vm10974_vm5, %v2481_v16  ;;  %vm10980_vm5 = vmmov %vm10978_vm1 }
 0x5b6   : > { %v2485_v25 = vpop.permute.xlu1 %2484 }
 0x5b7   : > { %v2487_v39 = vpop.permute.xlu0 %2486  ;;  %v2507_v42 = vpop.permute.xlu2 %2506 }
 0x5be   : > { %v7628_v9 = vpop.permute.xlu1 %2492 }
 0x5bf   : > { %v2491_v30 = vpop.permute.xlu0 %2490 }
 0x5c0   : > { %4746 = vmatmul.msk.bf16.gmra.mxu1 %vm10976_vm14, %v2483_v29  ;;  %vm10981_vm14 = vmmov %vm10978_vm1 }
 0x5c1   : > { %v2552_v60 = vsel %vm10981_vm14, %v2507_v42, 0  ;;  %vm10988_vm14 = vmmov %vm10985_vm0  ;;  %v7646_v42 = vpop.f32.mrf.mxu1 }
 0x5c2   : > { %10990 = vst [vmem:[#allocation154_spill] sm:$0xff] %v7646_v42 }
 0x5c6   : > { %v2499_v6 = vpop.permute.xlu1 %2498 }
 0x5c7   : > { %v2497_v62 = vpop.permute.xlu0 %2496 }
 0x5ce   : > { %v2505_v4 = vpop.permute.xlu1 %2504 }
 0x5cf   : > { %v2503_v63 = vpop.permute.xlu0 %2502  ;;  %v2549_v10 = vsel %vm10982_vm10, %v2505_v4, 0  ;;  %vm10989_vm10 = vmmov %vm10985_vm0 }
 0x5d0   : > { %4747 = vmatmul.msk.bf16.gmra.mxu1 %vm10977_vm8, %v2485_v25  ;;  %vm10983_vm8 = vmmov %vm10978_vm1  ;;  %v2546_v61 = vsel %vm10984_vm13, %v2503_v63, 0 }
 0x5d1   : > { %vm10991_vm13 = vmmov %vm10985_vm0 }
 0x5d6   : > { %v2511_v57 = vpop.permute.xlu1 %2510 }
 0x5d7   : > { %v2558_v24 = vsel %vm10978_vm1, %v2511_v57, 0  ;;  %v2509_v17 = vpop.permute.xlu0 %2508 }
 0x5d8   : > { %2560 = vmatpush.bf16.xpose.msrb.mxu3 %v2558_v24  ;;  %v2555_v2 = vsel %vm10979_vm3, %v2509_v17, 0  ;;  %v2543_v24 = vsel %vm10978_vm1, %v2501_v35, 0  ;;  %vm10986_vm3 = vmmov %vm10985_vm0 }
 0x5d9   : > { %vm10994_vm1 = vmmov %vm10985_vm0 }
 0x5e0   : > { %2561 = vmatpush.bf16.xpose.msrb.mxu3 %v2555_v2  ;;  %4748 = vmatmul.msk.bf16.gmra.mxu1 %vm10980_vm5, %v2487_v39  ;;  %v2540_v2 = vsel %vm10986_vm3, %v2499_v6, 0  ;;  %vm10987_vm5 = vmmov %vm10985_vm0 }
 0x5e1   : > { %v2537_v17 = vsel %vm10987_vm5, %v2497_v62, 0  ;;  %vm10995_vm3 = vmmov %vm10985_vm0 }
 0x5e2   : > { %vm10996_vm5 = vmmov %vm10985_vm0 }
 0x5e8   : > { %2562 = vmatpush.bf16.xpose.msrb.mxu3 %v2552_v60 }
 0x5f0   : > { %2563 = vmatpush.bf16.xpose.msrb.mxu3 %v2549_v10  ;;  %4749 = vmatmul.msk.bf16.gmra.mxu1 %vm10983_vm8, %v2489_v59  ;;  %vm10993_vm8 = vmmov %vm10985_vm0 }
 0x5f8   : > { %2564 = vmatpush.bf16.xpose.msrb.mxu3 %v2546_v61  ;;  %v7649_v61 = vpop.f32.mrf.mxu1 }
 0x5f9   : > { %10992 = vst [vmem:[#allocation155_spill] sm:$0xff] %v7649_v61 }
 0x600   : > { %2565 = vmatpush.bf16.xpose.msrb.mxu3 %v2543_v24  ;;  %4750 = vmatmul.msk.bf16.gmra.mxu1 %vm10985_vm0, %v2491_v30 }
 0x608   : > { %2566 = vmatpush.bf16.xpose.msrb.mxu3 %v2540_v2 }
 0x610   : > { %2567 = vmatpush.bf16.xpose.msrb.mxu3 %v2537_v17  ;;  %4751 = vmatmul.msk.bf16.gmra.mxu1 %vm10988_vm14, %v7628_v9  ;;  %vm10997_vm14 = vmmov %vm10985_vm0 }
 0x617   : > { %4737 = vmatmul.msk.bf16.vlgmr.msrb.gmra.mxu3 %vm10989_vm10, %v2481_v16  ;;  %vm10998_vm10 = vmmov %vm10985_vm0 }
 0x620   : > { %4752 = vmatmul.msk.bf16.gmra.mxu1 %vm10991_vm13, %v2495_v43  ;;  %vm11096_vm13 = vcmp.eq.s32.totalorder %v10697_v41, 4294967292 }
 0x627   : > { %4738 = vmatmul.msk.bf16.gmra.mxu3 %vm10993_vm8, %v2483_v29  ;;  %vm11097_vm8 = vcmp.eq.s32.totalorder %v10697_v41, 4294967293 }
 0x62d   : > { %v7652_v57 = vpop.f32.mrf.mxu1 }
 0x62e   : > { %2676 = vperm.xlu2 %4878, %v7652_v57  }
 0x635   : > { %v7655_v6 = vpop.f32.mrf.mxu1 }
 0x636   : > { %2681 = vperm.xlu0 %4877, %v7655_v6  }
 0x637   : > { %4739 = vmatmul.msk.bf16.gmra.mxu3 %vm10985_vm0, %v2485_v25  ;;  %vm11099_vm0 = vcmp.eq.s32.totalorder %v10697_v41, 4294967294 }
 0x63d   : > { %v7659_v62 = vpop.f32.mrf.mxu1 }
 0x63e   : > { %2686 = vperm.xlu1 %4879, %v7659_v62  }
 0x645   : > { %v7662_v60 = vpop.f32.mrf.mxu1 }
 0x646   : > { %2691 = vperm.xlu2 %4878, %v7662_v60  }
 0x647   : > { %4740 = vmatmul.msk.bf16.gmra.mxu3 %vm10994_vm1, %v2487_v39  ;;  %vm11101_vm1 = vcmp.eq.s32.totalorder %v10697_v41, 4294967295 }
 0x64d   : > { %v7666_v10 = vpop.f32.mrf.mxu1 }
 0x64e   : > { %2696 = vperm.xlu1 %4879, %v7666_v10  }
 0x655   : > { %v7669_v35 = vpop.f32.mrf.mxu1 }
 0x656   : > { %2701 = vperm.xlu2 %4878, %v7669_v35  }
 0x657   : > { %4741 = vmatmul.msk.bf16.gmra.mxu3 %vm10995_vm3, %v2489_v59  ;;  %vm11102_vm3 = vcmp.eq.s32.totalorder %v10697_v41, 0 }
 0x65d   : > { %v7673_v25 = vpop.f32.mrf.mxu1 }
 0x65e   : > { %2706 = vperm.xlu0 %4877, %v7673_v25  }
 0x665   : > { %v7676_v4 = vpop.f32.mrf.mxu1 }
 0x666   : > { %2711 = vperm.xlu1 %4879, %v7676_v4  }
 0x667   : > { %4742 = vmatmul.msk.bf16.gmra.mxu3 %vm10996_vm5, %v2491_v30  ;;  %vm11103_vm5 = vcmp.eq.s32.totalorder %v10697_v41, 1 }
 0x66d   : > { %v7680_v16 = vpop.f32.mrf.mxu1 }
 0x66e   : > { %2716 = vperm.xlu2 %4878, %v7680_v16  }
 0x675   : > { %v7683_v39 = vpop.f32.mrf.mxu1 }
 0x676   : > { %2721 = vperm.xlu0 %4877, %v7683_v39  }
 0x677   : > { %4743 = vmatmul.msk.bf16.gmra.mxu3 %vm10997_vm14, %v7628_v9  ;;  %v10999_v9 = vmov 1   ;;  %vm11104_vm14 = vcmp.eq.s32.totalorder %v10697_v41, 2 }
 0x67d   : > { %v7688_v59 = vpop.f32.mrf.mxu1 }
 0x67e   : > { %2726 = vperm.xlu1 %4879, %v7688_v59  }
 0x685   : > { %v7691_v29 = vpop.f32.mrf.mxu1 }
 0x686   : > { %2731 = vperm.xlu2 %4878, %v7691_v29  }
 0x687   : > { %4744 = vmatmul.msk.bf16.gmra.mxu3 %vm10998_vm10, %v2495_v43  ;;  %v11000_v43 = vmov 2   ;;  %vm11105_vm10 = vcmp.eq.s32.totalorder %v10697_v41, 3 }
 0x688   : > { %v7727_v17 = vpop.permute.xlu2 %2676 }
 0x68d   : > { %v7695_v30 = vpop.f32.mrf.mxu1 }
 0x68e   : > { %2736 = vperm.xlu0 %4877, %v7695_v30  }
 0x695   : > { %v7698_v63 = vpop.f32.mrf.mxu1 }
 0x696   : > { %2741 = vperm.xlu1 %4879, %v7698_v63  }
 0x69d   : > { %v7701_v24 = vpop.f32.mrf.mxu1 }
 0x69e   : > { %4880 = vset.pattern.permute.xlu1 %v10999_v9  ;;  %2746 = vperm.xlu2 %4878, %v7701_v24  }
 0x69f   : > { %2787 = vperm.xlu1 %4880, %v7652_v57  }
 0x6a5   : > { %v7706_v2 = vpop.f32.mrf.mxu1 }
 0x6a6   : > { %4881 = vset.pattern.permute.xlu2 %v10999_v9  ;;  %2751 = vperm.xlu0 %4877, %v7706_v2  }
 0x6a7   : > { %2799 = vperm.xlu1 %4880, %v7662_v60   ;;  %2791 = vperm.xlu2 %4881, %v7655_v6  }
 0x6a8   : > { %v7757_v7 = vpop.permute.xlu0 %2681 }
 0x6ae   : > { %4882 = vset.pattern.permute.xlu0 %v10999_v9  ;;  %v7733_v9 = vpop.permute.xlu2 %2691 }
 0x6af   : > { %2807 = vperm.xlu1 %4880, %v7669_v35   ;;  %2803 = vperm.xlu2 %4881, %v7666_v10  }
 0x6b0   : > { %2795 = vperm.xlu0 %4882, %v7659_v62   ;;  %v7743_v42 = vpop.permute.xlu1 %2686 }
 0x6b6   : > { %v7738_v61 = vpop.permute.xlu2 %2701 }
 0x6b7   : > { %2819 = vperm.xlu1 %4880, %v7680_v16   ;;  %2811 = vperm.xlu2 %4881, %v7673_v25  }
 0x6b8   : > { %2815 = vperm.xlu0 %4882, %v7676_v4  }
 0x6bf   : > { %2831 = vperm.xlu1 %4880, %v7691_v29   ;;  %2823 = vperm.xlu2 %4881, %v7683_v39  }
 0x6c0   : > { %2827 = vperm.xlu0 %4882, %v7688_v59  }
 0x6c7   : > { %2843 = vperm.xlu1 %4880, %v7701_v24   ;;  %2835 = vperm.xlu2 %4881, %v7695_v30  }
 0x6c8   : > { %2839 = vperm.xlu0 %4882, %v7698_v63   ;;  %v7745_v28 = vpop.permute.xlu2 %2716 }
 0x6cf   : > { %4884 = vset.pattern.permute.xlu1 %v11000_v43  ;;  %2847 = vperm.xlu2 %4881, %v7706_v2  }
 0x6d0   : > { %4883 = vset.pattern.permute.xlu0 %v11000_v43  ;;  %2887 = vperm.xlu1 %4884, %v7655_v6   ;;  %v7767_v31 = vpop.permute.xlu0 %2706 }
 0x6d1   : > { %2883 = vperm.xlu0 %4883, %v7652_v57  }
 0x6d7   : > { %4885 = vset.pattern.permute.xlu2 %v11000_v43  ;;  %v7750_v43 = vpop.permute.xlu1 %2696 }
 0x6d8   : > { %2895 = vperm.xlu1 %4884, %v7662_v60   ;;  %2891 = vperm.xlu2 %4885, %v7659_v62  }
 0x6d9   : > { %2903 = vperm.xlu0 %4883, %v7669_v35  }
 0x6df   : > { %v7759_v50 = vpop.permute.xlu1 %2711 }
 0x6e0   : > { %2907 = vperm.xlu1 %4884, %v7673_v25   ;;  %2899 = vperm.xlu2 %4885, %v7666_v10   ;;  %v7752_v26 = vpop.permute.xlu2 %2731 }
 0x6e1   : > { %2915 = vperm.xlu0 %4883, %v7680_v16  }
 0x6e8   : > { %2919 = vperm.xlu1 %4884, %v7683_v39   ;;  %2911 = vperm.xlu2 %4885, %v7676_v4   ;;  %v7778_v34 = vpop.permute.xlu0 %2721 }
 0x6e9   : > { %2927 = vperm.xlu0 %4883, %v7691_v29  }
 0x6f0   : > { %2931 = vperm.xlu1 %4884, %v7695_v30   ;;  %2923 = vperm.xlu2 %4885, %v7688_v59   ;;  %v7769_v32 = vpop.permute.xlu1 %2726 }
 0x6f1   : > { %2939 = vperm.xlu0 %4883, %v7701_v24  }
 0x6f8   : > { %v7761_v8 = vpop.permute.xlu2 %2746  ;;  %2943 = vperm.xlu1 %4884, %v7706_v2   ;;  %2935 = vperm.xlu2 %4885, %v7698_v63  }
 0x6f9   : > { %11001 = vst [vmem:[#allocation156_spill] sm:$0xff] %v7761_v8  ;;  %4887 = vset.pattern.permute.xlu0 %v11002_v22 }
 0x6fa   : > { %2983 = vperm.xlu0 %4887, %v7655_v6  }
 0x700   : > { %4888 = vset.pattern.permute.xlu1 %v11002_v22  ;;  %4886 = vset.pattern.permute.xlu2 %v11002_v22  ;;  %v7787_v22 = vpop.permute.xlu0 %2736 }
 0x701   : > { %v7773_v44 = vpop.permute.xlu2 %2791  ;;  %2987 = vperm.xlu1 %4888, %v7659_v62   ;;  %2979 = vperm.xlu2 %4886, %v7652_v57  }
 0x702   : > { %3003 = vperm.xlu0 %4887, %v7673_v25  }
 0x708   : > { %v7780_v3 = vpop.permute.xlu1 %2741 }
 0x709   : > { %v7782_v52 = vpop.permute.xlu2 %2803  ;;  %2995 = vperm.xlu1 %4888, %v7666_v10   ;;  %2991 = vperm.xlu2 %4886, %v7662_v60  }
 0x70a   : > { %3015 = vperm.xlu0 %4887, %v7683_v39  }
 0x711   : > { %v7789_v15 = vpop.permute.xlu2 %2811  ;;  %3007 = vperm.xlu1 %4888, %v7676_v4   ;;  %2999 = vperm.xlu2 %4886, %v7669_v35   ;;  %v7793_v1 = vpop.permute.xlu1 %2787 }
 0x712   : > { %3027 = vperm.xlu0 %4887, %v7695_v30  }
 0x718   : > { %v7796_v37 = vpop.permute.xlu0 %2751 }
 0x719   : > { %11003 = vst [vmem:[#allocation157_spill] sm:$0xff] %v7796_v37  ;;  %v7798_v48 = vpop.permute.xlu2 %2823  ;;  %3019 = vperm.xlu1 %4888, %v7688_v59   ;;  %3011 = vperm.xlu2 %4886, %v7680_v16   ;;  %v7802_v13 = vpop.permute.xlu1 %2799 }
 0x71a   : > { %11004 = vst [vmem:[#allocation158_spill] sm:$0xff] %v7802_v13  ;;  %3039 = vperm.xlu0 %4887, %v7706_v2  }
 0x721   : > { %v7805_v54 = vpop.permute.xlu2 %2835  ;;  %3031 = vperm.xlu1 %4888, %v7698_v63   ;;  %3023 = vperm.xlu2 %4886, %v7691_v29   ;;  %v7809_v23 = vpop.permute.xlu1 %2807 }
 0x722   : > { %11005 = vst [vmem:[#allocation159_spill] sm:$0xff] %v7805_v54  ;;  %4891 = vset.pattern.permute.xlu0 %v11007_v33  ;;  %v7812_v11 = vpop.permute.xlu0 %2795 }
 0x723   : > { %11006 = vst [vmem:[#allocation160_spill] sm:$0xff] %v7809_v23  ;;  %3083 = vperm.xlu0 %4891, %v7659_v62  }
 0x724   : > { %11008 = vst [vmem:[#allocation161_spill] sm:$0xff] %v7812_v11 }
 0x729   : > { %4889 = vset.pattern.permute.xlu1 %v11007_v33  ;;  %3035 = vperm.xlu2 %4886, %v7701_v24   ;;  %v7817_v40 = vpop.permute.xlu2 %2847  ;;  %v7819_v56 = vpop.permute.xlu1 %2819 }
 0x72a   : > { %11009 = vst [vmem:[#allocation162_spill] sm:$0xff] %v7817_v40  ;;  %v7821_v20 = vpop.permute.xlu0 %2815  ;;  %3075 = vperm.xlu1 %4889, %v7652_v57  }
 0x72b   : > { %11010 = vst [vmem:[#allocation163_spill] sm:$0xff] %v7819_v56  ;;  %3103 = vperm.xlu0 %4891, %v7676_v4  }
 0x72c   : > { %11011 = vst [vmem:[#allocation164_spill] sm:$0xff] %v7821_v20 }
 0x731   : > { %4890 = vset.pattern.permute.xlu2 %v11007_v33  ;;  %v7826_v5 = vpop.permute.xlu1 %2831 }
 0x732   : > { %11012 = vst [vmem:[#allocation165_spill] sm:$0xff] %v7826_v5  ;;  %v7828_v36 = vpop.permute.xlu0 %2827  ;;  %3087 = vperm.xlu1 %4889, %v7662_v60   ;;  %3079 = vperm.xlu2 %4890, %v7655_v6   ;;  %v7832_v47 = vpop.permute.xlu2 %2891 }
 0x733   : > { %11013 = vst [vmem:[#allocation166_spill] sm:$0xff] %v7828_v36  ;;  %3115 = vperm.xlu0 %4891, %v7688_v59   ;;  %v11020_v36 = vmov 5  }
 0x734   : > { %11014 = vst [vmem:[#allocation167_spill] sm:$0xff] %v7832_v47  ;;  %v7968_v47 = vpop.f32.mrf.mxu3 }
 0x739   : > { %v7835_v40 = vpop.permute.xlu1 %2843 }
 0x73a   : > { %11015 = vst [vmem:[#allocation168_spill] sm:$0xff] %v7835_v40  ;;  %v7837_v37 = vpop.permute.xlu0 %2839  ;;  %3095 = vperm.xlu1 %4889, %v7669_v35   ;;  %3091 = vperm.xlu2 %4890, %v7666_v10   ;;  %v7841_v33 = vpop.permute.xlu2 %2899 }
 0x73b   : > { %11016 = vst [vmem:[#allocation169_spill] sm:$0xff] %v7837_v37  ;;  %3127 = vperm.xlu0 %4891, %v7698_v63  }
 0x73c   : > { %11017 = vst [vmem:[#allocation170_spill] sm:$0xff] %v7841_v33 }
 0x742   : > { %3107 = vperm.xlu1 %4889, %v7680_v16   ;;  %3099 = vperm.xlu2 %4890, %v7673_v25   ;;  %v7846_v54 = vpop.permute.xlu2 %2911  ;;  %v7848_v5 = vpop.permute.xlu1 %2887 }
 0x743   : > { %11018 = vst [vmem:[#allocation171_spill] sm:$0xff] %v7846_v54  ;;  %4892 = vset.pattern.permute.xlu0 %v11020_v36  ;;  %v7851_v40 = vpop.permute.xlu0 %2883 }
 0x744   : > { %11019 = vst [vmem:[#allocation172_spill] sm:$0xff] %v7848_v5  ;;  %3171 = vperm.xlu0 %4892, %v7652_v57  }
 0x74a   : > { %3119 = vperm.xlu1 %4889, %v7691_v29   ;;  %3111 = vperm.xlu2 %4890, %v7683_v39   ;;  %v7856_v33 = vpop.permute.xlu2 %2923  ;;  %v7858_v37 = vpop.permute.xlu1 %2895 }
 0x74b   : > { %11021 = vst [vmem:[#allocation173_spill] sm:$0xff] %v7856_v33  ;;  %v7860_v56 = vpop.permute.xlu0 %2903 }
 0x74c   : > { %11022 = vst [vmem:[#allocation174_spill] sm:$0xff] %v7858_v37  ;;  %3191 = vperm.xlu0 %4892, %v7669_v35  }
 0x74d   : > { %11023 = vst [vmem:[#allocation175_spill] sm:$0xff] %v7860_v56 }
 0x752   : > { %3131 = vperm.xlu1 %4889, %v7701_v24   ;;  %3123 = vperm.xlu2 %4890, %v7695_v30   ;;  %v7865_v5 = vpop.permute.xlu2 %2935  ;;  %v7867_v54 = vpop.permute.xlu1 %2907 }
 0x753   : > { %11024 = vst [vmem:[#allocation176_spill] sm:$0xff] %v7865_v5  ;;  %v7869_v20 = vpop.permute.xlu0 %2915 }
 0x754   : > { %11025 = vst [vmem:[#allocation177_spill] sm:$0xff] %v7867_v54  ;;  %3203 = vperm.xlu0 %4892, %v7680_v16  }
 0x755   : > { %11026 = vst [vmem:[#allocation178_spill] sm:$0xff] %v7869_v20 }
 0x75a   : > { %4893 = vset.pattern.permute.xlu1 %v11020_v36  ;;  %3135 = vperm.xlu2 %4890, %v7706_v2   ;;  %v7874_v37 = vpop.permute.xlu1 %2919 }
 0x75b   : > { %11027 = vst [vmem:[#allocation179_spill] sm:$0xff] %v7874_v37  ;;  %v7876_v33 = vpop.permute.xlu0 %2927  ;;  %3175 = vperm.xlu1 %4893, %v7655_v6   ;;  %v7879_v56 = vpop.permute.xlu2 %2979 }
 0x75c   : > { %11028 = vst [vmem:[#allocation180_spill] sm:$0xff] %v7876_v33  ;;  %3215 = vperm.xlu0 %4892, %v7691_v29  }
 0x762   : > { %4894 = vset.pattern.permute.xlu2 %v11020_v36  ;;  %v7883_v5 = vpop.permute.xlu1 %2931  ;;  %v11034_v36 = vmov 6  }
 0x763   : > { %11029 = vst [vmem:[#allocation181_spill] sm:$0xff] %v7883_v5  ;;  %v7885_v54 = vpop.permute.xlu0 %2939  ;;  %3183 = vperm.xlu1 %4893, %v7662_v60   ;;  %3179 = vperm.xlu2 %4894, %v7659_v62   ;;  %v7889_v20 = vpop.permute.xlu2 %2991 }
 0x764   : > { %11030 = vst [vmem:[#allocation182_spill] sm:$0xff] %v7885_v54  ;;  %3227 = vperm.xlu0 %4892, %v7701_v24  }
 0x765   : > { %11031 = vst [vmem:[#allocation183_spill] sm:$0xff] %v7889_v20 }
 0x76a   : > { %v7892_v33 = vpop.permute.xlu1 %2943 }
 0x76b   : > { %11032 = vst [vmem:[#allocation184_spill] sm:$0xff] %v7892_v33  ;;  %3195 = vperm.xlu1 %4893, %v7673_v25   ;;  %3187 = vperm.xlu2 %4894, %v7666_v10   ;;  %v7896_v37 = vpop.permute.xlu2 %2999 }
 0x76c   : > { %11033 = vst [vmem:[#allocation185_spill] sm:$0xff] %v7896_v37  ;;  %4896 = vset.pattern.permute.xlu0 %v11034_v36  ;;  %v7899_v5 = vpop.permute.xlu0 %2983 }
 0x76d   : > { %11035 = vst [vmem:[#allocation186_spill] sm:$0xff] %v7899_v5  ;;  %3271 = vperm.xlu0 %4896, %v7655_v6  }
 0x773   : > { %3207 = vperm.xlu1 %4893, %v7683_v39   ;;  %3199 = vperm.xlu2 %4894, %v7676_v4   ;;  %v7904_v20 = vpop.permute.xlu2 %3011  ;;  %v7906_v54 = vpop.permute.xlu1 %2987 }
 0x774   : > { %11036 = vst [vmem:[#allocation187_spill] sm:$0xff] %v7904_v20  ;;  %v7908_v33 = vpop.permute.xlu0 %3003 }
 0x775   : > { %11037 = vst [vmem:[#allocation188_spill] sm:$0xff] %v7906_v54  ;;  %3291 = vperm.xlu0 %4896, %v7673_v25  }
 0x776   : > { %11038 = vst [vmem:[#allocation189_spill] sm:$0xff] %v7908_v33 }
 0x77b   : > { %3219 = vperm.xlu1 %4893, %v7695_v30   ;;  %3211 = vperm.xlu2 %4894, %v7688_v59   ;;  %v7913_v37 = vpop.permute.xlu2 %3023  ;;  %v7915_v5 = vpop.permute.xlu1 %2995 }
 0x77c   : > { %11039 = vst [vmem:[#allocation190_spill] sm:$0xff] %v7913_v37  ;;  %v7917_v23 = vpop.permute.xlu0 %3015 }
 0x77d   : > { %11040 = vst [vmem:[#allocation191_spill] sm:$0xff] %v7915_v5  ;;  %3303 = vperm.xlu0 %4896, %v7683_v39  }
 0x77e   : > { %11041 = vst [vmem:[#allocation192_spill] sm:$0xff] %v7917_v23 }
 0x783   : > { %3231 = vperm.xlu1 %4893, %v7706_v2   ;;  %3223 = vperm.xlu2 %4894, %v7698_v63   ;;  %v7922_v20 = vpop.permute.xlu2 %3035  ;;  %v7924_v33 = vpop.permute.xlu1 %3007 }
 0x784   : > { %11042 = vst [vmem:[#allocation193_spill] sm:$0xff] %v7922_v20  ;;  %v7926_v54 = vpop.permute.xlu0 %3027 }
 0x785   : > { %11043 = vst [vmem:[#allocation194_spill] sm:$0xff] %v7924_v33  ;;  %3315 = vperm.xlu0 %4896, %v7695_v30  }
 0x786   : > { %11044 = vst [vmem:[#allocation195_spill] sm:$0xff] %v7926_v54 }
 0x78b   : > { %4897 = vset.pattern.permute.xlu1 %v11034_v36  ;;  %4895 = vset.pattern.permute.xlu2 %v11034_v36  ;;  %v7931_v5 = vpop.permute.xlu1 %3019  ;;  %v11050_v36 = vmov 7  }
 0x78c   : > { %11045 = vst [vmem:[#allocation196_spill] sm:$0xff] %v7931_v5  ;;  %v7933_v23 = vpop.permute.xlu0 %3039  ;;  %3275 = vperm.xlu1 %4897, %v7659_v62   ;;  %3267 = vperm.xlu2 %4895, %v7652_v57   ;;  %v7937_v37 = vpop.permute.xlu2 %3079 }
 0x78d   : > { %11046 = vst [vmem:[#allocation197_spill] sm:$0xff] %v7933_v23  ;;  %3327 = vperm.xlu0 %4896, %v7706_v2  }
 0x78e   : > { %11047 = vst [vmem:[#allocation198_spill] sm:$0xff] %v7937_v37 }
 0x793   : > { %v7940_v20 = vpop.permute.xlu1 %3031 }
 0x794   : > { %11048 = vst [vmem:[#allocation199_spill] sm:$0xff] %v7940_v20  ;;  %3283 = vperm.xlu1 %4897, %v7666_v10   ;;  %3279 = vperm.xlu2 %4895, %v7662_v60   ;;  %v7944_v54 = vpop.permute.xlu2 %3091 }
 0x795   : > { %11049 = vst [vmem:[#allocation200_spill] sm:$0xff] %v7944_v54  ;;  %4900 = vset.pattern.permute.xlu0 %v11050_v36  ;;  %v7947_v5 = vpop.permute.xlu0 %3083 }
 0x796   : > { %11051 = vst [vmem:[#allocation201_spill] sm:$0xff] %v7947_v5  ;;  %3371 = vperm.xlu0 %4900, %v7659_v62  }
 0x79c   : > { %3295 = vperm.xlu1 %4897, %v7676_v4   ;;  %3287 = vperm.xlu2 %4895, %v7669_v35   ;;  %v7952_v23 = vpop.permute.xlu2 %3099  ;;  %v7954_v37 = vpop.permute.xlu1 %3075 }
 0x79d   : > { %11052 = vst [vmem:[#allocation202_spill] sm:$0xff] %v7952_v23  ;;  %v7956_v20 = vpop.permute.xlu0 %3103 }
 0x79e   : > { %11053 = vst [vmem:[#allocation203_spill] sm:$0xff] %v7956_v20  ;;  %3391 = vperm.xlu0 %4900, %v7676_v4  }
 0x7a4   : > { %3307 = vperm.xlu1 %4897, %v7688_v59   ;;  %3299 = vperm.xlu2 %4895, %v7680_v16   ;;  %v7961_v54 = vpop.permute.xlu2 %3111  ;;  %v7963_v33 = vpop.permute.xlu1 %3087 }
 0x7a5   : > { %11054 = vst [vmem:[#allocation204_spill] sm:$0xff] %v7961_v54  ;;  %v7965_v5 = vpop.permute.xlu0 %3115  ;;  %v7979_v54 = vpop.f32.mrf.mxu3 }
 0x7a6   : > { %11055 = vst [vmem:[#allocation205_spill] sm:$0xff] %v7963_v33  ;;  %3403 = vperm.xlu0 %4900, %v7688_v59  }
 0x7a7   : > { %11056 = vst [vmem:[#allocation206_spill] sm:$0xff] %v7965_v5 }
 0x7ac   : > { %3319 = vperm.xlu1 %4897, %v7698_v63   ;;  %3311 = vperm.xlu2 %4895, %v7691_v29   ;;  %v7972_v23 = vpop.permute.xlu2 %3123  ;;  %v7974_v20 = vpop.permute.xlu1 %3095 }
 0x7ad   : > { %11057 = vst [vmem:[#allocation207_spill] sm:$0xff] %v7972_v23  ;;  %v7976_v13 = vpop.permute.xlu0 %3127 }
 0x7ae   : > { %11058 = vst [vmem:[#allocation208_spill] sm:$0xff] %v7974_v20  ;;  %3415 = vperm.xlu0 %4900, %v7698_v63   ;;  %v7995_v20 = vpop.f32.mrf.mxu3 }
 0x7af   : > { %11059 = vst [vmem:[#allocation209_spill] sm:$0xff] %v7976_v13 }
 0x7b4   : > { %4898 = vset.pattern.permute.xlu1 %v11050_v36  ;;  %3323 = vperm.xlu2 %4895, %v7701_v24   ;;  %v7983_v5 = vpop.permute.xlu2 %3135  ;;  %v7985_v33 = vpop.permute.xlu1 %3107 }
 0x7b5   : > { %11060 = vst [vmem:[#allocation210_spill] sm:$0xff] %v7983_v5  ;;  %3363 = vperm.xlu1 %4898, %v7652_v57  }
 0x7b6   : > { %11061 = vst [vmem:[#allocation211_spill] sm:$0xff] %v7985_v33  ;;  %4901 = vset.pattern.permute.xlu0 %v11062_v55  ;;  %v7989_v23 = vpop.permute.xlu0 %3171 }
 0x7b7   : > { %3459 = vperm.xlu0 %4901, %v7652_v57  }
 0x7bc   : > { %4899 = vset.pattern.permute.xlu2 %v11050_v36  ;;  %v7993_v13 = vpop.permute.xlu1 %3119 }
 0x7bd   : > { %11063 = vst [vmem:[#allocation212_spill] sm:$0xff] %v7993_v13  ;;  %3375 = vperm.xlu1 %4898, %v7662_v60   ;;  %3367 = vperm.xlu2 %4899, %v7655_v6   ;;  %v7999_v5 = vpop.permute.xlu2 %3179  ;;  %v8012_v13 = vpop.f32.mrf.mxu3 }
 0x7be   : > { %11064 = vst [vmem:[#allocation213_spill] sm:$0xff] %v7999_v5  ;;  %v8001_v33 = vpop.permute.xlu0 %3191 }
 0x7bf   : > { %11065 = vst [vmem:[#allocation214_spill] sm:$0xff] %v8001_v33  ;;  %3479 = vperm.xlu0 %4901, %v7669_v35  }
 0x7c4   : > { %v8004_v8 = vpop.permute.xlu1 %3131 }
 0x7c5   : > { %11066 = vst [vmem:[#allocation215_spill] sm:$0xff] %v8004_v8  ;;  %3383 = vperm.xlu1 %4898, %v7669_v35   ;;  %3379 = vperm.xlu2 %4899, %v7666_v10   ;;  %v8008_v57 = vpop.permute.xlu2 %3187  ;;  %v8024_v35 = vpop.f32.mrf.mxu3 }
 0x7c6   : > { %11067 = vst [vmem:[#allocation216_spill] sm:$0xff] %v8008_v57  ;;  %v8010_v36 = vpop.permute.xlu0 %3203 }
 0x7c7   : > { %11068 = vst [vmem:[#allocation217_spill] sm:$0xff] %v8010_v36  ;;  %3491 = vperm.xlu0 %4901, %v7680_v16  }
 0x7cd   : > { %3395 = vperm.xlu1 %4898, %v7680_v16   ;;  %3387 = vperm.xlu2 %4899, %v7673_v25   ;;  %v8017_v33 = vpop.permute.xlu2 %3199  ;;  %v8019_v5 = vpop.permute.xlu1 %3175 }
 0x7ce   : > { %11069 = vst [vmem:[#allocation218_spill] sm:$0xff] %v8017_v33  ;;  %v8021_v8 = vpop.permute.xlu0 %3215  ;;  %v8035_v33 = vpop.f32.mrf.mxu3 }
 0x7cf   : > { %11070 = vst [vmem:[#allocation219_spill] sm:$0xff] %v8019_v5  ;;  %3503 = vperm.xlu0 %4901, %v7691_v29  }
 0x7d0   : > { %11071 = vst [vmem:[#allocation220_spill] sm:$0xff] %v8021_v8 }
 0x7d5   : > { %3407 = vperm.xlu1 %4898, %v7691_v29   ;;  %3399 = vperm.xlu2 %4899, %v7683_v39   ;;  %v8028_v57 = vpop.permute.xlu2 %3211  ;;  %v8030_v36 = vpop.permute.xlu1 %3183 }
 0x7d6   : > { %11072 = vst [vmem:[#allocation221_spill] sm:$0xff] %v8028_v57  ;;  %v8032_v16 = vpop.permute.xlu0 %3227  ;;  %v8045_v11 = vpop.f32.mrf.mxu3 }
 0x7d7   : > { %11073 = vst [vmem:[#allocation222_spill] sm:$0xff] %v8030_v36  ;;  %3515 = vperm.xlu0 %4901, %v7701_v24  }
 0x7d8   : > { %11074 = vst [vmem:[#allocation223_spill] sm:$0xff] %v8032_v16 }
 0x7dd   : > { %3419 = vperm.xlu1 %4898, %v7701_v24   ;;  %3411 = vperm.xlu2 %4899, %v7695_v30   ;;  %v8039_v8 = vpop.permute.xlu2 %3223  ;;  %v8041_v5 = vpop.permute.xlu1 %3195 }
 0x7de   : > { %11075 = vst [vmem:[#allocation224_spill] sm:$0xff] %v8039_v8  ;;  %v8061_v36 = vpop.f32.mrf.mxu3 }
 0x7df   : > { %11076 = vst [vmem:[#allocation225_spill] sm:$0xff] %v8041_v5  ;;  %v8043_v29 = vpop.permute.xlu0 %3271 }
 0x7e0   : > { %11077 = vst [vmem:[#allocation226_spill] sm:$0xff] %v8043_v29 }
 0x7e5   : > { %4902 = vset.pattern.permute.xlu1 %v11062_v55  ;;  %3423 = vperm.xlu2 %4899, %v7706_v2   ;;  %v8049_v57 = vpop.permute.xlu1 %3207 }
 0x7e6   : > { %11078 = vst [vmem:[#allocation227_spill] sm:$0xff] %v8049_v57  ;;  %3463 = vperm.xlu1 %4902, %v7655_v6   ;;  %v3268_v16 = vpop.permute.xlu2 %3267 }
 0x7e7   : > { %v8052_v24 = vpop.permute.xlu0 %3291 }
 0x7e8   : > { %11079 = vst [vmem:[#allocation228_spill] sm:$0xff] %v8052_v24 }
 0x7ed   : > { %4903 = vset.pattern.permute.xlu2 %v11062_v55  ;;  %v8055_v8 = vpop.permute.xlu1 %3219 }
 0x7ee   : > { %11080 = vst [vmem:[#allocation229_spill] sm:$0xff] %v8055_v8  ;;  %3467 = vperm.xlu2 %4903, %v7659_v62   ;;  %v8058_v5 = vpop.permute.xlu2 %3279  ;;  %3471 = vperm.xlu1 %4902, %v7662_v60   ;;  %v8073_v8 = vpop.f32.mrf.mxu3 }
 0x7ef   : > { %11081 = vst [vmem:[#allocation230_spill] sm:$0xff] %v8058_v5  ;;  %v8063_v29 = vpop.permute.xlu0 %3303 }
 0x7f0   : > { %11082 = vst [vmem:[#allocation231_spill] sm:$0xff] %v8063_v29 }
 0x7f5   : > { %v8065_v57 = vpop.permute.xlu1 %3231 }
 0x7f6   : > { %11083 = vst [vmem:[#allocation232_spill] sm:$0xff] %v8065_v57  ;;  %3475 = vperm.xlu2 %4903, %v7666_v10   ;;  %v8068_v6 = vpop.permute.xlu2 %3287  ;;  %3483 = vperm.xlu1 %4902, %v7673_v25   ;;  %v8083_v57 = vpop.f32.mrf.mxu3 }
 0x7f7   : > { %v8071_v55 = vpop.permute.xlu0 %3315 }
 0x7f8   : > { %11084 = vst [vmem:[#allocation233_spill] sm:$0xff] %v8071_v55 }
 0x7fe   : > { %3487 = vperm.xlu2 %4903, %v7676_v4   ;;  %v8076_v62 = vpop.permute.xlu2 %3299  ;;  %3495 = vperm.xlu1 %4902, %v7683_v39   ;;  %v8079_v60 = vpop.permute.xlu1 %3275 }
 0x7ff   : > { %11085 = vst [vmem:[#allocation234_spill] sm:$0xff] %v8076_v62  ;;  %v8081_v29 = vpop.permute.xlu0 %3327  ;;  %v8093_v4 = vpop.f32.mrf.mxu3 }
 0x800   : > { %11086 = vst [vmem:[#allocation235_spill] sm:$0xff] %v8081_v29 }
 0x806   : > { %3499 = vperm.xlu2 %4903, %v7688_v59   ;;  %v8086_v10 = vpop.permute.xlu2 %3311  ;;  %3507 = vperm.xlu1 %4902, %v7695_v30   ;;  %v8089_v25 = vpop.permute.xlu1 %3283 }
 0x807   : > { %11087 = vst [vmem:[#allocation236_spill] sm:$0xff] %v8086_v10  ;;  %v2596_v5 = vpop.f32.mrf.mxu3  ;;  %v2609_v10 = vmul.f32 0.25, %v7968_v47 }
 0x808   : > { %11088 = vst [vmem:[#allocation237_spill] sm:$0xff] %v8089_v25  ;;  %v8091_v55 = vpop.permute.xlu0 %3371 }
 0x80e   : > { %3511 = vperm.xlu2 %4903, %v7698_v63   ;;  %v8096_v39 = vpop.permute.xlu2 %3323  ;;  %3519 = vperm.xlu1 %4902, %v7706_v2   ;;  %v8099_v29 = vpop.permute.xlu1 %3295  ;;  %v2754_v63 = vsel %vm11096_vm13, %v7727_v17, 0.0  ;;  %v2850_v2 = vsel %vm11097_vm8, %v7793_v1, 0.0  ;;  %v3138_v1 = vsel %vm11102_vm3, %v7954_v37, 0.0  ;;  %vm11106_vm13 = vcmp.eq.s32.totalorder %v5743_v45, 4294967292 }
 0x80f   : > { %11089 = vst [vmem:[#allocation238_spill] sm:$0xff] %v8096_v39  ;;  %v2755_v37 = vsel %vm11106_vm13, %v7757_v7, 0.0  ;;  %vm11107_vm8 = vcmp.eq.s32.totalorder %v10694_v27, 4294967292  ;;  %vm11110_vm3 = vcmp.eq.s32.totalorder %v5909_v0, 4294967292  ;;  %vm11114_vm13 = vcmp.eq.s32.totalorder %v5777_v12, 4294967292 }
 0x810   : > { %11090 = vst [vmem:[#allocation239_spill] sm:$0xff] %v8099_v29  ;;  %v8101_v24 = vpop.permute.xlu0 %3391  ;;  %v2599_v29 = vpop.f32.mrf.mxu3 }
 0x811   : > { %11091 = vst [vmem:[#allocation240_spill] sm:$0xff] %v8101_v24 }
 0x816   : > { %v8103_v59 = vpop.permute.xlu1 %3307 }
 0x817   : > { %11092 = vst [vmem:[#allocation241_spill] sm:$0xff] %v8103_v59  ;;  %v8105_v30 = vpop.permute.xlu2 %3367  ;;  %v2770_v59 = vadd.f32 %v2754_v63, %v2609_v10  ;;  %v3234_v10 = vsel %vm11103_vm5, %v7989_v23, 0.0  ;;  %v2756_v23 = vsel %vm11107_vm8, %v7743_v42, 0.0  ;;  %v2758_v42 = vsel %vm11110_vm3, %v7750_v43, 0.0 }
 0x818   : > { %11093 = vst [vmem:[#allocation242_spill] sm:$0xff] %v8105_v30  ;;  %v8107_v25 = vpop.permute.xlu0 %3403  ;;  %vm11111_vm5 = vcmp.eq.s32.totalorder %v5824_v51, 4294967292  ;;  %v2617_v43 = vmul.f32 0.25, %v8073_v8  ;;  %v2764_v8 = vsel %vm11114_vm13, %v7769_v32, 0.0  ;;  %vm11115_vm8 = vcmp.eq.s32.totalorder %v5790_v49, 4294967292 }
 0x819   : > { %11094 = vst [vmem:[#allocation243_spill] sm:$0xff] %v8107_v25  ;;  %v2946_v25 = vsel %vm11099_vm0, %v7851_v40, 0.0  ;;  %v2866_v39 = vadd.f32 %v2850_v2, %v2770_v59  ;;  %v3330_v2 = vsel %vm11104_vm14, %v3268_v16, 0.0  ;;  %v2611_v16 = vmul.f32 0.25, %v7995_v20 }
 0x81a   : > { %vm11108_vm0 = vcmp.eq.s32.totalorder %v10697_v41, 4  ;;  %vm11112_vm14 = vcmp.eq.s32.totalorder %v5880_v58, 4294967292  ;;  %v2766_v32 = vsel %vm511_vm9, %v7787_v22, 0.0  ;;  %vm11118_vm3 = vcmp.eq.s32.totalorder %v5909_v0, 4294967293 }
 0x81b   : > { %v2962_v17 = vadd.f32 %v2946_v25, %v2866_v39 }
 0x81e   : > { %v8110_v62 = vpop.permute.xlu1 %3319 }
 0x81f   : > { %11095 = vst [vmem:[#allocation244_spill] sm:$0xff] %v8110_v62  ;;  %v8118_v24 = vpop.permute.xlu2 %3379  ;;  %v3042_v62 = vsel %vm11101_vm1, %v7879_v56, 0.0  ;;  %vm11109_vm1 = vcmp.eq.s32.totalorder %v5793_v38, 4294967292 }
 0x820   : > { %11098 = vst [vmem:[#allocation245_spill] sm:$0xff] %v8118_v24  ;;  %v8123_v47 = vpop.permute.xlu0 %3415  ;;  %v3058_v30 = vadd.f32 %v3042_v62, %v2962_v17  ;;  %v2601_v24 = vpop.f32.mrf.mxu3  ;;  %v2612_v17 = vmul.f32 0.25, %v8012_v13  ;;  %v2757_v7 = vsel %vm11109_vm1, %v7733_v9, 0.0  ;;  %v2759_v13 = vsel %vm11111_vm5, %v7738_v61, 0.0 }
 0x821   : > { %11100 = vst [vmem:[#allocation246_spill] sm:$0xff] %v8123_v47  ;;  %v2761_v9 = vsel %vm11112_vm14, %v7759_v50, 0.0  ;;  %v2616_v61 = vmul.f32 0.25, %v8061_v36  ;;  %vm11117_vm1 = vcmp.eq.s32.totalorder %v5837_v53, 4294967292  ;;  %vm11119_vm5 = vcmp.eq.s32.totalorder %v5998_v18, 4294967293 }
 0x822   : > { %v3154_v59 = vadd.f32 %v3138_v1, %v3058_v30  ;;  %v2610_v30 = vmul.f32 0.25, %v7979_v54  ;;  %v2614_v54 = vmul.f32 0.25, %v8035_v33  ;;  %v2773_v33 = vadd.f32 %v2757_v7, %v2612_v17 }
 0x823   : > { %v2767_v7 = vsel %vm11117_vm1, %v7780_v3, 0.0  ;;  %vm11120_vm14 = vcmp.eq.s32.totalorder %v5751_v14, 4294967293  ;;  %v11123_v3 = vld [vmem:[#allocation156_spill] sm:$0xff]  ;;  %vm11131_vm1 = vcmp.eq.s32.totalorder %v5824_v51, 4294967293 }
 0x824   : > { %v3250_v47 = vadd.f32 %v3234_v10, %v3154_v59  ;;  %v2771_v20 = vadd.f32 %v2755_v37, %v2610_v30  ;;  %v2613_v59 = vmul.f32 0.25, %v8024_v35  ;;  %v2775_v37 = vadd.f32 %v2759_v13, %v2614_v54 }
 0x825   : > { %v2622_v54 = vmul.f32 0.25, %v2601_v24  ;;  %v2859_v13 = vsel %vm11120_vm14, %v7798_v48, 0.0  ;;  %vm11137_vm14 = vcmp.eq.s32.totalorder %v10694_v27, 4294967295 }
 0x826   : > { %v3346_v25 = vadd.f32 %v3330_v2, %v3250_v47  ;;  %v2760_v2 = vsel %vm505_vm6, %v7767_v31, 0.0  ;;  %v2763_v31 = vsel %vm508_vm12, %v7778_v34, 0.0 }
 0x827   : > { %v8134_v63 = vpop.permute.xlu2 %3387  ;;  %v3364_v40 = vpop.permute.xlu1 %3363 }
 0x828   : > { %v3426_v56 = vsel %vm11105_vm10, %v3364_v40, 0.0  ;;  %v2772_v40 = vadd.f32 %v2756_v23, %v2611_v16  ;;  %vm11113_vm10 = vcmp.eq.s32.totalorder %v5733_v46, 4294967292  ;;  %v2777_v23 = vadd.f32 %v2761_v9, %v2616_v61  ;;  %v2604_v36 = vpop.f32.mrf.mxu3  ;;  %v11124_v9 = vld [vmem:[#allocation88_spill] sm:$0xff]  ;;  %v11126_v61 = vld [vmem:[#allocation158_spill] sm:$0xff] }
 0x829   : > { %v3460_v39 = vpop.permute.xlu0 %3459  ;;  %v3442_v62 = vadd.f32 %v3426_v56, %v3346_v25  ;;  %v2774_v25 = vadd.f32 %v2758_v42, %v2613_v59  ;;  %v2762_v35 = vsel %vm11113_vm10, %v7745_v28, 0.0  ;;  %v2765_v28 = vsel %vm11115_vm8, %v7752_v26, 0.0  ;;  %v11121_v59 = vld [vmem:[#allocation161_spill] sm:$0xff] }
 0x82a   : > { %v3522_v1 = vsel %vm11108_vm0, %v3460_v39, 0.0  ;;  %v2615_v39 = vmul.f32 0.25, %v8045_v11  ;;  %v2619_v11 = vmul.f32 0.25, %v8093_v4  ;;  %v2778_v30 = vadd.f32 %v2762_v35, %v2617_v43  ;;  %v11128_v35 = vld [vmem:[#allocation167_spill] sm:$0xff] }
 0x82b   : > { %v3538_v56 = vadd.f32 %v3522_v1, %v3442_v62  ;;  %v2618_v62 = vmul.f32 0.25, %v8083_v57  ;;  %v2620_v16 = vmul.f32 0.25, %v2596_v5  ;;  %vm11116_vm0 = vcmp.eq.s32.totalorder %v5743_v45, 4294967293 }
 0x82c   : > { %v2776_v50 = vadd.f32 %v2760_v2, %v2615_v39  ;;  %v2780_v1 = vadd.f32 %v2764_v8, %v2619_v11  ;;  %v2851_v57 = vsel %vm11116_vm0, %v7773_v44, 0.0  ;;  %v2621_v5 = vmul.f32 0.25, %v2599_v29 }
 0x82d   : > { %v8191_v34 = vsel %vm6091_vm7, %v3538_v56, -10000.0  ;;  %v2779_v17 = vadd.f32 %v2763_v31, %v2618_v62  ;;  %v2854_v42 = vsel %vm11118_vm3, %v7782_v52, 0.0  ;;  %v2623_v22 = vmul.f32 0.25, %v2604_v36  ;;  %v11130_v36 = vld [vmem:[#allocation160_spill] sm:$0xff] }
 0x82e   : > { %v2856_v44 = vsel %vm11119_vm5, %v7789_v15, 0.0  ;;  %vm11122_vm10 = vcmp.eq.s32.totalorder %v10694_v27, 4294967293  ;;  %v2781_v2 = vadd.f32 %v2765_v28, %v2620_v16  ;;  %vm11125_vm13 = vcmp.eq.s32.totalorder %v11124_v9, 4294967292  ;;  %v11132_v28 = vld [vmem:[#allocation164_spill] sm:$0xff]  ;;  %v11134_v16 = vld [vmem:[#allocation163_spill] sm:$0xff] }
 0x82f   : > { %v8151_v47 = vpop.permute.xlu2 %3399  ;;  %v8153_v10 = vpop.permute.xlu1 %3375  ;;  %v2852_v29 = vsel %vm11122_vm10, %v11121_v59, 0.0  ;;  %v2768_v43 = vsel %vm11125_vm13, %v11123_v3, 0.0  ;;  %v8222_v52 = vadd.f32 %v2766_v32, %v2621_v5  ;;  %v2867_v24 = vadd.f32 %v2851_v57, %v2771_v20  ;;  %v11136_v57 = vld [vmem:[#allocation188_spill] sm:$0xff]  ;;  %v11148_v3 = vld [vmem:[#allocation201_spill] sm:$0xff] }
 0x830   : > { %v2783_v56 = vadd.f32 %v2767_v7, %v2622_v54  ;;  %v2870_v39 = vadd.f32 %v2854_v42, %v2774_v25  ;;  %vm11127_vm8 = vcmp.eq.s32.totalorder %v5793_v38, 4294967293  ;;  %vm11129_vm0 = vcmp.eq.s32.totalorder %v10694_v27, 4294967294  ;;  %v11140_v7 = vld [vmem:[#allocation165_spill] sm:$0xff]  ;;  %v11142_v54 = vld [vmem:[#allocation159_spill] sm:$0xff] }
 0x831   : > { %v2853_v15 = vsel %vm11127_vm8, %v11126_v61, 0.0  ;;  %v2948_v48 = vsel %vm11129_vm0, %v11128_v35, 0.0  ;;  %v2784_v31 = vadd.f32 %v2768_v43, %v2623_v22  ;;  %v8230_v8 = vadd.f32 %v2856_v44, %v2776_v50 }
 0x832   : > { %v8232_v62 = vadd.f32 %v2859_v13, %v2779_v17  ;;  %v2868_v11 = vadd.f32 %v2852_v29, %v2772_v40  ;;  %v2855_v20 = vsel %vm11131_vm1, %v11130_v36, 0.0  ;;  %vm11133_vm3 = vcmp.eq.s32.totalorder %v5880_v58, 4294967293  ;;  %v11138_v17 = vld [vmem:[#allocation166_spill] sm:$0xff]  ;;  %v11144_v13 = vld [vmem:[#allocation168_spill] sm:$0xff]  ;;  %v11146_v29 = vld [vmem:[#allocation175_spill] sm:$0xff] }
 0x833   : > { %v2857_v25 = vsel %vm11133_vm3, %v11132_v28, 0.0  ;;  %vm11135_vm5 = vcmp.eq.s32.totalorder %v5733_v46, 4294967293  ;;  %v3044_v50 = vsel %vm11137_vm14, %v11136_v57, 0.0  ;;  %v2869_v5 = vadd.f32 %v2853_v15, %v2773_v33  ;;  %v11150_v57 = vld [vmem:[#allocation185_spill] sm:$0xff] }
 0x834   : > { %v2858_v32 = vsel %vm11135_vm5, %v11134_v16, 0.0  ;;  %vm11139_vm10 = vcmp.eq.s32.totalorder %v5777_v12, 4294967293  ;;  %vm11141_vm13 = vcmp.eq.s32.totalorder %v5790_v49, 4294967293  ;;  %v2964_v22 = vadd.f32 %v2948_v48, %v2868_v11 }
 0x835   : > { %v2860_v40 = vsel %vm11139_vm10, %v11138_v17, 0.0  ;;  %v2861_v42 = vsel %vm11141_vm13, %v11140_v7, 0.0  ;;  %vm11143_vm8 = vcmp.eq.s32.totalorder %v5945_v19, 4294967293  ;;  %vm11145_vm0 = vcmp.eq.s32.totalorder %v11124_v9, 4294967293  ;;  %v11152_v7 = vld [vmem:[#allocation213_spill] sm:$0xff] }
 0x836   : > { %v8255_v44 = vsel %vm11143_vm8, %v11142_v54, 0.0  ;;  %v2864_v59 = vsel %vm11145_vm0, %v11144_v13, 0.0  ;;  %vm11147_vm1 = vcmp.eq.s32.totalorder %v5824_v51, 4294967294  ;;  %vm11149_vm3 = vcmp.eq.s32.totalorder %v10694_v27, 0  ;;  %v11154_v13 = vld [vmem:[#allocation169_spill] sm:$0xff] }
 0x837   : > { %v8199_v4 = vpop.permute.xlu2 %3411  ;;  %3570 = vmax.xlane.f32.xlu2 %v8191_v34  ;;  %v8202_v26 = vpop.permute.xlu1 %3383  ;;  %v2951_v33 = vsel %vm11147_vm1, %v11146_v29, 0.0  ;;  %v3140_v43 = vsel %vm11149_vm3, %v11148_v3, 0.0  ;;  %v2871_v35 = vadd.f32 %v2855_v20, %v2775_v37  ;;  %v2873_v48 = vadd.f32 %v2857_v25, %v2777_v23  ;;  %v11156_v23 = vld [vmem:[#allocation170_spill] sm:$0xff]  ;;  %v11160_v20 = vld [vmem:[#allocation208_spill] sm:$0xff] }
 0x838   : > { %v2874_v11 = vadd.f32 %v2858_v32, %v2778_v30  ;;  %v3060_v36 = vadd.f32 %v3044_v50, %v2964_v22  ;;  %v2876_v28 = vadd.f32 %v2860_v40, %v2780_v1  ;;  %v2877_v16 = vadd.f32 %v2861_v42, %v2781_v2  ;;  %v11158_v1 = vld [vmem:[#allocation171_spill] sm:$0xff]  ;;  %v11163_v50 = vld [vmem:[#allocation172_spill] sm:$0xff]  ;;  %v11165_v40 = vld [vmem:[#allocation173_spill] sm:$0xff] }
 0x839   : > { %vm11151_vm5 = vcmp.eq.s32.totalorder %v5824_v51, 4294967295  ;;  %vm11153_vm14 = vcmp.eq.s32.totalorder %v10694_v27, 1  ;;  %vm11155_vm10 = vcmp.eq.s32.totalorder %v5837_v53, 4294967293  ;;  %v2880_v3 = vadd.f32 %v2864_v59, %v2784_v31 }
 0x83a   : > { %v3047_v17 = vsel %vm11151_vm5, %v11150_v57, 0.0  ;;  %v3236_v54 = vsel %vm11153_vm14, %v11152_v7, 0.0  ;;  %v2863_v29 = vsel %vm11155_vm10, %v11154_v13, 0.0  ;;  %v2967_v41 = vadd.f32 %v2951_v33, %v2871_v35 }
 0x83b   : > { %v3156_v37 = vadd.f32 %v3140_v43, %v3060_v36  ;;  %vm11157_vm13 = vcmp.eq.s32.totalorder %v5909_v0, 4294967294  ;;  %vm11159_vm8 = vcmp.eq.s32.totalorder %v5880_v58, 4294967294  ;;  %vm11161_vm0 = vcmp.eq.s32.totalorder %v5824_v51, 0  ;;  %v11167_v43 = vld [vmem:[#allocation178_spill] sm:$0xff] }
 0x83c   : > { %v2950_v30 = vsel %vm11157_vm13, %v11156_v23, 0.0  ;;  %v2953_v2 = vsel %vm11159_vm8, %v11158_v1, 0.0  ;;  %v3143_v25 = vsel %vm11161_vm0, %v11160_v20, 0.0  ;;  %vm11162_vm1 = vcmp.eq.s32.totalorder %v10694_v27, 2  ;;  %v11169_v36 = vld [vmem:[#allocation214_spill] sm:$0xff] }
 0x83d   : > { %v3332_v32 = vsel %vm11162_vm1, %v8079_v60, 0.0  ;;  %vm11164_vm3 = vcmp.eq.s32.totalorder %v5743_v45, 4294967294  ;;  %vm11166_vm5 = vcmp.eq.s32.totalorder %v5777_v12, 4294967294  ;;  %v3063_v22 = vadd.f32 %v3047_v17, %v2967_v41  ;;  %v3480_v41 = vpop.permute.xlu0 %3479 }
 0x83e   : > { %v2947_v31 = vsel %vm11164_vm3, %v11163_v50, 0.0  ;;  %v2956_v42 = vsel %vm11166_vm5, %v11165_v40, 0.0  ;;  %v3252_v59 = vadd.f32 %v3236_v54, %v3156_v37  ;;  %v8297_v33 = vadd.f32 %v2863_v29, %v2783_v56  ;;  %v11172_v54 = vld [vmem:[#allocation174_spill] sm:$0xff] }
 0x83f   : > { %v8266_v61 = vpop.permute.xlu2 %3423  ;;  %v8268_v15 = vpop.permute.xlu1 %3395  ;;  %vm11168_vm14 = vcmp.eq.s32.totalorder %v5733_v46, 4294967294  ;;  %vm11170_vm10 = vcmp.eq.s32.totalorder %v5824_v51, 1  ;;  %vm11171_vm13 = vcmp.eq.s32.totalorder %v10694_v27, 3  ;;  %v2966_v7 = vadd.f32 %v2950_v30, %v2870_v39 }
 0x840   : > { %v2954_v35 = vsel %vm11168_vm14, %v11167_v43, 0.0  ;;  %v3239_v60 = vsel %vm11170_vm10, %v11169_v36, 0.0  ;;  %v3428_v57 = vsel %vm11171_vm13, %v8091_v55, 0.0  ;;  %v2969_v13 = vadd.f32 %v2953_v2, %v2873_v48  ;;  %v11175_v55 = vld [vmem:[#allocation177_spill] sm:$0xff] }
 0x841   : > { %v3159_v23 = vadd.f32 %v3143_v25, %v3063_v22  ;;  %v3348_v1 = vadd.f32 %v3332_v32, %v3252_v59  ;;  %v2963_v17 = vadd.f32 %v2947_v31, %v2867_v24  ;;  %v8308_v56 = vadd.f32 %v2956_v42, %v2876_v28  ;;  %v11177_v28 = vld [vmem:[#allocation179_spill] sm:$0xff]  ;;  %v11183_v31 = vld [vmem:[#allocation180_spill] sm:$0xff]  ;;  %v11185_v42 = vld [vmem:[#allocation182_spill] sm:$0xff] }
 0x842   : > { %vm11173_vm8 = vcmp.eq.s32.totalorder %v5793_v38, 4294967294  ;;  %vm11174_vm0 = vcmp.eq.s32.totalorder %v5824_v51, 2  ;;  %v2970_v50 = vadd.f32 %v2954_v35, %v2874_v11  ;;  %vm11176_vm1 = vcmp.eq.s32.totalorder %v5998_v18, 4294967294  ;;  %v11179_v25 = vld [vmem:[#allocation187_spill] sm:$0xff] }
 0x843   : > { %v2949_v29 = vsel %vm11173_vm8, %v11172_v54, 0.0  ;;  %v3335_v37 = vsel %vm11174_vm0, %v8068_v6, 0.0  ;;  %v2952_v39 = vsel %vm11176_vm1, %v11175_v55, 0.0  ;;  %v3255_v48 = vadd.f32 %v3239_v60, %v3159_v23  ;;  %v11187_v60 = vld [vmem:[#allocation183_spill] sm:$0xff] }
 0x844   : > { %v3444_v30 = vadd.f32 %v3428_v57, %v3348_v1  ;;  %vm11178_vm3 = vcmp.eq.s32.totalorder %v5751_v14, 4294967294  ;;  %vm11180_vm5 = vcmp.eq.s32.totalorder %v5733_v46, 4294967295  ;;  %vm11181_vm14 = vcmp.eq.s32.totalorder %v5824_v51, 3  ;;  %v11189_v57 = vld [vmem:[#allocation211_spill] sm:$0xff] }
 0x845   : > { %v2955_v2 = vsel %vm11178_vm3, %v11177_v28, 0.0  ;;  %v3050_v32 = vsel %vm11180_vm5, %v11179_v25, 0.0  ;;  %v3431_v6 = vsel %vm11181_vm14, %v8202_v26, 0.0  ;;  %vm11182_vm10 = vcmp.eq.s32.totalorder %v10694_v27, 4  ;;  %v11197_v28 = vld [vmem:[#allocation191_spill] sm:$0xff] }
 0x846   : > { %vm11184_vm13 = vcmp.eq.s32.totalorder %v5790_v49, 4294967294  ;;  %vm11186_vm8 = vcmp.eq.s32.totalorder %v11124_v9, 4294967294  ;;  %v3351_v59 = vadd.f32 %v3335_v37, %v3255_v48  ;;  %v2965_v35 = vadd.f32 %v2949_v29, %v2869_v5  ;;  %v11193_v48 = vld [vmem:[#allocation217_spill] sm:$0xff] }
 0x847   : > { %v8316_v20 = vpop.permute.xlu1 %3407  ;;  %v2957_v40 = vsel %vm11184_vm13, %v11183_v31, 0.0  ;;  %v2960_v22 = vsel %vm11186_vm8, %v11185_v42, 0.0  ;;  %v2968_v36 = vadd.f32 %v2952_v39, %v8230_v8  ;;  %vm11188_vm0 = vcmp.eq.s32.totalorder %v5793_v38, 4294967295  ;;  %v11191_v8 = vld [vmem:[#allocation186_spill] sm:$0xff] }
 0x848   : > { %v3468_v24 = vpop.permute.xlu2 %3467  ;;  %v3045_v26 = vsel %vm11188_vm0, %v11187_v60, 0.0  ;;  %vm11190_vm1 = vcmp.eq.s32.totalorder %v5733_v46, 0  ;;  %v8346_v1 = vadd.f32 %v2955_v2, %v8232_v62  ;;  %v3066_v54 = vadd.f32 %v3050_v32, %v2970_v50  ;;  %v11199_v2 = vld [vmem:[#allocation194_spill] sm:$0xff]  ;;  %v3492_v60 = vpop.permute.xlu0 %3491 }
 0x849   : > { %v3524_v11 = vsel %vm11182_vm10, %v3468_v24, 0.0  ;;  %v3146_v23 = vsel %vm11190_vm1, %v11189_v57, 0.0  ;;  %v3447_v55 = vadd.f32 %v3431_v6, %v3351_v59  ;;  %v2973_v5 = vadd.f32 %v2957_v40, %v2877_v16  ;;  %v11195_v24 = vld [vmem:[#allocation190_spill] sm:$0xff]  ;;  %v11206_v59 = vld [vmem:[#allocation189_spill] sm:$0xff] }
 0x84a   : > { %v3540_v43 = vadd.f32 %v3524_v11, %v3444_v30  ;;  %v2976_v29 = vadd.f32 %v2960_v22, %v2880_v3  ;;  %vm11192_vm3 = vcmp.eq.s32.totalorder %v5743_v45, 4294967295  ;;  %vm11194_vm5 = vcmp.eq.s32.totalorder %v5733_v46, 1  ;;  %v11201_v32 = vld [vmem:[#allocation198_spill] sm:$0xff] }
 0x84b   : > { %v3043_v39 = vsel %vm11192_vm3, %v11191_v8, 0.0  ;;  %v3242_v30 = vsel %vm11194_vm5, %v11193_v48, 0.0  ;;  %v3061_v62 = vadd.f32 %v3045_v26, %v2965_v35  ;;  %vm11196_vm14 = vcmp.eq.s32.totalorder %v5790_v49, 4294967295  ;;  %v11203_v11 = vld [vmem:[#allocation234_spill] sm:$0xff]  ;;  %v11211_v48 = vld [vmem:[#allocation193_spill] sm:$0xff] }
 0x84c   : > { %v8350_v37 = vsel %vm6091_vm7, %v3540_v43, -10000.0  ;;  %v3053_v50 = vsel %vm11196_vm14, %v11195_v24, 0.0  ;;  %vm11198_vm10 = vcmp.eq.s32.totalorder %v5909_v0, 4294967295  ;;  %v3162_v3 = vadd.f32 %v3146_v23, %v3066_v54  ;;  %v11208_v54 = vld [vmem:[#allocation219_spill] sm:$0xff] }
 0x84d   : > { %3574 = vmax.xlane.f32.xlu1 %v8350_v37  ;;  %v3046_v16 = vsel %vm11198_vm10, %v11197_v28, 0.0  ;;  %vm11200_vm13 = vcmp.eq.s32.totalorder %v5880_v58, 4294967295  ;;  %vm11202_vm8 = vcmp.eq.s32.totalorder %v5743_v45, 0  ;;  %vm11204_vm0 = vcmp.eq.s32.totalorder %v5733_v46, 2 }
 0x84e   : > { %v3049_v25 = vsel %vm11200_vm13, %v11199_v2, 0.0  ;;  %v3139_v6 = vsel %vm11202_vm8, %v11201_v32, 0.0  ;;  %v3338_v31 = vsel %vm11204_vm0, %v11203_v11, 0.0  ;;  %vm11205_vm1 = vcmp.eq.s32.totalorder %v5824_v51, 4  ;;  %v11221_v2 = vld [vmem:[#allocation205_spill] sm:$0xff] }
 0x84f   : > { %v3527_v40 = vsel %vm11205_vm1, %v3480_v41, 0.0  ;;  %v8376_v42 = vpop.permute.xlu1 %3419  ;;  %v3059_v22 = vadd.f32 %v3043_v39, %v2963_v17  ;;  %vm11207_vm3 = vcmp.eq.s32.totalorder %v5998_v18, 4294967295  ;;  %v3258_v35 = vadd.f32 %v3242_v30, %v3162_v3  ;;  %v11213_v30 = vld [vmem:[#allocation200_spill] sm:$0xff] }
 0x850   : > { %v3048_v43 = vsel %vm11207_vm3, %v11206_v59, 0.0  ;;  %v3543_v26 = vadd.f32 %v3527_v40, %v3447_v55  ;;  %v3069_v57 = vadd.f32 %v3053_v50, %v2973_v5  ;;  %v3062_v23 = vadd.f32 %v3046_v16, %v2966_v7  ;;  %v11215_v7 = vld [vmem:[#allocation203_spill] sm:$0xff]  ;;  %v11217_v50 = vld [vmem:[#allocation212_spill] sm:$0xff] }
 0x851   : > { %vm11209_vm5 = vcmp.eq.s32.totalorder %v5743_v45, 1  ;;  %vm11210_vm14 = vcmp.eq.s32.totalorder %v5733_v46, 3  ;;  %vm11212_vm10 = vcmp.eq.s32.totalorder %v11124_v9, 4294967295  ;;  %v3065_v39 = vadd.f32 %v3049_v25, %v2969_v13 }
 0x852   : > { %v3235_v8 = vsel %vm11209_vm5, %v11208_v54, 0.0  ;;  %v3434_v41 = vsel %vm11210_vm14, %v8268_v15, 0.0  ;;  %v3056_v17 = vsel %vm11212_vm10, %v11211_v48, 0.0  ;;  %v3155_v24 = vadd.f32 %v3139_v6, %v3059_v22  ;;  %v11219_v15 = vld [vmem:[#allocation226_spill] sm:$0xff]  ;;  %v3476_v6 = vpop.permute.xlu2 %3475  ;;  %v11222_v22 = vld [vmem:[#allocation220_spill] sm:$0xff] }
 0x853   : > { %v3354_v28 = vadd.f32 %v3338_v31, %v3258_v35  ;;  %vm11214_vm13 = vcmp.eq.s32.totalorder %v5909_v0, 0  ;;  %vm11216_vm8 = vcmp.eq.s32.totalorder %v5880_v58, 0  ;;  %vm11218_vm0 = vcmp.eq.s32.totalorder %v5790_v49, 0  ;;  %v11224_v35 = vld [vmem:[#allocation242_spill] sm:$0xff] }
 0x854   : > { %v3142_v55 = vsel %vm11214_vm13, %v11213_v30, 0.0  ;;  %v3145_v5 = vsel %vm11216_vm8, %v11215_v7, 0.0  ;;  %v3149_v16 = vsel %vm11218_vm0, %v11217_v50, 0.0  ;;  %vm11220_vm1 = vcmp.eq.s32.totalorder %v5743_v45, 2  ;;  %v11226_v30 = vld [vmem:[#allocation216_spill] sm:$0xff]  ;;  %v11231_v7 = vld [vmem:[#allocation222_spill] sm:$0xff] }
 0x855   : > { %v3331_v3 = vsel %vm11220_vm1, %v11219_v15, 0.0  ;;  %v3141_v13 = vsel %vm966_vm15, %v11221_v2, 0.0  ;;  %v3251_v25 = vadd.f32 %v3235_v8, %v3155_v24  ;;  %v3450_v32 = vadd.f32 %v3434_v41, %v3354_v28  ;;  %v11235_v50 = vld [vmem:[#allocation237_spill] sm:$0xff]  ;;  %v11239_v2 = vld [vmem:[#allocation218_spill] sm:$0xff] }
 0x856   : > { %v8407_v11 = vsel %vm6091_vm7, %v3543_v26, -10000.0  ;;  %v3064_v31 = vadd.f32 %v3048_v43, %v2968_v36  ;;  %v3072_v40 = vadd.f32 %v3056_v17, %v2976_v29  ;;  %vm11223_vm3 = vcmp.eq.s32.totalorder %v5790_v49, 1  ;;  %v11228_v29 = vld [vmem:[#allocation236_spill] sm:$0xff] }
 0x857   : > { %v3245_v59 = vsel %vm11223_vm3, %v11222_v22, 0.0  ;;  %vm11225_vm5 = vcmp.eq.s32.totalorder %v5743_v45, 3  ;;  %3580 = vmax.xlane.f32.xlu1 %v8407_v11  ;;  %v3158_v48 = vadd.f32 %v3142_v55, %v3062_v23  ;;  %v3161_v8 = vadd.f32 %v3145_v5, %v3065_v39 }
 0x858   : > { %v3427_v54 = vsel %vm11225_vm5, %v11224_v35, 0.0  ;;  %v3165_v41 = vadd.f32 %v3149_v16, %v3069_v57  ;;  %v3347_v24 = vadd.f32 %v3331_v3, %v3251_v25  ;;  %v3157_v28 = vadd.f32 %v3141_v13, %v3061_v62  ;;  %v3464_v57 = vpop.permute.xlu1 %3463  ;;  %v11233_v62 = vld [vmem:[#allocation215_spill] sm:$0xff] }
 0x859   : > { %vm11227_vm14 = vcmp.eq.s32.totalorder %v5909_v0, 1  ;;  %vm11229_vm10 = vcmp.eq.s32.totalorder %v5790_v49, 2  ;;  %vm11230_vm13 = vcmp.eq.s32.totalorder %v5733_v46, 4  ;;  %vm11232_vm8 = vcmp.eq.s32.totalorder %v5793_v38, 1 }
 0x85a   : > { %v3238_v36 = vsel %vm11227_vm14, %v11226_v30, 0.0  ;;  %v3341_v43 = vsel %vm11229_vm10, %v11228_v29, 0.0  ;;  %v3530_v26 = vsel %vm11230_vm13, %v3492_v60, 0.0  ;;  %v3261_v17 = vadd.f32 %v3245_v59, %v3165_v41  ;;  %v11241_v59 = vld [vmem:[#allocation223_spill] sm:$0xff]  ;;  %v11243_v41 = vld [vmem:[#allocation230_spill] sm:$0xff] }
 0x85b   : > { %v3237_v23 = vsel %vm11232_vm8, %v11231_v7, 0.0  ;;  %v3443_v39 = vadd.f32 %v3427_v54, %v3347_v24  ;;  %v3546_v55 = vadd.f32 %v3530_v26, %v3450_v32  ;;  %vm11234_vm0 = vcmp.eq.s32.totalorder %v11124_v9, 0  ;;  %v3504_v32 = vpop.permute.xlu0 %3503  ;;  %v11245_v24 = vld [vmem:[#allocation245_spill] sm:$0xff]  ;;  %v11247_v26 = vld [vmem:[#allocation196_spill] sm:$0xff] }
 0x85c   : > { %v3152_v5 = vsel %vm11234_vm0, %v11233_v62, 0.0  ;;  %vm11236_vm1 = vcmp.eq.s32.totalorder %v5909_v0, 2  ;;  %vm11237_vm3 = vcmp.eq.s32.totalorder %v5790_v49, 3  ;;  %vm11238_vm5 = vcmp.eq.s32.totalorder %v5743_v45, 4 }
 0x85d   : > { %v3334_v16 = vsel %vm11236_vm1, %v11235_v50, 0.0  ;;  %v3437_v60 = vsel %vm11237_vm3, %v8316_v20, 0.0  ;;  %v3523_v15 = vsel %vm11238_vm5, %v3464_v57, 0.0  ;;  %v3254_v3 = vadd.f32 %v3238_v36, %v3158_v48 }
 0x85e   : > { %vm11240_vm14 = vcmp.eq.s32.totalorder %v5880_v58, 1  ;;  %v3357_v25 = vadd.f32 %v3341_v43, %v3261_v17  ;;  %v3539_v22 = vadd.f32 %v3523_v15, %v3443_v39  ;;  %vm11242_vm10 = vcmp.eq.s32.totalorder %v11124_v9, 1  ;;  %v11251_v39 = vld [vmem:[#allocation202_spill] sm:$0xff] }
 0x85f   : > { %v3241_v13 = vsel %vm11240_vm14, %v11239_v2, 0.0  ;;  %v3248_v35 = vsel %vm11242_vm10, %v11241_v59, 0.0  ;;  %v3253_v54 = vadd.f32 %v3237_v23, %v3157_v28  ;;  %vm11244_vm13 = vcmp.eq.s32.totalorder %v5793_v38, 2  ;;  %v11260_v59 = vld [vmem:[#allocation192_spill] sm:$0xff] }
 0x860   : > { %v3333_v20 = vsel %vm11244_vm13, %v11243_v41, 0.0  ;;  %vm11246_vm8 = vcmp.eq.s32.totalorder %v5909_v0, 3  ;;  %v3350_v30 = vadd.f32 %v3334_v16, %v3254_v3  ;;  %v3453_v36 = vadd.f32 %v3437_v60, %v3357_v25  ;;  %v3488_v16 = vpop.permute.xlu2 %3487  ;;  %v11255_v60 = vld [vmem:[#allocation239_spill] sm:$0xff]  ;;  %v11258_v3 = vld [vmem:[#allocation225_spill] sm:$0xff]  ;;  %v3472_v25 = vpop.permute.xlu1 %3471 }
 0x861   : > { %v3430_v48 = vsel %vm11246_vm8, %v11245_v24, 0.0  ;;  %v8452_v29 = vsel %vm6091_vm7, %v3546_v55, -10000.0  ;;  %v8456_v43 = vsel %vm6091_vm7, %v3539_v22, -10000.0  ;;  %vm11248_vm0 = vcmp.eq.s32.totalorder %v5777_v12, 4294967295 }
 0x862   : > { %v3052_v28 = vsel %vm11248_vm0, %v11247_v26, 0.0  ;;  %v3168_v17 = vadd.f32 %v3152_v5, %v3072_v40  ;;  %vm11249_vm1 = vcmp.eq.s32.totalorder %v5793_v38, 3  ;;  %vm11250_vm3 = vcmp.eq.s32.totalorder %v5909_v0, 4  ;;  %3586 = vmax.xlane.f32.xlu1 %v8452_v29  ;;  %3572 = vmax.xlane.f32.xlu0 %v8456_v43  ;;  %v11253_v5 = vld [vmem:[#allocation238_spill] sm:$0xff] }
 0x863   : > { %v3429_v7 = vsel %vm11249_vm1, %v8153_v10, 0.0  ;;  %v3526_v23 = vsel %vm11250_vm3, %v3476_v6, 0.0  ;;  %vm11252_vm5 = vcmp.eq.s32.totalorder %v5998_v18, 0  ;;  %v3257_v55 = vadd.f32 %v3241_v13, %v3161_v8  ;;  %v11264_v26 = vld [vmem:[#allocation206_spill] sm:$0xff] }
 0x864   : > { %v3144_v57 = vsel %vm11252_vm5, %v11251_v39, 0.0  ;;  %v3349_v62 = vadd.f32 %v3333_v20, %v3253_v54  ;;  %v3446_v50 = vadd.f32 %v3430_v48, %v3350_v30  ;;  %v3264_v40 = vadd.f32 %v3248_v35, %v3168_v17  ;;  %v3516_v39 = vpop.permute.xlu0 %3515 }
 0x865   : > { %vm11254_vm14 = vcmp.eq.s32.totalorder %v11124_v9, 2  ;;  %vm11256_vm10 = vcmp.eq.s32.totalorder %v5880_v58, 2  ;;  %vm11257_vm13 = vcmp.eq.s32.totalorder %v5790_v49, 4  ;;  %vm11259_vm8 = vcmp.eq.s32.totalorder %v5998_v18, 1 }
 0x866   : > { %v3344_v10 = vsel %vm11254_vm14, %v11253_v5, 0.0  ;;  %v3337_v6 = vsel %vm11256_vm10, %v11255_v60, 0.0  ;;  %v3533_v15 = vsel %vm11257_vm13, %v3504_v32, 0.0  ;;  %v3240_v2 = vsel %vm11259_vm8, %v11258_v3, 0.0 }
 0x867   : > { %v3445_v8 = vadd.f32 %v3429_v7, %v3349_v62  ;;  %v3542_v13 = vadd.f32 %v3526_v23, %v3446_v50  ;;  %v3549_v22 = vadd.f32 %v3533_v15, %v3453_v36  ;;  %vm11261_vm0 = vcmp.eq.s32.totalorder %v5751_v14, 4294967295  ;;  %v11266_v7 = vld [vmem:[#allocation228_spill] sm:$0xff] }
 0x868   : > { %v3051_v35 = vsel %vm11261_vm0, %v11260_v59, 0.0  ;;  %v3160_v54 = vadd.f32 %v3144_v57, %v3064_v31  ;;  %vm11262_vm1 = vcmp.eq.s32.totalorder %v11124_v9, 3  ;;  %vm11263_vm3 = vcmp.eq.s32.totalorder %v5793_v38, 4  ;;  %v11268_v23 = vld [vmem:[#allocation240_spill] sm:$0xff] }
 0x869   : > { %v3440_v41 = vsel %vm11262_vm1, %v8376_v42, 0.0  ;;  %v3525_v32 = vsel %vm11263_vm3, %v3472_v25, 0.0  ;;  %v3068_v20 = vadd.f32 %v3052_v28, %v8308_v56  ;;  %v3360_v24 = vadd.f32 %v3344_v10, %v3264_v40  ;;  %v11270_v62 = vld [vmem:[#allocation176_spill] sm:$0xff]  ;;  %v11272_v40 = vld [vmem:[#allocation221_spill] sm:$0xff] }
 0x86a   : > { %v3353_v48 = vadd.f32 %v3337_v6, %v3257_v55  ;;  %v3541_v30 = vadd.f32 %v3525_v32, %v3445_v8  ;;  %vm11265_vm5 = vcmp.eq.s32.totalorder %v5777_v12, 0  ;;  %v3256_v17 = vadd.f32 %v3240_v2, %v3160_v54  ;;  %v11275_v8 = vld [vmem:[#allocation199_spill] sm:$0xff]  ;;  %v11277_v25 = vld [vmem:[#allocation204_spill] sm:$0xff]  ;;  %v3484_v32 = vpop.permute.xlu1 %3483 }
 0x86b   : > { %v3148_v36 = vsel %vm11265_vm5, %v11264_v26, 0.0  ;;  %vm11267_vm14 = vcmp.eq.s32.totalorder %v5998_v18, 2  ;;  %vm11269_vm10 = vcmp.eq.s32.totalorder %v5880_v58, 3  ;;  %v3456_v57 = vadd.f32 %v3440_v41, %v3360_v24  ;;  %v3500_v41 = vpop.permute.xlu2 %3499 }
 0x86c   : > { %v3336_v31 = vsel %vm11267_vm14, %v11266_v7, 0.0  ;;  %v3433_v42 = vsel %vm11269_vm10, %v11268_v23, 0.0  ;;  %v8502_v56 = vsel %vm6091_vm7, %v3549_v22, -10000.0  ;;  %v8506_v28 = vsel %vm6091_vm7, %v3542_v13, -10000.0 }
 0x86d   : > { %v8510_v55 = vsel %vm6091_vm7, %v3541_v30, -10000.0  ;;  %vm11271_vm13 = vcmp.eq.s32.totalorder %v5837_v53, 4294967294  ;;  %v3244_v5 = vsel %vm1085_vm11, %v11272_v40, 0.0  ;;  %vm11273_vm8 = vcmp.eq.s32.totalorder %v5998_v18, 3  ;;  %3592 = vmax.xlane.f32.xlu1 %v8502_v56  ;;  %3578 = vmax.xlane.f32.xlu0 %v8506_v28  ;;  %v11281_v30 = vld [vmem:[#allocation227_spill] sm:$0xff]  ;;  %v2606_v40 = vpop.f32.mrf.mxu3 }
 0x86e   : > { %v2959_v50 = vsel %vm11271_vm13, %v11270_v62, 0.0  ;;  %v3432_v10 = vsel %vm11273_vm8, %v8134_v63, 0.0  ;;  %vm11274_vm0 = vcmp.eq.s32.totalorder %v5880_v58, 4  ;;  %v3067_v6 = vadd.f32 %v3051_v35, %v8346_v1  ;;  %3576 = vmax.xlane.f32.xlu2 %v8510_v55  ;;  %v11290_v62 = vld [vmem:[#allocation243_spill] sm:$0xff] }
 0x86f   : > { %v3529_v60 = vsel %vm11274_vm0, %v3488_v16, 0.0  ;;  %v3164_v15 = vadd.f32 %v3148_v36, %v3068_v20  ;;  %v3352_v3 = vadd.f32 %v3336_v31, %v3256_v17  ;;  %v3449_v2 = vadd.f32 %v3433_v42, %v3353_v48  ;;  %v11279_v16 = vld [vmem:[#allocation241_spill] sm:$0xff] }
 0x870   : > { %vm11276_vm1 = vcmp.eq.s32.totalorder %v5837_v53, 4294967295  ;;  %vm11278_vm3 = vcmp.eq.s32.totalorder %v5751_v14, 0  ;;  %v3340_v22 = vsel %vm1197_vm2, %v11279_v16, 0.0  ;;  %vm11280_vm5 = vcmp.eq.s32.totalorder %v11124_v9, 4  ;;  %v11284_v17 = vld [vmem:[#allocation181_spill] sm:$0xff] }
 0x871   : > { %v3055_v13 = vsel %vm11276_vm1, %v11275_v8, 0.0  ;;  %v3147_v63 = vsel %vm11278_vm3, %v11277_v25, 0.0  ;;  %v3536_v1 = vsel %vm11280_vm5, %v3516_v39, 0.0  ;;  %v3260_v59 = vadd.f32 %v3244_v5, %v3164_v15  ;;  %v11292_v15 = vld [vmem:[#allocation195_spill] sm:$0xff] }
 0x872   : > { %v3448_v35 = vadd.f32 %v3432_v10, %v3352_v3  ;;  %v3545_v54 = vadd.f32 %v3529_v60, %v3449_v2  ;;  %v3552_v20 = vadd.f32 %v3536_v1, %v3456_v57  ;;  %v2878_v24 = vadd.f32 %v8255_v44, %v8222_v52  ;;  %v11286_v57 = vld [vmem:[#allocation209_spill] sm:$0xff]  ;;  %v11288_v44 = vld [vmem:[#allocation231_spill] sm:$0xff]  ;;  %v11294_v2 = vld [vmem:[#allocation224_spill] sm:$0xff] }
 0x873   : > { %v2975_v48 = vadd.f32 %v2959_v50, %v8297_v33  ;;  %vm11282_vm14 = vcmp.eq.s32.totalorder %v5751_v14, 1  ;;  %vm11283_vm10 = vcmp.eq.s32.totalorder %v5998_v18, 4  ;;  %vm11285_vm13 = vcmp.eq.s32.totalorder %v5945_v19, 4294967294 }
 0x874   : > { %v3243_v26 = vsel %vm11282_vm14, %v11281_v30, 0.0  ;;  %v3528_v36 = vsel %vm11283_vm10, %v3484_v32, 0.0  ;;  %v2958_v7 = vsel %vm11285_vm13, %v11284_v17, 0.0  ;;  %v3163_v31 = vadd.f32 %v3147_v63, %v3067_v6  ;;  %v3496_v17 = vpop.permute.xlu1 %3495 }
 0x875   : > { %v3356_v23 = vadd.f32 %v3340_v22, %v3260_v59  ;;  %v3544_v42 = vadd.f32 %v3528_v36, %v3448_v35  ;;  %v3071_v39 = vadd.f32 %v3055_v13, %v2975_v48  ;;  %vm11287_vm8 = vcmp.eq.s32.totalorder %v5837_v53, 0  ;;  %v11297_v35 = vld [vmem:[#allocation157_spill] sm:$0xff] }
 0x876   : > { %v3151_v52 = vsel %vm11287_vm8, %v11286_v57, 0.0  ;;  %vm11289_vm0 = vcmp.eq.s32.totalorder %v5751_v14, 2  ;;  %vm11291_vm1 = vcmp.eq.s32.totalorder %v5777_v12, 3  ;;  %v3259_v5 = vadd.f32 %v3243_v26, %v3163_v31 }
 0x877   : > { %v3339_v33 = vsel %vm11289_vm0, %v11288_v44, 0.0  ;;  %v3436_v50 = vsel %vm11291_vm1, %v11290_v62, 0.0  ;;  %v8560_v10 = vsel %vm6091_vm7, %v3552_v20, -10000.0  ;;  %v8564_v60 = vsel %vm6091_vm7, %v3545_v54, -10000.0  ;;  %v11298_v54 = vld [vmem:[#allocation7_spill] sm:$0xff] }
 0x878   : > { %v8568_v6 = vsel %vm6091_vm7, %v3544_v42, -10000.0  ;;  %vm11293_vm3 = vcmp.eq.s32.totalorder %v5945_v19, 4294967295  ;;  %v3247_v8 = vsel %vm1088_vm4, %v11294_v2, 0.0  ;;  %vm11295_vm5 = vcmp.eq.s32.totalorder %v5751_v14, 3  ;;  %3598 = vmax.xlane.f32.xlu1 %v8560_v10  ;;  %3584 = vmax.xlane.f32.xlu0 %v8564_v60  ;;  %v11300_v20 = vld [vmem:[#allocation207_spill] sm:$0xff] }
 0x879   : > { %v3054_v3 = vsel %vm11293_vm3, %v11292_v15, 0.0  ;;  %v3435_v13 = vsel %vm11295_vm5, %v8151_v47, 0.0  ;;  %vm11296_vm14 = vcmp.eq.s32.totalorder %v5777_v12, 4  ;;  %v2974_v63 = vadd.f32 %v2958_v7, %v2878_v24  ;;  %3582 = vmax.xlane.f32.xlu2 %v8568_v6  ;;  %v11304_v7 = vld [vmem:[#allocation162_spill] sm:$0xff] }
 0x87a   : > { %v3532_v25 = vsel %vm11296_vm14, %v3500_v41, 0.0  ;;  %v3167_v16 = vadd.f32 %v3151_v52, %v3071_v39  ;;  %v3355_v22 = vadd.f32 %v3339_v33, %v3259_v5  ;;  %v3452_v1 = vadd.f32 %v3436_v50, %v3356_v23  ;;  %v11302_v41 = vld [vmem:[#allocation244_spill] sm:$0xff]  ;;  %v11306_v23 = vld [vmem:[#allocation229_spill] sm:$0xff]  ;;  %v3512_v33 = vpop.permute.xlu2 %3511 }
 0x87b   : > { %v2624_v59 = vmul.f32 0.25, %v2606_v40  ;;  %vm11299_vm10 = vcmp.eq.s32.totalorder %v11298_v54, 4294967292  ;;  %vm11301_vm13 = vcmp.eq.s32.totalorder %v5945_v19, 0  ;;  %vm11303_vm8 = vcmp.eq.s32.totalorder %v5837_v53, 2  ;;  %v11309_v50 = vld [vmem:[#allocation184_spill] sm:$0xff]  ;;  %v11311_v5 = vld [vmem:[#allocation233_spill] sm:$0xff] }
 0x87c   : > { %v2769_v32 = vsel %vm11299_vm10, %v11297_v35, 0.0  ;;  %v3150_v47 = vsel %vm11301_vm13, %v11300_v20, 0.0  ;;  %v3343_v48 = vsel %vm11303_vm8, %v11302_v41, 0.0  ;;  %v3070_v30 = vadd.f32 %v3054_v3, %v2974_v63  ;;  %v11313_v3 = vld [vmem:[#allocation246_spill] sm:$0xff] }
 0x87d   : > { %v3263_v24 = vadd.f32 %v3247_v8, %v3167_v16  ;;  %v3451_v26 = vadd.f32 %v3435_v13, %v3355_v22  ;;  %v3548_v36 = vadd.f32 %v3532_v25, %v3452_v1  ;;  %vm11305_vm0 = vcmp.eq.s32.totalorder %v11298_v54, 4294967293  ;;  %v11315_v16 = vld [vmem:[#allocation197_spill] sm:$0xff] }
 0x87e   : > { %v2865_v31 = vsel %vm11305_vm0, %v11304_v7, 0.0  ;;  %vm11307_vm1 = vcmp.eq.s32.totalorder %v5945_v19, 1  ;;  %vm11308_vm3 = vcmp.eq.s32.totalorder %v5751_v14, 4  ;;  %v2785_v57 = vadd.f32 %v2769_v32, %v2624_v59 }
 0x87f   : > { %v3246_v42 = vsel %vm11307_vm1, %v11306_v23, 0.0  ;;  %v3531_v39 = vsel %vm11308_vm3, %v3496_v17, 0.0  ;;  %v3166_v52 = vadd.f32 %v3150_v47, %v3070_v30  ;;  %v3359_v44 = vadd.f32 %v3343_v48, %v3263_v24  ;;  %v11319_v47 = vld [vmem:[#allocation210_spill] sm:$0xff]  ;;  %v11324_v23 = vld [vmem:[#allocation235_spill] sm:$0xff] }
 0x880   : > { %v3547_v62 = vadd.f32 %v3531_v39, %v3451_v26  ;;  %vm11310_vm5 = vcmp.eq.s32.totalorder %v11298_v54, 4294967294  ;;  %vm11312_vm14 = vcmp.eq.s32.totalorder %v5945_v19, 2  ;;  %vm11314_vm10 = vcmp.eq.s32.totalorder %v5837_v53, 3  ;;  %v3508_v26 = vpop.permute.xlu1 %3507 }
 0x881   : > { %v2961_v40 = vsel %vm11310_vm5, %v11309_v50, 0.0  ;;  %v3342_v15 = vsel %vm11312_vm14, %v11311_v5, 0.0  ;;  %v3439_v2 = vsel %vm11314_vm10, %v11313_v3, 0.0  ;;  %v2881_v8 = vadd.f32 %v2865_v31, %v2785_v57 }
 0x882   : > { %v3262_v13 = vadd.f32 %v3246_v42, %v3166_v52  ;;  %v8612_v25 = vsel %vm6091_vm7, %v3548_v36, -10000.0  ;;  %v8616_v63 = vsel %vm6091_vm7, %v3547_v62, -10000.0  ;;  %vm11316_vm13 = vcmp.eq.s32.totalorder %v11298_v54, 4294967295  ;;  %v11321_v36 = vld [vmem:[#allocation232_spill] sm:$0xff] }
 0x883   : > { %v3057_v22 = vsel %vm11316_vm13, %v11315_v16, 0.0  ;;  %vm11317_vm8 = vcmp.eq.s32.totalorder %v5945_v19, 3  ;;  %vm11318_vm0 = vcmp.eq.s32.totalorder %v5837_v53, 4  ;;  %3590 = vmax.xlane.f32.xlu0 %v8612_v25  ;;  %v2977_v35 = vadd.f32 %v2961_v40, %v2881_v8  ;;  %3588 = vmax.xlane.f32.xlu2 %v8616_v63 }
 0x884   : > { %v3438_v1 = vsel %vm11317_vm8, %v8199_v4, 0.0  ;;  %v3535_v59 = vsel %vm11318_vm0, %v3512_v33, 0.0  ;;  %v3358_v32 = vadd.f32 %v3342_v15, %v3262_v13  ;;  %v3455_v20 = vadd.f32 %v3439_v2, %v3359_v44 }
 0x885   : > { %vm11320_vm1 = vcmp.eq.s32.totalorder %v11298_v54, 0  ;;  %v3073_v48 = vadd.f32 %v3057_v22, %v2977_v35  ;;  %vm11322_vm3 = vcmp.eq.s32.totalorder %v11298_v54, 1  ;;  %vm11323_vm5 = vcmp.eq.s32.totalorder %v5945_v19, 4 }
 0x886   : > { %v3153_v41 = vsel %vm11320_vm1, %v11319_v47, 0.0  ;;  %v3454_v30 = vadd.f32 %v3438_v1, %v3358_v32  ;;  %v3551_v24 = vadd.f32 %v3535_v59, %v3455_v20  ;;  %v3249_v4 = vsel %vm11322_vm3, %v11321_v36, 0.0 }
 0x887   : > { %v3534_v17 = vsel %vm11323_vm5, %v3508_v26, 0.0  ;;  %v3169_v7 = vadd.f32 %v3153_v41, %v3073_v48  ;;  %vm11325_vm14 = vcmp.eq.s32.totalorder %v11298_v54, 2  ;;  %vm11326_vm10 = vcmp.eq.s32.totalorder %v11298_v54, 3 }
 0x888   : > { %v3550_v31 = vadd.f32 %v3534_v17, %v3454_v30  ;;  %v3345_v42 = vsel %vm11325_vm14, %v11324_v23, 0.0  ;;  %v8641_v57 = vsel %vm6091_vm7, %v3551_v24, -10000.0  ;;  %v3441_v44 = vsel %vm11326_vm10, %v8266_v61, 0.0  ;;  %v3520_v50 = vpop.permute.xlu1 %3519 }
 0x889   : > { %v3265_v39 = vadd.f32 %v3249_v4, %v3169_v7  ;;  %vm11327_vm13 = vcmp.eq.s32.totalorder %v11298_v54, 4  ;;  %vm11330_vm8 = vcmp.eq.s32.totalorder %v10694_v27, 4294967292  ;;  %vm11331_vm0 = vcmp.eq.s32.totalorder %v5824_v51, 4294967292 }
 0x88a   : > { %v8645_v52 = vsel %vm6091_vm7, %v3550_v31, -10000.0  ;;  %v3537_v40 = vsel %vm11327_vm13, %v3520_v50, 0.0  ;;  %vm11333_vm1 = vcmp.eq.s32.totalorder %v5743_v45, 4294967292  ;;  %vm11334_vm3 = vcmp.eq.s32.totalorder %v5733_v46, 4294967292 }
 0x88b   : > { %3596 = vmax.xlane.f32.xlu0 %v8641_v57  ;;  %v3361_v33 = vadd.f32 %v3345_v42, %v3265_v39  ;;  %3594 = vmax.xlane.f32.xlu2 %v8645_v52  ;;  %vm11337_vm5 = vcmp.eq.s32.totalorder %v5909_v0, 4294967292  ;;  %vm11338_vm14 = vcmp.eq.s32.totalorder %v5793_v38, 4294967292  ;;  %vm11339_vm10 = vcmp.eq.s32.totalorder %v5790_v49, 4294967292 }
 0x88c   : > { %vm11342_vm13 = vcmp.eq.s32.totalorder %v5880_v58, 4294967292 }
 0x88d   : > { %v3457_v62 = vadd.f32 %v3441_v44, %v3361_v33 }
 0x88f   : > { %v3553_v5 = vadd.f32 %v3537_v40, %v3457_v62 }
 0x891   : > { %v8656_v15 = vsel %vm6091_vm7, %v3553_v5, -10000.0 }
 0x893   : > { %3600 = vmax.xlane.f32.xlu2 %v8656_v15 }
 0x8aa   : > { %v3571_v3 = vpop.xlane.xlu2 %3570 }
 0x8ab   : > { %v3602_v61 = vsub.f32 %v8191_v34, %v3571_v3 }
 0x8ad   : > { %v3618_v2 = vmul.f32 1.442695, %v3602_v61 }
 0x8af   : > { %5008 = vpow2.f32 %v3618_v2 }
 0x8b5   : > { %v8660_v8 = vpop.eup %5008 }
 0x8b6   : > { %3650 = vadd.xlane.f32.xlu0 %v8660_v8 }
 0x8c0   : > { %v3575_v13 = vpop.xlane.xlu1 %3574 }
 0x8c1   : > { %v3604_v16 = vsub.f32 %v8350_v37, %v3575_v13 }
 0x8c3   : > { %v3622_v22 = vmul.f32 1.442695, %v3604_v16 }
 0x8c5   : > { %5010 = vpow2.f32 %v3622_v22 }
 0x8ca   : > { %v3581_v1 = vpop.xlane.xlu1 %3580 }
 0x8cb   : > { %v3607_v21 = vsub.f32 %v8407_v11, %v3581_v1  ;;  %v8665_v59 = vpop.eup %5010 }
 0x8cc   : > { %3654 = vadd.xlane.f32.xlu2 %v8665_v59 }
 0x8cd   : > { %v3628_v35 = vmul.f32 1.442695, %v3607_v21 }
 0x8cf   : > { %5012 = vpow2.f32 %v3628_v35 }
 0x8d5   : > { %v3573_v34 = vpop.xlane.xlu0 %3572  ;;  %v3587_v32 = vpop.xlane.xlu1 %3586 }
 0x8d6   : > { %v3603_v20 = vsub.f32 %v8456_v43, %v3573_v34  ;;  %v3610_v47 = vsub.f32 %v8452_v29, %v3587_v32  ;;  %v8670_v41 = vpop.eup %5012 }
 0x8d7   : > { %3660 = vadd.xlane.f32.xlu2 %v8670_v41 }
 0x8d8   : > { %v3620_v37 = vmul.f32 1.442695, %v3603_v20  ;;  %v3634_v48 = vmul.f32 1.442695, %v3610_v47 }
 0x8da   : > { %5014 = vpow2.f32 %v3620_v37 }
 0x8db   : > { %5016 = vpow2.f32 %v3634_v48 }
 0x8e0   : > { %v3579_v11 = vpop.xlane.xlu0 %3578  ;;  %v3593_v30 = vpop.xlane.xlu1 %3592 }
 0x8e1   : > { %v3606_v24 = vsub.f32 %v8506_v28, %v3579_v11  ;;  %v3577_v26 = vpop.xlane.xlu2 %3576  ;;  %v3613_v36 = vsub.f32 %v8502_v56, %v3593_v30  ;;  %v8676_v43 = vpop.eup %5014 }
 0x8e2   : > { %v3605_v4 = vsub.f32 %v8510_v55, %v3577_v26  ;;  %v8678_v7 = vpop.eup %5016  ;;  %3652 = vadd.xlane.f32.xlu1 %v8676_v43 }
 0x8e3   : > { %v3626_v29 = vmul.f32 1.442695, %v3606_v24  ;;  %v3640_v17 = vmul.f32 1.442695, %v3613_v36  ;;  %3666 = vadd.xlane.f32.xlu2 %v8678_v7 }
 0x8e4   : > { %v3624_v31 = vmul.f32 1.442695, %v3605_v4 }
 0x8e5   : > { %5018 = vpow2.f32 %v3626_v29 }
 0x8e6   : > { %5020 = vpow2.f32 %v3624_v31 }
 0x8e7   : > { %5022 = vpow2.f32 %v3640_v17 }
 0x8eb   : > { %v3585_v28 = vpop.xlane.xlu0 %3584  ;;  %v3599_v23 = vpop.xlane.xlu1 %3598 }
 0x8ec   : > { %v3609_v56 = vsub.f32 %v8564_v60, %v3585_v28  ;;  %v3583_v42 = vpop.xlane.xlu2 %3582  ;;  %v3616_v55 = vsub.f32 %v8560_v10, %v3599_v23  ;;  %v8685_v44 = vpop.eup %5018 }
 0x8ed   : > { %v3608_v39 = vsub.f32 %v8568_v6, %v3583_v42  ;;  %v8687_v50 = vpop.eup %5020  ;;  %3658 = vadd.xlane.f32.xlu1 %v8685_v44 }
 0x8ee   : > { %v3632_v33 = vmul.f32 1.442695, %v3609_v56  ;;  %v3646_v62 = vmul.f32 1.442695, %v3616_v55  ;;  %v8690_v5 = vpop.eup %5022  ;;  %3656 = vadd.xlane.f32.xlu0 %v8687_v50 }
 0x8ef   : > { %v3630_v40 = vmul.f32 1.442695, %v3608_v39  ;;  %3672 = vadd.xlane.f32.xlu2 %v8690_v5 }
 0x8f0   : > { %5024 = vpow2.f32 %v3632_v33 }
 0x8f1   : > { %5026 = vpow2.f32 %v3630_v40 }
 0x8f2   : > { %5028 = vpow2.f32 %v3646_v62 }
 0x8f6   : > { %v3591_v10 = vpop.xlane.xlu0 %3590  ;;  %v3589_v6 = vpop.xlane.xlu2 %3588 }
 0x8f7   : > { %v3612_v60 = vsub.f32 %v8612_v25, %v3591_v10  ;;  %v3611_v3 = vsub.f32 %v8616_v63, %v3589_v6  ;;  %v8696_v61 = vpop.eup %5024 }
 0x8f8   : > { %v8698_v13 = vpop.eup %5026  ;;  %3664 = vadd.xlane.f32.xlu1 %v8696_v61 }
 0x8f9   : > { %v3638_v2 = vmul.f32 1.442695, %v3612_v60  ;;  %v3636_v16 = vmul.f32 1.442695, %v3611_v3  ;;  %v8701_v22 = vpop.eup %5028  ;;  %3662 = vadd.xlane.f32.xlu0 %v8698_v13 }
 0x8fa   : > { %3678 = vadd.xlane.f32.xlu2 %v8701_v22 }
 0x8fb   : > { %5030 = vpow2.f32 %v3638_v2 }
 0x8fc   : > { %5032 = vpow2.f32 %v3636_v16 }
 0x8fe   : > { %v3597_v25 = vpop.xlane.xlu0 %3596  ;;  %v3595_v63 = vpop.xlane.xlu2 %3594 }
 0x8ff   : > { %v3615_v1 = vsub.f32 %v8641_v57, %v3597_v25  ;;  %v3614_v21 = vsub.f32 %v8645_v52, %v3595_v63 }
 0x901   : > { %v8707_v35 = vpop.eup %5030  ;;  %v3644_v34 = vmul.f32 1.442695, %v3615_v1  ;;  %v3642_v20 = vmul.f32 1.442695, %v3614_v21 }
 0x902   : > { %v8709_v32 = vpop.eup %5032  ;;  %3670 = vadd.xlane.f32.xlu1 %v8707_v35 }
 0x903   : > { %5034 = vpow2.f32 %v3644_v34  ;;  %3668 = vadd.xlane.f32.xlu0 %v8709_v32 }
 0x904   : > { %5036 = vpow2.f32 %v3642_v20 }
 0x906   : > { %v3601_v47 = vpop.xlane.xlu2 %3600 }
 0x907   : > { %v3617_v37 = vsub.f32 %v8656_v15, %v3601_v47  ;;  %v11328_v15 = vld [vmem:[#allocation74_spill] sm:$0xff] }
 0x908   : > { %vm11329_vm7 = vcmp.eq.s32.totalorder %v11328_v15, 4294967292 }
 0x909   : > { %v8714_v48 = vpop.eup %5034  ;;  %v3648_v52 = vmul.f32 1.442695, %v3617_v37 }
 0x90a   : > { %v8716_v57 = vpop.eup %5036  ;;  %3676 = vadd.xlane.f32.xlu1 %v8714_v48 }
 0x90b   : > { %3674 = vadd.xlane.f32.xlu0 %v8716_v57  ;;  %5038 = vpow2.f32 %v3648_v52 }
 0x911   : > { %v8720_v11 = vpop.eup %5038 }
 0x913   : > { %3680 = vadd.xlane.f32.xlu0 %v8720_v11 }
 0x929   : > { %v3651_v30 = vpop.xlane.xlu0 %3650 }
 0x92a   : > { %5040 = vrcp.f32 %v3651_v30 }
 0x930   : > { %v5041_v24 = vpop.eup %5040 }
 0x931   : > { %v8724_v26 = vmul.f32 %v5041_v24, %v8660_v8 }
 0x933   : > { %v3722_v36 = vsel %vm11329_vm7, %v8724_v26, 0.0  ;;  %vm11343_vm7 = vcmp.eq.s32.totalorder %v11124_v9, 4294967292 }
 0x934   : > { %3738 = vadd.xlane.f32.xlu1 %v3722_v36 }
 0x93f   : > { %v3655_v4 = vpop.xlane.xlu2 %3654 }
 0x940   : > { %5042 = vrcp.f32 %v3655_v4 }
 0x946   : > { %v5043_v29 = vpop.eup %5042 }
 0x947   : > { %v8730_v17 = vmul.f32 %v5043_v29, %v8665_v59 }
 0x949   : > { %v3724_v28 = vsel %vm11330_vm8, %v8730_v17, 0.0  ;;  %vm11346_vm8 = vcmp.eq.s32.totalorder %v11298_v54, 4294967292 }
 0x94a   : > { %v3661_v31 = vpop.xlane.xlu2 %3660  ;;  %3742 = vadd.xlane.f32.xlu0 %v3724_v28 }
 0x94b   : > { %5044 = vrcp.f32 %v3661_v31 }
 0x951   : > { %v5045_v8 = vpop.eup %5044 }
 0x952   : > { %v8736_v23 = vmul.f32 %v5045_v8, %v8670_v41 }
 0x954   : > { %v3727_v59 = vsel %vm11331_vm0, %v8736_v23, 0.0  ;;  %vm11348_vm0 = vcmp.eq.s32.totalorder %v5909_v0, 4294967293 }
 0x955   : > { %v3653_v56 = vpop.xlane.xlu1 %3652  ;;  %3748 = vadd.xlane.f32.xlu0 %v3727_v59 }
 0x956   : > { %v3667_v42 = vpop.xlane.xlu2 %3666  ;;  %5046 = vrcp.f32 %v3653_v56 }
 0x957   : > { %5048 = vrcp.f32 %v3667_v42 }
 0x95c   : > { %v5047_v55 = vpop.eup %5046 }
 0x95d   : > { %v5049_v39 = vpop.eup %5048  ;;  %v8742_v33 = vmul.f32 %v5047_v55, %v8676_v43 }
 0x95e   : > { %v8745_v40 = vmul.f32 %v5049_v39, %v8678_v7 }
 0x95f   : > { %v3723_v60 = vsel %vm11333_vm1, %v8742_v33, 0.0  ;;  %v3714_v43 = vpack.c.bf16 %v8742_v33, %v8724_v26  ;;  %vm11349_vm1 = vcmp.eq.s32.totalorder %v5880_v58, 4294967293 }
 0x960   : > { %v3659_v62 = vpop.xlane.xlu1 %3658  ;;  %11332 = vst [vmem:[#allocation161_spill] sm:$0xff] %v8745_v40  ;;  %v3730_v6 = vsel %vm11334_vm3, %v8745_v40, 0.0  ;;  %3740 = vadd.xlane.f32.xlu2 %v3723_v60  ;;  %vm11350_vm3 = vcmp.eq.s32.totalorder %v10694_v27, 4294967293 }
 0x961   : > { %v3657_v41 = vpop.xlane.xlu0 %3656  ;;  %5050 = vrcp.f32 %v3659_v62  ;;  %3754 = vadd.xlane.f32.xlu0 %v3730_v6 }
 0x962   : > { %5052 = vrcp.f32 %v3657_v41  ;;  %v3673_v10 = vpop.xlane.xlu2 %3672 }
 0x963   : > { %5054 = vrcp.f32 %v3673_v10 }
 0x967   : > { %v5051_v7 = vpop.eup %5050 }
 0x968   : > { %v5053_v3 = vpop.eup %5052  ;;  %v8756_v2 = vmul.f32 %v5051_v7, %v8685_v44 }
 0x969   : > { %v5055_v25 = vpop.eup %5054  ;;  %v8759_v1 = vmul.f32 %v5053_v3, %v8687_v50 }
 0x96a   : > { %v8762_v21 = vmul.f32 %v5055_v25, %v8690_v5  ;;  %v3726_v20 = vsel %vm11337_vm5, %v8756_v2, 0.0  ;;  %v3716_v47 = vpack.c.bf16 %v8736_v23, %v8756_v2  ;;  %vm11352_vm5 = vcmp.eq.s32.totalorder %v11328_v15, 4294967293 }
 0x96b   : > { %v3665_v16 = vpop.xlane.xlu1 %3664  ;;  %11335 = vst [vmem:[#allocation156_spill] sm:$0xff] %v8759_v1  ;;  %v3725_v44 = vsel %vm11338_vm14, %v8759_v1, 0.0  ;;  %3746 = vadd.xlane.f32.xlu2 %v3726_v20  ;;  %v3715_v5 = vpack.c.bf16 %v8759_v1, %v8730_v17  ;;  %vm11353_vm14 = vcmp.eq.s32.totalorder %v5777_v12, 4294967293 }
 0x96c   : > { %v3663_v63 = vpop.xlane.xlu0 %3662  ;;  %5056 = vrcp.f32 %v3665_v16  ;;  %11336 = vst [vmem:[#allocation158_spill] sm:$0xff] %v8762_v21  ;;  %3744 = vadd.xlane.f32.xlu1 %v3725_v44  ;;  %v3733_v50 = vsel %vm11339_vm10, %v8762_v21, 0.0  ;;  %vm11354_vm10 = vcmp.eq.s32.totalorder %v5824_v51, 4294967293 }
 0x96d   : > { %5058 = vrcp.f32 %v3663_v63  ;;  %v3679_v34 = vpop.xlane.xlu2 %3678  ;;  %3760 = vadd.xlane.f32.xlu0 %v3733_v50  ;;  %v5089_v50 = vld [vmem:[%s5171_s24 + $0x18] sm:$0xff] }
 0x96e   : > { %5060 = vrcp.f32 %v3679_v34  ;;  %v5088_v34 = vld [vmem:[%s5171_s24 + $0x8] sm:$0xff] }
 0x972   : > { %v5057_v37 = vpop.eup %5056 }
 0x973   : > { %v5059_v52 = vpop.eup %5058  ;;  %v8778_v30 = vmul.f32 %v5057_v37, %v8696_v61  ;;  %v5090_v37 = vld [vmem:[%s5171_s24 + $0x30] sm:$0xff] }
 0x974   : > { %v5061_v36 = vpop.eup %5060  ;;  %v8781_v4 = vmul.f32 %v5059_v52, %v8698_v13  ;;  %v5091_v52 = vld [vmem:[%s5171_s24] sm:$0xff] }
 0x975   : > { %v3671_v24 = vpop.xlane.xlu1 %3670  ;;  %v8784_v31 = vmul.f32 %v5061_v36, %v8701_v22  ;;  %v3729_v28 = vsel %vm11342_vm13, %v8778_v30, 0.0  ;;  %v5094_v36 = vld [vmem:[%s5171_s24 + $0x38] sm:$0xff]  ;;  %vm11355_vm13 = vcmp.eq.s32.totalorder %v5793_v38, 4294967293 }
 0x976   : > { %11340 = vst [vmem:[#allocation167_spill] sm:$0xff] %v8781_v4  ;;  %v3669_v29 = vpop.xlane.xlu0 %3668  ;;  %5062 = vrcp.f32 %v3671_v24  ;;  %v3728_v61 = vsel %vm505_vm6, %v8781_v4, 0.0  ;;  %3752 = vadd.xlane.f32.xlu2 %v3729_v28  ;;  %vm11344_vm6 = vcmp.eq.s32.totalorder %v5777_v12, 4294967292  ;;  %v5093_v24 = vld [vmem:[%s5171_s24 + $0x10] sm:$0xff] }
 0x977   : > { %11341 = vst [vmem:[#allocation160_spill] sm:$0xff] %v8784_v31  ;;  %5064 = vrcp.f32 %v3669_v29  ;;  %3750 = vadd.xlane.f32.xlu1 %v3728_v61  ;;  %v3736_v13 = vsel %vm11343_vm7, %v8784_v31, 0.0  ;;  %v5095_v29 = vld [vmem:[%s5171_s24 + $0x28] sm:$0xff]  ;;  %v3863_v61 = vsel %vm11348_vm0, %v8756_v2, 0.0  ;;  %vm11357_vm7 = vcmp.eq.s32.totalorder %v5837_v53, 4294967293 }
 0x978   : > { %3766 = vadd.xlane.f32.xlu0 %v3736_v13  ;;  %vm11364_vm0 = vcmp.eq.s32.totalorder %v5751_v14, 4294967293 }
 0x97c   : > { %v5063_v8 = vpop.eup %5062 }
 0x97d   : > { %v5065_v56 = vpop.eup %5064  ;;  %v8798_v42 = vmul.f32 %v5063_v8, %v8707_v35  ;;  %v3677_v59 = vpop.xlane.xlu1 %3676  ;;  %v3866_v8 = vsel %vm11349_vm1, %v8778_v30, 0.0  ;;  %vm11367_vm1 = vcmp.eq.s32.totalorder %v5793_v38, 4294967294 }
 0x97e   : > { %v8801_v55 = vmul.f32 %v5065_v56, %v8709_v32  ;;  %v3675_v39 = vpop.xlane.xlu0 %3674  ;;  %5066 = vrcp.f32 %v3677_v59  ;;  %v3861_v56 = vsel %vm11350_vm3, %v8730_v17, 0.0  ;;  %vm11368_vm3 = vcmp.eq.s32.totalorder %v11124_v9, 4294967293  ;;  %v9066_v35 = vpop.f32.mrf.mxu2 }
 0x97f   : > { %5068 = vrcp.f32 %v3675_v39  ;;  %v3732_v62 = vsel %vm11344_vm6, %v8798_v42, 0.0  ;;  %v3859_v39 = vsel %vm11352_vm5, %v8724_v26, 0.0  ;;  %vm11358_vm6 = vcmp.eq.s32.totalorder %v5733_v46, 4294967293  ;;  %11414 = vst [vmem:[#allocation208_spill] sm:$0xff] %v9066_v35 }
 0x980   : > { %v3731_v41 = vsel %vm508_vm12, %v8801_v55, 0.0  ;;  %3758 = vadd.xlane.f32.xlu2 %v3732_v62  ;;  %vm11345_vm12 = vcmp.eq.s32.totalorder %v5837_v53, 4294967292  ;;  %vm11369_vm5 = vcmp.eq.s32.totalorder %v5945_v19, 4294967293 }
 0x981   : > { %3756 = vadd.xlane.f32.xlu1 %v3731_v41  ;;  %v3869_v41 = vsel %vm11353_vm14, %v8798_v42, 0.0  ;;  %vm11371_vm14 = vcmp.eq.s32.totalorder %v5998_v18, 4294967294 }
 0x984   : > { %v5067_v10 = vpop.eup %5066 }
 0x985   : > { %v5069_v60 = vpop.eup %5068  ;;  %v8814_v6 = vmul.f32 %v5067_v10, %v8714_v48  ;;  %v3864_v10 = vsel %vm11354_vm10, %v8736_v23, 0.0  ;;  %vm11373_vm10 = vcmp.eq.s32.totalorder %v5743_v45, 4294967294 }
 0x986   : > { %v8817_v7 = vmul.f32 %v5069_v60, %v8716_v57  ;;  %v3681_v3 = vpop.xlane.xlu0 %3680  ;;  %v3862_v60 = vsel %vm11355_vm13, %v8759_v1, 0.0  ;;  %vm11374_vm13 = vcmp.eq.s32.totalorder %v11298_v54, 4294967293 }
 0x987   : > { %5070 = vrcp.f32 %v3681_v3  ;;  %v3735_v16 = vsel %vm11345_vm12, %v8814_v6, 0.0  ;;  %vm11359_vm12 = vcmp.eq.s32.totalorder %v5998_v18, 4294967293 }
 0x988   : > { %v3734_v25 = vsel %vm511_vm9, %v8817_v7, 0.0  ;;  %3764 = vadd.xlane.f32.xlu2 %v3735_v16  ;;  %vm11347_vm9 = vcmp.eq.s32.totalorder %v5743_v45, 4294967293 }
 0x989   : > { %3762 = vadd.xlane.f32.xlu1 %v3734_v25  ;;  %v3860_v28 = vsel %vm11347_vm9, %v8742_v33, 0.0  ;;  %vm11363_vm9 = vcmp.eq.s32.totalorder %v5790_v49, 4294967293 }
 0x98c   : > { %3788 = vrot.lane.b32.xlu0 %v5088_v34, %s5117_s6  ;;  %v3867_v34 = vsel %vm11358_vm6, %v8745_v40, 0.0  ;;  %vm11376_vm6 = vcmp.eq.s32.totalorder %v5909_v0, 4294967294 }
 0x98d   : > { %v5071_v57 = vpop.eup %5070 }
 0x98e   : > { %v8828_v63 = vmul.f32 %v5071_v57, %v8720_v11  ;;  %v5092_v11 = vld [vmem:[%s5171_s24 + $0x20] sm:$0xff]  ;;  %v3872_v57 = vsel %vm11357_vm7, %v8814_v6, 0.0  ;;  %vm11375_vm7 = vcmp.eq.s32.totalorder %v5751_v14, 4294967294 }
 0x990   : > { %v3737_v20 = vsel %vm11346_vm8, %v8828_v63, 0.0  ;;  %v3721_v44 = vpack.c.bf16 %v8828_v63, %v8784_v31  ;;  %vm11362_vm8 = vcmp.eq.s32.totalorder %v11328_v15, 4294967294 }
 0x991   : > { %3768 = vadd.xlane.f32.xlu1 %v3737_v20  ;;  %v3865_v20 = vsel %vm11359_vm12, %v8781_v4, 0.0  ;;  %vm11378_vm12 = vcmp.eq.s32.totalorder %v10694_v27, 4294967294 }
 0x994   : > { %3792 = vrot.lane.b32.xlu0 %v5089_v50, %s5117_s6 }
 0x99c   : > { %3798 = vrot.lane.b32.xlu0 %v5090_v37, %s5117_s6 }
 0x9a0   : > { %3786 = vrot.lane.b32.xlu2 %v5091_v52, %s5117_s6 }
 0x9a7   : > { %v8875_v16 = vpop.xlane.xlu1 %3738 }
 0x9a8   : > { %3794 = vrot.lane.b32.xlu2 %v5092_v11, %s5117_s6  ;;  %v3939_v11 = vsel %vm11362_vm8, %v8724_v26, 0.0  ;;  %vm11379_vm8 = vcmp.eq.s32.totalorder %v5945_v19, 4294967294 }
 0x9aa   : > { %3790 = vrot.lane.b32.xlu1 %v5093_v24, %s5117_s6  ;;  %v3870_v24 = vsel %vm11363_vm9, %v8762_v21, 0.0  ;;  %vm11380_vm9 = vcmp.eq.s32.totalorder %v5880_v58, 4294967294 }
 0x9b0   : > { %3800 = vrot.lane.b32.xlu2 %v5094_v36, %s5117_s6  ;;  %v3868_v36 = vsel %vm11364_vm0, %v8801_v55, 0.0  ;;  %vm11381_vm0 = vcmp.eq.s32.totalorder %v5824_v51, 4294967294 }
 0x9b2   : > { %3796 = vrot.lane.b32.xlu1 %v5095_v29, %s5117_s6 }
 0x9bd   : > { %v8849_v13 = vpop.xlane.xlu0 %3742 }
 0x9c6   : > { %3877 = vadd.xlane.f32.xlu0 %v3860_v28 }
 0x9c8   : > { %v8857_v59 = vpop.xlane.xlu0 %3748 }
 0x9c9   : > { %11351 = vst [vmem:[#allocation164_spill] sm:$0xff] %v8857_v59 }
 0x9ce   : > { %3883 = vadd.xlane.f32.xlu0 %v3863_v61  ;;  %v3942_v61 = vsel %vm11367_vm1, %v8759_v1, 0.0  ;;  %vm11382_vm1 = vcmp.eq.s32.totalorder %v11298_v54, 4294967294 }
 0x9d3   : > { %v8862_v62 = vpop.xlane.xlu2 %3740 }
 0x9d4   : > { %v8877_v25 = vpop.xlane.xlu0 %3754 }
 0x9d5   : > { %11356 = vst [vmem:[#allocation163_spill] sm:$0xff] %v8877_v25 }
 0x9d6   : > { %3889 = vadd.xlane.f32.xlu0 %v3866_v8  ;;  %v3873_v8 = vsel %vm11368_vm3, %v8784_v31, 0.0  ;;  %vm11383_vm3 = vcmp.eq.s32.totalorder %v5777_v12, 4294967294 }
 0x9d9   : > { %3879 = vadd.xlane.f32.xlu2 %v3861_v56 }
 0x9dc   : > { %3875 = vadd.xlane.f32.xlu1 %v3859_v39  ;;  %v3871_v39 = vsel %vm11369_vm5, %v8817_v7, 0.0  ;;  %vm11384_vm5 = vcmp.eq.s32.totalorder %v5733_v46, 4294967294 }
 0x9dd   : > { %v3947_v32 = vsel %vm11384_vm5, %v8745_v40, 0.0  ;;  %vm11396_vm5 = vcmp.eq.s32.totalorder %v5909_v0, 4294967295 }
 0x9de   : > { %3895 = vadd.xlane.f32.xlu0 %v3869_v41  ;;  %v8873_v3 = vpop.xlane.xlu2 %3746 }
 0x9df   : > { %v8890_v37 = vpop.xlane.xlu1 %3744 }
 0x9e0   : > { %v8892_v52 = vpop.xlane.xlu0 %3760 }
 0x9e1   : > { %3885 = vadd.xlane.f32.xlu2 %v3864_v10  ;;  %11361 = vst [vmem:[#allocation166_spill] sm:$0xff] %v8892_v52  ;;  %v3945_v10 = vsel %vm11371_vm14, %v8781_v4, 0.0  ;;  %vm11385_vm14 = vcmp.eq.s32.totalorder %v10694_v27, 4294967295 }
 0x9e4   : > { %3881 = vadd.xlane.f32.xlu1 %v3862_v60 }
 0x9e6   : > { %3901 = vadd.xlane.f32.xlu0 %v3872_v57  ;;  %v3940_v57 = vsel %vm11373_vm10, %v8742_v33, 0.0  ;;  %vm11386_vm10 = vcmp.eq.s32.totalorder %v5837_v53, 4294967294 }
 0x9e9   : > { %3891 = vadd.xlane.f32.xlu2 %v3867_v34  ;;  %v8888_v50 = vpop.xlane.xlu2 %3752 }
 0x9ea   : > { %11360 = vst [vmem:[#allocation188_spill] sm:$0xff] %v8888_v50  ;;  %v8905_v28 = vpop.xlane.xlu1 %3750 }
 0x9eb   : > { %11366 = vst [vmem:[#allocation159_spill] sm:$0xff] %v8905_v28  ;;  %v8913_v56 = vpop.xlane.xlu0 %3766 }
 0x9ec   : > { %3887 = vadd.xlane.f32.xlu1 %v3865_v20  ;;  %v3874_v20 = vsel %vm11374_vm13, %v8828_v63, 0.0  ;;  %vm11387_vm13 = vcmp.eq.s32.totalorder %v5790_v49, 4294967294 }
 0x9ee   : > { %3955 = vadd.xlane.f32.xlu0 %v3939_v11 }
 0x9f1   : > { %3897 = vadd.xlane.f32.xlu2 %v3870_v24  ;;  %v3948_v24 = vsel %vm11375_vm7, %v8801_v55, 0.0  ;;  %vm11388_vm7 = vcmp.eq.s32.totalorder %v5824_v51, 4294967295 }
 0x9f3   : > { %v8903_v29 = vpop.xlane.xlu2 %3758 }
 0x9f4   : > { %11365 = vst [vmem:[#allocation165_spill] sm:$0xff] %v8903_v29  ;;  %3893 = vadd.xlane.f32.xlu1 %v3868_v36  ;;  %v8923_v60 = vpop.xlane.xlu1 %3756  ;;  %v3943_v36 = vsel %vm11376_vm6, %v8756_v2, 0.0  ;;  %vm11389_vm6 = vcmp.eq.s32.totalorder %v11328_v15, 4294967295 }
 0x9f5   : > { %11372 = vst [vmem:[#allocation175_spill] sm:$0xff] %v8923_v60  ;;  %v11436_v60 = vpack.c.bf16 %v8801_v55, %v8745_v40 }
 0x9f6   : > { %3961 = vadd.xlane.f32.xlu0 %v3942_v61 }
 0x9f9   : > { %3903 = vadd.xlane.f32.xlu2 %v3873_v8  ;;  %v3941_v8 = vsel %vm11378_vm12, %v8730_v17, 0.0  ;;  %vm11390_vm12 = vcmp.eq.s32.totalorder %v11124_v9, 4294967294 }
 0x9fb   : > { %v8918_v41 = vpop.xlane.xlu2 %3764 }
 0x9fc   : > { %11370 = vst [vmem:[#allocation168_spill] sm:$0xff] %v8918_v41  ;;  %3899 = vadd.xlane.f32.xlu1 %v3871_v39  ;;  %v8937_v61 = vpop.xlane.xlu1 %3762 }
 0x9fd   : > { %11377 = vst [vmem:[#allocation201_spill] sm:$0xff] %v8937_v61 }
 0x9fe   : > { %3967 = vadd.xlane.f32.xlu0 %v3945_v10  ;;  %v3789_v34 = vpop.permute.xlu0 %3788 }
 0xa01   : > { %3957 = vadd.xlane.f32.xlu2 %v3940_v57  ;;  %v3951_v57 = vsel %vm11379_vm8, %v8817_v7, 0.0  ;;  %vm11391_vm8 = vcmp.eq.s32.totalorder %v5733_v46, 4294967295 }
 0xa03   : > { %v3787_v11 = vpop.permute.xlu2 %3786 }
 0xa04   : > { %3905 = vadd.xlane.f32.xlu1 %v3874_v20  ;;  %v3946_v20 = vsel %vm11380_vm9, %v8778_v30, 0.0  ;;  %v8951_v48 = vpop.xlane.xlu1 %3768  ;;  %vm11392_vm9 = vcmp.eq.s32.totalorder %v5793_v38, 4294967295 }
 0xa06   : > { %3973 = vadd.xlane.f32.xlu0 %v3948_v24  ;;  %v3793_v10 = vpop.permute.xlu0 %3792  ;;  %v3944_v24 = vsel %vm11381_vm0, %v8736_v23, 0.0  ;;  %vm11393_vm0 = vcmp.eq.s32.totalorder %v5743_v45, 4294967295 }
 0xa09   : > { %3963 = vadd.xlane.f32.xlu2 %v3943_v36 }
 0xa0b   : > { %v3795_v39 = vpop.permute.xlu2 %3794 }
 0xa0c   : > { %3959 = vadd.xlane.f32.xlu1 %v3941_v8 }
 0xa0e   : > { %3979 = vadd.xlane.f32.xlu0 %v3951_v57  ;;  %v3799_v8 = vpop.permute.xlu0 %3798  ;;  %v3954_v57 = vsel %vm11382_vm1, %v8828_v63, 0.0  ;;  %vm11394_vm1 = vcmp.eq.s32.totalorder %v5790_v49, 4294967295 }
 0xa11   : > { %3969 = vadd.xlane.f32.xlu2 %v3946_v20  ;;  %v3949_v20 = vsel %vm11383_vm3, %v8798_v42, 0.0  ;;  %vm11395_vm3 = vcmp.eq.s32.totalorder %v5998_v18, 4294967295 }
 0xa13   : > { %v3801_v36 = vpop.permute.xlu2 %3800 }
 0xa14   : > { %3965 = vadd.xlane.f32.xlu1 %v3944_v24  ;;  %3810 = vmatpush.bf16.msrb.mxu2 %v3801_v36 }
 0xa15   : > { %4783 = vmatpush.bf16.msra.mxu3 %v3801_v36  ;;  %v4021_v36 = vsel %vm11385_vm14, %v8730_v17, 0.0  ;;  %vm11397_vm14 = vcmp.eq.s32.totalorder %v11124_v9, 4294967295 }
 0xa16   : > { %3985 = vadd.xlane.f32.xlu0 %v3954_v57  ;;  %v3952_v57 = vsel %vm11386_vm10, %v8814_v6, 0.0  ;;  %vm11398_vm10 = vcmp.eq.s32.totalorder %v5751_v14, 4294967295 }
 0xa18   : > { %3811 = vmatpush.bf16.msrb.mxu2 %v3799_v8 }
 0xa19   : > { %3975 = vadd.xlane.f32.xlu2 %v3949_v20  ;;  %4784 = vmatpush.bf16.msra.mxu3 %v3799_v8  ;;  %v3950_v8 = vsel %vm11387_vm13, %v8762_v21, 0.0  ;;  %vm11399_vm13 = vcmp.eq.s32.totalorder %v5880_v58, 4294967295 }
 0xa1c   : > { %3971 = vadd.xlane.f32.xlu1 %v3947_v32  ;;  %v3791_v24 = vpop.permute.xlu1 %3790  ;;  %v4024_v32 = vsel %vm11388_vm7, %v8736_v23, 0.0  ;;  %vm11400_vm7 = vcmp.eq.s32.totalorder %v5743_v45, 0 }
 0xa1e   : > { %4039 = vadd.xlane.f32.xlu0 %v4021_v36  ;;  %v4019_v36 = vsel %vm11389_vm6, %v8724_v26, 0.0  ;;  %vm11401_vm6 = vcmp.eq.s32.totalorder %v5945_v19, 4294967295 }
 0xa21   : > { %3981 = vadd.xlane.f32.xlu2 %v3952_v57  ;;  %v3953_v57 = vsel %vm11390_vm12, %v8784_v31, 0.0  ;;  %vm11403_vm12 = vcmp.eq.s32.totalorder %v5777_v12, 4294967295 }
 0xa24   : > { %3977 = vadd.xlane.f32.xlu1 %v3950_v8  ;;  %v3797_v20 = vpop.permute.xlu1 %3796  ;;  %v4027_v8 = vsel %vm11391_vm8, %v8745_v40, 0.0  ;;  %vm11404_vm8 = vcmp.eq.s32.totalorder %v5909_v0, 0 }
 0xa25   : > { %3812 = vmatpush.bf16.msrb.mxu2 %v3797_v20  ;;  %4785 = vmatpush.bf16.msra.mxu3 %v3797_v20  ;;  %v4020_v20 = vsel %vm11393_vm0, %v8742_v33, 0.0  ;;  %vm11407_vm0 = vcmp.eq.s32.totalorder %v5837_v53, 4294967295 }
 0xa26   : > { %4045 = vadd.xlane.f32.xlu0 %v4024_v32 }
 0xa29   : > { %3813 = vmatpush.bf16.msrb.mxu2 %v3795_v39  ;;  %4786 = vmatpush.bf16.msra.mxu3 %v3795_v39  ;;  %v4022_v39 = vsel %vm11392_vm9, %v8759_v1, 0.0  ;;  %vm11405_vm9 = vcmp.eq.s32.totalorder %v11298_v54, 4294967295 }
 0xa2a   : > { %4035 = vadd.xlane.f32.xlu2 %v4019_v36  ;;  %v4023_v36 = vsel %vm11396_vm5, %v8756_v2, 0.0  ;;  %vm11412_vm5 = vcmp.eq.s32.totalorder %v11328_v15, 0 }
 0xa2c   : > { %3983 = vadd.xlane.f32.xlu1 %v3953_v57 }
 0xa2d   : > { %3814 = vmatpush.bf16.msrb.mxu2 %v3793_v10  ;;  %4787 = vmatpush.bf16.msra.mxu3 %v3793_v10  ;;  %v4030_v10 = vsel %vm11394_vm1, %v8762_v21, 0.0  ;;  %vm11409_vm1 = vcmp.eq.s32.totalorder %v5880_v58, 0 }
 0xa2e   : > { %4051 = vadd.xlane.f32.xlu0 %v4027_v8  ;;  %v4031_v8 = vsel %vm11401_vm6, %v8817_v7, 0.0  ;;  %vm11425_vm6 = vcmp.eq.s32.totalorder %v11328_v15, 1 }
 0xa31   : > { %3815 = vmatpush.bf16.msrb.mxu2 %v3791_v24  ;;  %4788 = vmatpush.bf16.msra.mxu3 %v3791_v24  ;;  %v4025_v24 = vsel %vm11395_vm3, %v8781_v4, 0.0  ;;  %vm11410_vm3 = vcmp.eq.s32.totalorder %v10694_v27, 0 }
 0xa32   : > { %4041 = vadd.xlane.f32.xlu2 %v4022_v39 }
 0xa34   : > { %4037 = vadd.xlane.f32.xlu1 %v4020_v20  ;;  %v4029_v20 = vsel %vm11403_vm12, %v8798_v42, 0.0  ;;  %vm11428_vm12 = vcmp.eq.s32.totalorder %v5790_v49, 0 }
 0xa35   : > { %3816 = vmatpush.bf16.msrb.mxu2 %v3789_v34  ;;  %4789 = vmatpush.bf16.msra.mxu3 %v3789_v34  ;;  %v4033_v34 = vsel %vm11397_vm14, %v8784_v31, 0.0  ;;  %vm11415_vm14 = vcmp.eq.s32.totalorder %v5777_v12, 0 }
 0xa36   : > { %4057 = vadd.xlane.f32.xlu0 %v4030_v10 }
 0xa39   : > { %3817 = vmatpush.bf16.msrb.mxu2 %v3787_v11  ;;  %4790 = vmatpush.bf16.msra.mxu3 %v3787_v11  ;;  %v8995_v32 = vpop.xlane.xlu0 %3877  ;;  %v4028_v11 = vsel %vm11398_vm10, %v8801_v55, 0.0  ;;  %vm11417_vm10 = vcmp.eq.s32.totalorder %v5824_v51, 0 }
 0xa3a   : > { %4047 = vadd.xlane.f32.xlu2 %v4025_v24  ;;  %v4103_v24 = vsel %vm11404_vm8, %v8756_v2, 0.0  ;;  %v4104_v22 = vsel %vm11417_vm10, %v8736_v23, 0.0  ;;  %vm11430_vm8 = vcmp.eq.s32.totalorder %v5751_v14, 0  ;;  %vm11443_vm10 = vcmp.eq.s32.totalorder %v5751_v14, 1 }
 0xa3c   : > { %4043 = vadd.xlane.f32.xlu1 %v4023_v36  ;;  %3818 = vmatmul.bf16.vlgmr.msrb.gmra.mxu2 %v3714_v43  ;;  %v4026_v43 = vsel %vm11399_vm13, %v8778_v30, 0.0  ;;  %vm11420_vm13 = vcmp.eq.s32.totalorder %v5837_v53, 0 }
 0xa3d   : > { %3853 = vmatmul.bf16.vlgmr.msra.gmra.mxu3 %v3721_v44  ;;  %v4100_v44 = vsel %vm11400_vm7, %v8742_v33, 0.0  ;;  %vm11422_vm7 = vcmp.eq.s32.totalorder %v5733_v46, 0 }
 0xa3e   : > { %4063 = vadd.xlane.f32.xlu0 %v4033_v34  ;;  %v4034_v34 = vsel %vm11405_vm9, %v8828_v63, 0.0  ;;  %vm11431_vm9 = vcmp.eq.s32.totalorder %v5793_v38, 1 }
 0xa41   : > { %v9012_v57 = vpop.xlane.xlu0 %3883 }
 0xa42   : > { %4053 = vadd.xlane.f32.xlu2 %v4028_v11 }
 0xa44   : > { %4049 = vadd.xlane.f32.xlu1 %v4026_v43 }
 0xa46   : > { %4117 = vadd.xlane.f32.xlu0 %v4100_v44  ;;  %v4106_v44 = vsel %vm11409_vm1, %v8778_v30, 0.0  ;;  %vm11435_vm1 = vcmp.eq.s32.totalorder %v5945_v19, 0 }
 0xa49   : > { %v9023_v39 = vpop.xlane.xlu0 %3889 }
 0xa4a   : > { %4059 = vadd.xlane.f32.xlu2 %v4031_v8  ;;  %11402 = vst [vmem:[#allocation185_spill] sm:$0xff] %v9023_v39 }
 0xa4c   : > { %4055 = vadd.xlane.f32.xlu1 %v4029_v20  ;;  %3823 = vmatmul.bf16.gmra.mxu2 %v3715_v5  ;;  %v9031_v10 = vpop.xlane.xlu2 %3879  ;;  %v4032_v5 = vsel %vm11407_vm0, %v8814_v6, 0.0  ;;  %v4101_v20 = vsel %vm11410_vm3, %v8730_v17, 0.0  ;;  %vm11432_vm0 = vcmp.eq.s32.totalorder %v11124_v9, 0  ;;  %vm11437_vm3 = vcmp.eq.s32.totalorder %v5998_v18, 1 }
 0xa4e   : > { %4123 = vadd.xlane.f32.xlu0 %v4103_v24 }
 0xa4f   : > { %v9036_v36 = vpop.xlane.xlu1 %3875 }
 0xa51   : > { %v9041_v11 = vpop.xlane.xlu0 %3895 }
 0xa52   : > { %4065 = vadd.xlane.f32.xlu2 %v4034_v34  ;;  %11406 = vst [vmem:[#allocation213_spill] sm:$0xff] %v9041_v11  ;;  %v4099_v34 = vsel %vm11412_vm5, %v8724_v26, 0.0  ;;  %v4110_v11 = vsel %vm11428_vm12, %v8762_v21, 0.0  ;;  %vm11438_vm5 = vcmp.eq.s32.totalorder %v5743_v45, 1  ;;  %vm11453_vm12 = vcmp.eq.s32.totalorder %v5824_v51, 1 }
 0xa54   : > { %4061 = vadd.xlane.f32.xlu1 %v4032_v5  ;;  %v9046_v43 = vpop.xlane.xlu2 %3885 }
 0xa55   : > { %11408 = vst [vmem:[#allocation169_spill] sm:$0xff] %v9046_v43 }
 0xa56   : > { %4129 = vadd.xlane.f32.xlu0 %v4106_v44  ;;  %v4109_v44 = vsel %vm11415_vm14, %v8798_v42, 0.0  ;;  %vm11440_vm14 = vcmp.eq.s32.totalorder %v11298_v54, 0 }
 0xa57   : > { %v9051_v8 = vpop.xlane.xlu1 %3881 }
 0xa59   : > { %v9056_v24 = vpop.xlane.xlu0 %3901 }
 0xa5a   : > { %4119 = vadd.xlane.f32.xlu2 %v4101_v20  ;;  %11411 = vst [vmem:[#allocation170_spill] sm:$0xff] %v9056_v24  ;;  %v9083_v24 = vpop.f32.mrf.mxu2 }
 0xa5b   : > { %11419 = vst [vmem:[#allocation178_spill] sm:$0xff] %v9083_v24  ;;  %v11424_v24 = vpack.c.bf16 %v8778_v30, %v8781_v4 }
 0xa5c   : > { %4115 = vadd.xlane.f32.xlu1 %v4099_v34  ;;  %3828 = vmatmul.bf16.gmra.mxu2 %v3716_v47  ;;  %v9064_v5 = vpop.xlane.xlu2 %3891  ;;  %v4102_v47 = vsel %vm966_vm15, %v8759_v1, 0.0  ;;  %vm11423_vm15 = vcmp.eq.s32.totalorder %v5998_v18, 0 }
 0xa5d   : > { %11413 = vst [vmem:[#allocation171_spill] sm:$0xff] %v9064_v5 }
 0xa5e   : > { %4135 = vadd.xlane.f32.xlu0 %v4109_v44  ;;  %v4112_v44 = vsel %vm11420_vm13, %v8814_v6, 0.0  ;;  %vm11445_vm13 = vcmp.eq.s32.totalorder %v5909_v0, 1 }
 0xa5f   : > { %v9071_v20 = vpop.xlane.xlu1 %3887 }
 0xa60   : > { %11416 = vst [vmem:[#allocation172_spill] sm:$0xff] %v9071_v20 }
 0xa61   : > { %v9076_v34 = vpop.xlane.xlu0 %3955 }
 0xa62   : > { %4125 = vadd.xlane.f32.xlu2 %v4104_v22  ;;  %v4107_v22 = vsel %vm11422_vm7, %v8745_v40, 0.0  ;;  %vm11446_vm7 = vcmp.eq.s32.totalorder %v10694_v27, 1 }
 0xa64   : > { %4121 = vadd.xlane.f32.xlu1 %v4102_v47  ;;  %v9081_v35 = vpop.xlane.xlu2 %3897  ;;  %v4105_v47 = vsel %vm11423_vm15, %v8781_v4, 0.0  ;;  %vm11450_vm15 = vcmp.eq.s32.totalorder %v5945_v19, 1 }
 0xa65   : > { %11418 = vst [vmem:[#allocation173_spill] sm:$0xff] %v9081_v35 }
 0xa66   : > { %4141 = vadd.xlane.f32.xlu0 %v4112_v44  ;;  %v4179_v44 = vsel %vm11425_vm6, %v8724_v26, 0.0  ;;  %vm11452_vm6 = vcmp.eq.s32.totalorder %v5880_v58, 1 }
 0xa67   : > { %v9088_v41 = vpop.xlane.xlu1 %3893 }
 0xa68   : > { %11421 = vst [vmem:[#allocation214_spill] sm:$0xff] %v9088_v41 }
 0xa69   : > { %v9093_v61 = vpop.xlane.xlu0 %3961 }
 0xa6a   : > { %4131 = vadd.xlane.f32.xlu2 %v4107_v22  ;;  %v9108_v22 = vpop.f32.mrf.mxu2 }
 0xa6b   : > { %11427 = vst [vmem:[#allocation177_spill] sm:$0xff] %v9108_v22 }
 0xa6c   : > { %4127 = vadd.xlane.f32.xlu1 %v4105_v47  ;;  %3833 = vmatmul.bf16.gmra.mxu2 %v11424_v24  ;;  %v9101_v35 = vpop.xlane.xlu2 %3903  ;;  %v4108_v24 = vsel %vm11430_vm8, %v8801_v55, 0.0  ;;  %vm11455_vm8 = vcmp.eq.s32.totalorder %v11298_v54, 1 }
 0xa6e   : > { %4195 = vadd.xlane.f32.xlu0 %v4179_v44  ;;  %v4182_v44 = vsel %vm11431_vm9, %v8759_v1, 0.0  ;;  %vm11459_vm9 = vcmp.eq.s32.totalorder %v5733_v46, 1 }
 0xa6f   : > { %v9106_v52 = vpop.xlane.xlu1 %3899 }
 0xa70   : > { %11426 = vst [vmem:[#allocation174_spill] sm:$0xff] %v9106_v52 }
 0xa71   : > { %v9113_v47 = vpop.xlane.xlu0 %3967 }
 0xa72   : > { %4137 = vadd.xlane.f32.xlu2 %v4110_v11  ;;  %11429 = vst [vmem:[#allocation179_spill] sm:$0xff] %v9113_v47  ;;  %v4113_v11 = vsel %vm11432_vm0, %v8784_v31, 0.0  ;;  %v9128_v22 = vpop.f32.mrf.mxu2  ;;  %v4186_v47 = vsel %vm11452_vm6, %v8778_v30, 0.0  ;;  %vm11461_vm0 = vcmp.eq.s32.totalorder %v10694_v27, 2  ;;  %vm11482_vm6 = vcmp.eq.s32.totalorder %v11124_v9, 2 }
 0xa73   : > { %11433 = vst [vmem:[#allocation187_spill] sm:$0xff] %v9128_v22  ;;  %v4180_v22 = vsel %vm11438_vm5, %v8742_v33, 0.0  ;;  %vm11471_vm5 = vcmp.eq.s32.totalorder %v5733_v46, 2 }
 0xa74   : > { %4133 = vadd.xlane.f32.xlu1 %v4108_v24  ;;  %v9118_v29 = vpop.xlane.xlu2 %3957  ;;  %v4111_v24 = vsel %vm11435_vm1, %v8817_v7, 0.0  ;;  %vm11465_vm1 = vcmp.eq.s32.totalorder %v5824_v51, 2 }
 0xa76   : > { %4201 = vadd.xlane.f32.xlu0 %v4182_v44  ;;  %v4185_v44 = vsel %vm11437_vm3, %v8781_v4, 0.0  ;;  %vm11468_vm3 = vcmp.eq.s32.totalorder %v11124_v9, 1 }
 0xa77   : > { %v9123_v52 = vpop.xlane.xlu1 %3905 }
 0xa79   : > { %v9130_v41 = vpop.xlane.xlu0 %3973 }
 0xa7a   : > { %4143 = vadd.xlane.f32.xlu2 %v4113_v11  ;;  %11434 = vst [vmem:[#allocation180_spill] sm:$0xff] %v9130_v41  ;;  %v9155_v25 = vpop.f32.mrf.mxu2 }
 0xa7b   : > { %11442 = vst [vmem:[#allocation211_spill] sm:$0xff] %v9155_v25  ;;  %v11447_v25 = vpack.c.bf16 %v8762_v21, %v8798_v42 }
 0xa7c   : > { %4139 = vadd.xlane.f32.xlu1 %v4111_v24  ;;  %3838 = vmatmul.bf16.gmra.mxu2 %v11436_v60  ;;  %v9138_v5 = vpop.xlane.xlu2 %3963  ;;  %v4114_v60 = vsel %vm11440_vm14, %v8828_v63, 0.0  ;;  %vm11473_vm14 = vcmp.eq.s32.totalorder %v5793_v38, 2 }
 0xa7e   : > { %4207 = vadd.xlane.f32.xlu0 %v4185_v44  ;;  %v4188_v44 = vsel %vm11443_vm10, %v8801_v55, 0.0  ;;  %vm11474_vm10 = vcmp.eq.s32.totalorder %v5743_v45, 2 }
 0xa7f   : > { %v9143_v11 = vpop.xlane.xlu1 %3959 }
 0xa81   : > { %v9148_v41 = vpop.xlane.xlu0 %3979 }
 0xa82   : > { %4197 = vadd.xlane.f32.xlu2 %v4180_v22  ;;  %11439 = vst [vmem:[#allocation182_spill] sm:$0xff] %v9148_v41  ;;  %v4183_v22 = vsel %vm11445_vm13, %v8756_v2, 0.0  ;;  %v9175_v50 = vpop.f32.mrf.mxu2  ;;  %vm11477_vm13 = vcmp.eq.s32.totalorder %v5790_v49, 2 }
 0xa83   : > { %11449 = vst [vmem:[#allocation190_spill] sm:$0xff] %v9175_v50 }
 0xa84   : > { %4145 = vadd.xlane.f32.xlu1 %v4114_v60  ;;  %v9153_v24 = vpop.xlane.xlu2 %3969  ;;  %v4181_v60 = vsel %vm11446_vm7, %v8730_v17, 0.0  ;;  %vm11479_vm7 = vcmp.eq.s32.totalorder %v5998_v18, 2 }
 0xa85   : > { %11441 = vst [vmem:[#allocation183_spill] sm:$0xff] %v9153_v24 }
 0xa86   : > { %4213 = vadd.xlane.f32.xlu0 %v4188_v44  ;;  %v4191_v44 = vsel %vm11450_vm15, %v8817_v7, 0.0  ;;  %vm11480_vm15 = vcmp.eq.s32.totalorder %v5909_v0, 2 }
 0xa87   : > { %v9160_v39 = vpop.xlane.xlu1 %3965 }
 0xa88   : > { %11444 = vst [vmem:[#allocation186_spill] sm:$0xff] %v9160_v39 }
 0xa89   : > { %v9165_v41 = vpop.xlane.xlu0 %3985 }
 0xa8a   : > { %4203 = vadd.xlane.f32.xlu2 %v4183_v22 }
 0xa8c   : > { %4199 = vadd.xlane.f32.xlu1 %v4181_v60  ;;  %3843 = vmatmul.bf16.gmra.mxu2 %v11447_v25  ;;  %v9173_v24 = vpop.xlane.xlu2 %3975  ;;  %v4184_v25 = vsel %vm11453_vm12, %v8736_v23, 0.0  ;;  %vm11484_vm12 = vcmp.eq.s32.totalorder %v5751_v14, 2 }
 0xa8d   : > { %11448 = vst [vmem:[#allocation217_spill] sm:$0xff] %v9173_v24  ;;  %v4194_v24 = vsel %vm11455_vm8, %v8828_v63, 0.0  ;;  %v4268_v9 = vsel %vm11484_vm12, %v8801_v55, 0.0  ;;  %vm11485_vm8 = vcmp.eq.s32.totalorder %v5880_v58, 2  ;;  %vm11515_vm12 = vcmp.eq.s32.totalorder %v11328_v15, 4 }
 0xa8e   : > { %4219 = vadd.xlane.f32.xlu0 %v4191_v44  ;;  %v9197_v44 = vpop.f32.mrf.mxu2 }
 0xa8f   : > { %v9180_v22 = vpop.xlane.xlu1 %3971  ;;  %11457 = vst [vmem:[#allocation234_spill] sm:$0xff] %v9197_v44 }
 0xa90   : > { %11451 = vst [vmem:[#allocation191_spill] sm:$0xff] %v9180_v22 }
 0xa91   : > { %v9185_v60 = vpop.xlane.xlu0 %4039 }
 0xa92   : > { %4209 = vadd.xlane.f32.xlu2 %v4186_v47  ;;  %v4189_v47 = vsel %vm1085_vm11, %v8798_v42, 0.0  ;;  %vm11464_vm11 = vcmp.eq.s32.totalorder %v5790_v49, 1 }
 0xa94   : > { %4205 = vadd.xlane.f32.xlu1 %v4184_v25  ;;  %v9190_v50 = vpop.xlane.xlu2 %3981  ;;  %v4187_v25 = vsel %vm11459_vm9, %v8745_v40, 0.0  ;;  %vm11486_vm9 = vcmp.eq.s32.totalorder %v5743_v45, 3 }
 0xa95   : > { %11454 = vst [vmem:[#allocation194_spill] sm:$0xff] %v9190_v50  ;;  %v11460_v50 = vpack.c.bf16 %v8814_v6, %v8817_v7 }
 0xa96   : > { %4225 = vadd.xlane.f32.xlu0 %v4194_v24  ;;  %v4261_v24 = vsel %vm11461_vm0, %v8730_v17, 0.0  ;;  %v9218_v28 = vpop.f32.mrf.mxu2  ;;  %vm11488_vm0 = vcmp.eq.s32.totalorder %v5945_v19, 2 }
 0xa97   : > { %v9195_v22 = vpop.xlane.xlu1 %3977  ;;  %11462 = vst [vmem:[#allocation219_spill] sm:$0xff] %v9218_v28 }
 0xa98   : > { %11456 = vst [vmem:[#allocation198_spill] sm:$0xff] %v9195_v22 }
 0xa99   : > { %v9202_v20 = vpop.xlane.xlu0 %4045 }
 0xa9a   : > { %4215 = vadd.xlane.f32.xlu2 %v4189_v47  ;;  %11458 = vst [vmem:[#allocation189_spill] sm:$0xff] %v9202_v20  ;;  %v4192_v47 = vsel %vm1088_vm4, %v8814_v6, 0.0  ;;  %vm11466_vm4 = vcmp.eq.s32.totalorder %v11328_v15, 2 }
 0xa9c   : > { %4211 = vadd.xlane.f32.xlu1 %v4187_v25  ;;  %3848 = vmatmul.bf16.gmra.mxu2 %v11460_v50  ;;  %v4190_v50 = vsel %vm11464_vm11, %v8762_v21, 0.0  ;;  %vm11490_vm11 = vcmp.eq.s32.totalorder %v11298_v54, 2 }
 0xa9d   : > { %v9210_v22 = vpop.xlane.xlu2 %4035 }
 0xa9e   : > { %4279 = vadd.xlane.f32.xlu0 %v4261_v24  ;;  %v4264_v24 = vsel %vm11465_vm1, %v8736_v23, 0.0  ;;  %vm11491_vm1 = vcmp.eq.s32.totalorder %v5837_v53, 2 }
 0xa9f   : > { %v3984_v44 = vpop.xlane.xlu1 %3983 }
 0xaa1   : > { %v9220_v25 = vpop.xlane.xlu0 %4051 }
 0xaa2   : > { %4221 = vadd.xlane.f32.xlu2 %v4192_v47  ;;  %11463 = vst [vmem:[#allocation193_spill] sm:$0xff] %v9220_v25  ;;  %v4259_v47 = vsel %vm11466_vm4, %v8724_v26, 0.0  ;;  %v9240_v25 = vpop.f32.mrf.mxu2  ;;  %vm11492_vm4 = vcmp.eq.s32.totalorder %v5880_v58, 3 }
 0xaa3   : > { %11469 = vst [vmem:[#allocation203_spill] sm:$0xff] %v9240_v25  ;;  %v233_v25 = vld [vmem:[%s10289_s3] sm:$0xf] }
 0xaa4   : > { %4217 = vadd.xlane.f32.xlu1 %v4190_v50  ;;  %v4193_v50 = vsel %vm11468_vm3, %v8784_v31, 0.0  ;;  %vm11493_vm3 = vcmp.eq.s32.totalorder %v10694_v27, 3 }
 0xaa5   : > { %v9225_v20 = vpop.xlane.xlu2 %4041 }
 0xaa6   : > { %4285 = vadd.xlane.f32.xlu0 %v4264_v24  ;;  %v4267_v24 = vsel %vm11471_vm5, %v8745_v40, 0.0  ;;  %vm11495_vm5 = vcmp.eq.s32.totalorder %v11328_v15, 3  ;;  %v11521_v15 = vld [vmem:[#allocation179_spill] sm:$0xff] }
 0xaa7   : > { %v9230_v39 = vpop.xlane.xlu1 %4037 }
 0xaa9   : > { %v9235_v28 = vpop.xlane.xlu0 %4057 }
 0xaaa   : > { %4275 = vadd.xlane.f32.xlu2 %v4259_v47  ;;  %11467 = vst [vmem:[#allocation200_spill] sm:$0xff] %v9235_v28  ;;  %v4262_v47 = vsel %vm11473_vm14, %v8759_v1, 0.0  ;;  %v9260_v46 = vpop.f32.mrf.mxu2  ;;  %vm11496_vm14 = vcmp.eq.s32.totalorder %v5777_v12, 3 }
 0xaab   : > { %11476 = vst [vmem:[#allocation220_spill] sm:$0xff] %v9260_v46 }
 0xaac   : > { %4223 = vadd.xlane.f32.xlu1 %v4193_v50  ;;  %v4260_v50 = vsel %vm11474_vm10, %v8742_v33, 0.0  ;;  %vm11497_vm10 = vcmp.eq.s32.totalorder %v5824_v51, 3 }
 0xaad   : > { %v9242_v43 = vpop.xlane.xlu2 %4047 }
 0xaae   : > { %11470 = vst [vmem:[#allocation212_spill] sm:$0xff] %v9242_v43  ;;  %4291 = vadd.xlane.f32.xlu0 %v4267_v24  ;;  %v4270_v24 = vsel %vm11477_vm13, %v8762_v21, 0.0 }
 0xaaf   : > { %v9247_v59 = vpop.xlane.xlu1 %4043 }
 0xab0   : > { %11472 = vst [vmem:[#allocation226_spill] sm:$0xff] %v9247_v59 }
 0xab1   : > { %v4064_v28 = vpop.xlane.xlu0 %4063 }
 0xab2   : > { %4281 = vadd.xlane.f32.xlu2 %v4262_v47  ;;  %v9267_v47 = vunpack.c.l.bf16 %v233_v25 }
 0xab4   : > { %4277 = vadd.xlane.f32.xlu1 %v4260_v50  ;;  %v4265_v50 = vsel %vm11479_vm7, %v8781_v4, 0.0  ;;  %v9276_v46 = vperm.slane %v9267_v47, 0  ;;  %v9281_v25 = vperm.slane %v9267_v47, 1  ;;  %vm11503_vm7 = vcmp.eq.s32.totalorder %v5837_v53, 3 }
 0xab5   : > { %v9258_v43 = vpop.xlane.xlu2 %4053 }
 0xab6   : > { %11475 = vst [vmem:[#allocation205_spill] sm:$0xff] %v9258_v43  ;;  %4297 = vadd.xlane.f32.xlu0 %v4270_v24  ;;  %v4263_v43 = vsel %vm11480_vm15, %v8756_v2, 0.0  ;;  %v3770_v24 = vmul.f32 %v8875_v16, %v9276_v46  ;;  %v3921_v16 = vmul.f32 %v9101_v35, %v9281_v25 }
 0xab7   : > { %v9265_v40 = vpop.xlane.xlu1 %4049 }
 0xab8   : > { %11478 = vst [vmem:[#allocation242_spill] sm:$0xff] %v9265_v40  ;;  %v4273_v40 = vsel %vm11482_vm6, %v8784_v31, 0.0  ;;  %v9303_v31 = vperm.slane %v9267_v47, 3 }
 0xab9   : > { %v4118_v59 = vpop.xlane.xlu0 %4117 }
 0xaba   : > { %4287 = vadd.xlane.f32.xlu2 %v4265_v50  ;;  %v3784_v50 = vmul.f32 %v8913_v56, %v9276_v46  ;;  %v4067_v35 = vmul.f32 %v9210_v22, %v9303_v31 }
 0xabc   : > { %4283 = vadd.xlane.f32.xlu1 %v4263_v43  ;;  %v9293_v43 = vperm.slane %v9267_v47, 2 }
 0xabd   : > { %v9278_v49 = vpop.xlane.xlu2 %4059 }
 0xabe   : > { %11481 = vst [vmem:[#allocation216_spill] sm:$0xff] %v9278_v49  ;;  %v3907_v49 = vmul.f32 %v9036_v36, %v9281_v25  ;;  %4303 = vadd.xlane.f32.xlu0 %v4273_v40  ;;  %v4001_v40 = vmul.f32 %v3984_v44, %v9293_v43  ;;  %v4340_v44 = vsel %vm11486_vm9, %v8742_v33, 0.0 }
 0xabf   : > { %v3819_v21 = vpop.f32.mrf.mxu2  ;;  %v9290_v18 = vpop.xlane.xlu1 %4055 }
 0xac0   : > { %11483 = vst [vmem:[#allocation236_spill] sm:$0xff] %v9290_v18  ;;  %v3820_v4 = vadd.f32 %v3819_v21, %v3770_v24  ;;  %v3854_v38 = vpop.f32.mrf.mxu3  ;;  %v3987_v18 = vmul.f32 %v9076_v34, %v9293_v43 }
 0xac1   : > { %v3855_v56 = vadd.f32 %v3854_v38, %v3784_v50  ;;  %v9308_v36 = vpop.xlane.xlu0 %4123  ;;  %v4266_v38 = vsel %vm11485_vm8, %v8778_v30, 0.0  ;;  %v4081_v50 = vmul.f32 %v4064_v28, %v9303_v31 }
 0xac2   : > { %v3923_v1 = vadd.f32 %v3907_v49, %v3820_v4  ;;  %4293 = vadd.xlane.f32.xlu2 %v4268_v9  ;;  %v3771_v49 = vmul.f32 %v8862_v62, %v9276_v46  ;;  %v3785_v4 = vmul.f32 %v8951_v48, %v9276_v46  ;;  %v3922_v62 = vmul.f32 %v9123_v52, %v9281_v25 }
 0xac3   : > { %v3937_v21 = vadd.f32 %v3921_v16, %v3855_v56  ;;  %v4271_v48 = vsel %vm11488_vm0, %v8817_v7, 0.0  ;;  %v4269_v52 = vsel %vm1197_vm2, %v8798_v42, 0.0  ;;  %vm11489_vm2 = vcmp.eq.s32.totalorder %v5909_v0, 3 }
 0xac4   : > { %v4003_v24 = vadd.f32 %v3987_v18, %v3923_v1  ;;  %4289 = vadd.xlane.f32.xlu1 %v4266_v38  ;;  %v3908_v1 = vmul.f32 %v8995_v32, %v9281_v25 }
 0xac5   : > { %v4017_v14 = vadd.f32 %v4001_v40, %v3937_v21  ;;  %v4066_v34 = vpop.xlane.xlu2 %4065  ;;  %v3988_v21 = vmul.f32 %v9118_v29, %v9293_v43 }
 0xac6   : > { %v4083_v9 = vadd.f32 %v4067_v35, %v4003_v24  ;;  %4357 = vadd.xlane.f32.xlu0 %v4340_v44  ;;  %v9344_v24 = vperm.slane %v9267_v47, 4  ;;  %v4082_v29 = vmul.f32 %v4066_v34, %v9303_v31 }
 0xac7   : > { %v3821_v16 = vpop.f32.mrf.mxu2  ;;  %v9323_v56 = vpop.xlane.xlu1 %4061  ;;  %v9325_v18 = vadd.f32 %v4081_v50, %v4017_v14  ;;  %v4002_v14 = vmul.f32 %v9165_v41, %v9293_v43  ;;  %v4068_v50 = vmul.f32 %v9230_v39, %v9303_v31  ;;  %v3772_v41 = vmul.f32 %v8849_v13, %v9276_v46 }
 0xac8   : > { %11487 = vst [vmem:[#allocation222_spill] sm:$0xff] %v9323_v56  ;;  %v3822_v28 = vadd.f32 %v3821_v16, %v3771_v49  ;;  %v3856_v22 = vpop.f32.mrf.mxu3  ;;  %v4148_v16 = vmul.f32 %v4118_v59, %v9344_v24  ;;  %v3909_v39 = vmul.f32 %v9031_v10, %v9281_v25  ;;  %v4274_v13 = vsel %vm11490_vm11, %v8828_v63, 0.0 }
 0xac9   : > { %v3857_v40 = vadd.f32 %v3856_v22, %v3785_v4  ;;  %v9338_v35 = vpop.xlane.xlu0 %4129  ;;  %v3989_v59 = vmul.f32 %v9143_v11, %v9293_v43  ;;  %v4272_v10 = vsel %vm11491_vm1, %v8814_v6, 0.0  ;;  %vm11532_vm11 = vcmp.eq.s32.totalorder %v5945_v19, 3 }
 0xaca   : > { %v3924_v38 = vadd.f32 %v3908_v1, %v3822_v28  ;;  %4299 = vadd.xlane.f32.xlu2 %v4271_v48  ;;  %v4343_v28 = vsel %vm11489_vm2, %v8756_v2, 0.0 }
 0xacb   : > { %v3938_v32 = vadd.f32 %v3922_v62, %v3857_v40 }
 0xacc   : > { %v4004_v49 = vadd.f32 %v3988_v21, %v3924_v38  ;;  %4295 = vadd.xlane.f32.xlu1 %v4269_v52  ;;  %v4069_v52 = vmul.f32 %v9185_v60, %v9303_v31 }
 0xacd   : > { %v4018_v4 = vadd.f32 %v4002_v14, %v3938_v32  ;;  %v4120_v44 = vpop.xlane.xlu2 %4119 }
 0xace   : > { %v4084_v1 = vadd.f32 %v4068_v50, %v4004_v49  ;;  %4363 = vadd.xlane.f32.xlu0 %v4343_v28  ;;  %v4149_v11 = vmul.f32 %v4120_v44, %v9344_v24  ;;  %v3990_v44 = vmul.f32 %v9093_v61, %v9293_v43 }
 0xacf   : > { %v3824_v22 = vpop.f32.mrf.mxu2  ;;  %v4116_v62 = vpop.xlane.xlu1 %4115  ;;  %v9355_v40 = vadd.f32 %v4082_v29, %v4018_v4  ;;  %v3773_v29 = vmul.f32 %v8890_v37, %v9276_v46  ;;  %v4346_v4 = vsel %vm11492_vm4, %v8778_v30, 0.0  ;;  %v4341_v37 = vsel %vm11493_vm3, %v8730_v17, 0.0 }
 0xad0   : > { %v3825_v34 = vadd.f32 %v3824_v22, %v3772_v41  ;;  %v4147_v48 = vmul.f32 %v4116_v62, %v9344_v24  ;;  %v9360_v21 = vadd.f32 %v4148_v16, %v4084_v1  ;;  %v3910_v1 = vmul.f32 %v9051_v8, %v9281_v25 }
 0xad1   : > { %v9367_v32 = vpop.xlane.xlu0 %4135  ;;  %v4070_v8 = vmul.f32 %v9225_v20, %v9303_v31  ;;  %v3911_v20 = vmul.f32 %v9012_v57, %v9281_v25  ;;  %vm11537_vm4 = vcmp.eq.s32.totalorder %v5743_v45, 4  ;;  %vm11539_vm3 = vcmp.eq.s32.totalorder %v11298_v54, 3 }
 0xad2   : > { %v3925_v38 = vadd.f32 %v3909_v39, %v3825_v34  ;;  %v4163_v14 = vadd.f32 %v4147_v48, %v4083_v9  ;;  %4305 = vadd.xlane.f32.xlu2 %v4274_v13  ;;  %v4339_v39 = vsel %vm11495_vm5, %v8724_v26, 0.0  ;;  %v3774_v13 = vmul.f32 %v8873_v3, %v9276_v46 }
 0xad3   : > { %v4344_v3 = vsel %vm11497_vm10, %v8736_v23, 0.0  ;;  %vm11546_vm10 = vcmp.eq.s32.totalorder %v10694_v27, 4  ;;  %v11549_v27 = vld [vmem:[#allocation213_spill] sm:$0xff] }
 0xad4   : > { %v4005_v50 = vadd.f32 %v3989_v59, %v3925_v38  ;;  %4301 = vadd.xlane.f32.xlu1 %v4272_v10  ;;  %v4349_v38 = vsel %vm11496_vm14, %v8798_v42, 0.0  ;;  %vm11544_vm14 = vcmp.eq.s32.totalorder %v5909_v0, 4 }
 0xad5   : > { %v9374_v49 = vpop.xlane.xlu2 %4125 }
 0xad6   : > { %v4085_v9 = vadd.f32 %v4069_v52, %v4005_v50  ;;  %4369 = vadd.xlane.f32.xlu0 %v4346_v4 }
 0xad7   : > { %v3826_v41 = vpop.f32.mrf.mxu2  ;;  %v4122_v16 = vpop.xlane.xlu1 %4121 }
 0xad8   : > { %v3827_v60 = vadd.f32 %v3826_v41, %v3773_v29  ;;  %v9384_v28 = vadd.f32 %v4149_v11, %v4085_v9  ;;  %v4150_v61 = vmul.f32 %v4122_v16, %v9344_v24  ;;  %v9414_v11 = vperm.slane %v9267_v47, 5  ;;  %v11498_v16 = vld [vmem:[#allocation156_spill] sm:$0xff] }
 0xad9   : > { %v9391_v62 = vpop.xlane.xlu0 %4141  ;;  %v3991_v9 = vmul.f32 %v9138_v5, %v9293_v43  ;;  %v4151_v5 = vmul.f32 %v9308_v36, %v9344_v24 }
 0xada   : > { %v3926_v22 = vadd.f32 %v3910_v1, %v3827_v60  ;;  %4359 = vadd.xlane.f32.xlu2 %v4341_v37  ;;  %11494 = vst [vmem:[#allocation215_spill] sm:$0xff] %v9391_v62  ;;  %v11499_v1 = vld [vmem:[#allocation84_spill] sm:$0xff]  ;;  %v11501_v60 = vld [vmem:[#allocation226_spill] sm:$0xff] }
 0xadb   : > { %vm11500_vm13 = vcmp.eq.s32.totalorder %v11499_v1, 3  ;;  %v4071_v37 = vmul.f32 %v11501_v60, %v9303_v31  ;;  %vm11527_vm0 = vcmp.eq.s32.totalorder %v11499_v1, 4 }
 0xadc   : > { %v4006_v34 = vadd.f32 %v3990_v44, %v3926_v22  ;;  %4355 = vadd.xlane.f32.xlu1 %v4339_v39  ;;  %v4342_v57 = vsel %vm11500_vm13, %v11498_v16, 0.0  ;;  %vm11550_vm13 = vcmp.eq.s32.totalorder %v5945_v19, 4  ;;  %v11552_v19 = vld [vmem:[#allocation217_spill] sm:$0xff] }
 0xadd   : > { %v9398_v48 = vpop.xlane.xlu2 %4131 }
 0xade   : > { %v4086_v59 = vadd.f32 %v4070_v8, %v4006_v34  ;;  %4375 = vadd.xlane.f32.xlu0 %v4349_v38  ;;  %v11502_v8 = vld [vmem:[#allocation164_spill] sm:$0xff] }
 0xadf   : > { %v3829_v10 = vpop.f32.mrf.mxu2  ;;  %v9406_v52 = vpop.xlane.xlu1 %4127  ;;  %v3775_v34 = vmul.f32 %v11502_v8, %v9276_v46 }
 0xae0   : > { %v4166_v50 = vadd.f32 %v4150_v61, %v4086_v59  ;;  %v3830_v29 = vadd.f32 %v3829_v10, %v3774_v13  ;;  %v4352_v61 = vsel %vm11503_vm7, %v8814_v6, 0.0  ;;  %vm11551_vm7 = vcmp.eq.s32.totalorder %v5880_v58, 4 }
 0xae1   : > { %v4196_v41 = vpop.xlane.xlu0 %4195 }
 0xae2   : > { %v3927_v4 = vadd.f32 %v3911_v20, %v3830_v29  ;;  %4365 = vadd.xlane.f32.xlu2 %v4344_v3  ;;  %v4227_v22 = vmul.f32 %v4196_v41, %v9414_v11  ;;  %v11504_v20 = vld [vmem:[#allocation169_spill] sm:$0xff]  ;;  %v11506_v41 = vld [vmem:[#allocation76_spill] sm:$0xff] }
 0xae3   : > { %v3912_v29 = vmul.f32 %v11504_v20, %v9281_v25  ;;  %vm11507_vm15 = vcmp.eq.s32.totalorder %v11506_v41, 3  ;;  %v11512_v20 = vld [vmem:[#allocation189_spill] sm:$0xff] }
 0xae4   : > { %v4007_v44 = vadd.f32 %v3991_v9, %v3927_v4  ;;  %4361 = vadd.xlane.f32.xlu1 %v4342_v57  ;;  %v9430_v13 = vadd.f32 %v4227_v22, %v4163_v14  ;;  %v11505_v4 = vld [vmem:[#allocation161_spill] sm:$0xff]  ;;  %v11508_v14 = vld [vmem:[#allocation186_spill] sm:$0xff]  ;;  %v11510_v22 = vld [vmem:[#allocation96_spill] sm:$0xff] }
 0xae5   : > { %v9424_v39 = vpop.xlane.xlu2 %4137  ;;  %v4347_v36 = vsel %vm11507_vm15, %v11505_v4, 0.0  ;;  %v3992_v57 = vmul.f32 %v11508_v14, %v9293_v43  ;;  %vm11511_vm6 = vcmp.eq.s32.totalorder %v11510_v22, 3  ;;  %vm11536_vm1 = vcmp.eq.s32.totalorder %v11510_v22, 4 }
 0xae6   : > { %v4087_v59 = vadd.f32 %v4071_v37, %v4007_v44  ;;  %4381 = vadd.xlane.f32.xlu0 %v4352_v61  ;;  %v11509_v44 = vld [vmem:[#allocation167_spill] sm:$0xff]  ;;  %v4072_v61 = vmul.f32 %v11512_v20, %v9303_v31  ;;  %v4419_v20 = vsel %vm11515_vm12, %v8724_v26, 0.0  ;;  %v3993_v26 = vmul.f32 %v11521_v15, %v9293_v43 }
 0xae7   : > { %v3831_v38 = vpop.f32.mrf.mxu2  ;;  %v9435_v10 = vpop.xlane.xlu1 %4133  ;;  %v4345_v8 = vsel %vm11511_vm6, %v11509_v44, 0.0  ;;  %vm11553_vm15 = vcmp.eq.s32.totalorder %v5824_v51, 4  ;;  %vm11556_vm6 = vcmp.eq.s32.totalorder %v11298_v54, 4  ;;  %vm11558_vm12 = vcmp.eq.s32.totalorder %v5777_v12, 4  ;;  %v11562_v12 = vld [vmem:[#allocation201_spill] sm:$0xff] }
 0xae8   : > { %v3832_v3 = vadd.f32 %v3831_v38, %v3775_v34  ;;  %v9439_v9 = vadd.f32 %v4151_v5, %v4087_v59  ;;  %v11513_v59 = vld [vmem:[#allocation159_spill] sm:$0xff]  ;;  %v4434_v51 = vsel %vm11556_vm6, %v8828_v63, 0.0 }
 0xae9   : > { %v4202_v37 = vpop.xlane.xlu0 %4201  ;;  %v3776_v38 = vmul.f32 %v11513_v59, %v9276_v46 }
 0xaea   : > { %v3928_v60 = vadd.f32 %v3912_v29, %v3832_v3  ;;  %4371 = vadd.xlane.f32.xlu2 %v4347_v36  ;;  %v4230_v5 = vmul.f32 %v4202_v37, %v9414_v11  ;;  %v4152_v29 = vmul.f32 %v9374_v49, %v9344_v24  ;;  %v11517_v37 = vld [vmem:[#allocation172_spill] sm:$0xff] }
 0xaec   : > { %v4008_v34 = vadd.f32 %v3992_v57, %v3928_v60  ;;  %4367 = vadd.xlane.f32.xlu1 %v4345_v8  ;;  %v9456_v3 = vadd.f32 %v4230_v5, %v4166_v50  ;;  %v3913_v8 = vmul.f32 %v11517_v37, %v9281_v25  ;;  %v11518_v5 = vld [vmem:[#allocation158_spill] sm:$0xff] }
 0xaed   : > { %v4144_v62 = vpop.xlane.xlu2 %4143 }
 0xaee   : > { %11514 = vst [vmem:[#allocation237_spill] sm:$0xff] %v9456_v3  ;;  %v4161_v36 = vmul.f32 %v4144_v62, %v9344_v24  ;;  %v4088_v14 = vadd.f32 %v4072_v61, %v4008_v34  ;;  %4435 = vadd.xlane.f32.xlu0 %v4419_v20  ;;  %v11519_v62 = vld [vmem:[#allocation83_spill] sm:$0xff]  ;;  %v11522_v3 = vld [vmem:[#allocation80_spill] sm:$0xff] }
 0xaef   : > { %v3834_v57 = vpop.f32.mrf.mxu2  ;;  %v9462_v60 = vpop.xlane.xlu1 %4139  ;;  %vm11520_vm8 = vcmp.eq.s32.totalorder %v11519_v62, 3  ;;  %vm11523_vm9 = vcmp.eq.s32.totalorder %v11522_v3, 3  ;;  %vm11543_vm5 = vcmp.eq.s32.totalorder %v11522_v3, 4 }
 0xaf0   : > { %11516 = vst [vmem:[#allocation218_spill] sm:$0xff] %v9462_v60  ;;  %v9467_v59 = vadd.f32 %v4161_v36, %v9325_v18  ;;  %v3835_v49 = vadd.f32 %v3834_v57, %v3776_v38  ;;  %v9469_v50 = vadd.f32 %v4152_v29, %v4088_v14  ;;  %v4350_v61 = vsel %vm11520_vm8, %v11518_v5, 0.0  ;;  %v11524_v18 = vld [vmem:[#allocation212_spill] sm:$0xff] }
 0xaf1   : > { %v4208_v56 = vpop.xlane.xlu0 %4207  ;;  %v4348_v37 = vsel %vm11523_vm9, %v8801_v55, 0.0  ;;  %v4073_v36 = vmul.f32 %v11524_v18, %v9303_v31  ;;  %v11525_v14 = vld [vmem:[#allocation188_spill] sm:$0xff]  ;;  %v4153_v57 = vmul.f32 %v9406_v52, %v9344_v24  ;;  %vm11560_vm8 = vcmp.eq.s32.totalorder %v11506_v41, 4  ;;  %v11563_v41 = vld [vmem:[#allocation174_spill] sm:$0xff] }
 0xaf2   : > { %v3929_v34 = vadd.f32 %v3913_v8, %v3835_v49  ;;  %4377 = vadd.xlane.f32.xlu2 %v4350_v61  ;;  %v3777_v20 = vmul.f32 %v11525_v14, %v9276_v46  ;;  %v11526_v49 = vld [vmem:[#allocation185_spill] sm:$0xff]  ;;  %v4233_v60 = vmul.f32 %v4208_v56, %v9414_v11  ;;  %v11531_v56 = vld [vmem:[#allocation183_spill] sm:$0xff]  ;;  %vm11564_vm9 = vcmp.eq.s32.totalorder %v5837_v53, 4 }
 0xaf3   : > { %v3914_v61 = vmul.f32 %v11526_v49, %v9281_v25  ;;  %v3994_v62 = vmul.f32 %v11531_v56, %v9293_v43 }
 0xaf4   : > { %v4009_v38 = vadd.f32 %v3993_v26, %v3929_v34  ;;  %4373 = vadd.xlane.f32.xlu1 %v4348_v37  ;;  %v4422_v26 = vsel %vm11527_vm0, %v11498_v16, 0.0 }
 0xaf5   : > { %v4198_v29 = vpop.xlane.xlu2 %4197 }
 0xaf6   : > { %v4089_v15 = vadd.f32 %v4073_v36, %v4009_v38  ;;  %v4228_v8 = vmul.f32 %v4198_v29, %v9414_v11  ;;  %4441 = vadd.xlane.f32.xlu0 %v4422_v26  ;;  %v11528_v38 = vld [vmem:[#allocation160_spill] sm:$0xff] }
 0xaf7   : > { %v3836_v34 = vpop.f32.mrf.mxu2  ;;  %v4146_v37 = vpop.xlane.xlu1 %4145  ;;  %v11529_v29 = vld [vmem:[#allocation88_spill] sm:$0xff] }
 0xaf8   : > { %v4169_v18 = vadd.f32 %v4153_v57, %v4089_v15  ;;  %v9493_v14 = vadd.f32 %v4228_v8, %v9360_v21  ;;  %v3837_v52 = vadd.f32 %v3836_v34, %v3777_v20  ;;  %v4162_v36 = vmul.f32 %v4146_v37, %v9344_v24  ;;  %v11533_v20 = vld [vmem:[#allocation242_spill] sm:$0xff]  ;;  %v11534_v34 = vld [vmem:[#allocation163_spill] sm:$0xff] }
 0xaf9   : > { %vm11530_vm2 = vcmp.eq.s32.totalorder %v11529_v29, 3  ;;  %v9504_v57 = vpop.xlane.xlu0 %4213  ;;  %v4351_v21 = vsel %vm11532_vm11, %v8817_v7, 0.0  ;;  %v4074_v15 = vmul.f32 %v11533_v20, %v9303_v31  ;;  %v4420_v20 = vsel %vm11537_vm4, %v8742_v33, 0.0  ;;  %v11541_v33 = vld [vmem:[#allocation175_spill] sm:$0xff] }
 0xafa   : > { %v4353_v49 = vsel %vm11530_vm2, %v11528_v38, 0.0  ;;  %v9501_v5 = vadd.f32 %v4233_v60, %v4169_v18  ;;  %v3930_v16 = vadd.f32 %v3914_v61, %v3837_v52  ;;  %v4178_v1 = vadd.f32 %v4162_v36, %v9355_v40  ;;  %v11535_v18 = vld [vmem:[#allocation171_spill] sm:$0xff] }
 0xafb   : > { %4383 = vadd.xlane.f32.xlu2 %v4353_v49  ;;  %v3778_v60 = vmul.f32 %v11534_v34, %v9276_v46  ;;  %v4154_v61 = vmul.f32 %v9338_v35, %v9344_v24  ;;  %v3915_v52 = vmul.f32 %v11535_v18, %v9281_v25  ;;  %v4425_v36 = vsel %vm11536_vm1, %v11509_v44, 0.0  ;;  %v11540_v34 = vld [vmem:[#allocation193_spill] sm:$0xff] }
 0xafc   : > { %v4010_v8 = vadd.f32 %v3994_v62, %v3930_v16  ;;  %4379 = vadd.xlane.f32.xlu1 %v4351_v21  ;;  %vm11575_vm2 = vcmp.eq.s32.totalorder %v11529_v29, 4  ;;  %vm4595_vm11 = vcmask 257024   ;;  %vm11642_vm1 = vcmask 130048  }
 0xafd   : > { %v4204_v26 = vpop.xlane.xlu2 %4203  ;;  %vm11643_vm4 = vmmov %vm11642_vm1 }
 0xafe   : > { %v4231_v40 = vmul.f32 %v4204_v26, %v9414_v11  ;;  %v4090_v37 = vadd.f32 %v4074_v15, %v4010_v8  ;;  %4447 = vadd.xlane.f32.xlu0 %v4425_v36  ;;  %v11538_v15 = vld [vmem:[#allocation191_spill] sm:$0xff]  ;;  %vm11720_vm6 = vmmov %vm11642_vm1 }
 0xaff   : > { %v3839_v49 = vpop.f32.mrf.mxu2  ;;  %v4200_v62 = vpop.xlane.xlu1 %4199  ;;  %v3995_v8 = vmul.f32 %v11538_v15, %v9293_v43 }
 0xb00   : > { %v9522_v56 = vadd.f32 %v4231_v40, %v9439_v9  ;;  %v3840_v16 = vadd.f32 %v3839_v49, %v3778_v60  ;;  %v4229_v21 = vmul.f32 %v4200_v62, %v9414_v11  ;;  %v4170_v35 = vadd.f32 %v4154_v61, %v4090_v37 }
 0xb01   : > { %v9533_v22 = vpop.xlane.xlu0 %4219  ;;  %v4354_v9 = vsel %vm11539_vm3, %v8828_v63, 0.0  ;;  %v4075_v60 = vmul.f32 %v11540_v34, %v9303_v31  ;;  %v3779_v40 = vmul.f32 %v11541_v33, %v9276_v46  ;;  %v4428_v49 = vsel %vm11543_vm5, %v8801_v55, 0.0  ;;  %v11548_v33 = vld [vmem:[#allocation165_spill] sm:$0xff]  ;;  %vm11670_vm3 = vmmov %vm11642_vm1 }
 0xb02   : > { %v3931_v26 = vadd.f32 %v3915_v52, %v3840_v16  ;;  %v9531_v44 = vadd.f32 %v4229_v21, %v9384_v28  ;;  %v4155_v28 = vmul.f32 %v9398_v48, %v9344_v24  ;;  %v11542_v52 = vld [vmem:[#allocation214_spill] sm:$0xff]  ;;  %v4423_v48 = vsel %vm11544_vm14, %v8756_v2, 0.0  ;;  %vm11671_vm5 = vmmov %vm11642_vm1 }
 0xb03   : > { %4437 = vadd.xlane.f32.xlu2 %v4420_v20  ;;  %v3916_v36 = vmul.f32 %v11542_v52, %v9281_v25  ;;  %vm11700_vm14 = vmmov %vm11642_vm1 }
 0xb04   : > { %v4011_v61 = vadd.f32 %v3995_v8, %v3931_v26  ;;  %4385 = vadd.xlane.f32.xlu1 %v4354_v9  ;;  %v11545_v26 = vld [vmem:[#allocation180_spill] sm:$0xff] }
 0xb05   : > { %v4210_v45 = vpop.xlane.xlu2 %4209  ;;  %v3996_v9 = vmul.f32 %v11545_v26, %v9293_v43 }
 0xb06   : > { %v4234_v37 = vmul.f32 %v4210_v45, %v9414_v11  ;;  %v4091_v18 = vadd.f32 %v4075_v60, %v4011_v61  ;;  %4453 = vadd.xlane.f32.xlu0 %v4428_v49  ;;  %v11547_v60 = vld [vmem:[#allocation205_spill] sm:$0xff]  ;;  %v4236_v49 = vmul.f32 %v9504_v57, %v9414_v11 }
 0xb07   : > { %v3841_v62 = vpop.f32.mrf.mxu2  ;;  %v4206_v16 = vpop.xlane.xlu1 %4205  ;;  %v4076_v61 = vmul.f32 %v11547_v60, %v9303_v31 }
 0xb08   : > { %v9550_v21 = vadd.f32 %v4234_v37, %v4170_v35  ;;  %v3842_v20 = vadd.f32 %v3841_v62, %v3779_v40  ;;  %v4232_v15 = vmul.f32 %v4206_v16, %v9414_v11  ;;  %v4171_v8 = vadd.f32 %v4155_v28, %v4091_v18 }
 0xb09   : > { %v4226_v55 = vpop.xlane.xlu0 %4225  ;;  %v4421_v35 = vsel %vm11546_vm10, %v8730_v17, 0.0  ;;  %v3780_v40 = vmul.f32 %v11548_v33, %v9276_v46  ;;  %v3917_v17 = vmul.f32 %v11549_v27, %v9281_v25  ;;  %v4431_v18 = vsel %vm11550_vm13, %v8817_v7, 0.0  ;;  %vm11701_vm10 = vmmov %vm11642_vm1 }
 0xb0a   : > { %v3932_v34 = vadd.f32 %v3916_v36, %v3842_v20  ;;  %v9559_v3 = vadd.f32 %v4232_v15, %v9469_v50  ;;  %v4242_v0 = vmul.f32 %v4226_v55, %v9414_v11  ;;  %v4156_v50 = vmul.f32 %v9435_v10, %v9344_v24  ;;  %vm11704_vm13 = vmmov %vm11642_vm1 }
 0xb0b   : > { %4443 = vadd.xlane.f32.xlu2 %v4423_v48  ;;  %v4426_v20 = vsel %vm11551_vm7, %v8778_v30, 0.0  ;;  %v3997_v7 = vmul.f32 %v11552_v19, %v9293_v43  ;;  %vm11705_vm7 = vmmov %vm11642_vm1 }
 0xb0c   : > { %v4012_v45 = vadd.f32 %v3996_v9, %v3932_v34  ;;  %4439 = vadd.xlane.f32.xlu1 %v4421_v35  ;;  %v9571_v37 = vadd.f32 %v4242_v0, %v4178_v1  ;;  %v9582_v1 = vperm.slane %v9267_v47, 6  ;;  %v4424_v9 = vsel %vm11553_vm15, %v8736_v23, 0.0  ;;  %v11554_v34 = vld [vmem:[#allocation236_spill] sm:$0xff]  ;;  %vm11719_vm15 = vmmov %vm11642_vm1 }
 0xb0d   : > { %v4216_v2 = vpop.xlane.xlu2 %4215  ;;  %v4077_v55 = vmul.f32 %v11554_v34, %v9303_v31 }
 0xb0e   : > { %v4092_v28 = vadd.f32 %v4076_v61, %v4012_v45  ;;  %4459 = vadd.xlane.f32.xlu0 %v4431_v18  ;;  %v4157_v61 = vmul.f32 %v9367_v32, %v9344_v24  ;;  %v4429_v32 = vsel %vm11558_vm12, %v8798_v42, 0.0  ;;  %v3782_v42 = vmul.f32 %v11562_v12, %v9276_v46  ;;  %v11573_v12 = vld [vmem:[#allocation237_spill] sm:$0xff]  ;;  %vm11732_vm12 = vmmov %vm11642_vm1 }
 0xb0f   : > { %v3844_v52 = vpop.f32.mrf.mxu2  ;;  %v4212_v36 = vpop.xlane.xlu1 %4211 }
 0xb10   : > { %v3845_v62 = vadd.f32 %v3844_v52, %v3780_v40  ;;  %v4235_v16 = vmul.f32 %v4212_v36, %v9414_v11  ;;  %v4172_v10 = vadd.f32 %v4156_v50, %v4092_v28  ;;  %v11557_v40 = vld [vmem:[#allocation173_spill] sm:$0xff]  ;;  %v4237_v28 = vmul.f32 %v4216_v2, %v9414_v11  ;;  %v11561_v2 = vld [vmem:[#allocation200_spill] sm:$0xff] }
 0xb11   : > { %v4280_v26 = vpop.xlane.xlu0 %4279  ;;  %v3918_v50 = vmul.f32 %v11557_v40, %v9281_v25  ;;  %v4427_v36 = vsel %vm11560_vm8, %v11505_v4, 0.0  ;;  %v11567_v40 = vld [vmem:[#allocation83_spill] sm:$0xff]  ;;  %vm11733_vm8 = vmmov %vm11642_vm1 }
 0xb12   : > { %v3933_v15 = vadd.f32 %v3917_v17, %v3845_v62  ;;  %v9589_v48 = vadd.f32 %v4235_v16, %v4171_v8  ;;  %v9591_v57 = vadd.f32 %v4236_v49, %v4172_v10  ;;  %v4309_v58 = vmul.f32 %v4280_v26, %v9582_v1  ;;  %v11555_v8 = vld [vmem:[#allocation166_spill] sm:$0xff] }
 0xb13   : > { %4449 = vadd.xlane.f32.xlu2 %v4426_v20  ;;  %v3781_v60 = vmul.f32 %v11555_v8, %v9276_v46  ;;  %v4078_v49 = vmul.f32 %v11561_v2, %v9303_v31  ;;  %v4158_v20 = vmul.f32 %v9424_v39, %v9344_v24  ;;  %v11565_v8 = vld [vmem:[#allocation182_spill] sm:$0xff]  ;;  %vm11568_vm0 = vcmp.eq.s32.totalorder %v11567_v40, 4 }
 0xb14   : > { %v4013_v35 = vadd.f32 %v3997_v7, %v3933_v15  ;;  %4445 = vadd.xlane.f32.xlu1 %v4424_v9  ;;  %v9606_v0 = vadd.f32 %v4309_v58, %v9531_v44  ;;  %v11559_v44 = vld [vmem:[#allocation198_spill] sm:$0xff]  ;;  %v3919_v15 = vmul.f32 %v11563_v41, %v9281_v25 }
 0xb15   : > { %v9599_v30 = vpop.xlane.xlu2 %4221  ;;  %v3998_v18 = vmul.f32 %v11559_v44, %v9293_v43  ;;  %v11571_v44 = vld [vmem:[#allocation218_spill] sm:$0xff] }
 0xb16   : > { %v4093_v45 = vadd.f32 %v4077_v55, %v4013_v35  ;;  %4465 = vadd.xlane.f32.xlu0 %v4434_v51 }
 0xb17   : > { %v3846_v23 = vpop.f32.mrf.mxu2  ;;  %v4218_v33 = vpop.xlane.xlu1 %4217 }
 0xb18   : > { %v3847_v27 = vadd.f32 %v3846_v23, %v3781_v60  ;;  %v4173_v17 = vadd.f32 %v4157_v61, %v4093_v45  ;;  %v4238_v26 = vmul.f32 %v4218_v33, %v9414_v11  ;;  %v3999_v60 = vmul.f32 %v11565_v8, %v9293_v43  ;;  %v11566_v33 = vld [vmem:[#allocation158_spill] sm:$0xff]  ;;  %v11577_v8 = vld [vmem:[#allocation215_spill] sm:$0xff] }
 0xb19   : > { %v4286_v63 = vpop.xlane.xlu0 %4285 }
 0xb1a   : > { %v3934_v52 = vadd.f32 %v3918_v50, %v3847_v27  ;;  %v9619_v54 = vadd.f32 %v4237_v28, %v4173_v17  ;;  %v4312_v16 = vmul.f32 %v4286_v63, %v9582_v1  ;;  %v11569_v50 = vld [vmem:[#allocation216_spill] sm:$0xff] }
 0xb1b   : > { %4455 = vadd.xlane.f32.xlu2 %v4429_v32  ;;  %v4079_v28 = vmul.f32 %v11569_v50, %v9303_v31 }
 0xb1c   : > { %v4014_v62 = vadd.f32 %v3998_v18, %v3934_v52  ;;  %4451 = vadd.xlane.f32.xlu1 %v4427_v36  ;;  %v9632_v7 = vadd.f32 %v4312_v16, %v9559_v3  ;;  %v4432_v3 = vsel %vm11564_vm9, %v8814_v6, 0.0  ;;  %v11570_v6 = vld [vmem:[#allocation168_spill] sm:$0xff]  ;;  %v11572_v36 = vld [vmem:[#allocation170_spill] sm:$0xff]  ;;  %vm11744_vm9 = vmmov %vm11642_vm1 }
 0xb1d   : > { %v4276_v10 = vpop.xlane.xlu2 %4275  ;;  %v3783_v17 = vmul.f32 %v11570_v6, %v9276_v46  ;;  %v3920_v2 = vmul.f32 %v11572_v36, %v9281_v25 }
 0xb1e   : > { %v4094_v19 = vadd.f32 %v4078_v49, %v4014_v62  ;;  %v4307_v4 = vmul.f32 %v4276_v10, %v9582_v1  ;;  %v4239_v49 = vmul.f32 %v9533_v22, %v9414_v11  ;;  %v4433_v22 = vsel %vm11575_vm2, %v11528_v38, 0.0 }
 0xb1f   : > { %v3849_v9 = vpop.f32.mrf.mxu2  ;;  %v4224_v34 = vpop.xlane.xlu1 %4223  ;;  %v4240_v38 = vmul.f32 %v9599_v30, %v9414_v11 }
 0xb20   : > { %v4174_v55 = vadd.f32 %v4158_v20, %v4094_v19  ;;  %v9639_v35 = vadd.f32 %v4307_v4, %v9430_v13  ;;  %v3850_v58 = vadd.f32 %v3849_v9, %v3782_v42  ;;  %v4241_v39 = vmul.f32 %v4224_v34, %v9414_v11  ;;  %v11576_v34 = vld [vmem:[#allocation222_spill] sm:$0xff] }
 0xb21   : > { %v4292_v23 = vpop.xlane.xlu0 %4291  ;;  %v4430_v13 = vsel %vm11568_vm0, %v11566_v33, 0.0  ;;  %vm11745_vm0 = vmmov %vm11642_vm1 }
 0xb22   : > { %v4254_v61 = vadd.f32 %v4238_v26, %v4174_v55  ;;  %v3935_v45 = vadd.f32 %v3919_v15, %v3850_v58  ;;  %v4257_v51 = vadd.f32 %v4241_v39, %v9467_v59  ;;  %v4315_v53 = vmul.f32 %v4292_v23, %v9582_v1  ;;  %vm11748_vm2 = vmmov %vm11745_vm0 }
 0xb23   : > { %4461 = vadd.xlane.f32.xlu2 %v4432_v3  ;;  %v4159_v59 = vmul.f32 %v11571_v44, %v9344_v24  ;;  %v4080_v55 = vmul.f32 %v11576_v34, %v9303_v31 }
 0xb24   : > { %v4015_v27 = vadd.f32 %v3999_v60, %v3935_v45  ;;  %4457 = vadd.xlane.f32.xlu1 %v4430_v13  ;;  %v9659_v52 = vadd.f32 %v4315_v53, %v9589_v48  ;;  %v11574_v48 = vld [vmem:[#allocation194_spill] sm:$0xff]  ;;  %v4160_v60 = vmul.f32 %v11577_v8, %v9344_v24 }
 0xb25   : > { %v4282_v32 = vpop.xlane.xlu2 %4281  ;;  %v4000_v4 = vmul.f32 %v11574_v48, %v9293_v43 }
 0xb26   : > { %v4095_v18 = vadd.f32 %v4079_v28, %v4015_v27  ;;  %v4310_v63 = vmul.f32 %v4282_v32, %v9582_v1 }
 0xb27   : > { %v3851_v62 = vpop.f32.mrf.mxu2  ;;  %v4278_v16 = vpop.xlane.xlu1 %4277 }
 0xb28   : > { %v9667_v42 = vadd.f32 %v4310_v63, %v11573_v12  ;;  %v3852_v10 = vadd.f32 %v3851_v62, %v3783_v17  ;;  %v4308_v20 = vmul.f32 %v4278_v16, %v9582_v1  ;;  %v4175_v19 = vadd.f32 %v4159_v59, %v4095_v18 }
 0xb29   : > { %v4298_v9 = vpop.xlane.xlu0 %4297 }
 0xb2a   : > { %v3936_v41 = vadd.f32 %v3920_v2, %v3852_v10  ;;  %v9673_v15 = vadd.f32 %v4308_v20, %v9493_v14  ;;  %v4255_v26 = vadd.f32 %v4239_v49, %v4175_v19  ;;  %v4318_v39 = vmul.f32 %v4298_v9, %v9582_v1 }
 0xb2c   : > { %v4016_v58 = vadd.f32 %v4000_v4, %v3936_v41  ;;  %4463 = vadd.xlane.f32.xlu1 %v4433_v22  ;;  %v9683_v14 = vadd.f32 %v4318_v39, %v4254_v61 }
 0xb2d   : > { %v4288_v3 = vpop.xlane.xlu2 %4287 }
 0xb2e   : > { %v4096_v45 = vadd.f32 %v4080_v55, %v4016_v58  ;;  %v4313_v23 = vmul.f32 %v4288_v3, %v9582_v1  ;;  %v234_v58 = vld [vmem:[%s10289_s3 + $0x4] sm:$0x1] }
 0xb2f   : > { %v4284_v33 = vpop.xlane.xlu1 %4283  ;;  %v236_v3 = vunpack.c.l.bf16 %v234_v58 }
 0xb30   : > { %v9689_v29 = vadd.f32 %v4313_v23, %v9501_v5  ;;  %v4311_v40 = vmul.f32 %v4284_v33, %v9582_v1  ;;  %v4176_v13 = vadd.f32 %v4160_v60, %v4096_v45  ;;  %v9734_v60 = vperm.slane %v9267_v47, 7 }
 0xb31   : > { %v4304_v27 = vpop.xlane.xlu0 %4303  ;;  %v9736_v45 = vperm.slane %v236_v3, 0 }
 0xb32   : > { %v9693_v50 = vadd.f32 %v4311_v40, %v9522_v56  ;;  %v4256_v28 = vadd.f32 %v4240_v38, %v4176_v13  ;;  %v4321_v61 = vmul.f32 %v4304_v27, %v9582_v1 }
 0xb34   : > { %v9696_v6 = vadd.f32 %v4321_v61, %v4257_v51 }
 0xb35   : > { %v4294_v53 = vpop.xlane.xlu2 %4293 }
 0xb36   : > { %v4316_v17 = vmul.f32 %v4294_v53, %v9582_v1 }
 0xb37   : > { %v4290_v32 = vpop.xlane.xlu1 %4289 }
 0xb38   : > { %v9700_v30 = vadd.f32 %v4316_v17, %v9591_v57  ;;  %v4314_v5 = vmul.f32 %v4290_v32, %v9582_v1 }
 0xb39   : > { %v4358_v56 = vpop.xlane.xlu0 %4357 }
 0xb3a   : > { %v9704_v44 = vadd.f32 %v4314_v5, %v9550_v21  ;;  %v4388_v23 = vmul.f32 %v4358_v56, %v9734_v60 }
 0xb3d   : > { %v4300_v59 = vpop.xlane.xlu2 %4299 }
 0xb3e   : > { %v4319_v18 = vmul.f32 %v4300_v59, %v9582_v1 }
 0xb3f   : > { %v4296_v63 = vpop.xlane.xlu1 %4295 }
 0xb40   : > { %v9707_v36 = vadd.f32 %v4319_v18, %v4255_v26  ;;  %v4317_v51 = vmul.f32 %v4296_v63, %v9582_v1 }
 0xb41   : > { %v4364_v49 = vpop.xlane.xlu0 %4363 }
 0xb42   : > { %v9711_v2 = vadd.f32 %v4317_v51, %v9619_v54 }
 0xb45   : > { %v4306_v57 = vpop.xlane.xlu2 %4305 }
 0xb46   : > { %v4322_v62 = vmul.f32 %v4306_v57, %v9582_v1 }
 0xb47   : > { %v4302_v16 = vpop.xlane.xlu1 %4301 }
 0xb48   : > { %v9715_v21 = vadd.f32 %v4322_v62, %v9571_v37  ;;  %v4320_v12 = vmul.f32 %v4302_v16, %v9582_v1 }
 0xb49   : > { %v4370_v20 = vpop.xlane.xlu0 %4369 }
 0xb4a   : > { %v9718_v10 = vadd.f32 %v4320_v12, %v4256_v28  ;;  %v4404_v28 = vadd.f32 %v4388_v23, %v9673_v15  ;;  %v4394_v62 = vmul.f32 %v4370_v20, %v9734_v60 }
 0xb4d   : > { %v4360_v19 = vpop.xlane.xlu2 %4359 }
 0xb4e   : > { %v4389_v5 = vmul.f32 %v4360_v19, %v9734_v60 }
 0xb4f   : > { %v4356_v48 = vpop.xlane.xlu1 %4355 }
 0xb50   : > { %v4387_v33 = vmul.f32 %v4356_v48, %v9734_v60  ;;  %v4391_v48 = vmul.f32 %v4364_v49, %v9734_v60 }
 0xb51   : > { %v9720_v4 = vpop.xlane.xlu0 %4375 }
 0xb52   : > { %v4403_v27 = vadd.f32 %v4387_v33, %v9639_v35  ;;  %v4405_v35 = vadd.f32 %v4389_v5, %v9606_v0  ;;  %v4410_v0 = vadd.f32 %v4394_v62, %v9704_v44 }
 0xb55   : > { %v4366_v41 = vpop.xlane.xlu2 %4365 }
 0xb57   : > { %v4362_v54 = vpop.xlane.xlu1 %4361 }
 0xb58   : > { %v4390_v56 = vmul.f32 %v4362_v54, %v9734_v60  ;;  %v4392_v54 = vmul.f32 %v4366_v41, %v9734_v60 }
 0xb59   : > { %v9722_v9 = vpop.xlane.xlu0 %4381 }
 0xb5a   : > { %v4406_v51 = vadd.f32 %v4390_v56, %v9667_v42  ;;  %v4408_v41 = vadd.f32 %v4392_v54, %v9632_v7 }
 0xb5d   : > { %v4372_v26 = vpop.xlane.xlu2 %4371 }
 0xb5f   : > { %v4368_v22 = vpop.xlane.xlu1 %4367 }
 0xb60   : > { %v4393_v16 = vmul.f32 %v4368_v22, %v9734_v60  ;;  %v4407_v22 = vadd.f32 %v4391_v48, %v9693_v50 }
 0xb61   : > { %v4436_v37 = vpop.xlane.xlu0 %4435 }
 0xb62   : > { %v4467_v40 = vmul.f32 %v4436_v37, %v9736_v45  ;;  %v4409_v42 = vadd.f32 %v4393_v16, %v9689_v29  ;;  %v4395_v29 = vmul.f32 %v4372_v26, %v9734_v60  ;;  %v4400_v26 = vmul.f32 %v9722_v9, %v9734_v60 }
 0xb64   : > { %v4483_v47 = vadd.f32 %v4467_v40, %v4403_v27 }
 0xb65   : > { %v9724_v34 = vpop.xlane.xlu2 %4377 }
 0xb67   : > { %v4374_v55 = vpop.xlane.xlu1 %4373 }
 0xb69   : > { %v4442_v38 = vpop.xlane.xlu0 %4441 }
 0xb6a   : > { %v4470_v15 = vmul.f32 %v4442_v38, %v9736_v45 }
 0xb6c   : > { %v4486_v12 = vadd.f32 %v4470_v15, %v4406_v51 }
 0xb6e   : > { %v9729_v39 = vpop.xlane.xlu2 %4383 }
 0xb6f   : > { %v9731_v8 = vpop.xlane.xlu1 %4379 }
 0xb71   : > { %v4448_v59 = vpop.xlane.xlu0 %4447 }
 0xb72   : > { %v4473_v37 = vmul.f32 %v4448_v59, %v9736_v45 }
 0xb74   : > { %v4489_v38 = vadd.f32 %v4473_v37, %v4409_v42 }
 0xb76   : > { %v4438_v13 = vpop.xlane.xlu2 %4437 }
 0xb77   : > { %v4468_v61 = vmul.f32 %v4438_v13, %v9736_v45  ;;  %v9744_v53 = vpop.xlane.xlu1 %4385 }
 0xb79   : > { %v4484_v17 = vadd.f32 %v4468_v61, %v4404_v28  ;;  %v4454_v33 = vpop.xlane.xlu0 %4453  ;;  %v4396_v61 = vmul.f32 %v4374_v55, %v9734_v60  ;;  %v4399_v55 = vmul.f32 %v9731_v8, %v9734_v60 }
 0xb7a   : > { %v4476_v50 = vmul.f32 %v4454_v33, %v9736_v45 }
 0xb7b   : > { %v4904_v32 = vpack.i.bf16 %v4484_v17, %v4483_v47  ;;  %v4412_v5 = vadd.f32 %v4396_v61, %v9700_v30  ;;  %v4415_v62 = vadd.f32 %v4399_v55, %v9707_v36  ;;  %v4401_v36 = vmul.f32 %v9729_v39, %v9734_v60  ;;  %v11582_v61 = vld [vmem:[#allocation82_spill] sm:$0xff] }
 0xb7c   : > { %v11587_v55 = vld [vmem:[#allocation14_spill] sm:$0xff] }
 0xb7d   : > { %4905 = vrot.lane.b32.xlu2 %v4904_v32, %s5118_s11  ;;  %v4411_v32 = vadd.f32 %v4395_v29, %v9659_v52  ;;  %v4417_v42 = vadd.f32 %v4401_v36, %v9696_v6  ;;  %v11597_v36 = vld [vmem:[#allocation29_spill] sm:$0xff] }
 0xb7e   : > { %v4444_v18 = vpop.xlane.xlu2 %4443 }
 0xb7f   : > { %v4440_v63 = vpop.xlane.xlu1 %4439  ;;  %v4471_v23 = vmul.f32 %v4444_v18, %v9736_v45  ;;  %v4492_v18 = vadd.f32 %v4476_v50, %v4412_v5  ;;  %v11585_v5 = vld [vmem:[#allocation13_spill] sm:$0xff] }
 0xb80   : > { %v4469_v57 = vmul.f32 %v4440_v63, %v9736_v45  ;;  %v4397_v63 = vmul.f32 %v9720_v4, %v9734_v60 }
 0xb81   : > { %v4487_v28 = vadd.f32 %v4471_v23, %v4407_v22  ;;  %v4460_v59 = vpop.xlane.xlu0 %4459 }
 0xb82   : > { %v4485_v19 = vadd.f32 %v4469_v57, %v4405_v35  ;;  %v4398_v35 = vmul.f32 %v9724_v34, %v9734_v60  ;;  %v4479_v52 = vmul.f32 %v4460_v59, %v9736_v45  ;;  %v4416_v57 = vadd.f32 %v4400_v26, %v9718_v10  ;;  %v11586_v59 = vld [vmem:[#allocation66_spill] sm:$0xff] }
 0xb83   : > { %v4413_v16 = vadd.f32 %v4397_v63, %v9711_v2  ;;  %v9828_v26 = vmul.f32 %v9281_v25, %v11586_v59  ;;  %v11588_v63 = vld [vmem:[#allocation17_spill] sm:$0xff] }
 0xb84   : > { %v4909_v58 = vpack.i.bf16 %v4486_v12, %v4485_v19  ;;  %v4414_v12 = vadd.f32 %v4398_v35, %v9683_v14  ;;  %v4495_v34 = vadd.f32 %v4479_v52, %v4415_v62  ;;  %v9836_v35 = vmul.f32 %v9281_v25, %v11588_v63  ;;  %v11589_v52 = vld [vmem:[#allocation75_spill] sm:$0xff]  ;;  %v11591_v62 = vld [vmem:[#allocation20_spill] sm:$0xff] }
 0xb85   : > { %v11611_v63 = vld [vmem:[#allocation71_spill] sm:$0xff] }
 0xb86   : > { %v4450_v3 = vpop.xlane.xlu2 %4449  ;;  %4910 = vrot.lane.b32.xlu1 %v4909_v58, %s5118_s11 }
 0xb87   : > { %v4474_v20 = vmul.f32 %v4450_v3, %v9736_v45  ;;  %v4446_v49 = vpop.xlane.xlu1 %4445  ;;  %v4402_v3 = vmul.f32 %v9744_v53, %v9734_v60  ;;  %v1792_v53 = vpop.f32.mrf.mxu0 }
 0xb88   : > { %v4472_v13 = vmul.f32 %v4446_v49, %v9736_v45 }
 0xb89   : > { %v4490_v40 = vadd.f32 %v4474_v20, %v4410_v0  ;;  %v4466_v58 = vpop.xlane.xlu0 %4465  ;;  %v4418_v23 = vadd.f32 %v4402_v3, %v9715_v21  ;;  %v9864_v3 = vmul.f32 %v9293_v43, %v11597_v36 }
 0xb8a   : > { %v4488_v27 = vadd.f32 %v4472_v13, %v4408_v41  ;;  %v4482_v2 = vmul.f32 %v4466_v58, %v9736_v45  ;;  %v11578_v41 = vld [vmem:[#allocation61_spill] sm:$0xff] }
 0xb8b   : > { %v4919_v44 = vpack.i.bf16 %v4490_v40, %v4489_v38  ;;  %v1744_v38 = vmul.f32 %v9276_v46, %v11578_v41  ;;  %v11579_v40 = vld [vmem:[#allocation11_spill] sm:$0xff] }
 0xb8c   : > { %v4914_v47 = vpack.i.bf16 %v4488_v27, %v4487_v28  ;;  %v4498_v22 = vadd.f32 %v4482_v2, %v4418_v23  ;;  %v1743_v13 = vmul.f32 %v9276_v46, %v11579_v40  ;;  %v11581_v27 = vld [vmem:[#allocation8_spill] sm:$0xff]  ;;  %v11600_v23 = vld [vmem:[#allocation39_spill] sm:$0xff]  ;;  %v11604_v40 = vld [vmem:[#allocation25_spill] sm:$0xff] }
 0xb8d   : > { %4920 = vrot.lane.b32.xlu2 %v4919_v44, %s5118_s11  ;;  %v11580_v44 = vld [vmem:[#allocation18_spill] sm:$0xff]  ;;  %v9810_v29 = vmul.f32 %v9276_v46, %v11581_v27  ;;  %v11603_v41 = vld [vmem:[#allocation27_spill] sm:$0xff] }
 0xb8e   : > { %v4456_v17 = vpop.xlane.xlu2 %4455  ;;  %4915 = vrot.lane.b32.xlu0 %v4914_v47, %s5118_s11  ;;  %v1882_v6 = vmul.f32 %v9281_v25, %v11580_v44  ;;  %v1793_v21 = vadd.f32 %v1792_v53, %v1743_v13  ;;  %v9814_v47 = vmul.f32 %v9276_v46, %v11582_v61  ;;  %v11602_v53 = vld [vmem:[#allocation22_spill] sm:$0xff]  ;;  %v1888_v13 = vmul.f32 %v9281_v25, %v11604_v40  ;;  %v11619_v40 = vld [vmem:[#allocation105_spill] sm:$0xff] }
 0xb8f   : > { %v4452_v7 = vpop.xlane.xlu1 %4451  ;;  %v4477_v9 = vmul.f32 %v4456_v17, %v9736_v45  ;;  %v1794_v49 = vpop.f32.mrf.mxu0  ;;  %v11583_v17 = vld [vmem:[#allocation9_spill] sm:$0xff]  ;;  %v11607_v61 = vld [vmem:[#allocation78_spill] sm:$0xff] }
 0xb90   : > { %v4475_v56 = vmul.f32 %v4452_v7, %v9736_v45  ;;  %v1795_v28 = vadd.f32 %v1794_v49, %v1744_v38  ;;  %v1881_v50 = vmul.f32 %v9281_v25, %v11583_v17  ;;  %v11584_v7 = vld [vmem:[#allocation10_spill] sm:$0xff]  ;;  %v9878_v49 = vmul.f32 %v9276_v46, %v11602_v53 }
 0xb91   : > { %v4493_v54 = vadd.f32 %v4477_v9, %v4413_v16  ;;  %v9844_v9 = vmul.f32 %v9276_v46, %v11591_v62  ;;  %v9882_v38 = vmul.f32 %v9281_v25, %v11603_v41  ;;  %v2124_v17 = vmul.f32 %v9344_v24, %v11607_v61 }
 0xb92   : > { %v4491_v15 = vadd.f32 %v4475_v56, %v4411_v32  ;;  %v9820_v32 = vmul.f32 %v9281_v25, %v11584_v7  ;;  %v9824_v56 = vmul.f32 %v9276_v46, %v11585_v5  ;;  %v11609_v5 = vld [vmem:[#allocation30_spill] sm:$0xff] }
 0xb93   : > { %v9898_v59 = vmul.f32 %v9281_v25, %v11609_v5 }
 0xb94   : > { %v4924_v30 = vpack.i.bf16 %v4492_v18, %v4491_v15  ;;  %v9832_v18 = vmul.f32 %v9276_v46, %v11587_v55  ;;  %v1898_v15 = vadd.f32 %v1882_v6, %v1795_v28  ;;  %v11605_v28 = vld [vmem:[#allocation47_spill] sm:$0xff]  ;;  %v11606_v6 = vld [vmem:[#allocation46_spill] sm:$0xff]  ;;  %v11610_v55 = vld [vmem:[#allocation28_spill] sm:$0xff] }
 0xb95   : > { %v9888_v44 = vmul.f32 %v9281_v25, %v11605_v28  ;;  %v2287_v28 = vmul.f32 %v9582_v1, %v11619_v40 }
 0xb96   : > { %v4462_v51 = vpop.xlane.xlu2 %4461  ;;  %4925 = vrot.lane.b32.xlu0 %v4924_v30, %s5118_s11  ;;  %v1747_v30 = vmul.f32 %v9276_v46, %v11589_v52  ;;  %v9906_v52 = vmul.f32 %v9276_v46, %v11611_v63  ;;  %v11624_v63 = vld [vmem:[#allocation178_spill] sm:$0xff] }
 0xb97   : > { %v4480_v8 = vmul.f32 %v4462_v51, %v9736_v45  ;;  %v4458_v4 = vpop.xlane.xlu1 %4457  ;;  %v11590_v51 = vld [vmem:[#allocation26_spill] sm:$0xff] }
 0xb98   : > { %v4478_v48 = vmul.f32 %v4458_v4, %v9736_v45  ;;  %v11593_v4 = vld [vmem:[#allocation16_spill] sm:$0xff] }
 0xb99   : > { %v4496_v19 = vadd.f32 %v4480_v8, %v4416_v57  ;;  %v1749_v57 = vmul.f32 %v9276_v46, %v11590_v51  ;;  %v11592_v8 = vld [vmem:[#allocation15_spill] sm:$0xff]  ;;  %v11612_v51 = vld [vmem:[#allocation34_spill] sm:$0xff] }
 0xb9a   : > { %v4494_v10 = vadd.f32 %v4478_v48, %v4414_v12  ;;  %v1750_v16 = vmul.f32 %v9276_v46, %v11592_v8  ;;  %v9850_v12 = vmul.f32 %v9281_v25, %v11593_v4  ;;  %v1897_v48 = vadd.f32 %v1881_v50, %v1793_v21  ;;  %v11608_v50 = vld [vmem:[#allocation70_spill] sm:$0xff] }
 0xb9b   : > { %v4934_v37 = vpack.i.bf16 %v4496_v19, %v4495_v34  ;;  %v11594_v34 = vld [vmem:[#allocation31_spill] sm:$0xff]  ;;  %v2044_v21 = vmul.f32 %v9303_v31, %v11606_v6  ;;  %v2125_v7 = vmul.f32 %v9344_v24, %v11608_v50  ;;  %v9910_v62 = vmul.f32 %v9276_v46, %v11612_v51 }
 0xb9c   : > { %v4929_v0 = vpack.i.bf16 %v4494_v10, %v4493_v54  ;;  %v1963_v19 = vmul.f32 %v9293_v43, %v11594_v34  ;;  %v11595_v54 = vld [vmem:[#allocation23_spill] sm:$0xff]  ;;  %v11613_v34 = vld [vmem:[#allocation53_spill] sm:$0xff]  ;;  %v1810_v51 = vadd.f32 %v11624_v63, %v1750_v16  ;;  %v11630_v16 = vld [vmem:[#allocation208_spill] sm:$0xff] }
 0xb9d   : > { %4935 = vrot.lane.b32.xlu2 %v4934_v37, %s5118_s11  ;;  %v9856_v37 = vmul.f32 %v9281_v25, %v11595_v54  ;;  %v11596_v10 = vld [vmem:[#allocation19_spill] sm:$0xff]  ;;  %v11634_v63 = vld [vmem:[#allocation45_spill] sm:$0xff] }
 0xb9e   : > { %4930 = vrot.lane.b32.xlu1 %v4929_v0, %s5118_s11  ;;  %v9860_v58 = vmul.f32 %v9281_v25, %v11596_v10  ;;  %v11598_v0 = vld [vmem:[#allocation77_spill] sm:$0xff]  ;;  %v11620_v6 = vld [vmem:[#allocation107_spill] sm:$0xff] }
 0xb9f   : > { %v4464_v14 = vpop.xlane.xlu1 %4463  ;;  %v1885_v2 = vmul.f32 %v9281_v25, %v11598_v0  ;;  %v11615_v10 = vld [vmem:[#allocation33_spill] sm:$0xff]  ;;  %v11616_v0 = vld [vmem:[#allocation36_spill] sm:$0xff]  ;;  %v11622_v50 = vld [vmem:[#allocation35_spill] sm:$0xff] }
 0xba0   : > { %v4481_v20 = vmul.f32 %v4464_v14, %v9736_v45  ;;  %v11599_v14 = vld [vmem:[#allocation21_spill] sm:$0xff]  ;;  %v9918_v36 = vmul.f32 %v9281_v25, %v11615_v10  ;;  %v9942_v5 = vmul.f32 %v9276_v46, %v11622_v50  ;;  %v11633_v50 = vld [vmem:[#allocation43_spill] sm:$0xff] }
 0xba1   : > { %v11627_v10 = vld [vmem:[#allocation37_spill] sm:$0xff] }
 0xba2   : > { %v4497_v33 = vadd.f32 %v4481_v20, %v4417_v42  ;;  %v9870_v42 = vmul.f32 %v9276_v46, %v11599_v14  ;;  %v1962_v20 = vmul.f32 %v9293_v43, %v11600_v23  ;;  %v9922_v14 = vmul.f32 %v9281_v25, %v11616_v0  ;;  %v11617_v23 = vld [vmem:[#allocation32_spill] sm:$0xff] }
 0xba3   : > { %v9952_v0 = vmul.f32 %v9293_v43, %v11627_v10  ;;  %v1904_v10 = vadd.f32 %v1888_v13, %v1810_v51 }
 0xba4   : > { %v4939_v39 = vpack.i.bf16 %v4498_v22, %v4497_v33  ;;  %v1979_v22 = vadd.f32 %v1963_v19, %v1898_v15  ;;  %v11601_v33 = vld [vmem:[#allocation54_spill] sm:$0xff]  ;;  %v1978_v27 = vadd.f32 %v1962_v20, %v1897_v48  ;;  %v9902_v15 = vmul.f32 %v9276_v46, %v11610_v55  ;;  %v11614_v48 = vld [vmem:[#allocation69_spill] sm:$0xff] }
 0xba5   : > { %v2205_v19 = vmul.f32 %v9414_v11, %v11613_v34  ;;  %v2206_v54 = vmul.f32 %v9414_v11, %v11614_v48  ;;  %v9926_v20 = vmul.f32 %v9293_v43, %v11617_v23  ;;  %v11623_v55 = vld [vmem:[#allocation154_spill] sm:$0xff]  ;;  %v11628_v23 = vld [vmem:[#allocation40_spill] sm:$0xff] }
 0xba6   : > { %4940 = vrot.lane.b32.xlu0 %v4939_v39, %s5118_s11  ;;  %v2043_v39 = vmul.f32 %v9303_v31, %v11601_v33  ;;  %v2060_v4 = vadd.f32 %v2044_v21, %v1979_v22  ;;  %v11618_v33 = vld [vmem:[#allocation94_spill] sm:$0xff]  ;;  %v2286_v21 = vmul.f32 %v9582_v1, %v11620_v6  ;;  %v9956_v46 = vmul.f32 %v9293_v43, %v11628_v23 }
 0xba7   : > { %v9930_v22 = vmul.f32 %v9281_v25, %v11618_v33  ;;  %v1803_v25 = vadd.f32 %v11623_v55, %v1747_v30  ;;  %v11626_v34 = vld [vmem:[#allocation122_spill] sm:$0xff]  ;;  %v1968_v55 = vmul.f32 %v9293_v43, %v11633_v50 }
 0xba8   : > { %v2059_v8 = vadd.f32 %v2043_v39, %v1978_v27  ;;  %v1797_v39 = vpop.f32.mrf.mxu0  ;;  %v2141_v41 = vadd.f32 %v2125_v7, %v2060_v4  ;;  %v11621_v27 = vld [vmem:[#allocation56_spill] sm:$0xff]  ;;  %v2368_v48 = vmul.f32 %v9734_v60, %v11626_v34  ;;  %v11629_v33 = vld [vmem:[#allocation42_spill] sm:$0xff] }
 0xba9   : > { %v9938_v61 = vmul.f32 %v9293_v43, %v11621_v27  ;;  %v1966_v30 = vmul.f32 %v9293_v43, %v11629_v33  ;;  %v11632_v6 = vld [vmem:[#allocation138_spill] sm:$0xff]  ;;  %v1901_v34 = vadd.f32 %v1885_v2, %v1803_v25  ;;  %v11637_v33 = vld [vmem:[#allocation51_spill] sm:$0xff]  ;;  %v1798_v13 = vadd.f32 %v1797_v39, %v9810_v29 }
 0xbaa   : > { %v2140_v53 = vadd.f32 %v2124_v17, %v2059_v8  ;;  %v2222_v7 = vadd.f32 %v2206_v54, %v2141_v41  ;;  %v11625_v8 = vld [vmem:[#allocation123_spill] sm:$0xff]  ;;  %v11631_v41 = vld [vmem:[#allocation137_spill] sm:$0xff]  ;;  %v2449_v27 = vmul.f32 %v9736_v45, %v11632_v6  ;;  %v11635_v23 = vld [vmem:[#allocation38_spill] sm:$0xff] }
 0xbab   : > { %v2367_v4 = vmul.f32 %v9734_v60, %v11625_v8  ;;  %v2448_v40 = vmul.f32 %v9736_v45, %v11631_v41  ;;  %v9969_v8 = vmul.f32 %v9293_v43, %v11634_v63  ;;  %v11638_v6 = vld [vmem:[#allocation155_spill] sm:$0xff] }
 0xbac   : > { %v2221_v17 = vadd.f32 %v2205_v19, %v2140_v53  ;;  %v1808_v19 = vadd.f32 %v11630_v16, %v1749_v57  ;;  %v2303_v54 = vadd.f32 %v2287_v28, %v2222_v7  ;;  %v1969_v57 = vmul.f32 %v9293_v43, %v11635_v23  ;;  %v11636_v28 = vld [vmem:[#allocation48_spill] sm:$0xff] }
 0xbad   : > { %v9979_v16 = vmul.f32 %v9293_v43, %v11637_v33  ;;  %v1805_v2 = vadd.f32 %v11638_v6, %v9814_v47 }
 0xbae   : > { %v2302_v53 = vadd.f32 %v2286_v21, %v2221_v17  ;;  %v9975_v21 = vmul.f32 %v9293_v43, %v11636_v28  ;;  %v2384_v7 = vadd.f32 %v2368_v48, %v2303_v54  ;;  %v1903_v41 = vadd.f32 %v9828_v26, %v1808_v19  ;;  %v11640_v54 = vld [vmem:[#allocation50_spill] sm:$0xff]  ;;  %v11641_v19 = vld [vmem:[#allocation57_spill] sm:$0xff] }
 0xbaf   : > { %v1982_v28 = vadd.f32 %v1966_v30, %v1901_v34  ;;  %v1985_v33 = vadd.f32 %v1969_v57, %v1904_v10  ;;  %v2049_v47 = vmul.f32 %v9303_v31, %v11641_v19  ;;  %v1902_v30 = vadd.f32 %v9860_v58, %v1805_v2  ;;  %v11644_v57 = vld [vmem:[#allocation52_spill] sm:$0xff]  ;;  %v11648_v2 = vld [vmem:[#allocation49_spill] sm:$0xff] }
 0xbb0   : > { %v2383_v17 = vadd.f32 %v2367_v4, %v2302_v53  ;;  %v2465_v50 = vadd.f32 %v2449_v27, %v2384_v7  ;;  %v11639_v4 = vld [vmem:[#allocation41_spill] sm:$0xff]  ;;  %v2047_v53 = vmul.f32 %v9303_v31, %v11640_v54  ;;  %v1799_v26 = vpop.f32.mrf.mxu0  ;;  %v1984_v10 = vadd.f32 %v1968_v55, %v1903_v41  ;;  %v11645_v7 = vld [vmem:[#allocation86_spill] sm:$0xff]  ;;  %v11650_v54 = vld [vmem:[#allocation99_spill] sm:$0xff] }
 0xbb1   : > { %v9987_v48 = vmul.f32 %v9293_v43, %v11639_v4  ;;  %v2130_v6 = vmul.f32 %v9344_v24, %v11645_v7  ;;  %v1800_v55 = vadd.f32 %v1799_v26, %v9832_v18  ;;  %v11652_v18 = vld [vmem:[#allocation177_spill] sm:$0xff] }
 0xbb2   : > { %v2464_v51 = vadd.f32 %v2448_v40, %v2383_v17  ;;  %v1899_v40 = vadd.f32 %v9850_v12, %v1798_v13  ;;  %v2050_v17 = vmul.f32 %v9303_v31, %v11644_v57  ;;  %v10016_v12 = vmul.f32 %v9293_v43, %v11648_v2 }
 0xbb3   : > { %v2065_v41 = vadd.f32 %v2049_v47, %v1984_v10  ;;  %v1813_v26 = vadd.f32 %v11652_v18, %v9824_v56  ;;  %v11654_v10 = vld [vmem:[#allocation113_spill] sm:$0xff] }
 0xbb4   : > { %v2066_v13 = vadd.f32 %v2050_v17, %v1985_v33  ;;  %v1980_v19 = vadd.f32 %v9864_v3, %v1899_v40  ;;  %v2292_v57 = vmul.f32 %v9582_v1, %v11654_v10  ;;  %v11655_v17 = vld [vmem:[#allocation89_spill] sm:$0xff]  ;;  %v11656_v3 = vld [vmem:[#allocation234_spill] sm:$0xff]  ;;  %v11657_v40 = vld [vmem:[#allocation219_spill] sm:$0xff] }
 0xbb5   : > { %v2146_v47 = vadd.f32 %v2130_v6, %v2065_v41  ;;  %v1825_v7 = vadd.f32 %v11657_v40, %v9910_v62 }
 0xbd7   : > { %v4906_v25 = vpop.permute.xlu2 %4905 }
 0xbd8   : > { %v4908_v63 = vunpack.i.h.bf16 %v4906_v25  ;;  %v4907_v23 = vunpack.i.l.bf16 %v4906_v25  ;;  %v11646_v25 = vld [vmem:[#allocation63_spill] sm:$0xff] }
 0xbd9   : > { %v2131_v4 = vmul.f32 %v9344_v24, %v11646_v25  ;;  %v11658_v25 = vld [vmem:[#allocation129_spill] sm:$0xff] }
 0xbda   : > { %v4564_v29 = vsel %vm11642_vm1, %v2465_v50, %v4908_v63  ;;  %v4563_v39 = vsel %vm11643_vm4, %v2464_v51, %v4907_v23  ;;  %v10010_v50 = vadd.f32 %v2047_v53, %v1982_v28  ;;  %v11647_v51 = vld [vmem:[#allocation44_spill] sm:$0xff]  ;;  %v11649_v63 = vld [vmem:[#allocation2_spill] sm:$0xff]  ;;  %v2212_v28 = vmul.f32 %v9414_v11, %v11650_v54  ;;  %vm11749_vm1 = vmmov %vm11745_vm0 }
 0xbdb   : > { %v4580_v27 = vpack.c.bf16 %v4564_v29, %v4564_v29  ;;  %v4579_v34 = vpack.c.bf16 %v4563_v39, %v4563_v39  ;;  %v1975_v58 = vmul.f32 %v9293_v43, %v11647_v51  ;;  %v2211_v23 = vmul.f32 %v9414_v11, %v11649_v63  ;;  %v11651_v43 = vld [vmem:[#allocation60_spill] sm:$0xff] }
 0xbdc   : > { %v1983_v53 = vadd.f32 %v9926_v20, %v1902_v30  ;;  %v2045_v29 = vmul.f32 %v9303_v31, %v11651_v43  ;;  %v2147_v33 = vadd.f32 %v2131_v4, %v2066_v13  ;;  %v11653_v39 = vld [vmem:[#allocation112_spill] sm:$0xff]  ;;  %v2048_v20 = vmul.f32 %v9303_v31, %v11655_v17 }
 0xbdd   : > { %4597 = vst.msk [vmem:[%s9998_s14 + $0x4] sm:$0xf] %vm4595_vm11, %v4580_v27  ;;  %v2293_v27 = vmul.f32 %v9582_v1, %v11653_v39  ;;  %v1823_v30 = vadd.f32 %v11656_v3, %v9906_v52  ;;  %v2227_v56 = vadd.f32 %v2211_v23, %v2146_v47  ;;  %v2373_v4 = vmul.f32 %v9734_v60, %v11658_v25  ;;  %v11659_v51 = vld [vmem:[#allocation128_spill] sm:$0xff]  ;;  %v11661_v52 = vld [vmem:[#allocation187_spill] sm:$0xff]  ;;  %v11664_v47 = vld [vmem:[#allocation93_spill] sm:$0xff] }
 0xbde   : > { %4596 = vst.msk [vmem:[%s9998_s14] sm:$0xf] %vm4595_vm11, %v4579_v34  ;;  %v1900_v34 = vadd.f32 %v9820_v32, %v1800_v55  ;;  %v2228_v6 = vadd.f32 %v2212_v28, %v2147_v33  ;;  %v2374_v2 = vmul.f32 %v9734_v60, %v11659_v51  ;;  %v2061_v41 = vadd.f32 %v2045_v29, %v1980_v19  ;;  %v11660_v13 = vld [vmem:[#allocation68_spill] sm:$0xff]  ;;  %v11662_v23 = vld [vmem:[#allocation143_spill] sm:$0xff] }
 0xbdf   : > { %v10050_v32 = vmul.f32 %v9303_v31, %v11660_v13  ;;  %v1905_v55 = vadd.f32 %v9882_v38, %v1813_v26  ;;  %v1815_v63 = vadd.f32 %v11661_v52, %v9870_v42  ;;  %v2308_v62 = vadd.f32 %v2292_v57, %v2227_v56  ;;  %v11663_v43 = vld [vmem:[#allocation144_spill] sm:$0xff]  ;;  %v11665_v38 = vld [vmem:[#allocation211_spill] sm:$0xff] }
 0xbe0   : > { %v2309_v54 = vadd.f32 %v2293_v27, %v2228_v6  ;;  %v2454_v28 = vmul.f32 %v9736_v45, %v11662_v23  ;;  %v2455_v18 = vmul.f32 %v9736_v45, %v11663_v43  ;;  %v2046_v19 = vmul.f32 %v9303_v31, %v11664_v47  ;;  %v11666_v17 = vld [vmem:[#allocation64_spill] sm:$0xff]  ;;  %v11675_v23 = vld [vmem:[#allocation6_spill] sm:$0xff]  ;;  %v11676_v43 = vld [vmem:[#allocation85_spill] sm:$0xff] }
 0xbe1   : > { %v1981_v29 = vadd.f32 %v9952_v0, %v1900_v34  ;;  %v10062_v33 = vadd.f32 %v2048_v20, %v1983_v53  ;;  %v1818_v26 = vadd.f32 %v11665_v38, %v9878_v49  ;;  %v1909_v42 = vadd.f32 %v9856_v37, %v1823_v30  ;;  %v11667_v56 = vld [vmem:[#allocation72_spill] sm:$0xff]  ;;  %v11668_v30 = vld [vmem:[#allocation3_spill] sm:$0xff] }
 0xbe2   : > { %v1910_v39 = vadd.f32 %v9922_v14, %v1825_v7  ;;  %v2389_v27 = vadd.f32 %v2373_v4, %v2308_v62  ;;  %v2390_v10 = vadd.f32 %v2374_v2, %v2309_v54  ;;  %v1986_v57 = vadd.f32 %v9938_v61, %v1905_v55  ;;  %v11669_v61 = vld [vmem:[#allocation190_spill] sm:$0xff]  ;;  %v11672_v55 = vld [vmem:[#allocation55_spill] sm:$0xff] }
 0xbe3   : > { %v2056_v3 = vmul.f32 %v9303_v31, %v11666_v17  ;;  %v1906_v40 = vadd.f32 %v9836_v35, %v1815_v63  ;;  %v2051_v0 = vmul.f32 %v9303_v31, %v11667_v56  ;;  %v1907_v37 = vadd.f32 %v9898_v59, %v1818_v26  ;;  %v11674_v62 = vld [vmem:[#allocation91_spill] sm:$0xff]  ;;  %v11680_v17 = vld [vmem:[#allocation58_spill] sm:$0xff] }
 0xbe4   : > { %v2470_v34 = vadd.f32 %v2454_v28, %v2389_v27  ;;  %v2471_v20 = vadd.f32 %v2455_v18, %v2390_v10  ;;  %v2062_v14 = vadd.f32 %v2046_v19, %v1981_v29  ;;  %v2127_v7 = vmul.f32 %v9344_v24, %v11668_v30  ;;  %v11677_v26 = vld [vmem:[#allocation103_spill] sm:$0xff]  ;;  %v11679_v10 = vld [vmem:[#allocation92_spill] sm:$0xff] }
 0xbe5   : > { %v1820_v25 = vadd.f32 %v11669_v61, %v9844_v9  ;;  %v1990_v4 = vadd.f32 %v9987_v48, %v1909_v42  ;;  %v1991_v35 = vadd.f32 %v1975_v58, %v1910_v39  ;;  %v10082_v13 = vadd.f32 %v2051_v0, %v1986_v57  ;;  %v11673_v9 = vld [vmem:[#allocation59_spill] sm:$0xff]  ;;  %v11678_v39 = vld [vmem:[#allocation104_spill] sm:$0xff]  ;;  %v11687_v61 = vld [vmem:[#allocation110_spill] sm:$0xff] }
 0xbe6   : > { %v2126_v59 = vmul.f32 %v9344_v24, %v11672_v55  ;;  %v10087_v54 = vadd.f32 %v9975_v21, %v1906_v40  ;;  %v2055_v48 = vmul.f32 %v9303_v31, %v11673_v9  ;;  %v2136_v58 = vmul.f32 %v9344_v24, %v11674_v62  ;;  %v11681_v40 = vld [vmem:[#allocation73_spill] sm:$0xff]  ;;  %v11686_v30 = vld [vmem:[#allocation108_spill] sm:$0xff]  ;;  %v11689_v55 = vld [vmem:[#allocation134_spill] sm:$0xff] }
 0xbe7   : > { %v4921_v53 = vpop.permute.xlu2 %4920  ;;  %v2137_v28 = vmul.f32 %v9344_v24, %v11675_v23  ;;  %v10097_v18 = vmul.f32 %v9303_v31, %v11676_v43  ;;  %v10100_v47 = vadd.f32 %v9979_v16, %v1907_v37  ;;  %v2143_v19 = vadd.f32 %v2127_v7, %v2062_v14  ;;  %v11685_v14 = vld [vmem:[#allocation24_spill] sm:$0xff]  ;;  %v11690_v9 = vld [vmem:[#allocation126_spill] sm:$0xff]  ;;  %v11692_v43 = vld [vmem:[#allocation149_spill] sm:$0xff] }
 0xbe8   : > { %v4923_v49 = vunpack.i.h.bf16 %v4921_v53  ;;  %v4922_v6 = vunpack.i.l.bf16 %v4921_v53  ;;  %v10103_v21 = vadd.f32 %v9888_v44, %v1820_v25  ;;  %v2071_v29 = vadd.f32 %v2055_v48, %v1990_v4  ;;  %v11682_v53 = vld [vmem:[#allocation119_spill] sm:$0xff]  ;;  %v11691_v62 = vld [vmem:[#allocation124_spill] sm:$0xff] }
 0xbe9   : > { %v2072_v38 = vadd.f32 %v2056_v3, %v1991_v35  ;;  %v2217_v42 = vmul.f32 %v9414_v11, %v11677_v26  ;;  %v2218_v27 = vmul.f32 %v9414_v11, %v11678_v39  ;;  %v10115_v16 = vmul.f32 %v9344_v24, %v11679_v10 }
 0xbea   : > { %v4570_v51 = vsel %vm11670_vm3, %v2471_v20, %v4923_v49  ;;  %v4569_v2 = vsel %vm11671_vm5, %v2470_v34, %v4922_v6  ;;  %v2142_v57 = vadd.f32 %v2126_v59, %v2061_v41  ;;  %v2207_v44 = vmul.f32 %v9414_v11, %v11680_v17  ;;  %v11683_v20 = vld [vmem:[#allocation118_spill] sm:$0xff]  ;;  %v11684_v6 = vld [vmem:[#allocation87_spill] sm:$0xff] }
 0xbeb   : > { %v4586_v52 = vpack.c.bf16 %v4570_v51, %v4570_v51  ;;  %v4585_v63 = vpack.c.bf16 %v4569_v2, %v4569_v2  ;;  %v2208_v56 = vmul.f32 %v9414_v11, %v11681_v40  ;;  %v2152_v3 = vadd.f32 %v2136_v58, %v2071_v29  ;;  %v11688_v51 = vld [vmem:[#allocation136_spill] sm:$0xff] }
 0xbec   : > { %v2153_v0 = vadd.f32 %v2137_v28, %v2072_v38  ;;  %v2299_v34 = vmul.f32 %v9582_v1, %v11682_v53  ;;  %v2298_v49 = vmul.f32 %v9582_v1, %v11683_v20  ;;  %v2128_v37 = vmul.f32 %v9344_v24, %v11684_v6  ;;  %v11693_v38 = vld [vmem:[#allocation150_spill] sm:$0xff]  ;;  %v11697_v53 = vld [vmem:[#allocation81_spill] sm:$0xff] }
 0xbed   : > { %4603 = vst.msk [vmem:[%s9998_s14 + $0x1c] sm:$0xf] %vm4595_vm11, %v4586_v52  ;;  %v2129_v41 = vmul.f32 %v9344_v24, %v11685_v14  ;;  %v2288_v7 = vmul.f32 %v9582_v1, %v11686_v30  ;;  %v2289_v25 = vmul.f32 %v9582_v1, %v11687_v61  ;;  %v2233_v4 = vadd.f32 %v2217_v42, %v2152_v3  ;;  %v11696_v3 = vld [vmem:[#allocation67_spill] sm:$0xff] }
 0xbee   : > { %4602 = vst.msk [vmem:[%s9998_s14 + $0x18] sm:$0xf] %vm4595_vm11, %v4585_v63  ;;  %v2234_v35 = vadd.f32 %v2218_v27, %v2153_v0  ;;  %v2379_v2 = vmul.f32 %v9734_v60, %v11688_v51  ;;  %v2380_v59 = vmul.f32 %v9734_v60, %v11689_v55  ;;  %v2223_v52 = vadd.f32 %v2207_v44, %v2142_v57  ;;  %v11694_v27 = vld [vmem:[#allocation142_spill] sm:$0xff] }
 0xbef   : > { %v2224_v63 = vadd.f32 %v2208_v56, %v2143_v19  ;;  %v2370_v48 = vmul.f32 %v9734_v60, %v11690_v9  ;;  %v2369_v58 = vmul.f32 %v9734_v60, %v11691_v62  ;;  %v2314_v28 = vadd.f32 %v2298_v49, %v2233_v4  ;;  %v11695_v19 = vld [vmem:[#allocation140_spill] sm:$0xff]  ;;  %v11702_v62 = vld [vmem:[#allocation125_spill] sm:$0xff] }
 0xbf0   : > { %v2315_v23 = vadd.f32 %v2299_v34, %v2234_v35  ;;  %v2460_v29 = vmul.f32 %v9736_v45, %v11692_v43  ;;  %v2461_v26 = vmul.f32 %v9736_v45, %v11693_v38  ;;  %v2304_v42 = vadd.f32 %v2288_v7, %v2223_v52 }
 0xbf1   : > { %v2305_v39 = vadd.f32 %v2289_v25, %v2224_v63  ;;  %v2450_v10 = vmul.f32 %v9736_v45, %v11694_v27  ;;  %v2451_v57 = vmul.f32 %v9736_v45, %v11695_v19  ;;  %v2144_v17 = vadd.f32 %v2128_v37, %v10010_v50  ;;  %v11698_v25 = vld [vmem:[#allocation109_spill] sm:$0xff]  ;;  %v11699_v37 = vld [vmem:[#allocation111_spill] sm:$0xff] }
 0xbf2   : > { %v2145_v44 = vadd.f32 %v2129_v41, %v10062_v33  ;;  %v2395_v40 = vadd.f32 %v2379_v2, %v2314_v28  ;;  %v2396_v56 = vadd.f32 %v2380_v59, %v2315_v23  ;;  %v2210_v0 = vmul.f32 %v9414_v11, %v11696_v3  ;;  %v11703_v23 = vld [vmem:[#allocation127_spill] sm:$0xff]  ;;  %v11710_v3 = vld [vmem:[#allocation62_spill] sm:$0xff] }
 0xbf3   : > { %v2209_v34 = vmul.f32 %v9414_v11, %v11697_v53  ;;  %v2386_v20 = vadd.f32 %v2370_v48, %v2305_v39  ;;  %v2385_v49 = vadd.f32 %v2369_v58, %v2304_v42  ;;  %v2290_v50 = vmul.f32 %v9582_v1, %v11698_v25  ;;  %v11711_v53 = vld [vmem:[#allocation100_spill] sm:$0xff] }
 0xbf4   : > { %v2476_v14 = vadd.f32 %v2460_v29, %v2395_v40  ;;  %v2477_v30 = vadd.f32 %v2461_v26, %v2396_v56  ;;  %v2291_v33 = vmul.f32 %v9582_v1, %v11699_v37  ;;  %v2226_v52 = vadd.f32 %v2210_v0, %v2145_v44  ;;  %v11706_v26 = vld [vmem:[#allocation5_spill] sm:$0xff]  ;;  %v11709_v56 = vld [vmem:[#allocation90_spill] sm:$0xff]  ;;  %v11714_v25 = vld [vmem:[#allocation116_spill] sm:$0xff] }
 0xbf5   : > { %v2466_v41 = vadd.f32 %v2450_v10, %v2385_v49  ;;  %v2467_v4 = vadd.f32 %v2451_v57, %v2386_v20  ;;  %v2225_v63 = vadd.f32 %v2209_v34, %v2144_v17  ;;  %v2371_v58 = vmul.f32 %v9734_v60, %v11702_v62  ;;  %v11707_v57 = vld [vmem:[#allocation145_spill] sm:$0xff]  ;;  %v11721_v62 = vld [vmem:[#allocation95_spill] sm:$0xff] }
 0xbf6   : > { %v2372_v28 = vmul.f32 %v9734_v60, %v11703_v23  ;;  %v2068_v38 = vadd.f32 %v10097_v18, %v10087_v54  ;;  %v2132_v42 = vmul.f32 %v9344_v24, %v11706_v26  ;;  %v2307_v19 = vadd.f32 %v2291_v33, %v2226_v52  ;;  %v11708_v44 = vld [vmem:[#allocation141_spill] sm:$0xff]  ;;  %v11723_v26 = vld [vmem:[#allocation146_spill] sm:$0xff] }
 0xbf7   : > { %v4936_v6 = vpop.permute.xlu2 %4935  ;;  %v2306_v10 = vadd.f32 %v2290_v50, %v2225_v63  ;;  %v2453_v17 = vmul.f32 %v9736_v45, %v11707_v57  ;;  %v2452_v40 = vmul.f32 %v9736_v45, %v11708_v44  ;;  %v2054_v54 = vmul.f32 %v9303_v31, %v11709_v56 }
 0xbf8   : > { %v4938_v7 = vunpack.i.h.bf16 %v4936_v6  ;;  %v4937_v61 = vunpack.i.l.bf16 %v4936_v6  ;;  %v4911_v35 = vpop.permute.xlu1 %4910  ;;  %v2069_v18 = vadd.f32 %v10050_v32, %v10100_v47  ;;  %v2213_v0 = vmul.f32 %v9414_v11, %v11710_v3  ;;  %v11712_v32 = vld [vmem:[#allocation220_spill] sm:$0xff] }
 0xbf9   : > { %v4913_v55 = vunpack.i.h.bf16 %v4911_v35  ;;  %v4912_v59 = vunpack.i.l.bf16 %v4911_v35  ;;  %v2214_v34 = vmul.f32 %v9414_v11, %v11711_v53  ;;  %v1989_v20 = vadd.f32 %v9956_v46, %v10103_v21  ;;  %v11716_v35 = vld [vmem:[#allocation65_spill] sm:$0xff] }
 0xbfa   : > { %v4576_v51 = vsel %vm11700_vm14, %v2477_v30, %v4938_v7  ;;  %v4575_v2 = vsel %vm11701_vm10, %v2476_v14, %v4937_v61  ;;  %v2149_v49 = vadd.f32 %v10115_v16, %v2068_v38  ;;  %v2387_v6 = vadd.f32 %v2371_v58, %v2306_v10  ;;  %v11713_v7 = vld [vmem:[#allocation114_spill] sm:$0xff] }
 0xbfb   : > { %v4592_v9 = vpack.c.bf16 %v4576_v51, %v4576_v51  ;;  %v4591_v48 = vpack.c.bf16 %v4575_v2, %v4575_v2  ;;  %v4566_v43 = vsel %vm11704_vm13, %v2467_v4, %v4913_v55  ;;  %v4565_v29 = vsel %vm11705_vm7, %v2466_v41, %v4912_v59  ;;  %v11715_v41 = vld [vmem:[#allocation203_spill] sm:$0xff]  ;;  %v11718_v59 = vld [vmem:[#allocation130_spill] sm:$0xff] }
 0xbfc   : > { %v4582_v39 = vpack.c.bf16 %v4566_v43, %v4566_v43  ;;  %v4581_v27 = vpack.c.bf16 %v4565_v29, %v4565_v29  ;;  %v2388_v14 = vadd.f32 %v2372_v28, %v2307_v19  ;;  %v2148_v30 = vadd.f32 %v2132_v42, %v10082_v13  ;;  %v11722_v29 = vld [vmem:[#allocation148_spill] sm:$0xff]  ;;  %v11724_v10 = vld [vmem:[#allocation98_spill] sm:$0xff] }
 0xbfd   : > { %4609 = vst.msk [vmem:[%s9998_s14 + $0x34] sm:$0xf] %vm4595_vm11, %v4592_v9  ;;  %v1830_v47 = vadd.f32 %v11712_v32, %v9942_v5  ;;  %v2294_v61 = vmul.f32 %v9582_v1, %v11713_v7  ;;  %v2295_v50 = vmul.f32 %v9582_v1, %v11714_v25  ;;  %v2468_v46 = vadd.f32 %v2452_v40, %v2387_v6  ;;  %v11717_v5 = vld [vmem:[#allocation133_spill] sm:$0xff]  ;;  %v11725_v19 = vld [vmem:[#allocation102_spill] sm:$0xff] }
 0xbfe   : > { %4608 = vst.msk [vmem:[%s9998_s14 + $0x30] sm:$0xf] %vm4595_vm11, %v4591_v48  ;;  %v2469_v33 = vadd.f32 %v2453_v17, %v2388_v14  ;;  %v1828_v4 = vadd.f32 %v11715_v41, %v9902_v15  ;;  %v2134_v13 = vmul.f32 %v9344_v24, %v11716_v35  ;;  %v2229_v51 = vadd.f32 %v2213_v0, %v2148_v30  ;;  %v11726_v17 = vld [vmem:[#allocation79_spill] sm:$0xff]  ;;  %v11734_v41 = vld [vmem:[#allocation12_spill] sm:$0xff] }
 0xbff   : > { %4599 = vst.msk [vmem:[%s9998_s14 + $0xc] sm:$0xf] %vm4595_vm11, %v4582_v39  ;;  %v2230_v2 = vadd.f32 %v2214_v34, %v2149_v49  ;;  %v2376_v55 = vmul.f32 %v9734_v60, %v11717_v5  ;;  %v2375_v52 = vmul.f32 %v9734_v60, %v11718_v59  ;;  %v1912_v48 = vadd.f32 %v9918_v36, %v1830_v47  ;;  %v11728_v34 = vld [vmem:[#allocation117_spill] sm:$0xff]  ;;  %v11729_v47 = vld [vmem:[#allocation4_spill] sm:$0xff]  ;;  %v11736_v5 = vld [vmem:[#allocation147_spill] sm:$0xff] }
 0xc00   : > { %4598 = vst.msk [vmem:[%s9998_s14 + $0x8] sm:$0xf] %vm4595_vm11, %v4581_v27  ;;  %v4916_v37 = vpop.permute.xlu0 %4915  ;;  %v2135_v15 = vmul.f32 %v9344_v24, %v11721_v62  ;;  %v2310_v28 = vadd.f32 %v2294_v61, %v2229_v51  ;;  %v2456_v38 = vmul.f32 %v9736_v45, %v11722_v29  ;;  %v2457_v42 = vmul.f32 %v9736_v45, %v11723_v26  ;;  %v11735_v51 = vld [vmem:[#allocation151_spill] sm:$0xff]  ;;  %v11737_v59 = vld [vmem:[#allocation97_spill] sm:$0xff]  ;;  %v11739_v62 = vld [vmem:[#allocation106_spill] sm:$0xff] }
 0xc01   : > { %v4918_v21 = vunpack.i.h.bf16 %v4916_v37  ;;  %v4917_v16 = vunpack.i.l.bf16 %v4916_v37  ;;  %v2311_v43 = vadd.f32 %v2295_v50, %v2230_v2  ;;  %v1911_v39 = vadd.f32 %v9930_v22, %v1828_v4  ;;  %v11731_v37 = vld [vmem:[#allocation132_spill] sm:$0xff]  ;;  %v11741_v26 = vld [vmem:[#allocation121_spill] sm:$0xff] }
 0xc02   : > { %v2070_v27 = vadd.f32 %v2054_v54, %v1989_v20  ;;  %v2216_v36 = vmul.f32 %v9414_v11, %v11724_v10  ;;  %v2215_v57 = vmul.f32 %v9414_v11, %v11725_v19  ;;  %v2057_v44 = vmul.f32 %v9303_v31, %v11726_v17  ;;  %v11727_v54 = vld [vmem:[#allocation115_spill] sm:$0xff]  ;;  %v11740_v29 = vld [vmem:[#allocation120_spill] sm:$0xff] }
 0xc03   : > { %v4568_v63 = vsel %vm11719_vm15, %v2469_v33, %v4918_v21  ;;  %v4567_v9 = vsel %vm11720_vm6, %v2468_v46, %v4917_v16  ;;  %v2150_v40 = vadd.f32 %v2134_v13, %v2069_v18  ;;  %v2392_v56 = vadd.f32 %v2376_v55, %v2311_v43 }
 0xc04   : > { %v4584_v58 = vpack.c.bf16 %v4568_v63, %v4568_v63  ;;  %v4583_v23 = vpack.c.bf16 %v4567_v9, %v4567_v9  ;;  %v2391_v3 = vadd.f32 %v2375_v52, %v2310_v28  ;;  %v1993_v0 = vadd.f32 %v10016_v12, %v1912_v48  ;;  %v11730_v12 = vld [vmem:[#allocation131_spill] sm:$0xff]  ;;  %v11738_v9 = vld [vmem:[#allocation101_spill] sm:$0xff] }
 0xc05   : > { %v2151_v22 = vadd.f32 %v2135_v15, %v2070_v27  ;;  %v2296_v53 = vmul.f32 %v9582_v1, %v11727_v54  ;;  %v2297_v20 = vmul.f32 %v9582_v1, %v11728_v34  ;;  %v2473_v14 = vadd.f32 %v2457_v42, %v2392_v56 }
 0xc06   : > { %4601 = vst.msk [vmem:[%s9998_s14 + $0x14] sm:$0xf] %vm4595_vm11, %v4584_v58  ;;  %v2472_v6 = vadd.f32 %v2456_v38, %v2391_v3  ;;  %v2058_v18 = vmul.f32 %v9303_v31, %v11729_v47  ;;  %v1992_v7 = vadd.f32 %v9969_v8, %v1911_v39  ;;  %v2231_v25 = vadd.f32 %v2215_v57, %v2150_v40  ;;  %v11742_v57 = vld [vmem:[#allocation139_spill] sm:$0xff] }
 0xc07   : > { %4600 = vst.msk [vmem:[%s9998_s14 + $0x10] sm:$0xf] %vm4595_vm11, %v4583_v23  ;;  %v2232_v61 = vadd.f32 %v2216_v36, %v2151_v22  ;;  %v2377_v50 = vmul.f32 %v9734_v60, %v11730_v12  ;;  %v2378_v33 = vmul.f32 %v9734_v60, %v11731_v37  ;;  %v2138_v31 = vmul.f32 %v9344_v24, %v11734_v41 }
 0xc08   : > { %v4926_v49 = vpop.permute.xlu0 %4925  ;;  %v2074_v16 = vadd.f32 %v2058_v18, %v1993_v0  ;;  %v2312_v35 = vadd.f32 %v2296_v53, %v2231_v25  ;;  %v2459_v2 = vmul.f32 %v9736_v45, %v11735_v51  ;;  %v2458_v55 = vmul.f32 %v9736_v45, %v11736_v5  ;;  %v11746_v53 = vld [vmem:[#allocation153_spill] sm:$0xff] }
 0xc09   : > { %v4928_v30 = vunpack.i.h.bf16 %v4926_v49  ;;  %v4927_v32 = vunpack.i.l.bf16 %v4926_v49  ;;  %v2313_v13 = vadd.f32 %v2297_v20, %v2232_v61  ;;  %v2139_v52 = vmul.f32 %v9344_v24, %v11737_v59  ;;  %v11747_v20 = vld [vmem:[#allocation152_spill] sm:$0xff] }
 0xc0a   : > { %v2073_v63 = vadd.f32 %v2057_v44, %v1992_v7  ;;  %v2219_v48 = vmul.f32 %v9414_v11, %v11738_v9  ;;  %v2220_v15 = vmul.f32 %v9414_v11, %v11739_v62  ;;  %v2393_v58 = vadd.f32 %v2377_v50, %v2312_v35  ;;  %v11743_v44 = vld [vmem:[#allocation135_spill] sm:$0xff] }
 0xc0b   : > { %v4572_v46 = vsel %vm11732_vm12, %v2473_v14, %v4928_v30  ;;  %v4571_v21 = vsel %vm11733_vm8, %v2472_v6, %v4927_v32  ;;  %v2394_v23 = vadd.f32 %v2378_v33, %v2313_v13  ;;  %v2155_v43 = vadd.f32 %v2139_v52, %v2074_v16 }
 0xc0c   : > { %v4588_v4 = vpack.c.bf16 %v4572_v46, %v4572_v46  ;;  %v4587_v8 = vpack.c.bf16 %v4571_v21, %v4571_v21  ;;  %v2154_v28 = vadd.f32 %v2138_v31, %v2073_v63  ;;  %v2300_v38 = vmul.f32 %v9582_v1, %v11740_v29 }
 0xc0d   : > { %v2301_v24 = vmul.f32 %v9582_v1, %v11741_v26  ;;  %v2475_v39 = vadd.f32 %v2459_v2, %v2394_v23  ;;  %v2474_v27 = vadd.f32 %v2458_v55, %v2393_v58  ;;  %v2236_v19 = vadd.f32 %v2220_v15, %v2155_v43 }
 0xc0e   : > { %4605 = vst.msk [vmem:[%s9998_s14 + $0x24] sm:$0xf] %vm4595_vm11, %v4588_v4  ;;  %v2235_v36 = vadd.f32 %v2219_v48, %v2154_v28  ;;  %v2382_v17 = vmul.f32 %v9734_v60, %v11742_v57  ;;  %v2381_v40 = vmul.f32 %v9734_v60, %v11743_v44  ;;  %v2462_v34 = vmul.f32 %v9736_v45, %v11746_v53 }
 0xc0f   : > { %4604 = vst.msk [vmem:[%s9998_s14 + $0x20] sm:$0xf] %vm4595_vm11, %v4587_v8  ;;  %v2317_v54 = vadd.f32 %v2301_v24, %v2236_v19  ;;  %v2463_v49 = vmul.f32 %v9736_v45, %v11747_v20 }
 0xc10   : > { %v4931_v42 = vpop.permute.xlu1 %4930  ;;  %v2316_v22 = vadd.f32 %v2300_v38, %v2235_v36 }
 0xc11   : > { %v4933_v10 = vunpack.i.h.bf16 %v4931_v42  ;;  %v4932_v11 = vunpack.i.l.bf16 %v4931_v42  ;;  %v2398_v6 = vadd.f32 %v2382_v17, %v2317_v54 }
 0xc12   : > { %v2397_v60 = vadd.f32 %v2381_v40, %v2316_v22 }
 0xc13   : > { %v4574_v56 = vsel %vm11744_vm9, %v2475_v39, %v4933_v10  ;;  %v4573_v3 = vsel %vm11745_vm0, %v2474_v27, %v4932_v11  ;;  %v2479_v32 = vadd.f32 %v2463_v49, %v2398_v6 }
 0xc14   : > { %v4590_v1 = vpack.c.bf16 %v4574_v56, %v4574_v56  ;;  %v4589_v0 = vpack.c.bf16 %v4573_v3, %v4573_v3  ;;  %v2478_v30 = vadd.f32 %v2462_v34, %v2397_v60 }
 0xc16   : > { %4607 = vst.msk [vmem:[%s9998_s14 + $0x2c] sm:$0xf] %vm4595_vm11, %v4590_v1 }
 0xc17   : > { %4606 = vst.msk [vmem:[%s9998_s14 + $0x28] sm:$0xf] %vm4595_vm11, %v4589_v0 }
 0xc18   : > { %v4941_v14 = vpop.permute.xlu0 %4940 }
 0xc19   : > { %v4943_v47 = vunpack.i.h.bf16 %v4941_v14  ;;  %v4942_v18 = vunpack.i.l.bf16 %v4941_v14 }
 0xc1b   : > { %v4578_v7 = vsel %vm11748_vm2, %v2479_v32, %v4943_v47  ;;  %v4577_v61 = vsel %vm11749_vm1, %v2478_v30, %v4942_v18 }
 0xc1c   : > { %v4594_v25 = vpack.c.bf16 %v4578_v7, %v4578_v7  ;;  %v4593_v12 = vpack.c.bf16 %v4577_v61, %v4577_v61 }
 0xc1e   : > { %4611 = vst.msk [vmem:[%s9998_s14 + $0x3c] sm:$0xf] %vm4595_vm11, %v4594_v25 }
 0xc1f   : > { %4610 = vst.msk [vmem:[%s9998_s14 + $0x38] sm:$0xf] %vm4595_vm11, %v4593_v12 }
 0xc20 PF: > { %s14_s15 = sadd.s32 1, %s5102_s15  }
 0xc21   : > { %p11_p4 = scmp.ge.s32.totalorder %s14_s15, 4  }
 0xc23   :  { %13 = sbr.rel (!%p11_p4) target bundleno = 1 (0x1), region = 69 }

// kernel: text_encoder_forward.14
= control target key start
LH: loop header
LB: loop body
LE: loop exit
PB: predicated region body
PF: predicated region fallthrough
CT: control target
= control target key end

     0   :  { %vm291_vm0 = vcmask 523264   ;;  %vm518_vm1 = vcmask 261120   ;;  %s1239_s1 = inlined_call_operand.vmem [shape: bf16[192,32], index: 1, kind: input, shape index: {}]   ;;  %s1240_s0 = inlined_call_operand.vmem [shape: bf16[256,192], index: 0, kind: input, shape index: {}]   ;;  %s1241_s2 = inlined_call_operand.vmem [shape: f32[1,32], index: 2, kind: input, shape index: {}]   ;;  %s1242_s3 = inlined_call_operand.vmem [shape: f32[256,32], index: 3, kind: output, shape index: {}]  }
   0x1   :  { %v786_v0 = vld [vmem:[%s1239_s1 + $0x38] sm:$0xff]  ;;  %v785_v2 = vld [vmem:[%s1239_s1 + $0x30] sm:$0xff]  ;;  %v784_v4 = vld [vmem:[%s1239_s1 + $0x28] sm:$0xff] }
   0x2   :  { %v790_v1 = vld [vmem:[%s1239_s1 + $0x58] sm:$0xff]  ;;  %340 = vmatpush.bf16.msra.mxu0 %v786_v0  ;;  %791 = vmatpush.bf16.msra.mxu2 %v786_v0  ;;  %v789_v3 = vld [vmem:[%s1239_s1 + $0x50] sm:$0xff]  ;;  %v788_v5 = vld [vmem:[%s1239_s1 + $0x48] sm:$0xff] }
   0x3   :  { %433 = vmatpush.bf16.msra.mxu1 %v790_v1  ;;  %799 = vmatpush.bf16.msra.mxu3 %v790_v1  ;;  %v783_v6 = vld [vmem:[%s1239_s1 + $0x20] sm:$0xff]  ;;  %v559_v9 = vld [vmem:[%s1240_s0 + $0x8] sm:$0xf0]  ;;  %v765_v10 = vld [vmem:[%s1240_s0 + $0x94] sm:$0xf] }
   0x4   :  { %v787_v7 = vld [vmem:[%s1239_s1 + $0x40] sm:$0xff]  ;;  %v631_v11 = vld [vmem:[%s1240_s0 + $0x98] sm:$0xf0]  ;;  %v781_v15 = vld [vmem:[%s1239_s1 + $0x10] sm:$0xff] }
   0x5   :  { %v747_v8 = vld [vmem:[%s1240_s0 + $0x4] sm:$0xf]  ;;  %v782_v13 = vld [vmem:[%s1239_s1 + $0x18] sm:$0xff]  ;;  %v634_v14 = vor.u32 %v765_v10, %v631_v11  ;;  %v780_v16 = vld [vmem:[%s1239_s1 + $0x8] sm:$0xff] }
   0x6   :  { %341 = vmatpush.bf16.msra.mxu0 %v785_v2  ;;  %792 = vmatpush.bf16.msra.mxu2 %v785_v2  ;;  %v562_v12 = vor.u32 %v747_v8, %v559_v9  ;;  %v779_v17 = vld [vmem:[%s1239_s1] sm:$0xff]  ;;  %v748_v19 = vld [vmem:[%s1240_s0 + $0x4] sm:$0xf0]  ;;  %v749_v22 = vld [vmem:[%s1240_s0 + $0x14] sm:$0xf] }
   0x7   :  { %434 = vmatpush.bf16.msra.mxu1 %v789_v3  ;;  %800 = vmatpush.bf16.msra.mxu3 %v789_v3  ;;  %v557_v18 = vld [vmem:[%s1240_s0] sm:$0xf]  ;;  %v764_v21 = vld [vmem:[%s1240_s0 + $0x84] sm:$0xf0]  ;;  %v567_v23 = vld [vmem:[%s1240_s0 + $0x18] sm:$0xf0] }
   0x8   :  { %v621_v20 = vld [vmem:[%s1240_s0 + $0x80] sm:$0xf]  ;;  %v767_v24 = vld [vmem:[%s1240_s0 + $0xa4] sm:$0xf]  ;;  %v639_v25 = vld [vmem:[%s1240_s0 + $0xa8] sm:$0xf0]  ;;  %v558_v26 = vor.u32 %v748_v19, %v557_v18  ;;  %v570_v28 = vor.u32 %v749_v22, %v567_v23 }
   0x9   :  { %v622_v27 = vor.u32 %v764_v21, %v621_v20  ;;  %v642_v29 = vor.u32 %v767_v24, %v639_v25  ;;  %v565_v30 = vld [vmem:[%s1240_s0 + $0x10] sm:$0xf]  ;;  %v750_v31 = vld [vmem:[%s1240_s0 + $0x14] sm:$0xf0]  ;;  %v751_v34 = vld [vmem:[%s1240_s0 + $0x24] sm:$0xf] }
   0xa   :  { %342 = vmatpush.bf16.msra.mxu0 %v784_v4  ;;  %793 = vmatpush.bf16.msra.mxu2 %v784_v4  ;;  %v629_v32 = vld [vmem:[%s1240_s0 + $0x90] sm:$0xf]  ;;  %v766_v33 = vld [vmem:[%s1240_s0 + $0x94] sm:$0xf0]  ;;  %v575_v35 = vld [vmem:[%s1240_s0 + $0x28] sm:$0xf0]  ;;  %v566_v38 = vor.u32 %v750_v31, %v565_v30 }
   0xb   :  { %435 = vmatpush.bf16.msra.mxu1 %v788_v5  ;;  %801 = vmatpush.bf16.msra.mxu3 %v788_v5  ;;  %v769_v36 = vld [vmem:[%s1240_s0 + $0xb4] sm:$0xf]  ;;  %v647_v37 = vld [vmem:[%s1240_s0 + $0xb8] sm:$0xf0]  ;;  %v630_v39 = vor.u32 %v766_v33, %v629_v32  ;;  %v578_v40 = vor.u32 %v751_v34, %v575_v35  ;;  %v573_v42 = vld [vmem:[%s1240_s0 + $0x20] sm:$0xf] }
   0xc   :  { %v650_v41 = vor.u32 %v769_v36, %v647_v37  ;;  %v752_v43 = vld [vmem:[%s1240_s0 + $0x24] sm:$0xf0]  ;;  %v637_v44 = vld [vmem:[%s1240_s0 + $0xa0] sm:$0xf]  ;;  %v753_v46 = vld [vmem:[%s1240_s0 + $0x34] sm:$0xf] }
   0xd   :  { %v768_v45 = vld [vmem:[%s1240_s0 + $0xa4] sm:$0xf0]  ;;  %v583_v47 = vld [vmem:[%s1240_s0 + $0x38] sm:$0xf0]  ;;  %v771_v48 = vld [vmem:[%s1240_s0 + $0xc4] sm:$0xf]  ;;  %v574_v50 = vor.u32 %v752_v43, %v573_v42 }
   0xe   :  { %343 = vmatpush.bf16.msra.mxu0 %v783_v6  ;;  %794 = vmatpush.bf16.msra.mxu2 %v783_v6  ;;  %v655_v49 = vld [vmem:[%s1240_s0 + $0xc8] sm:$0xf0]  ;;  %v638_v51 = vor.u32 %v768_v45, %v637_v44  ;;  %v586_v52 = vor.u32 %v753_v46, %v583_v47  ;;  %v581_v54 = vld [vmem:[%s1240_s0 + $0x30] sm:$0xf]  ;;  %v754_v55 = vld [vmem:[%s1240_s0 + $0x34] sm:$0xf0] }
   0xf   :  { %436 = vmatpush.bf16.msra.mxu1 %v787_v7  ;;  %802 = vmatpush.bf16.msra.mxu3 %v787_v7  ;;  %v658_v53 = vor.u32 %v771_v48, %v655_v49  ;;  %v645_v56 = vld [vmem:[%s1240_s0 + $0xb0] sm:$0xf]  ;;  %v770_v57 = vld [vmem:[%s1240_s0 + $0xb4] sm:$0xf0]  ;;  %v755_v58 = vld [vmem:[%s1240_s0 + $0x44] sm:$0xf]  ;;  %v582_v62 = vor.u32 %v754_v55, %v581_v54 }
  0x10   :  { %v591_v59 = vld [vmem:[%s1240_s0 + $0x48] sm:$0xf0]  ;;  %v773_v60 = vld [vmem:[%s1240_s0 + $0xd4] sm:$0xf]  ;;  %v663_v61 = vld [vmem:[%s1240_s0 + $0xd8] sm:$0xf0]  ;;  %v646_v63 = vor.u32 %v770_v57, %v645_v56 }
  0x11   :  { %v594_v0 = vor.u32 %v755_v58, %v591_v59  ;;  %v666_v1 = vor.u32 %v773_v60, %v663_v61  ;;  %v589_v2 = vld [vmem:[%s1240_s0 + $0x40] sm:$0xf]  ;;  %v756_v3 = vld [vmem:[%s1240_s0 + $0x44] sm:$0xf0]  ;;  %v757_v6 = vld [vmem:[%s1240_s0 + $0x54] sm:$0xf] }
  0x12   :  { %731 = vmatmul.msk.bf16.vlgmr.msra.gmra.mxu1 %vm291_vm0, %v562_v12  ;;  %344 = vmatpush.bf16.msra.mxu0 %v782_v13  ;;  %v653_v4 = vld [vmem:[%s1240_s0 + $0xc0] sm:$0xf]  ;;  %v772_v5 = vld [vmem:[%s1240_s0 + $0xc4] sm:$0xf0]  ;;  %v599_v7 = vld [vmem:[%s1240_s0 + $0x58] sm:$0xf0]  ;;  %v590_v10 = vor.u32 %v756_v3, %v589_v2 }
  0x13   :  { %795 = vmatpush.bf16.msra.mxu2 %v782_v13  ;;  %740 = vmatmul.msk.bf16.vlgmr.msra.gmra.mxu3 %vm291_vm0, %v634_v14  ;;  %v775_v8 = vld [vmem:[%s1240_s0 + $0xe4] sm:$0xf]  ;;  %v671_v9 = vld [vmem:[%s1240_s0 + $0xe8] sm:$0xf0]  ;;  %v654_v11 = vor.u32 %v772_v5, %v653_v4  ;;  %v602_v12 = vor.u32 %v757_v6, %v599_v7  ;;  %v597_v14 = vld [vmem:[%s1240_s0 + $0x50] sm:$0xf] }
  0x14   :  { %v674_v13 = vor.u32 %v775_v8, %v671_v9  ;;  %v759_v18 = vld [vmem:[%s1240_s0 + $0x64] sm:$0xf]  ;;  %v607_v19 = vld [vmem:[%s1240_s0 + $0x68] sm:$0xf0]  ;;  %v777_v20 = vld [vmem:[%s1240_s0 + $0xf4] sm:$0xf] }
  0x15   :  { %v679_v21 = vld [vmem:[%s1240_s0 + $0xf8] sm:$0xf0]  ;;  %v610_v24 = vor.u32 %v759_v18, %v607_v19  ;;  %v761_v30 = vld [vmem:[%s1240_s0 + $0x74] sm:$0xf]  ;;  %v613_v35 = vld [vmem:[%s1240_s0 + $0x70] sm:$0xf] }
  0x16   :  { %345 = vmatpush.bf16.msra.mxu0 %v781_v15  ;;  %v682_v25 = vor.u32 %v777_v20, %v679_v21  ;;  %v615_v31 = vld [vmem:[%s1240_s0 + $0x78] sm:$0xf0]  ;;  %v762_v36 = vld [vmem:[%s1240_s0 + $0x74] sm:$0xf0]  ;;  %v677_v37 = vld [vmem:[%s1240_s0 + $0xf0] sm:$0xf] }
  0x17   :  { %796 = vmatpush.bf16.msra.mxu2 %v781_v15  ;;  %v758_v15 = vld [vmem:[%s1240_s0 + $0x54] sm:$0xf0]  ;;  %v618_v34 = vor.u32 %v761_v30, %v615_v31  ;;  %v1071_v46 = vld [vmem:[%s1241_s2] ss:$0 sm:$0xff] }
  0x18   :  { %v598_v22 = vor.u32 %v758_v15, %v597_v14 }
  0x1a   :  { %346 = vmatpush.bf16.msra.mxu0 %v780_v16 }
  0x1b   :  { %797 = vmatpush.bf16.msra.mxu2 %v780_v16  ;;  %v661_v16 = vld [vmem:[%s1240_s0 + $0xd0] sm:$0xf] }
  0x1e   :  { %347 = vmatpush.bf16.msra.mxu0 %v779_v17 }
  0x1f   :  { %798 = vmatpush.bf16.msra.mxu2 %v779_v17  ;;  %v774_v17 = vld [vmem:[%s1240_s0 + $0xd4] sm:$0xf0] }
  0x20   :  { %v662_v23 = vor.u32 %v774_v17, %v661_v16 }
  0x21   :  { %348 = vmatmul.bf16.vlgmr.msra.gmra.mxu0 %v558_v26  ;;  %v605_v26 = vld [vmem:[%s1240_s0 + $0x60] sm:$0xf] }
  0x22   :  { %388 = vmatmul.bf16.vlgmr.msra.gmra.mxu2 %v622_v27  ;;  %732 = vmatmul.msk.bf16.gmra.mxu1 %vm291_vm0, %v570_v28  ;;  %v760_v27 = vld [vmem:[%s1240_s0 + $0x64] sm:$0xf0]  ;;  %v669_v28 = vld [vmem:[%s1240_s0 + $0xe0] sm:$0xf] }
  0x23   :  { %741 = vmatmul.msk.bf16.gmra.mxu3 %vm291_vm0, %v642_v29  ;;  %v776_v29 = vld [vmem:[%s1240_s0 + $0xe4] sm:$0xf0]  ;;  %v606_v32 = vor.u32 %v760_v27, %v605_v26 }
  0x24   :  { %v670_v33 = vor.u32 %v776_v29, %v669_v28 }
  0x31   :  { %353 = vmatmul.bf16.gmra.mxu0 %v566_v38  ;;  %v778_v38 = vld [vmem:[%s1240_s0 + $0xf4] sm:$0xf0] }
  0x32   :  { %393 = vmatmul.bf16.gmra.mxu2 %v630_v39  ;;  %733 = vmatmul.msk.bf16.gmra.mxu1 %vm291_vm0, %v578_v40  ;;  %v763_v39 = vld [vmem:[%s1240_s0 + $0x84] sm:$0xf]  ;;  %v623_v40 = vld [vmem:[%s1240_s0 + $0x88] sm:$0xf0]  ;;  %v678_v42 = vor.u32 %v778_v38, %v677_v37 }
  0x33   :  { %742 = vmatmul.msk.bf16.gmra.mxu3 %vm291_vm0, %v650_v41  ;;  %v614_v41 = vor.u32 %v762_v36, %v613_v35  ;;  %v626_v43 = vor.u32 %v763_v39, %v623_v40 }
  0x41   :  { %358 = vmatmul.bf16.gmra.mxu0 %v574_v50 }
  0x42   :  { %398 = vmatmul.bf16.gmra.mxu2 %v638_v51  ;;  %734 = vmatmul.msk.bf16.gmra.mxu1 %vm291_vm0, %v586_v52 }
  0x43   :  { %743 = vmatmul.msk.bf16.gmra.mxu3 %vm291_vm0, %v658_v53 }
  0x51   :  { %363 = vmatmul.bf16.gmra.mxu0 %v582_v62 }
  0x52   :  { %403 = vmatmul.bf16.gmra.mxu2 %v646_v63  ;;  %735 = vmatmul.msk.bf16.gmra.mxu1 %vm291_vm0, %v594_v0 }
  0x53   :  { %744 = vmatmul.msk.bf16.gmra.mxu3 %vm291_vm0, %v666_v1 }
  0x61   :  { %368 = vmatmul.bf16.gmra.mxu0 %v590_v10 }
  0x62   :  { %408 = vmatmul.bf16.gmra.mxu2 %v654_v11  ;;  %736 = vmatmul.msk.bf16.gmra.mxu1 %vm291_vm0, %v602_v12 }
  0x63   :  { %745 = vmatmul.msk.bf16.gmra.mxu3 %vm291_vm0, %v674_v13 }
  0x71   :  { %373 = vmatmul.bf16.gmra.mxu0 %v598_v22 }
  0x72   :  { %413 = vmatmul.bf16.gmra.mxu2 %v662_v23  ;;  %737 = vmatmul.msk.bf16.gmra.mxu1 %vm291_vm0, %v610_v24 }
  0x73   :  { %746 = vmatmul.msk.bf16.gmra.mxu3 %vm291_vm0, %v682_v25 }
  0x81   :  { %378 = vmatmul.bf16.gmra.mxu0 %v606_v32 }
  0x82   :  { %418 = vmatmul.bf16.gmra.mxu2 %v670_v33  ;;  %738 = vmatmul.msk.bf16.gmra.mxu1 %vm291_vm0, %v618_v34 }
  0x8f   :  { %v438_v44 = vpop.f32.mrf.mxu1 }
  0x91   :  { %383 = vmatmul.bf16.gmra.mxu0 %v614_v41 }
  0x92   :  { %423 = vmatmul.bf16.gmra.mxu2 %v678_v42  ;;  %739 = vmatmul.msk.bf16.gmra.mxu1 %vm291_vm0, %v626_v43 }
  0x96   :  { %v483_v47 = vpop.f32.mrf.mxu3 }
  0x97   :  { %v440_v45 = vpop.f32.mrf.mxu1 }
  0x9e   :  { %v349_v48 = vpop.f32.mrf.mxu0  ;;  %v485_v56 = vpop.f32.mrf.mxu3 }
  0x9f   :  { %v350_v49 = vadd.f32 %v1071_v46, %v349_v48  ;;  %v443_v50 = vpop.f32.mrf.mxu1 }
  0xa1   :  { %v439_v51 = vadd.f32 %v438_v44, %v350_v49 }
  0xa3   :  { %519 = vst.msk [vmem:[%s1242_s3] sm:$0xff] %vm518_vm1, %v439_v51 }
  0xa5   :  { %v1078_v52 = vpop.f32.mrf.mxu2 }
  0xa6   :  { %v351_v53 = vpop.f32.mrf.mxu0  ;;  %v488_v63 = vpop.f32.mrf.mxu3 }
  0xa7   :  { %v352_v54 = vadd.f32 %v1071_v46, %v351_v53  ;;  %v445_v55 = vpop.f32.mrf.mxu1 }
  0xa9   :  { %v441_v57 = vadd.f32 %v440_v45, %v352_v54 }
  0xab   :  { %520 = vst.msk [vmem:[%s1242_s3 + $0x8] sm:$0xff] %vm518_vm1, %v441_v57 }
  0xad   :  { %v1085_v58 = vpop.f32.mrf.mxu2 }
  0xae   :  { %v354_v59 = vpop.f32.mrf.mxu0  ;;  %v490_v7 = vpop.f32.mrf.mxu3 }
  0xaf   :  { %v355_v60 = vadd.f32 %v1071_v46, %v354_v59  ;;  %v448_v61 = vpop.f32.mrf.mxu1 }
  0xb1   :  { %v444_v62 = vadd.f32 %v443_v50, %v355_v60 }
  0xb3   :  { %521 = vst.msk [vmem:[%s1242_s3 + $0x10] sm:$0xff] %vm518_vm1, %v444_v62 }
  0xb5   :  { %v394_v0 = vpop.f32.mrf.mxu2 }
  0xb6   :  { %v395_v1 = vadd.f32 %v1071_v46, %v394_v0  ;;  %v356_v2 = vpop.f32.mrf.mxu0  ;;  %v493_v16 = vpop.f32.mrf.mxu3 }
  0xb7   :  { %v357_v3 = vadd.f32 %v1071_v46, %v356_v2  ;;  %v450_v4 = vpop.f32.mrf.mxu1 }
  0xb8   :  { %v484_v5 = vadd.f32 %v483_v47, %v395_v1 }
  0xb9   :  { %v446_v6 = vadd.f32 %v445_v55, %v357_v3 }
  0xba   :  { %537 = vst.msk [vmem:[%s1242_s3 + $0x90] sm:$0xff] %vm518_vm1, %v484_v5 }
  0xbb   :  { %522 = vst.msk [vmem:[%s1242_s3 + $0x18] sm:$0xff] %vm518_vm1, %v446_v6 }
  0xbd   :  { %v396_v8 = vpop.f32.mrf.mxu2 }
  0xbe   :  { %v397_v9 = vadd.f32 %v1071_v46, %v396_v8  ;;  %v359_v10 = vpop.f32.mrf.mxu0  ;;  %v495_v28 = vpop.f32.mrf.mxu3 }
  0xbf   :  { %v360_v11 = vadd.f32 %v1071_v46, %v359_v10  ;;  %v453_v12 = vpop.f32.mrf.mxu1 }
  0xc0   :  { %v486_v13 = vadd.f32 %v485_v56, %v397_v9 }
  0xc1   :  { %v449_v14 = vadd.f32 %v448_v61, %v360_v11 }
  0xc2   :  { %538 = vst.msk [vmem:[%s1242_s3 + $0x98] sm:$0xff] %vm518_vm1, %v486_v13 }
  0xc3   :  { %523 = vst.msk [vmem:[%s1242_s3 + $0x20] sm:$0xff] %vm518_vm1, %v449_v14 }
  0xc5   :  { %v399_v15 = vpop.f32.mrf.mxu2 }
  0xc6   :  { %v400_v17 = vadd.f32 %v1071_v46, %v399_v15  ;;  %v361_v18 = vpop.f32.mrf.mxu0  ;;  %v498_v38 = vpop.f32.mrf.mxu3 }
  0xc7   :  { %v362_v19 = vadd.f32 %v1071_v46, %v361_v18  ;;  %v455_v20 = vpop.f32.mrf.mxu1 }
  0xc8   :  { %v489_v21 = vadd.f32 %v488_v63, %v400_v17 }
  0xc9   :  { %v451_v22 = vadd.f32 %v450_v4, %v362_v19 }
  0xca   :  { %539 = vst.msk [vmem:[%s1242_s3 + $0xa0] sm:$0xff] %vm518_vm1, %v489_v21 }
  0xcb   :  { %524 = vst.msk [vmem:[%s1242_s3 + $0x28] sm:$0xff] %vm518_vm1, %v451_v22 }
  0xcd   :  { %v401_v23 = vpop.f32.mrf.mxu2 }
  0xce   :  { %v402_v24 = vadd.f32 %v1071_v46, %v401_v23  ;;  %v364_v25 = vpop.f32.mrf.mxu0  ;;  %v500_v47 = vpop.f32.mrf.mxu3 }
  0xcf   :  { %v365_v26 = vadd.f32 %v1071_v46, %v364_v25  ;;  %v458_v27 = vpop.f32.mrf.mxu1 }
  0xd0   :  { %v491_v29 = vadd.f32 %v490_v7, %v402_v24 }
  0xd1   :  { %v454_v30 = vadd.f32 %v453_v12, %v365_v26  ;;  %v390_v26 = vadd.f32 %v1071_v46, %v1078_v52 }
  0xd2   :  { %540 = vst.msk [vmem:[%s1242_s3 + $0xa8] sm:$0xff] %vm518_vm1, %v491_v29 }
  0xd3   :  { %525 = vst.msk [vmem:[%s1242_s3 + $0x30] sm:$0xff] %vm518_vm1, %v454_v30 }
  0xd5   :  { %v404_v31 = vpop.f32.mrf.mxu2 }
  0xd6   :  { %v405_v32 = vadd.f32 %v1071_v46, %v404_v31  ;;  %v366_v33 = vpop.f32.mrf.mxu0  ;;  %v503_v57 = vpop.f32.mrf.mxu3 }
  0xd7   :  { %v367_v34 = vadd.f32 %v1071_v46, %v366_v33  ;;  %v460_v35 = vpop.f32.mrf.mxu1 }
  0xd8   :  { %v494_v36 = vadd.f32 %v493_v16, %v405_v32 }
  0xd9   :  { %v456_v37 = vadd.f32 %v455_v20, %v367_v34 }
  0xda   :  { %541 = vst.msk [vmem:[%s1242_s3 + $0xb0] sm:$0xff] %vm518_vm1, %v494_v36 }
  0xdb   :  { %526 = vst.msk [vmem:[%s1242_s3 + $0x38] sm:$0xff] %vm518_vm1, %v456_v37 }
  0xdd   :  { %v406_v39 = vpop.f32.mrf.mxu2 }
  0xde   :  { %v407_v40 = vadd.f32 %v1071_v46, %v406_v39  ;;  %v369_v41 = vpop.f32.mrf.mxu0  ;;  %v505_v6 = vpop.f32.mrf.mxu3 }
  0xdf   :  { %v370_v42 = vadd.f32 %v1071_v46, %v369_v41  ;;  %v463_v43 = vpop.f32.mrf.mxu1 }
  0xe0   :  { %v496_v44 = vadd.f32 %v495_v28, %v407_v40 }
  0xe1   :  { %v459_v45 = vadd.f32 %v458_v27, %v370_v42 }
  0xe2   :  { %542 = vst.msk [vmem:[%s1242_s3 + $0xb8] sm:$0xff] %vm518_vm1, %v496_v44 }
  0xe3   :  { %527 = vst.msk [vmem:[%s1242_s3 + $0x40] sm:$0xff] %vm518_vm1, %v459_v45 }
  0xe5   :  { %v409_v48 = vpop.f32.mrf.mxu2 }
  0xe6   :  { %v410_v49 = vadd.f32 %v1071_v46, %v409_v48  ;;  %v371_v50 = vpop.f32.mrf.mxu0  ;;  %v508_v16 = vpop.f32.mrf.mxu3 }
  0xe7   :  { %v372_v51 = vadd.f32 %v1071_v46, %v371_v50  ;;  %v465_v53 = vpop.f32.mrf.mxu1 }
  0xe8   :  { %v499_v54 = vadd.f32 %v498_v38, %v410_v49 }
  0xe9   :  { %v461_v55 = vadd.f32 %v460_v35, %v372_v51  ;;  %v392_v35 = vadd.f32 %v1071_v46, %v1085_v58 }
  0xea   :  { %543 = vst.msk [vmem:[%s1242_s3 + $0xc0] sm:$0xff] %vm518_vm1, %v499_v54 }
  0xeb   :  { %528 = vst.msk [vmem:[%s1242_s3 + $0x48] sm:$0xff] %vm518_vm1, %v461_v55 }
  0xed   :  { %v411_v56 = vpop.f32.mrf.mxu2 }
  0xee   :  { %v412_v59 = vadd.f32 %v1071_v46, %v411_v56  ;;  %v374_v60 = vpop.f32.mrf.mxu0  ;;  %v510_v24 = vpop.f32.mrf.mxu3 }
  0xef   :  { %v375_v61 = vadd.f32 %v1071_v46, %v374_v60  ;;  %v468_v62 = vpop.f32.mrf.mxu1 }
  0xf0   :  { %v501_v63 = vadd.f32 %v500_v47, %v412_v59 }
  0xf1   :  { %v464_v0 = vadd.f32 %v463_v43, %v375_v61 }
  0xf2   :  { %544 = vst.msk [vmem:[%s1242_s3 + $0xc8] sm:$0xff] %vm518_vm1, %v501_v63 }
  0xf3   :  { %529 = vst.msk [vmem:[%s1242_s3 + $0x50] sm:$0xff] %vm518_vm1, %v464_v0 }
  0xf5   :  { %v414_v1 = vpop.f32.mrf.mxu2 }
  0xf6   :  { %v415_v2 = vadd.f32 %v1071_v46, %v414_v1  ;;  %v376_v3 = vpop.f32.mrf.mxu0  ;;  %v513_v52 = vpop.f32.mrf.mxu3 }
  0xf7   :  { %v377_v4 = vadd.f32 %v1071_v46, %v376_v3  ;;  %v470_v5 = vpop.f32.mrf.mxu1 }
  0xf8   :  { %v504_v7 = vadd.f32 %v503_v57, %v415_v2 }
  0xf9   :  { %v466_v8 = vadd.f32 %v465_v53, %v377_v4 }
  0xfa   :  { %545 = vst.msk [vmem:[%s1242_s3 + $0xd0] sm:$0xff] %vm518_vm1, %v504_v7 }
  0xfb   :  { %530 = vst.msk [vmem:[%s1242_s3 + $0x58] sm:$0xff] %vm518_vm1, %v466_v8 }
  0xfd   :  { %v416_v9 = vpop.f32.mrf.mxu2 }
  0xfe   :  { %v417_v10 = vadd.f32 %v1071_v46, %v416_v9  ;;  %v379_v11 = vpop.f32.mrf.mxu0  ;;  %v515_v44 = vpop.f32.mrf.mxu3 }
  0xff   :  { %v380_v12 = vadd.f32 %v1071_v46, %v379_v11  ;;  %v473_v13 = vpop.f32.mrf.mxu1 }
 0x100   :  { %v506_v14 = vadd.f32 %v505_v6, %v417_v10 }
 0x101   :  { %v469_v15 = vadd.f32 %v468_v62, %v380_v12 }
 0x102   :  { %546 = vst.msk [vmem:[%s1242_s3 + $0xd8] sm:$0xff] %vm518_vm1, %v506_v14 }
 0x103   :  { %531 = vst.msk [vmem:[%s1242_s3 + $0x60] sm:$0xff] %vm518_vm1, %v469_v15 }
 0x105   :  { %v419_v17 = vpop.f32.mrf.mxu2 }
 0x106   :  { %v420_v18 = vadd.f32 %v1071_v46, %v419_v17  ;;  %v381_v19 = vpop.f32.mrf.mxu0 }
 0x107   :  { %v382_v20 = vadd.f32 %v1071_v46, %v381_v19  ;;  %v475_v21 = vpop.f32.mrf.mxu1 }
 0x108   :  { %v509_v22 = vadd.f32 %v508_v16, %v420_v18 }
 0x109   :  { %v471_v23 = vadd.f32 %v470_v5, %v382_v20 }
 0x10a   :  { %547 = vst.msk [vmem:[%s1242_s3 + $0xe0] sm:$0xff] %vm518_vm1, %v509_v22 }
 0x10b   :  { %532 = vst.msk [vmem:[%s1242_s3 + $0x68] sm:$0xff] %vm518_vm1, %v471_v23 }
 0x10d   :  { %v421_v25 = vpop.f32.mrf.mxu2 }
 0x10e   :  { %v422_v27 = vadd.f32 %v1071_v46, %v421_v25  ;;  %v384_v28 = vpop.f32.mrf.mxu0 }
 0x10f   :  { %v385_v29 = vadd.f32 %v1071_v46, %v384_v28  ;;  %v478_v30 = vpop.f32.mrf.mxu1 }
 0x110   :  { %v511_v31 = vadd.f32 %v510_v24, %v422_v27  ;;  %v479_v32 = vadd.f32 %v478_v30, %v390_v26 }
 0x111   :  { %v474_v33 = vadd.f32 %v473_v13, %v385_v29 }
 0x112   :  { %548 = vst.msk [vmem:[%s1242_s3 + $0xe8] sm:$0xff] %vm518_vm1, %v511_v31 }
 0x113   :  { %533 = vst.msk [vmem:[%s1242_s3 + $0x70] sm:$0xff] %vm518_vm1, %v474_v33 }
 0x114   :  { %535 = vst.msk [vmem:[%s1242_s3 + $0x80] sm:$0xff] %vm518_vm1, %v479_v32 }
 0x115   :  { %v424_v34 = vpop.f32.mrf.mxu2 }
 0x116   :  { %v425_v36 = vadd.f32 %v1071_v46, %v424_v34  ;;  %v386_v37 = vpop.f32.mrf.mxu0 }
 0x117   :  { %v387_v38 = vadd.f32 %v1071_v46, %v386_v37  ;;  %v480_v39 = vpop.f32.mrf.mxu1 }
 0x118   :  { %v514_v40 = vadd.f32 %v513_v52, %v425_v36  ;;  %v481_v41 = vadd.f32 %v480_v39, %v392_v35 }
 0x119   :  { %v476_v42 = vadd.f32 %v475_v21, %v387_v38 }
 0x11a   :  { %549 = vst.msk [vmem:[%s1242_s3 + $0xf0] sm:$0xff] %vm518_vm1, %v514_v40 }
 0x11b   :  { %534 = vst.msk [vmem:[%s1242_s3 + $0x78] sm:$0xff] %vm518_vm1, %v476_v42 }
 0x11c   :  { %536 = vst.msk [vmem:[%s1242_s3 + $0x88] sm:$0xff] %vm518_vm1, %v481_v41 }
 0x11d   :  { %v426_v58 = vpop.f32.mrf.mxu2 }
 0x11e   :  { %v427_v43 = vadd.f32 %v1071_v46, %v426_v58 }
 0x120   :  { %v516_v45 = vadd.f32 %v515_v44, %v427_v43 }
 0x122   :  { %550 = vst.msk [vmem:[%s1242_s3 + $0xf8] sm:$0xff] %vm518_vm1, %v516_v45 }

</bundles_post_ra>
